<compile_context>
chip_gen: v7x
topology: tpu7x:2x2x1
jax: 0.10.0
libtpu: 0.0.40
codegen_flags: <defaults>
</compile_context>

<pallas_src>
import math

import jax
import jax.numpy as jnp
from jax import lax
from jax.experimental import pallas as pl
from jax.experimental.pallas import tpu as pltpu

THETA0 = 3              # pooling radius -> kernel_size 7, padding 3
THETA = 2.0
SMOOTH = 1e-5
_W1 = math.exp(-1.0 / (THETA * THETA))   # weight-map value where pooled == 1
_W2 = _W1 * _W1


def _pick_td(D, C, H, W, itemsize, target=8, budget_bytes=8 * 1024 * 1024):
    """Largest divisor of D <= target whose logits block fits a small budget."""
    td = max(1, min(target, D))
    while td > 1 and C * td * H * W * itemsize > budget_bytes:
        td -= 1
    while D % td != 0:
        td -= 1
    return td


def _make_kernel(C, D, H, W, Td, nrows):
    n_dt = D // Td
    n_halo = Td + 2 * THETA0
    win = 2 * THETA0 + 1
    f32 = jnp.float32

    def kernel(logits_ref, labels_ref, out_ref, acc_ref):
        # logits_ref: (1, C, Td, H, W)    labels_ref: (1, D, H, W) int32
        # out_ref:    (1, nrows, 1) f32   acc_ref:    (nrows, H, W) f32 scratch
        dt = pl.program_id(1)

        @pl.when(dt == 0)
        def _init():
            acc_ref[...] = jnp.zeros_like(acc_ref)

        d0 = dt * Td

        # Banded "ones window" matrices: windowed counts along H / W on the MXU.
        # bf16 operands are exact here ({0,1} band, small integer counts);
        # accumulation stays f32.
        ih = lax.broadcasted_iota(jnp.int32, (H, H), 0)
        jh = lax.broadcasted_iota(jnp.int32, (H, H), 1)
        a_h = (jnp.abs(ih - jh) <= THETA0).astype(jnp.bfloat16)
        iw = lax.broadcasted_iota(jnp.int32, (W, W), 0)
        jw = lax.broadcasted_iota(jnp.int32, (W, W), 1)
        a_w = (jnp.abs(iw - jw) <= THETA0).astype(jnp.bfloat16)

        def zeros():
            return jnp.zeros((H, W), f32)

        # ---- labels for this D-tile + THETA0 halo each side (whole D resident) ----
        lab = []
        halo_valid = []
        for j in range(n_halo):
            g = d0 + (j - THETA0)
            if THETA0 <= j < Td + THETA0:            # tile interior: always in range
                lab.append(labels_ref[0, g])
                halo_valid.append(None)
            else:                                    # halo slice: clamp + mask
                gi = jnp.clip(g, 0, D - 1)
                lab.append(labels_ref[0, gi])
                halo_valid.append(
                    jnp.logical_and(g >= 0, g < D).astype(f32))

        # one-hot complements per boundary class; OOB halo slices contribute 0
        # (zero padding == -inf padding for a binary max pool)
        vcomp = [[None] * n_halo for _ in range(C)]
        for c in range(1, C):
            for j in range(n_halo):
                vc = (lab[j] != c).astype(f32)
                if halo_valid[j] is not None:
                    vc = vc * halo_valid[j]
                vcomp[c][j] = vc

        # sliding windowed count along D (incremental update: +new -old)
        scount = [[None] * Td for _ in range(C)]
        for c in range(1, C):
            s = vcomp[c][0]
            for j in range(1, win):
                s = s + vcomp[c][j]
            scount[c][0] = s
            for i in range(1, Td):
                s = s + vcomp[c][i + win - 1] - vcomp[c][i - 1]
                scount[c][i] = s

        # ---- per-tile accumulators (folded into scratch once per grid step) ----
        acc_onehot = [zeros() for _ in range(C)]
        acc_po = [zeros() for _ in range(C)]
        acc_p = [zeros() for _ in range(C)]
        acc_ce = zeros()
        acc_b = [[zeros() for _ in range(5)] for _ in range(C)]   # classes 1..C-1

        for i in range(Td):
            lg = [logits_ref[0, c, i].astype(f32) for c in range(C)]
            m = lg[0]
            for c in range(1, C):
                m = jnp.maximum(m, lg[c])
            e = [jnp.exp(lg[c] - m) for c in range(C)]
            den = e[0]
            for c in range(1, C):
                den = den + e[c]
            inv_den = 1.0 / den

            lab_i = lab[i + THETA0]
            probs = []
            hots = []
            logit_true = zeros()
            for c in range(C):
                p_c = e[c] * inv_den
                if c == 0:
                    v_c = (lab_i == 0).astype(f32)
                else:
                    v_c = 1.0 - vcomp[c][i + THETA0]
                probs.append(p_c)
                hots.append(v_c)
                acc_onehot[c] = acc_onehot[c] + v_c
                acc_po[c] = acc_po[c] + p_c * v_c
                acc_p[c] = acc_p[c] + p_c
                logit_true = logit_true + lg[c] * v_c
            acc_ce = acc_ce + (m + jnp.log(den) - logit_true)

            # boundary terms for classes 1..C-1
            for c in range(1, C):
                cnt = scount[c][i]                                  # D-window count
                t1 = jnp.dot(a_h, cnt.astype(jnp.bfloat16),
                             preferred_element_type=f32)            # + H window
                cnt3 = jnp.dot(t1.astype(jnp.bfloat16), a_w,
                               preferred_element_type=f32)          # + W window
                # count > 0  <=>  max_pool3d(1 - onehot, k=7, s=1, pad=3) == 1
                mask = (cnt3 > 0.5).astype(f32)
                wm = 1.0 - mask * (1.0 - _W1)    # exp(-pooled^2/theta^2), pooled in {0,1}
                wm2 = 1.0 - mask * (1.0 - _W2)
                u = probs[c]
                v = hots[c]
                acc_b[c][0] = acc_b[c][0] + (u * v) * wm2
                acc_b[c][1] = acc_b[c][1] + u * wm
                acc_b[c][2] = acc_b[c][2] + v * wm
                acc_b[c][3] = acc_b[c][3] + ((1.0 - u) * (1.0 - v)) * wm2
                acc_b[c][4] = acc_b[c][4] + wm

        row = 0
        for c in range(C):
            acc_ref[row] += acc_onehot[c]
            row += 1
        for c in range(C):
            acc_ref[row] += acc_po[c]
            row += 1
        for c in range(C):
            acc_ref[row] += acc_p[c]
            row += 1
        acc_ref[row] += acc_ce
        row += 1
        for c in range(1, C):
            for k in range(5):
                acc_ref[row] += acc_b[c][k]
                row += 1

        # last D-tile of this batch element: reduce maps -> scalars, write once
        @pl.when(dt == n_dt - 1)
        def _finalize():
            tot = acc_ref[...]                              # (nrows, H, W)
            r = jnp.sum(tot, axis=-1)                       # (nrows, H)
            r = jnp.sum(r, axis=-1, keepdims=True)          # (nrows, 1)
            out_ref[0] = r

    return kernel


def combined_loss_pallas(logits, labels, dice_weight=0.33, ce_weight=0.33,
                         boundary_weight=0.33, d_tile=8):
    """logits: [B, C, D, H, W] float; labels: [B, D, H, W] int class indices."""
    B, C, D, H, W = logits.shape
    labels_i = labels.astype(jnp.int32)
    Td = _pick_td(D, C, H, W, jnp.dtype(logits.dtype).itemsize, target=d_tile)
    n_dt = D // Td
    nrows = 3 * C + 1 + 5 * (C - 1)

    kernel = _make_kernel(C, D, H, W, Td, nrows)

    partial = pl.pallas_call(
        kernel,
        grid=(B, n_dt),
        in_specs=[
            pl.BlockSpec((1, C, Td, H, W), lambda b, t: (b, 0, t, 0, 0)),
            pl.BlockSpec((1, D, H, W), lambda b, t: (b, 0, 0, 0)),
        ],
        out_specs=pl.BlockSpec((1, nrows, 1), lambda b, t: (b, 0, 0)),
        out_shape=jax.ShapeDtypeStruct((B, nrows, 1), jnp.float32),
        scratch_shapes=[pltpu.VMEM((nrows, H, W), jnp.float32)],
        compiler_params=pltpu.CompilerParams(
            dimension_semantics=("parallel", "arbitrary"),
            vmem_limit_bytes=64 * 1024 * 1024),
    )(logits, labels_i)

    sums = jnp.sum(partial[:, :, 0], axis=0)          # (nrows,) over batch

    s_onehot = sums[0:C]
    s_po = sums[C:2 * C]
    s_p = sums[2 * C:3 * C]
    s_ce = sums[3 * C]

    # Generalized Dice loss
    w = 1.0 / (s_onehot + SMOOTH)
    inter = w * s_po
    card = w * (s_p + s_onehot)
    dice_pc = (2.0 * inter + SMOOTH) / (card + SMOOTH)
    dice_loss = 1.0 - jnp.mean(dice_pc)

    # Cross entropy (mean over all voxels, no class weights)
    ce_loss = s_ce / (B * D * H * W)

    # Boundary loss (precision + recall > 0 always holds with smooth > 0)
    boundary = jnp.float32(0.0)
    base0 = 3 * C + 1
    for c in range(1, C):
        base = base0 + 5 * (c - 1)
        int_p = sums[base + 0]
        sum_u = sums[base + 1]
        sum_v = sums[base + 2]
        int_r = sums[base + 3]
        sum_w = sums[base + 4]
        precision = (2.0 * int_p + SMOOTH) / (sum_u + sum_v + SMOOTH)
        recall = (2.0 * int_r + SMOOTH) / ((sum_w - sum_u) + (sum_w - sum_v) + SMOOTH)
        f1 = 2.0 * precision * recall / (precision + recall)
        boundary = boundary + (1.0 - f1)
    if C > 1:
        boundary = boundary / (C - 1)

    return dice_weight * dice_loss + ce_weight * ce_loss + boundary_weight * boundary


def combined_loss_reference(logits, labels, dice_weight=0.33, ce_weight=0.33,
                            boundary_weight=0.33):
    """Pure-JAX reference mirroring the PyTorch module."""
    logits = logits.astype(jnp.float32)
    B, C, D, H, W = logits.shape
    prob = jax.nn.softmax(logits, axis=1)
    onehot = jax.nn.one_hot(labels, C, axis=1, dtype=jnp.float32)

    dims = (0, 2, 3, 4)
    w = 1.0 / (jnp.sum(onehot, dims) + SMOOTH)
    inter = w * jnp.sum(prob * onehot, dims)
    card = w * jnp.sum(prob + onehot, dims)
    dice_pc = (2.0 * inter + SMOOTH) / (card + SMOOTH)
    dice_loss = 1.0 - jnp.mean(dice_pc)

    logp = jax.nn.log_softmax(logits, axis=1)
    nll = -jnp.take_along_axis(logp, labels[:, None].astype(jnp.int32), axis=1)[:, 0]
    ce_loss = jnp.mean(nll)

    boundary = 0.0
    k = 2 * THETA0 + 1
    for c in range(1, C):
        v = onehot[:, c]
        u = prob[:, c]
        pooled = lax.reduce_window(
            1.0 - v, -jnp.inf, lax.max, (1, k, k, k), (1, 1, 1, 1),
            [(0, 0), (THETA0, THETA0), (THETA0, THETA0), (THETA0, THETA0)])
        wm = jnp.exp(-(pooled ** 2) / (THETA ** 2))
        bu, bv = u * wm, v * wm
        precision = (2.0 * jnp.sum(bu * bv) + SMOOTH) / (jnp.sum(bu) + jnp.sum(bv) + SMOOTH)
        buc, bvc = (1.0 - u) * wm, (1.0 - v) * wm
        recall = (2.0 * jnp.sum(buc * bvc) + SMOOTH) / (jnp.sum(buc) + jnp.sum(bvc) + SMOOTH)
        f1 = 2.0 * precision * recall / (precision + recall)
        boundary = boundary + (1.0 - f1)
    if C > 1:
        boundary = boundary / (C - 1)

    return dice_weight * dice_loss + ce_weight * ce_loss + boundary_weight * boundary


if __name__ == "__main__":
    B, C, D, H, W = 2, 4, 8, 16, 16
    key = jax.random.PRNGKey(0)
    k1, k2 = jax.random.split(key)
    logits = jax.random.normal(k1, (B, C, D, H, W), dtype=jnp.float32)
    labels = jax.random.randint(k2, (B, D, H, W), 0, C, dtype=jnp.int32)

    loss_fn = jax.jit(combined_loss_pallas)
    loss = jax.block_until_ready(loss_fn(logits, labels))
    ref = jax.block_until_ready(combined_loss_reference(logits, labels))

    assert bool(jnp.isfinite(loss)), "non-finite loss"
    assert abs(float(loss) - float(ref)) < 1e-3 * max(1.0, abs(float(ref))), (
        float(loss), float(ref))
    print("KERNEL_OK")
</pallas_src>

<mosaic_0001>
module attributes {stable_mosaic.version = 11 : i64} {
  func.func @kernel(%arg0: i32, %arg1: i32, %arg2: memref<1x4x8x16x16xf32, #tpu.memory_space<vmem>>, %arg3: memref<1x8x16x16xi32, #tpu.memory_space<vmem>>, %arg4: memref<1x28x1xf32, #tpu.memory_space<vmem>>, %arg5: memref<28x16x16xf32, #tpu.memory_space<vmem>>) attributes {dimension_semantics = [#tpu.dimension_semantics<parallel>, #tpu.dimension_semantics<arbitrary>], iteration_bounds = array<i64: 2, 1>, scalar_prefetch = 0 : i64, scratch_operands = 1 : i64, tpu.core_type = #tpu.core_type<tc>, window_params = [{transform_indices = @transform_0, window_bounds = array<i64: 1, 4, 8, 16, 16>}, {transform_indices = @transform_1, window_bounds = array<i64: 1, 8, 16, 16>}, {transform_indices = @transform_2, window_bounds = array<i64: 1, 28, 1>}]} {
    %c0_i32 = arith.constant 0 : i32
    %0 = arith.cmpi eq, %arg1, %c0_i32 : i32
    %1 = arith.extui %0 : i1 to i32
    %c0_i32_0 = arith.constant 0 : i32
    %2 = arith.cmpi ne, %1, %c0_i32_0 : i32
    scf.if %2 {
      %cst_706 = arith.constant 0.000000e+00 : f32
      %1863 = vector.broadcast %cst_706 : f32 to vector<28x16x16xf32>
      %c0_707 = arith.constant 0 : index
      %c0_708 = arith.constant 0 : index
      %c0_709 = arith.constant 0 : index
      %1864 = vector.load %arg5[%c0_707, %c0_708, %c0_709] : memref<28x16x16xf32, #tpu.memory_space<vmem>>, vector<28x16x16xf32>
      tpu.vector_store %arg5[%c0_707, %c0_708, %c0_709], %1863 {strides = array<i32>} : memref<28x16x16xf32, #tpu.memory_space<vmem>>, vector<28x16x16xf32>,
    } else {
    }
    %c8_i32 = arith.constant 8 : i32
    %3 = arith.muli %arg1, %c8_i32 : i32
    %4 = tpu.iota {dimensions = array<i32: 0>} : vector<16x16xi32>
    %5 = tpu.iota {dimensions = array<i32: 1>} : vector<16x16xi32>
    %6 = arith.subi %4, %5 : vector<16x16xi32>
    %7 = math.absi %6 : vector<16x16xi32>
    %c3_i32 = arith.constant 3 : i32
    %8 = vector.broadcast %c3_i32 : i32 to vector<16x16xi32>
    %9 = arith.cmpi sle, %7, %8 : vector<16x16xi32>
    %10 = arith.extui %9 : vector<16x16xi1> to vector<16x16xi32>
    %11 = arith.sitofp %10 : vector<16x16xi32> to vector<16x16xf32>
    %12 = arith.truncf %11 : vector<16x16xf32> to vector<16x16xbf16>
    %13 = tpu.iota {dimensions = array<i32: 0>} : vector<16x16xi32>
    %14 = tpu.iota {dimensions = array<i32: 1>} : vector<16x16xi32>
    %15 = arith.subi %13, %14 : vector<16x16xi32>
    %16 = math.absi %15 : vector<16x16xi32>
    %c3_i32_1 = arith.constant 3 : i32
    %17 = vector.broadcast %c3_i32_1 : i32 to vector<16x16xi32>
    %18 = arith.cmpi sle, %16, %17 : vector<16x16xi32>
    %19 = arith.extui %18 : vector<16x16xi1> to vector<16x16xi32>
    %20 = arith.sitofp %19 : vector<16x16xi32> to vector<16x16xf32>
    %21 = arith.truncf %20 : vector<16x16xf32> to vector<16x16xbf16>
    %c-3_i32 = arith.constant -3 : i32
    %22 = arith.addi %3, %c-3_i32 : i32
    %c0_i32_2 = arith.constant 0 : i32
    %c7_i32 = arith.constant 7 : i32
    %23 = arith.maxsi %c0_i32_2, %22 : i32
    %24 = arith.minsi %c7_i32, %23 : i32
    %c0 = arith.constant 0 : index
    %25 = arith.index_cast %24 : i32 to index
    %c0_3 = arith.constant 0 : index
    %c0_4 = arith.constant 0 : index
    %26 = vector.load %arg3[%c0, %25, %c0_3, %c0_4] : memref<1x8x16x16xi32, #tpu.memory_space<vmem>>, vector<1x1x16x16xi32>
    %27 = vector.shape_cast %26 : vector<1x1x16x16xi32> to vector<16x16xi32>
    %c0_i32_5 = arith.constant 0 : i32
    %28 = arith.cmpi sge, %22, %c0_i32_5 : i32
    %c8_i32_6 = arith.constant 8 : i32
    %29 = arith.cmpi slt, %22, %c8_i32_6 : i32
    %30 = arith.andi %28, %29 : i1
    %31 = arith.extui %30 : i1 to i32
    %32 = arith.sitofp %31 : i32 to f32
    %c-2_i32 = arith.constant -2 : i32
    %33 = arith.addi %3, %c-2_i32 : i32
    %c0_i32_7 = arith.constant 0 : i32
    %c7_i32_8 = arith.constant 7 : i32
    %34 = arith.maxsi %c0_i32_7, %33 : i32
    %35 = arith.minsi %c7_i32_8, %34 : i32
    %c0_9 = arith.constant 0 : index
    %36 = arith.index_cast %35 : i32 to index
    %c0_10 = arith.constant 0 : index
    %c0_11 = arith.constant 0 : index
    %37 = vector.load %arg3[%c0_9, %36, %c0_10, %c0_11] : memref<1x8x16x16xi32, #tpu.memory_space<vmem>>, vector<1x1x16x16xi32>
    %38 = vector.shape_cast %37 : vector<1x1x16x16xi32> to vector<16x16xi32>
    %c0_i32_12 = arith.constant 0 : i32
    %39 = arith.cmpi sge, %33, %c0_i32_12 : i32
    %c8_i32_13 = arith.constant 8 : i32
    %40 = arith.cmpi slt, %33, %c8_i32_13 : i32
    %41 = arith.andi %39, %40 : i1
    %42 = arith.extui %41 : i1 to i32
    %43 = arith.sitofp %42 : i32 to f32
    %c-1_i32 = arith.constant -1 : i32
    %44 = arith.addi %3, %c-1_i32 : i32
    %c0_i32_14 = arith.constant 0 : i32
    %c7_i32_15 = arith.constant 7 : i32
    %45 = arith.maxsi %c0_i32_14, %44 : i32
    %46 = arith.minsi %c7_i32_15, %45 : i32
    %c0_16 = arith.constant 0 : index
    %47 = arith.index_cast %46 : i32 to index
    %c0_17 = arith.constant 0 : index
    %c0_18 = arith.constant 0 : index
    %48 = vector.load %arg3[%c0_16, %47, %c0_17, %c0_18] : memref<1x8x16x16xi32, #tpu.memory_space<vmem>>, vector<1x1x16x16xi32>
    %49 = vector.shape_cast %48 : vector<1x1x16x16xi32> to vector<16x16xi32>
    %c0_i32_19 = arith.constant 0 : i32
    %50 = arith.cmpi sge, %44, %c0_i32_19 : i32
    %c8_i32_20 = arith.constant 8 : i32
    %51 = arith.cmpi slt, %44, %c8_i32_20 : i32
    %52 = arith.andi %50, %51 : i1
    %53 = arith.extui %52 : i1 to i32
    %54 = arith.sitofp %53 : i32 to f32
    %c0_i32_21 = arith.constant 0 : i32
    %55 = arith.addi %3, %c0_i32_21 : i32
    %c0_22 = arith.constant 0 : index
    %56 = arith.index_cast %55 : i32 to index
    %c0_23 = arith.constant 0 : index
    %c0_24 = arith.constant 0 : index
    %57 = vector.load %arg3[%c0_22, %56, %c0_23, %c0_24] : memref<1x8x16x16xi32, #tpu.memory_space<vmem>>, vector<1x1x16x16xi32>
    %58 = vector.shape_cast %57 : vector<1x1x16x16xi32> to vector<16x16xi32>
    %c1_i32 = arith.constant 1 : i32
    %59 = arith.addi %3, %c1_i32 : i32
    %c0_25 = arith.constant 0 : index
    %60 = arith.index_cast %59 : i32 to index
    %c0_26 = arith.constant 0 : index
    %c0_27 = arith.constant 0 : index
    %61 = vector.load %arg3[%c0_25, %60, %c0_26, %c0_27] : memref<1x8x16x16xi32, #tpu.memory_space<vmem>>, vector<1x1x16x16xi32>
    %62 = vector.shape_cast %61 : vector<1x1x16x16xi32> to vector<16x16xi32>
    %c2_i32 = arith.constant 2 : i32
    %63 = arith.addi %3, %c2_i32 : i32
    %c0_28 = arith.constant 0 : index
    %64 = arith.index_cast %63 : i32 to index
    %c0_29 = arith.constant 0 : index
    %c0_30 = arith.constant 0 : index
    %65 = vector.load %arg3[%c0_28, %64, %c0_29, %c0_30] : memref<1x8x16x16xi32, #tpu.memory_space<vmem>>, vector<1x1x16x16xi32>
    %66 = vector.shape_cast %65 : vector<1x1x16x16xi32> to vector<16x16xi32>
    %c3_i32_31 = arith.constant 3 : i32
    %67 = arith.addi %3, %c3_i32_31 : i32
    %c0_32 = arith.constant 0 : index
    %68 = arith.index_cast %67 : i32 to index
    %c0_33 = arith.constant 0 : index
    %c0_34 = arith.constant 0 : index
    %69 = vector.load %arg3[%c0_32, %68, %c0_33, %c0_34] : memref<1x8x16x16xi32, #tpu.memory_space<vmem>>, vector<1x1x16x16xi32>
    %70 = vector.shape_cast %69 : vector<1x1x16x16xi32> to vector<16x16xi32>
    %c4_i32 = arith.constant 4 : i32
    %71 = arith.addi %3, %c4_i32 : i32
    %c0_35 = arith.constant 0 : index
    %72 = arith.index_cast %71 : i32 to index
    %c0_36 = arith.constant 0 : index
    %c0_37 = arith.constant 0 : index
    %73 = vector.load %arg3[%c0_35, %72, %c0_36, %c0_37] : memref<1x8x16x16xi32, #tpu.memory_space<vmem>>, vector<1x1x16x16xi32>
    %74 = vector.shape_cast %73 : vector<1x1x16x16xi32> to vector<16x16xi32>
    %c5_i32 = arith.constant 5 : i32
    %75 = arith.addi %3, %c5_i32 : i32
    %c0_38 = arith.constant 0 : index
    %76 = arith.index_cast %75 : i32 to index
    %c0_39 = arith.constant 0 : index
    %c0_40 = arith.constant 0 : index
    %77 = vector.load %arg3[%c0_38, %76, %c0_39, %c0_40] : memref<1x8x16x16xi32, #tpu.memory_space<vmem>>, vector<1x1x16x16xi32>
    %78 = vector.shape_cast %77 : vector<1x1x16x16xi32> to vector<16x16xi32>
    %c6_i32 = arith.constant 6 : i32
    %79 = arith.addi %3, %c6_i32 : i32
    %c0_41 = arith.constant 0 : index
    %80 = arith.index_cast %79 : i32 to index
    %c0_42 = arith.constant 0 : index
    %c0_43 = arith.constant 0 : index
    %81 = vector.load %arg3[%c0_41, %80, %c0_42, %c0_43] : memref<1x8x16x16xi32, #tpu.memory_space<vmem>>, vector<1x1x16x16xi32>
    %82 = vector.shape_cast %81 : vector<1x1x16x16xi32> to vector<16x16xi32>
    %c7_i32_44 = arith.constant 7 : i32
    %83 = arith.addi %3, %c7_i32_44 : i32
    %c0_45 = arith.constant 0 : index
    %84 = arith.index_cast %83 : i32 to index
    %c0_46 = arith.constant 0 : index
    %c0_47 = arith.constant 0 : index
    %85 = vector.load %arg3[%c0_45, %84, %c0_46, %c0_47] : memref<1x8x16x16xi32, #tpu.memory_space<vmem>>, vector<1x1x16x16xi32>
    %86 = vector.shape_cast %85 : vector<1x1x16x16xi32> to vector<16x16xi32>
    %c8_i32_48 = arith.constant 8 : i32
    %87 = arith.addi %3, %c8_i32_48 : i32
    %c0_i32_49 = arith.constant 0 : i32
    %c7_i32_50 = arith.constant 7 : i32
    %88 = arith.maxsi %c0_i32_49, %87 : i32
    %89 = arith.minsi %c7_i32_50, %88 : i32
    %c0_51 = arith.constant 0 : index
    %90 = arith.index_cast %89 : i32 to index
    %c0_52 = arith.constant 0 : index
    %c0_53 = arith.constant 0 : index
    %91 = vector.load %arg3[%c0_51, %90, %c0_52, %c0_53] : memref<1x8x16x16xi32, #tpu.memory_space<vmem>>, vector<1x1x16x16xi32>
    %92 = vector.shape_cast %91 : vector<1x1x16x16xi32> to vector<16x16xi32>
    %c0_i32_54 = arith.constant 0 : i32
    %93 = arith.cmpi sge, %87, %c0_i32_54 : i32
    %c8_i32_55 = arith.constant 8 : i32
    %94 = arith.cmpi slt, %87, %c8_i32_55 : i32
    %95 = arith.andi %93, %94 : i1
    %96 = arith.extui %95 : i1 to i32
    %97 = arith.sitofp %96 : i32 to f32
    %c9_i32 = arith.constant 9 : i32
    %98 = arith.addi %3, %c9_i32 : i32
    %c0_i32_56 = arith.constant 0 : i32
    %c7_i32_57 = arith.constant 7 : i32
    %99 = arith.maxsi %c0_i32_56, %98 : i32
    %100 = arith.minsi %c7_i32_57, %99 : i32
    %c0_58 = arith.constant 0 : index
    %101 = arith.index_cast %100 : i32 to index
    %c0_59 = arith.constant 0 : index
    %c0_60 = arith.constant 0 : index
    %102 = vector.load %arg3[%c0_58, %101, %c0_59, %c0_60] : memref<1x8x16x16xi32, #tpu.memory_space<vmem>>, vector<1x1x16x16xi32>
    %103 = vector.shape_cast %102 : vector<1x1x16x16xi32> to vector<16x16xi32>
    %c0_i32_61 = arith.constant 0 : i32
    %104 = arith.cmpi sge, %98, %c0_i32_61 : i32
    %c8_i32_62 = arith.constant 8 : i32
    %105 = arith.cmpi slt, %98, %c8_i32_62 : i32
    %106 = arith.andi %104, %105 : i1
    %107 = arith.extui %106 : i1 to i32
    %108 = arith.sitofp %107 : i32 to f32
    %c10_i32 = arith.constant 10 : i32
    %109 = arith.addi %3, %c10_i32 : i32
    %c0_i32_63 = arith.constant 0 : i32
    %c7_i32_64 = arith.constant 7 : i32
    %110 = arith.maxsi %c0_i32_63, %109 : i32
    %111 = arith.minsi %c7_i32_64, %110 : i32
    %c0_65 = arith.constant 0 : index
    %112 = arith.index_cast %111 : i32 to index
    %c0_66 = arith.constant 0 : index
    %c0_67 = arith.constant 0 : index
    %113 = vector.load %arg3[%c0_65, %112, %c0_66, %c0_67] : memref<1x8x16x16xi32, #tpu.memory_space<vmem>>, vector<1x1x16x16xi32>
    %114 = vector.shape_cast %113 : vector<1x1x16x16xi32> to vector<16x16xi32>
    %c0_i32_68 = arith.constant 0 : i32
    %115 = arith.cmpi sge, %109, %c0_i32_68 : i32
    %c8_i32_69 = arith.constant 8 : i32
    %116 = arith.cmpi slt, %109, %c8_i32_69 : i32
    %117 = arith.andi %115, %116 : i1
    %118 = arith.extui %117 : i1 to i32
    %119 = arith.sitofp %118 : i32 to f32
    %c1_i32_70 = arith.constant 1 : i32
    %120 = vector.broadcast %c1_i32_70 : i32 to vector<16x16xi32>
    %121 = arith.cmpi ne, %27, %120 : vector<16x16xi32>
    %122 = arith.extui %121 : vector<16x16xi1> to vector<16x16xi32>
    %123 = arith.sitofp %122 : vector<16x16xi32> to vector<16x16xf32>
    %124 = vector.broadcast %32 : f32 to vector<16x16xf32>
    %125 = arith.mulf %123, %124 : vector<16x16xf32>
    %c1_i32_71 = arith.constant 1 : i32
    %126 = vector.broadcast %c1_i32_71 : i32 to vector<16x16xi32>
    %127 = arith.cmpi ne, %38, %126 : vector<16x16xi32>
    %128 = arith.extui %127 : vector<16x16xi1> to vector<16x16xi32>
    %129 = arith.sitofp %128 : vector<16x16xi32> to vector<16x16xf32>
    %130 = vector.broadcast %43 : f32 to vector<16x16xf32>
    %131 = arith.mulf %129, %130 : vector<16x16xf32>
    %c1_i32_72 = arith.constant 1 : i32
    %132 = vector.broadcast %c1_i32_72 : i32 to vector<16x16xi32>
    %133 = arith.cmpi ne, %49, %132 : vector<16x16xi32>
    %134 = arith.extui %133 : vector<16x16xi1> to vector<16x16xi32>
    %135 = arith.sitofp %134 : vector<16x16xi32> to vector<16x16xf32>
    %136 = vector.broadcast %54 : f32 to vector<16x16xf32>
    %137 = arith.mulf %135, %136 : vector<16x16xf32>
    %c1_i32_73 = arith.constant 1 : i32
    %138 = vector.broadcast %c1_i32_73 : i32 to vector<16x16xi32>
    %139 = arith.cmpi ne, %58, %138 : vector<16x16xi32>
    %140 = arith.extui %139 : vector<16x16xi1> to vector<16x16xi32>
    %141 = arith.sitofp %140 : vector<16x16xi32> to vector<16x16xf32>
    %c1_i32_74 = arith.constant 1 : i32
    %142 = vector.broadcast %c1_i32_74 : i32 to vector<16x16xi32>
    %143 = arith.cmpi ne, %62, %142 : vector<16x16xi32>
    %144 = arith.extui %143 : vector<16x16xi1> to vector<16x16xi32>
    %145 = arith.sitofp %144 : vector<16x16xi32> to vector<16x16xf32>
    %c1_i32_75 = arith.constant 1 : i32
    %146 = vector.broadcast %c1_i32_75 : i32 to vector<16x16xi32>
    %147 = arith.cmpi ne, %66, %146 : vector<16x16xi32>
    %148 = arith.extui %147 : vector<16x16xi1> to vector<16x16xi32>
    %149 = arith.sitofp %148 : vector<16x16xi32> to vector<16x16xf32>
    %c1_i32_76 = arith.constant 1 : i32
    %150 = vector.broadcast %c1_i32_76 : i32 to vector<16x16xi32>
    %151 = arith.cmpi ne, %70, %150 : vector<16x16xi32>
    %152 = arith.extui %151 : vector<16x16xi1> to vector<16x16xi32>
    %153 = arith.sitofp %152 : vector<16x16xi32> to vector<16x16xf32>
    %c1_i32_77 = arith.constant 1 : i32
    %154 = vector.broadcast %c1_i32_77 : i32 to vector<16x16xi32>
    %155 = arith.cmpi ne, %74, %154 : vector<16x16xi32>
    %156 = arith.extui %155 : vector<16x16xi1> to vector<16x16xi32>
    %157 = arith.sitofp %156 : vector<16x16xi32> to vector<16x16xf32>
    %c1_i32_78 = arith.constant 1 : i32
    %158 = vector.broadcast %c1_i32_78 : i32 to vector<16x16xi32>
    %159 = arith.cmpi ne, %78, %158 : vector<16x16xi32>
    %160 = arith.extui %159 : vector<16x16xi1> to vector<16x16xi32>
    %161 = arith.sitofp %160 : vector<16x16xi32> to vector<16x16xf32>
    %c1_i32_79 = arith.constant 1 : i32
    %162 = vector.broadcast %c1_i32_79 : i32 to vector<16x16xi32>
    %163 = arith.cmpi ne, %82, %162 : vector<16x16xi32>
    %164 = arith.extui %163 : vector<16x16xi1> to vector<16x16xi32>
    %165 = arith.sitofp %164 : vector<16x16xi32> to vector<16x16xf32>
    %c1_i32_80 = arith.constant 1 : i32
    %166 = vector.broadcast %c1_i32_80 : i32 to vector<16x16xi32>
    %167 = arith.cmpi ne, %86, %166 : vector<16x16xi32>
    %168 = arith.extui %167 : vector<16x16xi1> to vector<16x16xi32>
    %169 = arith.sitofp %168 : vector<16x16xi32> to vector<16x16xf32>
    %c1_i32_81 = arith.constant 1 : i32
    %170 = vector.broadcast %c1_i32_81 : i32 to vector<16x16xi32>
    %171 = arith.cmpi ne, %92, %170 : vector<16x16xi32>
    %172 = arith.extui %171 : vector<16x16xi1> to vector<16x16xi32>
    %173 = arith.sitofp %172 : vector<16x16xi32> to vector<16x16xf32>
    %174 = vector.broadcast %97 : f32 to vector<16x16xf32>
    %175 = arith.mulf %173, %174 : vector<16x16xf32>
    %c1_i32_82 = arith.constant 1 : i32
    %176 = vector.broadcast %c1_i32_82 : i32 to vector<16x16xi32>
    %177 = arith.cmpi ne, %103, %176 : vector<16x16xi32>
    %178 = arith.extui %177 : vector<16x16xi1> to vector<16x16xi32>
    %179 = arith.sitofp %178 : vector<16x16xi32> to vector<16x16xf32>
    %180 = vector.broadcast %108 : f32 to vector<16x16xf32>
    %181 = arith.mulf %179, %180 : vector<16x16xf32>
    %c1_i32_83 = arith.constant 1 : i32
    %182 = vector.broadcast %c1_i32_83 : i32 to vector<16x16xi32>
    %183 = arith.cmpi ne, %114, %182 : vector<16x16xi32>
    %184 = arith.extui %183 : vector<16x16xi1> to vector<16x16xi32>
    %185 = arith.sitofp %184 : vector<16x16xi32> to vector<16x16xf32>
    %186 = vector.broadcast %119 : f32 to vector<16x16xf32>
    %187 = arith.mulf %185, %186 : vector<16x16xf32>
    %c2_i32_84 = arith.constant 2 : i32
    %188 = vector.broadcast %c2_i32_84 : i32 to vector<16x16xi32>
    %189 = arith.cmpi ne, %27, %188 : vector<16x16xi32>
    %190 = arith.extui %189 : vector<16x16xi1> to vector<16x16xi32>
    %191 = arith.sitofp %190 : vector<16x16xi32> to vector<16x16xf32>
    %192 = vector.broadcast %32 : f32 to vector<16x16xf32>
    %193 = arith.mulf %191, %192 : vector<16x16xf32>
    %c2_i32_85 = arith.constant 2 : i32
    %194 = vector.broadcast %c2_i32_85 : i32 to vector<16x16xi32>
    %195 = arith.cmpi ne, %38, %194 : vector<16x16xi32>
    %196 = arith.extui %195 : vector<16x16xi1> to vector<16x16xi32>
    %197 = arith.sitofp %196 : vector<16x16xi32> to vector<16x16xf32>
    %198 = vector.broadcast %43 : f32 to vector<16x16xf32>
    %199 = arith.mulf %197, %198 : vector<16x16xf32>
    %c2_i32_86 = arith.constant 2 : i32
    %200 = vector.broadcast %c2_i32_86 : i32 to vector<16x16xi32>
    %201 = arith.cmpi ne, %49, %200 : vector<16x16xi32>
    %202 = arith.extui %201 : vector<16x16xi1> to vector<16x16xi32>
    %203 = arith.sitofp %202 : vector<16x16xi32> to vector<16x16xf32>
    %204 = vector.broadcast %54 : f32 to vector<16x16xf32>
    %205 = arith.mulf %203, %204 : vector<16x16xf32>
    %c2_i32_87 = arith.constant 2 : i32
    %206 = vector.broadcast %c2_i32_87 : i32 to vector<16x16xi32>
    %207 = arith.cmpi ne, %58, %206 : vector<16x16xi32>
    %208 = arith.extui %207 : vector<16x16xi1> to vector<16x16xi32>
    %209 = arith.sitofp %208 : vector<16x16xi32> to vector<16x16xf32>
    %c2_i32_88 = arith.constant 2 : i32
    %210 = vector.broadcast %c2_i32_88 : i32 to vector<16x16xi32>
    %211 = arith.cmpi ne, %62, %210 : vector<16x16xi32>
    %212 = arith.extui %211 : vector<16x16xi1> to vector<16x16xi32>
    %213 = arith.sitofp %212 : vector<16x16xi32> to vector<16x16xf32>
    %c2_i32_89 = arith.constant 2 : i32
    %214 = vector.broadcast %c2_i32_89 : i32 to vector<16x16xi32>
    %215 = arith.cmpi ne, %66, %214 : vector<16x16xi32>
    %216 = arith.extui %215 : vector<16x16xi1> to vector<16x16xi32>
    %217 = arith.sitofp %216 : vector<16x16xi32> to vector<16x16xf32>
    %c2_i32_90 = arith.constant 2 : i32
    %218 = vector.broadcast %c2_i32_90 : i32 to vector<16x16xi32>
    %219 = arith.cmpi ne, %70, %218 : vector<16x16xi32>
    %220 = arith.extui %219 : vector<16x16xi1> to vector<16x16xi32>
    %221 = arith.sitofp %220 : vector<16x16xi32> to vector<16x16xf32>
    %c2_i32_91 = arith.constant 2 : i32
    %222 = vector.broadcast %c2_i32_91 : i32 to vector<16x16xi32>
    %223 = arith.cmpi ne, %74, %222 : vector<16x16xi32>
    %224 = arith.extui %223 : vector<16x16xi1> to vector<16x16xi32>
    %225 = arith.sitofp %224 : vector<16x16xi32> to vector<16x16xf32>
    %c2_i32_92 = arith.constant 2 : i32
    %226 = vector.broadcast %c2_i32_92 : i32 to vector<16x16xi32>
    %227 = arith.cmpi ne, %78, %226 : vector<16x16xi32>
    %228 = arith.extui %227 : vector<16x16xi1> to vector<16x16xi32>
    %229 = arith.sitofp %228 : vector<16x16xi32> to vector<16x16xf32>
    %c2_i32_93 = arith.constant 2 : i32
    %230 = vector.broadcast %c2_i32_93 : i32 to vector<16x16xi32>
    %231 = arith.cmpi ne, %82, %230 : vector<16x16xi32>
    %232 = arith.extui %231 : vector<16x16xi1> to vector<16x16xi32>
    %233 = arith.sitofp %232 : vector<16x16xi32> to vector<16x16xf32>
    %c2_i32_94 = arith.constant 2 : i32
    %234 = vector.broadcast %c2_i32_94 : i32 to vector<16x16xi32>
    %235 = arith.cmpi ne, %86, %234 : vector<16x16xi32>
    %236 = arith.extui %235 : vector<16x16xi1> to vector<16x16xi32>
    %237 = arith.sitofp %236 : vector<16x16xi32> to vector<16x16xf32>
    %c2_i32_95 = arith.constant 2 : i32
    %238 = vector.broadcast %c2_i32_95 : i32 to vector<16x16xi32>
    %239 = arith.cmpi ne, %92, %238 : vector<16x16xi32>
    %240 = arith.extui %239 : vector<16x16xi1> to vector<16x16xi32>
    %241 = arith.sitofp %240 : vector<16x16xi32> to vector<16x16xf32>
    %242 = vector.broadcast %97 : f32 to vector<16x16xf32>
    %243 = arith.mulf %241, %242 : vector<16x16xf32>
    %c2_i32_96 = arith.constant 2 : i32
    %244 = vector.broadcast %c2_i32_96 : i32 to vector<16x16xi32>
    %245 = arith.cmpi ne, %103, %244 : vector<16x16xi32>
    %246 = arith.extui %245 : vector<16x16xi1> to vector<16x16xi32>
    %247 = arith.sitofp %246 : vector<16x16xi32> to vector<16x16xf32>
    %248 = vector.broadcast %108 : f32 to vector<16x16xf32>
    %249 = arith.mulf %247, %248 : vector<16x16xf32>
    %c2_i32_97 = arith.constant 2 : i32
    %250 = vector.broadcast %c2_i32_97 : i32 to vector<16x16xi32>
    %251 = arith.cmpi ne, %114, %250 : vector<16x16xi32>
    %252 = arith.extui %251 : vector<16x16xi1> to vector<16x16xi32>
    %253 = arith.sitofp %252 : vector<16x16xi32> to vector<16x16xf32>
    %254 = vector.broadcast %119 : f32 to vector<16x16xf32>
    %255 = arith.mulf %253, %254 : vector<16x16xf32>
    %c3_i32_98 = arith.constant 3 : i32
    %256 = vector.broadcast %c3_i32_98 : i32 to vector<16x16xi32>
    %257 = arith.cmpi ne, %27, %256 : vector<16x16xi32>
    %258 = arith.extui %257 : vector<16x16xi1> to vector<16x16xi32>
    %259 = arith.sitofp %258 : vector<16x16xi32> to vector<16x16xf32>
    %260 = vector.broadcast %32 : f32 to vector<16x16xf32>
    %261 = arith.mulf %259, %260 : vector<16x16xf32>
    %c3_i32_99 = arith.constant 3 : i32
    %262 = vector.broadcast %c3_i32_99 : i32 to vector<16x16xi32>
    %263 = arith.cmpi ne, %38, %262 : vector<16x16xi32>
    %264 = arith.extui %263 : vector<16x16xi1> to vector<16x16xi32>
    %265 = arith.sitofp %264 : vector<16x16xi32> to vector<16x16xf32>
    %266 = vector.broadcast %43 : f32 to vector<16x16xf32>
    %267 = arith.mulf %265, %266 : vector<16x16xf32>
    %c3_i32_100 = arith.constant 3 : i32
    %268 = vector.broadcast %c3_i32_100 : i32 to vector<16x16xi32>
    %269 = arith.cmpi ne, %49, %268 : vector<16x16xi32>
    %270 = arith.extui %269 : vector<16x16xi1> to vector<16x16xi32>
    %271 = arith.sitofp %270 : vector<16x16xi32> to vector<16x16xf32>
    %272 = vector.broadcast %54 : f32 to vector<16x16xf32>
    %273 = arith.mulf %271, %272 : vector<16x16xf32>
    %c3_i32_101 = arith.constant 3 : i32
    %274 = vector.broadcast %c3_i32_101 : i32 to vector<16x16xi32>
    %275 = arith.cmpi ne, %58, %274 : vector<16x16xi32>
    %276 = arith.extui %275 : vector<16x16xi1> to vector<16x16xi32>
    %277 = arith.sitofp %276 : vector<16x16xi32> to vector<16x16xf32>
    %c3_i32_102 = arith.constant 3 : i32
    %278 = vector.broadcast %c3_i32_102 : i32 to vector<16x16xi32>
    %279 = arith.cmpi ne, %62, %278 : vector<16x16xi32>
    %280 = arith.extui %279 : vector<16x16xi1> to vector<16x16xi32>
    %281 = arith.sitofp %280 : vector<16x16xi32> to vector<16x16xf32>
    %c3_i32_103 = arith.constant 3 : i32
    %282 = vector.broadcast %c3_i32_103 : i32 to vector<16x16xi32>
    %283 = arith.cmpi ne, %66, %282 : vector<16x16xi32>
    %284 = arith.extui %283 : vector<16x16xi1> to vector<16x16xi32>
    %285 = arith.sitofp %284 : vector<16x16xi32> to vector<16x16xf32>
    %c3_i32_104 = arith.constant 3 : i32
    %286 = vector.broadcast %c3_i32_104 : i32 to vector<16x16xi32>
    %287 = arith.cmpi ne, %70, %286 : vector<16x16xi32>
    %288 = arith.extui %287 : vector<16x16xi1> to vector<16x16xi32>
    %289 = arith.sitofp %288 : vector<16x16xi32> to vector<16x16xf32>
    %c3_i32_105 = arith.constant 3 : i32
    %290 = vector.broadcast %c3_i32_105 : i32 to vector<16x16xi32>
    %291 = arith.cmpi ne, %74, %290 : vector<16x16xi32>
    %292 = arith.extui %291 : vector<16x16xi1> to vector<16x16xi32>
    %293 = arith.sitofp %292 : vector<16x16xi32> to vector<16x16xf32>
    %c3_i32_106 = arith.constant 3 : i32
    %294 = vector.broadcast %c3_i32_106 : i32 to vector<16x16xi32>
    %295 = arith.cmpi ne, %78, %294 : vector<16x16xi32>
    %296 = arith.extui %295 : vector<16x16xi1> to vector<16x16xi32>
    %297 = arith.sitofp %296 : vector<16x16xi32> to vector<16x16xf32>
    %c3_i32_107 = arith.constant 3 : i32
    %298 = vector.broadcast %c3_i32_107 : i32 to vector<16x16xi32>
    %299 = arith.cmpi ne, %82, %298 : vector<16x16xi32>
    %300 = arith.extui %299 : vector<16x16xi1> to vector<16x16xi32>
    %301 = arith.sitofp %300 : vector<16x16xi32> to vector<16x16xf32>
    %c3_i32_108 = arith.constant 3 : i32
    %302 = vector.broadcast %c3_i32_108 : i32 to vector<16x16xi32>
    %303 = arith.cmpi ne, %86, %302 : vector<16x16xi32>
    %304 = arith.extui %303 : vector<16x16xi1> to vector<16x16xi32>
    %305 = arith.sitofp %304 : vector<16x16xi32> to vector<16x16xf32>
    %c3_i32_109 = arith.constant 3 : i32
    %306 = vector.broadcast %c3_i32_109 : i32 to vector<16x16xi32>
    %307 = arith.cmpi ne, %92, %306 : vector<16x16xi32>
    %308 = arith.extui %307 : vector<16x16xi1> to vector<16x16xi32>
    %309 = arith.sitofp %308 : vector<16x16xi32> to vector<16x16xf32>
    %310 = vector.broadcast %97 : f32 to vector<16x16xf32>
    %311 = arith.mulf %309, %310 : vector<16x16xf32>
    %c3_i32_110 = arith.constant 3 : i32
    %312 = vector.broadcast %c3_i32_110 : i32 to vector<16x16xi32>
    %313 = arith.cmpi ne, %103, %312 : vector<16x16xi32>
    %314 = arith.extui %313 : vector<16x16xi1> to vector<16x16xi32>
    %315 = arith.sitofp %314 : vector<16x16xi32> to vector<16x16xf32>
    %316 = vector.broadcast %108 : f32 to vector<16x16xf32>
    %317 = arith.mulf %315, %316 : vector<16x16xf32>
    %c3_i32_111 = arith.constant 3 : i32
    %318 = vector.broadcast %c3_i32_111 : i32 to vector<16x16xi32>
    %319 = arith.cmpi ne, %114, %318 : vector<16x16xi32>
    %320 = arith.extui %319 : vector<16x16xi1> to vector<16x16xi32>
    %321 = arith.sitofp %320 : vector<16x16xi32> to vector<16x16xf32>
    %322 = vector.broadcast %119 : f32 to vector<16x16xf32>
    %323 = arith.mulf %321, %322 : vector<16x16xf32>
    %324 = arith.addf %125, %131 : vector<16x16xf32>
    %325 = arith.addf %324, %137 : vector<16x16xf32>
    %326 = arith.addf %325, %141 : vector<16x16xf32>
    %327 = arith.addf %326, %145 : vector<16x16xf32>
    %328 = arith.addf %327, %149 : vector<16x16xf32>
    %329 = arith.addf %328, %153 : vector<16x16xf32>
    %330 = arith.addf %329, %157 : vector<16x16xf32>
    %331 = arith.subf %330, %125 : vector<16x16xf32>
    %332 = arith.addf %331, %161 : vector<16x16xf32>
    %333 = arith.subf %332, %131 : vector<16x16xf32>
    %334 = arith.addf %333, %165 : vector<16x16xf32>
    %335 = arith.subf %334, %137 : vector<16x16xf32>
    %336 = arith.addf %335, %169 : vector<16x16xf32>
    %337 = arith.subf %336, %141 : vector<16x16xf32>
    %338 = arith.addf %337, %175 : vector<16x16xf32>
    %339 = arith.subf %338, %145 : vector<16x16xf32>
    %340 = arith.addf %339, %181 : vector<16x16xf32>
    %341 = arith.subf %340, %149 : vector<16x16xf32>
    %342 = arith.addf %341, %187 : vector<16x16xf32>
    %343 = arith.subf %342, %153 : vector<16x16xf32>
    %344 = arith.addf %193, %199 : vector<16x16xf32>
    %345 = arith.addf %344, %205 : vector<16x16xf32>
    %346 = arith.addf %345, %209 : vector<16x16xf32>
    %347 = arith.addf %346, %213 : vector<16x16xf32>
    %348 = arith.addf %347, %217 : vector<16x16xf32>
    %349 = arith.addf %348, %221 : vector<16x16xf32>
    %350 = arith.addf %349, %225 : vector<16x16xf32>
    %351 = arith.subf %350, %193 : vector<16x16xf32>
    %352 = arith.addf %351, %229 : vector<16x16xf32>
    %353 = arith.subf %352, %199 : vector<16x16xf32>
    %354 = arith.addf %353, %233 : vector<16x16xf32>
    %355 = arith.subf %354, %205 : vector<16x16xf32>
    %356 = arith.addf %355, %237 : vector<16x16xf32>
    %357 = arith.subf %356, %209 : vector<16x16xf32>
    %358 = arith.addf %357, %243 : vector<16x16xf32>
    %359 = arith.subf %358, %213 : vector<16x16xf32>
    %360 = arith.addf %359, %249 : vector<16x16xf32>
    %361 = arith.subf %360, %217 : vector<16x16xf32>
    %362 = arith.addf %361, %255 : vector<16x16xf32>
    %363 = arith.subf %362, %221 : vector<16x16xf32>
    %364 = arith.addf %261, %267 : vector<16x16xf32>
    %365 = arith.addf %364, %273 : vector<16x16xf32>
    %366 = arith.addf %365, %277 : vector<16x16xf32>
    %367 = arith.addf %366, %281 : vector<16x16xf32>
    %368 = arith.addf %367, %285 : vector<16x16xf32>
    %369 = arith.addf %368, %289 : vector<16x16xf32>
    %370 = arith.addf %369, %293 : vector<16x16xf32>
    %371 = arith.subf %370, %261 : vector<16x16xf32>
    %372 = arith.addf %371, %297 : vector<16x16xf32>
    %373 = arith.subf %372, %267 : vector<16x16xf32>
    %374 = arith.addf %373, %301 : vector<16x16xf32>
    %375 = arith.subf %374, %273 : vector<16x16xf32>
    %376 = arith.addf %375, %305 : vector<16x16xf32>
    %377 = arith.subf %376, %277 : vector<16x16xf32>
    %378 = arith.addf %377, %311 : vector<16x16xf32>
    %379 = arith.subf %378, %281 : vector<16x16xf32>
    %380 = arith.addf %379, %317 : vector<16x16xf32>
    %381 = arith.subf %380, %285 : vector<16x16xf32>
    %382 = arith.addf %381, %323 : vector<16x16xf32>
    %383 = arith.subf %382, %289 : vector<16x16xf32>
    %cst = arith.constant 0.000000e+00 : f32
    %384 = vector.broadcast %cst : f32 to vector<16x16xf32>
    %cst_112 = arith.constant 0.000000e+00 : f32
    %385 = vector.broadcast %cst_112 : f32 to vector<16x16xf32>
    %cst_113 = arith.constant 0.000000e+00 : f32
    %386 = vector.broadcast %cst_113 : f32 to vector<16x16xf32>
    %cst_114 = arith.constant 0.000000e+00 : f32
    %387 = vector.broadcast %cst_114 : f32 to vector<16x16xf32>
    %cst_115 = arith.constant 0.000000e+00 : f32
    %388 = vector.broadcast %cst_115 : f32 to vector<16x16xf32>
    %cst_116 = arith.constant 0.000000e+00 : f32
    %389 = vector.broadcast %cst_116 : f32 to vector<16x16xf32>
    %cst_117 = arith.constant 0.000000e+00 : f32
    %390 = vector.broadcast %cst_117 : f32 to vector<16x16xf32>
    %cst_118 = arith.constant 0.000000e+00 : f32
    %391 = vector.broadcast %cst_118 : f32 to vector<16x16xf32>
    %cst_119 = arith.constant 0.000000e+00 : f32
    %392 = vector.broadcast %cst_119 : f32 to vector<16x16xf32>
    %cst_120 = arith.constant 0.000000e+00 : f32
    %393 = vector.broadcast %cst_120 : f32 to vector<16x16xf32>
    %cst_121 = arith.constant 0.000000e+00 : f32
    %394 = vector.broadcast %cst_121 : f32 to vector<16x16xf32>
    %cst_122 = arith.constant 0.000000e+00 : f32
    %395 = vector.broadcast %cst_122 : f32 to vector<16x16xf32>
    %cst_123 = arith.constant 0.000000e+00 : f32
    %396 = vector.broadcast %cst_123 : f32 to vector<16x16xf32>
    %cst_124 = arith.constant 0.000000e+00 : f32
    %397 = vector.broadcast %cst_124 : f32 to vector<16x16xf32>
    %cst_125 = arith.constant 0.000000e+00 : f32
    %398 = vector.broadcast %cst_125 : f32 to vector<16x16xf32>
    %cst_126 = arith.constant 0.000000e+00 : f32
    %399 = vector.broadcast %cst_126 : f32 to vector<16x16xf32>
    %cst_127 = arith.constant 0.000000e+00 : f32
    %400 = vector.broadcast %cst_127 : f32 to vector<16x16xf32>
    %cst_128 = arith.constant 0.000000e+00 : f32
    %401 = vector.broadcast %cst_128 : f32 to vector<16x16xf32>
    %cst_129 = arith.constant 0.000000e+00 : f32
    %402 = vector.broadcast %cst_129 : f32 to vector<16x16xf32>
    %cst_130 = arith.constant 0.000000e+00 : f32
    %403 = vector.broadcast %cst_130 : f32 to vector<16x16xf32>
    %cst_131 = arith.constant 0.000000e+00 : f32
    %404 = vector.broadcast %cst_131 : f32 to vector<16x16xf32>
    %cst_132 = arith.constant 0.000000e+00 : f32
    %405 = vector.broadcast %cst_132 : f32 to vector<16x16xf32>
    %cst_133 = arith.constant 0.000000e+00 : f32
    %406 = vector.broadcast %cst_133 : f32 to vector<16x16xf32>
    %cst_134 = arith.constant 0.000000e+00 : f32
    %407 = vector.broadcast %cst_134 : f32 to vector<16x16xf32>
    %cst_135 = arith.constant 0.000000e+00 : f32
    %408 = vector.broadcast %cst_135 : f32 to vector<16x16xf32>
    %cst_136 = arith.constant 0.000000e+00 : f32
    %409 = vector.broadcast %cst_136 : f32 to vector<16x16xf32>
    %cst_137 = arith.constant 0.000000e+00 : f32
    %410 = vector.broadcast %cst_137 : f32 to vector<16x16xf32>
    %cst_138 = arith.constant 0.000000e+00 : f32
    %411 = vector.broadcast %cst_138 : f32 to vector<16x16xf32>
    %c0_139 = arith.constant 0 : index
    %c0_140 = arith.constant 0 : index
    %c0_141 = arith.constant 0 : index
    %c0_142 = arith.constant 0 : index
    %c0_143 = arith.constant 0 : index
    %412 = vector.load %arg2[%c0_139, %c0_140, %c0_141, %c0_142, %c0_143] : memref<1x4x8x16x16xf32, #tpu.memory_space<vmem>>, vector<1x1x1x16x16xf32>
    %413 = vector.shape_cast %412 : vector<1x1x1x16x16xf32> to vector<16x16xf32>
    %c0_144 = arith.constant 0 : index
    %c1 = arith.constant 1 : index
    %c0_145 = arith.constant 0 : index
    %c0_146 = arith.constant 0 : index
    %c0_147 = arith.constant 0 : index
    %414 = vector.load %arg2[%c0_144, %c1, %c0_145, %c0_146, %c0_147] : memref<1x4x8x16x16xf32, #tpu.memory_space<vmem>>, vector<1x1x1x16x16xf32>
    %415 = vector.shape_cast %414 : vector<1x1x1x16x16xf32> to vector<16x16xf32>
    %c0_148 = arith.constant 0 : index
    %c2 = arith.constant 2 : index
    %c0_149 = arith.constant 0 : index
    %c0_150 = arith.constant 0 : index
    %c0_151 = arith.constant 0 : index
    %416 = vector.load %arg2[%c0_148, %c2, %c0_149, %c0_150, %c0_151] : memref<1x4x8x16x16xf32, #tpu.memory_space<vmem>>, vector<1x1x1x16x16xf32>
    %417 = vector.shape_cast %416 : vector<1x1x1x16x16xf32> to vector<16x16xf32>
    %c0_152 = arith.constant 0 : index
    %c3 = arith.constant 3 : index
    %c0_153 = arith.constant 0 : index
    %c0_154 = arith.constant 0 : index
    %c0_155 = arith.constant 0 : index
    %418 = vector.load %arg2[%c0_152, %c3, %c0_153, %c0_154, %c0_155] : memref<1x4x8x16x16xf32, #tpu.memory_space<vmem>>, vector<1x1x1x16x16xf32>
    %419 = vector.shape_cast %418 : vector<1x1x1x16x16xf32> to vector<16x16xf32>
    %420 = arith.maximumf %413, %415 : vector<16x16xf32>
    %421 = arith.maximumf %420, %417 : vector<16x16xf32>
    %422 = arith.maximumf %421, %419 : vector<16x16xf32>
    %423 = arith.subf %413, %422 : vector<16x16xf32>
    %424 = math.exp %423 : vector<16x16xf32>
    %425 = arith.subf %415, %422 : vector<16x16xf32>
    %426 = math.exp %425 : vector<16x16xf32>
    %427 = arith.subf %417, %422 : vector<16x16xf32>
    %428 = math.exp %427 : vector<16x16xf32>
    %429 = arith.subf %419, %422 : vector<16x16xf32>
    %430 = math.exp %429 : vector<16x16xf32>
    %431 = arith.addf %424, %426 : vector<16x16xf32>
    %432 = arith.addf %431, %428 : vector<16x16xf32>
    %433 = arith.addf %432, %430 : vector<16x16xf32>
    %cst_156 = arith.constant 1.000000e+00 : f32
    %434 = vector.broadcast %cst_156 : f32 to vector<16x16xf32>
    %435 = arith.divf %434, %433 : vector<16x16xf32>
    %cst_157 = arith.constant 0.000000e+00 : f32
    %436 = vector.broadcast %cst_157 : f32 to vector<16x16xf32>
    %437 = arith.mulf %424, %435 : vector<16x16xf32>
    %c0_i32_158 = arith.constant 0 : i32
    %438 = vector.broadcast %c0_i32_158 : i32 to vector<16x16xi32>
    %439 = arith.cmpi eq, %58, %438 : vector<16x16xi32>
    %440 = arith.extui %439 : vector<16x16xi1> to vector<16x16xi32>
    %441 = arith.sitofp %440 : vector<16x16xi32> to vector<16x16xf32>
    %442 = arith.addf %384, %441 : vector<16x16xf32>
    %443 = arith.mulf %437, %441 : vector<16x16xf32>
    %444 = arith.addf %388, %443 : vector<16x16xf32>
    %445 = arith.addf %392, %437 : vector<16x16xf32>
    %446 = arith.mulf %413, %441 : vector<16x16xf32>
    %447 = arith.addf %436, %446 : vector<16x16xf32>
    %448 = arith.mulf %426, %435 : vector<16x16xf32>
    %cst_159 = arith.constant 1.000000e+00 : f32
    %449 = vector.broadcast %cst_159 : f32 to vector<16x16xf32>
    %450 = arith.subf %449, %141 : vector<16x16xf32>
    %451 = arith.addf %385, %450 : vector<16x16xf32>
    %452 = arith.mulf %448, %450 : vector<16x16xf32>
    %453 = arith.addf %389, %452 : vector<16x16xf32>
    %454 = arith.addf %393, %448 : vector<16x16xf32>
    %455 = arith.mulf %415, %450 : vector<16x16xf32>
    %456 = arith.addf %447, %455 : vector<16x16xf32>
    %457 = arith.mulf %428, %435 : vector<16x16xf32>
    %cst_160 = arith.constant 1.000000e+00 : f32
    %458 = vector.broadcast %cst_160 : f32 to vector<16x16xf32>
    %459 = arith.subf %458, %209 : vector<16x16xf32>
    %460 = arith.addf %386, %459 : vector<16x16xf32>
    %461 = arith.mulf %457, %459 : vector<16x16xf32>
    %462 = arith.addf %390, %461 : vector<16x16xf32>
    %463 = arith.addf %394, %457 : vector<16x16xf32>
    %464 = arith.mulf %417, %459 : vector<16x16xf32>
    %465 = arith.addf %456, %464 : vector<16x16xf32>
    %466 = arith.mulf %430, %435 : vector<16x16xf32>
    %cst_161 = arith.constant 1.000000e+00 : f32
    %467 = vector.broadcast %cst_161 : f32 to vector<16x16xf32>
    %468 = arith.subf %467, %277 : vector<16x16xf32>
    %469 = arith.addf %387, %468 : vector<16x16xf32>
    %470 = arith.mulf %466, %468 : vector<16x16xf32>
    %471 = arith.addf %391, %470 : vector<16x16xf32>
    %472 = arith.addf %395, %466 : vector<16x16xf32>
    %473 = arith.mulf %419, %468 : vector<16x16xf32>
    %474 = arith.addf %465, %473 : vector<16x16xf32>
    %475 = math.log %433 : vector<16x16xf32>
    %476 = arith.addf %422, %475 : vector<16x16xf32>
    %477 = arith.subf %476, %474 : vector<16x16xf32>
    %478 = arith.addf %396, %477 : vector<16x16xf32>
    %479 = arith.truncf %329 : vector<16x16xf32> to vector<16x16xbf16>
    %cst_162 = arith.constant dense<0.000000e+00> : vector<16x16xf32>
    %480 = tpu.matmul %12, %479, %cst_162 {dimension_numbers = #tpu.dot_dimension_numbers<[1], [0], [0], [1], [0, 0, 1, 1], [], []>} : vector<16x16xbf16>, vector<16x16xbf16>, vector<16x16xf32> -> vector<16x16xf32>
    %481 = arith.truncf %480 : vector<16x16xf32> to vector<16x16xbf16>
    %cst_163 = arith.constant dense<0.000000e+00> : vector<16x16xf32>
    %482 = tpu.matmul %481, %21, %cst_163 {dimension_numbers = #tpu.dot_dimension_numbers<[1], [0], [0], [1], [0, 0, 1, 1], [], []>} : vector<16x16xbf16>, vector<16x16xbf16>, vector<16x16xf32> -> vector<16x16xf32>
    %cst_164 = arith.constant 5.000000e-01 : f32
    %483 = vector.broadcast %cst_164 : f32 to vector<16x16xf32>
    %484 = arith.cmpf ogt, %482, %483 : vector<16x16xf32>
    %485 = arith.extui %484 : vector<16x16xi1> to vector<16x16xi32>
    %486 = arith.sitofp %485 : vector<16x16xi32> to vector<16x16xf32>
    %cst_165 = arith.constant 0.221199214 : f32
    %487 = vector.broadcast %cst_165 : f32 to vector<16x16xf32>
    %488 = arith.mulf %486, %487 : vector<16x16xf32>
    %cst_166 = arith.constant 1.000000e+00 : f32
    %489 = vector.broadcast %cst_166 : f32 to vector<16x16xf32>
    %490 = arith.subf %489, %488 : vector<16x16xf32>
    %cst_167 = arith.constant 0.393469334 : f32
    %491 = vector.broadcast %cst_167 : f32 to vector<16x16xf32>
    %492 = arith.mulf %486, %491 : vector<16x16xf32>
    %cst_168 = arith.constant 1.000000e+00 : f32
    %493 = vector.broadcast %cst_168 : f32 to vector<16x16xf32>
    %494 = arith.subf %493, %492 : vector<16x16xf32>
    %495 = arith.mulf %448, %450 : vector<16x16xf32>
    %496 = arith.mulf %495, %494 : vector<16x16xf32>
    %497 = arith.addf %397, %496 : vector<16x16xf32>
    %498 = arith.mulf %448, %490 : vector<16x16xf32>
    %499 = arith.addf %398, %498 : vector<16x16xf32>
    %500 = arith.mulf %450, %490 : vector<16x16xf32>
    %501 = arith.addf %399, %500 : vector<16x16xf32>
    %cst_169 = arith.constant 1.000000e+00 : f32
    %502 = vector.broadcast %cst_169 : f32 to vector<16x16xf32>
    %503 = arith.subf %502, %448 : vector<16x16xf32>
    %cst_170 = arith.constant 1.000000e+00 : f32
    %504 = vector.broadcast %cst_170 : f32 to vector<16x16xf32>
    %505 = arith.subf %504, %450 : vector<16x16xf32>
    %506 = arith.mulf %503, %505 : vector<16x16xf32>
    %507 = arith.mulf %506, %494 : vector<16x16xf32>
    %508 = arith.addf %400, %507 : vector<16x16xf32>
    %509 = arith.addf %401, %490 : vector<16x16xf32>
    %510 = arith.truncf %349 : vector<16x16xf32> to vector<16x16xbf16>
    %cst_171 = arith.constant dense<0.000000e+00> : vector<16x16xf32>
    %511 = tpu.matmul %12, %510, %cst_171 {dimension_numbers = #tpu.dot_dimension_numbers<[1], [0], [0], [1], [0, 0, 1, 1], [], []>} : vector<16x16xbf16>, vector<16x16xbf16>, vector<16x16xf32> -> vector<16x16xf32>
    %512 = arith.truncf %511 : vector<16x16xf32> to vector<16x16xbf16>
    %cst_172 = arith.constant dense<0.000000e+00> : vector<16x16xf32>
    %513 = tpu.matmul %512, %21, %cst_172 {dimension_numbers = #tpu.dot_dimension_numbers<[1], [0], [0], [1], [0, 0, 1, 1], [], []>} : vector<16x16xbf16>, vector<16x16xbf16>, vector<16x16xf32> -> vector<16x16xf32>
    %cst_173 = arith.constant 5.000000e-01 : f32
    %514 = vector.broadcast %cst_173 : f32 to vector<16x16xf32>
    %515 = arith.cmpf ogt, %513, %514 : vector<16x16xf32>
    %516 = arith.extui %515 : vector<16x16xi1> to vector<16x16xi32>
    %517 = arith.sitofp %516 : vector<16x16xi32> to vector<16x16xf32>
    %cst_174 = arith.constant 0.221199214 : f32
    %518 = vector.broadcast %cst_174 : f32 to vector<16x16xf32>
    %519 = arith.mulf %517, %518 : vector<16x16xf32>
    %cst_175 = arith.constant 1.000000e+00 : f32
    %520 = vector.broadcast %cst_175 : f32 to vector<16x16xf32>
    %521 = arith.subf %520, %519 : vector<16x16xf32>
    %cst_176 = arith.constant 0.393469334 : f32
    %522 = vector.broadcast %cst_176 : f32 to vector<16x16xf32>
    %523 = arith.mulf %517, %522 : vector<16x16xf32>
    %cst_177 = arith.constant 1.000000e+00 : f32
    %524 = vector.broadcast %cst_177 : f32 to vector<16x16xf32>
    %525 = arith.subf %524, %523 : vector<16x16xf32>
    %526 = arith.mulf %457, %459 : vector<16x16xf32>
    %527 = arith.mulf %526, %525 : vector<16x16xf32>
    %528 = arith.addf %402, %527 : vector<16x16xf32>
    %529 = arith.mulf %457, %521 : vector<16x16xf32>
    %530 = arith.addf %403, %529 : vector<16x16xf32>
    %531 = arith.mulf %459, %521 : vector<16x16xf32>
    %532 = arith.addf %404, %531 : vector<16x16xf32>
    %cst_178 = arith.constant 1.000000e+00 : f32
    %533 = vector.broadcast %cst_178 : f32 to vector<16x16xf32>
    %534 = arith.subf %533, %457 : vector<16x16xf32>
    %cst_179 = arith.constant 1.000000e+00 : f32
    %535 = vector.broadcast %cst_179 : f32 to vector<16x16xf32>
    %536 = arith.subf %535, %459 : vector<16x16xf32>
    %537 = arith.mulf %534, %536 : vector<16x16xf32>
    %538 = arith.mulf %537, %525 : vector<16x16xf32>
    %539 = arith.addf %405, %538 : vector<16x16xf32>
    %540 = arith.addf %406, %521 : vector<16x16xf32>
    %541 = arith.truncf %369 : vector<16x16xf32> to vector<16x16xbf16>
    %cst_180 = arith.constant dense<0.000000e+00> : vector<16x16xf32>
    %542 = tpu.matmul %12, %541, %cst_180 {dimension_numbers = #tpu.dot_dimension_numbers<[1], [0], [0], [1], [0, 0, 1, 1], [], []>} : vector<16x16xbf16>, vector<16x16xbf16>, vector<16x16xf32> -> vector<16x16xf32>
    %543 = arith.truncf %542 : vector<16x16xf32> to vector<16x16xbf16>
    %cst_181 = arith.constant dense<0.000000e+00> : vector<16x16xf32>
    %544 = tpu.matmul %543, %21, %cst_181 {dimension_numbers = #tpu.dot_dimension_numbers<[1], [0], [0], [1], [0, 0, 1, 1], [], []>} : vector<16x16xbf16>, vector<16x16xbf16>, vector<16x16xf32> -> vector<16x16xf32>
    %cst_182 = arith.constant 5.000000e-01 : f32
    %545 = vector.broadcast %cst_182 : f32 to vector<16x16xf32>
    %546 = arith.cmpf ogt, %544, %545 : vector<16x16xf32>
    %547 = arith.extui %546 : vector<16x16xi1> to vector<16x16xi32>
    %548 = arith.sitofp %547 : vector<16x16xi32> to vector<16x16xf32>
    %cst_183 = arith.constant 0.221199214 : f32
    %549 = vector.broadcast %cst_183 : f32 to vector<16x16xf32>
    %550 = arith.mulf %548, %549 : vector<16x16xf32>
    %cst_184 = arith.constant 1.000000e+00 : f32
    %551 = vector.broadcast %cst_184 : f32 to vector<16x16xf32>
    %552 = arith.subf %551, %550 : vector<16x16xf32>
    %cst_185 = arith.constant 0.393469334 : f32
    %553 = vector.broadcast %cst_185 : f32 to vector<16x16xf32>
    %554 = arith.mulf %548, %553 : vector<16x16xf32>
    %cst_186 = arith.constant 1.000000e+00 : f32
    %555 = vector.broadcast %cst_186 : f32 to vector<16x16xf32>
    %556 = arith.subf %555, %554 : vector<16x16xf32>
    %557 = arith.mulf %466, %468 : vector<16x16xf32>
    %558 = arith.mulf %557, %556 : vector<16x16xf32>
    %559 = arith.addf %407, %558 : vector<16x16xf32>
    %560 = arith.mulf %466, %552 : vector<16x16xf32>
    %561 = arith.addf %408, %560 : vector<16x16xf32>
    %562 = arith.mulf %468, %552 : vector<16x16xf32>
    %563 = arith.addf %409, %562 : vector<16x16xf32>
    %cst_187 = arith.constant 1.000000e+00 : f32
    %564 = vector.broadcast %cst_187 : f32 to vector<16x16xf32>
    %565 = arith.subf %564, %466 : vector<16x16xf32>
    %cst_188 = arith.constant 1.000000e+00 : f32
    %566 = vector.broadcast %cst_188 : f32 to vector<16x16xf32>
    %567 = arith.subf %566, %468 : vector<16x16xf32>
    %568 = arith.mulf %565, %567 : vector<16x16xf32>
    %569 = arith.mulf %568, %556 : vector<16x16xf32>
    %570 = arith.addf %410, %569 : vector<16x16xf32>
    %571 = arith.addf %411, %552 : vector<16x16xf32>
    %c0_189 = arith.constant 0 : index
    %c0_190 = arith.constant 0 : index
    %c1_191 = arith.constant 1 : index
    %c0_192 = arith.constant 0 : index
    %c0_193 = arith.constant 0 : index
    %572 = vector.load %arg2[%c0_189, %c0_190, %c1_191, %c0_192, %c0_193] : memref<1x4x8x16x16xf32, #tpu.memory_space<vmem>>, vector<1x1x1x16x16xf32>
    %573 = vector.shape_cast %572 : vector<1x1x1x16x16xf32> to vector<16x16xf32>
    %c0_194 = arith.constant 0 : index
    %c1_195 = arith.constant 1 : index
    %c1_196 = arith.constant 1 : index
    %c0_197 = arith.constant 0 : index
    %c0_198 = arith.constant 0 : index
    %574 = vector.load %arg2[%c0_194, %c1_195, %c1_196, %c0_197, %c0_198] : memref<1x4x8x16x16xf32, #tpu.memory_space<vmem>>, vector<1x1x1x16x16xf32>
    %575 = vector.shape_cast %574 : vector<1x1x1x16x16xf32> to vector<16x16xf32>
    %c0_199 = arith.constant 0 : index
    %c2_200 = arith.constant 2 : index
    %c1_201 = arith.constant 1 : index
    %c0_202 = arith.constant 0 : index
    %c0_203 = arith.constant 0 : index
    %576 = vector.load %arg2[%c0_199, %c2_200, %c1_201, %c0_202, %c0_203] : memref<1x4x8x16x16xf32, #tpu.memory_space<vmem>>, vector<1x1x1x16x16xf32>
    %577 = vector.shape_cast %576 : vector<1x1x1x16x16xf32> to vector<16x16xf32>
    %c0_204 = arith.constant 0 : index
    %c3_205 = arith.constant 3 : index
    %c1_206 = arith.constant 1 : index
    %c0_207 = arith.constant 0 : index
    %c0_208 = arith.constant 0 : index
    %578 = vector.load %arg2[%c0_204, %c3_205, %c1_206, %c0_207, %c0_208] : memref<1x4x8x16x16xf32, #tpu.memory_space<vmem>>, vector<1x1x1x16x16xf32>
    %579 = vector.shape_cast %578 : vector<1x1x1x16x16xf32> to vector<16x16xf32>
    %580 = arith.maximumf %573, %575 : vector<16x16xf32>
    %581 = arith.maximumf %580, %577 : vector<16x16xf32>
    %582 = arith.maximumf %581, %579 : vector<16x16xf32>
    %583 = arith.subf %573, %582 : vector<16x16xf32>
    %584 = math.exp %583 : vector<16x16xf32>
    %585 = arith.subf %575, %582 : vector<16x16xf32>
    %586 = math.exp %585 : vector<16x16xf32>
    %587 = arith.subf %577, %582 : vector<16x16xf32>
    %588 = math.exp %587 : vector<16x16xf32>
    %589 = arith.subf %579, %582 : vector<16x16xf32>
    %590 = math.exp %589 : vector<16x16xf32>
    %591 = arith.addf %584, %586 : vector<16x16xf32>
    %592 = arith.addf %591, %588 : vector<16x16xf32>
    %593 = arith.addf %592, %590 : vector<16x16xf32>
    %cst_209 = arith.constant 1.000000e+00 : f32
    %594 = vector.broadcast %cst_209 : f32 to vector<16x16xf32>
    %595 = arith.divf %594, %593 : vector<16x16xf32>
    %cst_210 = arith.constant 0.000000e+00 : f32
    %596 = vector.broadcast %cst_210 : f32 to vector<16x16xf32>
    %597 = arith.mulf %584, %595 : vector<16x16xf32>
    %c0_i32_211 = arith.constant 0 : i32
    %598 = vector.broadcast %c0_i32_211 : i32 to vector<16x16xi32>
    %599 = arith.cmpi eq, %62, %598 : vector<16x16xi32>
    %600 = arith.extui %599 : vector<16x16xi1> to vector<16x16xi32>
    %601 = arith.sitofp %600 : vector<16x16xi32> to vector<16x16xf32>
    %602 = arith.addf %442, %601 : vector<16x16xf32>
    %603 = arith.mulf %597, %601 : vector<16x16xf32>
    %604 = arith.addf %444, %603 : vector<16x16xf32>
    %605 = arith.addf %445, %597 : vector<16x16xf32>
    %606 = arith.mulf %573, %601 : vector<16x16xf32>
    %607 = arith.addf %596, %606 : vector<16x16xf32>
    %608 = arith.mulf %586, %595 : vector<16x16xf32>
    %cst_212 = arith.constant 1.000000e+00 : f32
    %609 = vector.broadcast %cst_212 : f32 to vector<16x16xf32>
    %610 = arith.subf %609, %145 : vector<16x16xf32>
    %611 = arith.addf %451, %610 : vector<16x16xf32>
    %612 = arith.mulf %608, %610 : vector<16x16xf32>
    %613 = arith.addf %453, %612 : vector<16x16xf32>
    %614 = arith.addf %454, %608 : vector<16x16xf32>
    %615 = arith.mulf %575, %610 : vector<16x16xf32>
    %616 = arith.addf %607, %615 : vector<16x16xf32>
    %617 = arith.mulf %588, %595 : vector<16x16xf32>
    %cst_213 = arith.constant 1.000000e+00 : f32
    %618 = vector.broadcast %cst_213 : f32 to vector<16x16xf32>
    %619 = arith.subf %618, %213 : vector<16x16xf32>
    %620 = arith.addf %460, %619 : vector<16x16xf32>
    %621 = arith.mulf %617, %619 : vector<16x16xf32>
    %622 = arith.addf %462, %621 : vector<16x16xf32>
    %623 = arith.addf %463, %617 : vector<16x16xf32>
    %624 = arith.mulf %577, %619 : vector<16x16xf32>
    %625 = arith.addf %616, %624 : vector<16x16xf32>
    %626 = arith.mulf %590, %595 : vector<16x16xf32>
    %cst_214 = arith.constant 1.000000e+00 : f32
    %627 = vector.broadcast %cst_214 : f32 to vector<16x16xf32>
    %628 = arith.subf %627, %281 : vector<16x16xf32>
    %629 = arith.addf %469, %628 : vector<16x16xf32>
    %630 = arith.mulf %626, %628 : vector<16x16xf32>
    %631 = arith.addf %471, %630 : vector<16x16xf32>
    %632 = arith.addf %472, %626 : vector<16x16xf32>
    %633 = arith.mulf %579, %628 : vector<16x16xf32>
    %634 = arith.addf %625, %633 : vector<16x16xf32>
    %635 = math.log %593 : vector<16x16xf32>
    %636 = arith.addf %582, %635 : vector<16x16xf32>
    %637 = arith.subf %636, %634 : vector<16x16xf32>
    %638 = arith.addf %478, %637 : vector<16x16xf32>
    %639 = arith.truncf %331 : vector<16x16xf32> to vector<16x16xbf16>
    %cst_215 = arith.constant dense<0.000000e+00> : vector<16x16xf32>
    %640 = tpu.matmul %12, %639, %cst_215 {dimension_numbers = #tpu.dot_dimension_numbers<[1], [0], [0], [1], [0, 0, 1, 1], [], []>} : vector<16x16xbf16>, vector<16x16xbf16>, vector<16x16xf32> -> vector<16x16xf32>
    %641 = arith.truncf %640 : vector<16x16xf32> to vector<16x16xbf16>
    %cst_216 = arith.constant dense<0.000000e+00> : vector<16x16xf32>
    %642 = tpu.matmul %641, %21, %cst_216 {dimension_numbers = #tpu.dot_dimension_numbers<[1], [0], [0], [1], [0, 0, 1, 1], [], []>} : vector<16x16xbf16>, vector<16x16xbf16>, vector<16x16xf32> -> vector<16x16xf32>
    %cst_217 = arith.constant 5.000000e-01 : f32
    %643 = vector.broadcast %cst_217 : f32 to vector<16x16xf32>
    %644 = arith.cmpf ogt, %642, %643 : vector<16x16xf32>
    %645 = arith.extui %644 : vector<16x16xi1> to vector<16x16xi32>
    %646 = arith.sitofp %645 : vector<16x16xi32> to vector<16x16xf32>
    %cst_218 = arith.constant 0.221199214 : f32
    %647 = vector.broadcast %cst_218 : f32 to vector<16x16xf32>
    %648 = arith.mulf %646, %647 : vector<16x16xf32>
    %cst_219 = arith.constant 1.000000e+00 : f32
    %649 = vector.broadcast %cst_219 : f32 to vector<16x16xf32>
    %650 = arith.subf %649, %648 : vector<16x16xf32>
    %cst_220 = arith.constant 0.393469334 : f32
    %651 = vector.broadcast %cst_220 : f32 to vector<16x16xf32>
    %652 = arith.mulf %646, %651 : vector<16x16xf32>
    %cst_221 = arith.constant 1.000000e+00 : f32
    %653 = vector.broadcast %cst_221 : f32 to vector<16x16xf32>
    %654 = arith.subf %653, %652 : vector<16x16xf32>
    %655 = arith.mulf %608, %610 : vector<16x16xf32>
    %656 = arith.mulf %655, %654 : vector<16x16xf32>
    %657 = arith.addf %497, %656 : vector<16x16xf32>
    %658 = arith.mulf %608, %650 : vector<16x16xf32>
    %659 = arith.addf %499, %658 : vector<16x16xf32>
    %660 = arith.mulf %610, %650 : vector<16x16xf32>
    %661 = arith.addf %501, %660 : vector<16x16xf32>
    %cst_222 = arith.constant 1.000000e+00 : f32
    %662 = vector.broadcast %cst_222 : f32 to vector<16x16xf32>
    %663 = arith.subf %662, %608 : vector<16x16xf32>
    %cst_223 = arith.constant 1.000000e+00 : f32
    %664 = vector.broadcast %cst_223 : f32 to vector<16x16xf32>
    %665 = arith.subf %664, %610 : vector<16x16xf32>
    %666 = arith.mulf %663, %665 : vector<16x16xf32>
    %667 = arith.mulf %666, %654 : vector<16x16xf32>
    %668 = arith.addf %508, %667 : vector<16x16xf32>
    %669 = arith.addf %509, %650 : vector<16x16xf32>
    %670 = arith.truncf %351 : vector<16x16xf32> to vector<16x16xbf16>
    %cst_224 = arith.constant dense<0.000000e+00> : vector<16x16xf32>
    %671 = tpu.matmul %12, %670, %cst_224 {dimension_numbers = #tpu.dot_dimension_numbers<[1], [0], [0], [1], [0, 0, 1, 1], [], []>} : vector<16x16xbf16>, vector<16x16xbf16>, vector<16x16xf32> -> vector<16x16xf32>
    %672 = arith.truncf %671 : vector<16x16xf32> to vector<16x16xbf16>
    %cst_225 = arith.constant dense<0.000000e+00> : vector<16x16xf32>
    %673 = tpu.matmul %672, %21, %cst_225 {dimension_numbers = #tpu.dot_dimension_numbers<[1], [0], [0], [1], [0, 0, 1, 1], [], []>} : vector<16x16xbf16>, vector<16x16xbf16>, vector<16x16xf32> -> vector<16x16xf32>
    %cst_226 = arith.constant 5.000000e-01 : f32
    %674 = vector.broadcast %cst_226 : f32 to vector<16x16xf32>
    %675 = arith.cmpf ogt, %673, %674 : vector<16x16xf32>
    %676 = arith.extui %675 : vector<16x16xi1> to vector<16x16xi32>
    %677 = arith.sitofp %676 : vector<16x16xi32> to vector<16x16xf32>
    %cst_227 = arith.constant 0.221199214 : f32
    %678 = vector.broadcast %cst_227 : f32 to vector<16x16xf32>
    %679 = arith.mulf %677, %678 : vector<16x16xf32>
    %cst_228 = arith.constant 1.000000e+00 : f32
    %680 = vector.broadcast %cst_228 : f32 to vector<16x16xf32>
    %681 = arith.subf %680, %679 : vector<16x16xf32>
    %cst_229 = arith.constant 0.393469334 : f32
    %682 = vector.broadcast %cst_229 : f32 to vector<16x16xf32>
    %683 = arith.mulf %677, %682 : vector<16x16xf32>
    %cst_230 = arith.constant 1.000000e+00 : f32
    %684 = vector.broadcast %cst_230 : f32 to vector<16x16xf32>
    %685 = arith.subf %684, %683 : vector<16x16xf32>
    %686 = arith.mulf %617, %619 : vector<16x16xf32>
    %687 = arith.mulf %686, %685 : vector<16x16xf32>
    %688 = arith.addf %528, %687 : vector<16x16xf32>
    %689 = arith.mulf %617, %681 : vector<16x16xf32>
    %690 = arith.addf %530, %689 : vector<16x16xf32>
    %691 = arith.mulf %619, %681 : vector<16x16xf32>
    %692 = arith.addf %532, %691 : vector<16x16xf32>
    %cst_231 = arith.constant 1.000000e+00 : f32
    %693 = vector.broadcast %cst_231 : f32 to vector<16x16xf32>
    %694 = arith.subf %693, %617 : vector<16x16xf32>
    %cst_232 = arith.constant 1.000000e+00 : f32
    %695 = vector.broadcast %cst_232 : f32 to vector<16x16xf32>
    %696 = arith.subf %695, %619 : vector<16x16xf32>
    %697 = arith.mulf %694, %696 : vector<16x16xf32>
    %698 = arith.mulf %697, %685 : vector<16x16xf32>
    %699 = arith.addf %539, %698 : vector<16x16xf32>
    %700 = arith.addf %540, %681 : vector<16x16xf32>
    %701 = arith.truncf %371 : vector<16x16xf32> to vector<16x16xbf16>
    %cst_233 = arith.constant dense<0.000000e+00> : vector<16x16xf32>
    %702 = tpu.matmul %12, %701, %cst_233 {dimension_numbers = #tpu.dot_dimension_numbers<[1], [0], [0], [1], [0, 0, 1, 1], [], []>} : vector<16x16xbf16>, vector<16x16xbf16>, vector<16x16xf32> -> vector<16x16xf32>
    %703 = arith.truncf %702 : vector<16x16xf32> to vector<16x16xbf16>
    %cst_234 = arith.constant dense<0.000000e+00> : vector<16x16xf32>
    %704 = tpu.matmul %703, %21, %cst_234 {dimension_numbers = #tpu.dot_dimension_numbers<[1], [0], [0], [1], [0, 0, 1, 1], [], []>} : vector<16x16xbf16>, vector<16x16xbf16>, vector<16x16xf32> -> vector<16x16xf32>
    %cst_235 = arith.constant 5.000000e-01 : f32
    %705 = vector.broadcast %cst_235 : f32 to vector<16x16xf32>
    %706 = arith.cmpf ogt, %704, %705 : vector<16x16xf32>
    %707 = arith.extui %706 : vector<16x16xi1> to vector<16x16xi32>
    %708 = arith.sitofp %707 : vector<16x16xi32> to vector<16x16xf32>
    %cst_236 = arith.constant 0.221199214 : f32
    %709 = vector.broadcast %cst_236 : f32 to vector<16x16xf32>
    %710 = arith.mulf %708, %709 : vector<16x16xf32>
    %cst_237 = arith.constant 1.000000e+00 : f32
    %711 = vector.broadcast %cst_237 : f32 to vector<16x16xf32>
    %712 = arith.subf %711, %710 : vector<16x16xf32>
    %cst_238 = arith.constant 0.393469334 : f32
    %713 = vector.broadcast %cst_238 : f32 to vector<16x16xf32>
    %714 = arith.mulf %708, %713 : vector<16x16xf32>
    %cst_239 = arith.constant 1.000000e+00 : f32
    %715 = vector.broadcast %cst_239 : f32 to vector<16x16xf32>
    %716 = arith.subf %715, %714 : vector<16x16xf32>
    %717 = arith.mulf %626, %628 : vector<16x16xf32>
    %718 = arith.mulf %717, %716 : vector<16x16xf32>
    %719 = arith.addf %559, %718 : vector<16x16xf32>
    %720 = arith.mulf %626, %712 : vector<16x16xf32>
    %721 = arith.addf %561, %720 : vector<16x16xf32>
    %722 = arith.mulf %628, %712 : vector<16x16xf32>
    %723 = arith.addf %563, %722 : vector<16x16xf32>
    %cst_240 = arith.constant 1.000000e+00 : f32
    %724 = vector.broadcast %cst_240 : f32 to vector<16x16xf32>
    %725 = arith.subf %724, %626 : vector<16x16xf32>
    %cst_241 = arith.constant 1.000000e+00 : f32
    %726 = vector.broadcast %cst_241 : f32 to vector<16x16xf32>
    %727 = arith.subf %726, %628 : vector<16x16xf32>
    %728 = arith.mulf %725, %727 : vector<16x16xf32>
    %729 = arith.mulf %728, %716 : vector<16x16xf32>
    %730 = arith.addf %570, %729 : vector<16x16xf32>
    %731 = arith.addf %571, %712 : vector<16x16xf32>
    %c0_242 = arith.constant 0 : index
    %c0_243 = arith.constant 0 : index
    %c2_244 = arith.constant 2 : index
    %c0_245 = arith.constant 0 : index
    %c0_246 = arith.constant 0 : index
    %732 = vector.load %arg2[%c0_242, %c0_243, %c2_244, %c0_245, %c0_246] : memref<1x4x8x16x16xf32, #tpu.memory_space<vmem>>, vector<1x1x1x16x16xf32>
    %733 = vector.shape_cast %732 : vector<1x1x1x16x16xf32> to vector<16x16xf32>
    %c0_247 = arith.constant 0 : index
    %c1_248 = arith.constant 1 : index
    %c2_249 = arith.constant 2 : index
    %c0_250 = arith.constant 0 : index
    %c0_251 = arith.constant 0 : index
    %734 = vector.load %arg2[%c0_247, %c1_248, %c2_249, %c0_250, %c0_251] : memref<1x4x8x16x16xf32, #tpu.memory_space<vmem>>, vector<1x1x1x16x16xf32>
    %735 = vector.shape_cast %734 : vector<1x1x1x16x16xf32> to vector<16x16xf32>
    %c0_252 = arith.constant 0 : index
    %c2_253 = arith.constant 2 : index
    %c2_254 = arith.constant 2 : index
    %c0_255 = arith.constant 0 : index
    %c0_256 = arith.constant 0 : index
    %736 = vector.load %arg2[%c0_252, %c2_253, %c2_254, %c0_255, %c0_256] : memref<1x4x8x16x16xf32, #tpu.memory_space<vmem>>, vector<1x1x1x16x16xf32>
    %737 = vector.shape_cast %736 : vector<1x1x1x16x16xf32> to vector<16x16xf32>
    %c0_257 = arith.constant 0 : index
    %c3_258 = arith.constant 3 : index
    %c2_259 = arith.constant 2 : index
    %c0_260 = arith.constant 0 : index
    %c0_261 = arith.constant 0 : index
    %738 = vector.load %arg2[%c0_257, %c3_258, %c2_259, %c0_260, %c0_261] : memref<1x4x8x16x16xf32, #tpu.memory_space<vmem>>, vector<1x1x1x16x16xf32>
    %739 = vector.shape_cast %738 : vector<1x1x1x16x16xf32> to vector<16x16xf32>
    %740 = arith.maximumf %733, %735 : vector<16x16xf32>
    %741 = arith.maximumf %740, %737 : vector<16x16xf32>
    %742 = arith.maximumf %741, %739 : vector<16x16xf32>
    %743 = arith.subf %733, %742 : vector<16x16xf32>
    %744 = math.exp %743 : vector<16x16xf32>
    %745 = arith.subf %735, %742 : vector<16x16xf32>
    %746 = math.exp %745 : vector<16x16xf32>
    %747 = arith.subf %737, %742 : vector<16x16xf32>
    %748 = math.exp %747 : vector<16x16xf32>
    %749 = arith.subf %739, %742 : vector<16x16xf32>
    %750 = math.exp %749 : vector<16x16xf32>
    %751 = arith.addf %744, %746 : vector<16x16xf32>
    %752 = arith.addf %751, %748 : vector<16x16xf32>
    %753 = arith.addf %752, %750 : vector<16x16xf32>
    %cst_262 = arith.constant 1.000000e+00 : f32
    %754 = vector.broadcast %cst_262 : f32 to vector<16x16xf32>
    %755 = arith.divf %754, %753 : vector<16x16xf32>
    %cst_263 = arith.constant 0.000000e+00 : f32
    %756 = vector.broadcast %cst_263 : f32 to vector<16x16xf32>
    %757 = arith.mulf %744, %755 : vector<16x16xf32>
    %c0_i32_264 = arith.constant 0 : i32
    %758 = vector.broadcast %c0_i32_264 : i32 to vector<16x16xi32>
    %759 = arith.cmpi eq, %66, %758 : vector<16x16xi32>
    %760 = arith.extui %759 : vector<16x16xi1> to vector<16x16xi32>
    %761 = arith.sitofp %760 : vector<16x16xi32> to vector<16x16xf32>
    %762 = arith.addf %602, %761 : vector<16x16xf32>
    %763 = arith.mulf %757, %761 : vector<16x16xf32>
    %764 = arith.addf %604, %763 : vector<16x16xf32>
    %765 = arith.addf %605, %757 : vector<16x16xf32>
    %766 = arith.mulf %733, %761 : vector<16x16xf32>
    %767 = arith.addf %756, %766 : vector<16x16xf32>
    %768 = arith.mulf %746, %755 : vector<16x16xf32>
    %cst_265 = arith.constant 1.000000e+00 : f32
    %769 = vector.broadcast %cst_265 : f32 to vector<16x16xf32>
    %770 = arith.subf %769, %149 : vector<16x16xf32>
    %771 = arith.addf %611, %770 : vector<16x16xf32>
    %772 = arith.mulf %768, %770 : vector<16x16xf32>
    %773 = arith.addf %613, %772 : vector<16x16xf32>
    %774 = arith.addf %614, %768 : vector<16x16xf32>
    %775 = arith.mulf %735, %770 : vector<16x16xf32>
    %776 = arith.addf %767, %775 : vector<16x16xf32>
    %777 = arith.mulf %748, %755 : vector<16x16xf32>
    %cst_266 = arith.constant 1.000000e+00 : f32
    %778 = vector.broadcast %cst_266 : f32 to vector<16x16xf32>
    %779 = arith.subf %778, %217 : vector<16x16xf32>
    %780 = arith.addf %620, %779 : vector<16x16xf32>
    %781 = arith.mulf %777, %779 : vector<16x16xf32>
    %782 = arith.addf %622, %781 : vector<16x16xf32>
    %783 = arith.addf %623, %777 : vector<16x16xf32>
    %784 = arith.mulf %737, %779 : vector<16x16xf32>
    %785 = arith.addf %776, %784 : vector<16x16xf32>
    %786 = arith.mulf %750, %755 : vector<16x16xf32>
    %cst_267 = arith.constant 1.000000e+00 : f32
    %787 = vector.broadcast %cst_267 : f32 to vector<16x16xf32>
    %788 = arith.subf %787, %285 : vector<16x16xf32>
    %789 = arith.addf %629, %788 : vector<16x16xf32>
    %790 = arith.mulf %786, %788 : vector<16x16xf32>
    %791 = arith.addf %631, %790 : vector<16x16xf32>
    %792 = arith.addf %632, %786 : vector<16x16xf32>
    %793 = arith.mulf %739, %788 : vector<16x16xf32>
    %794 = arith.addf %785, %793 : vector<16x16xf32>
    %795 = math.log %753 : vector<16x16xf32>
    %796 = arith.addf %742, %795 : vector<16x16xf32>
    %797 = arith.subf %796, %794 : vector<16x16xf32>
    %798 = arith.addf %638, %797 : vector<16x16xf32>
    %799 = arith.truncf %333 : vector<16x16xf32> to vector<16x16xbf16>
    %cst_268 = arith.constant dense<0.000000e+00> : vector<16x16xf32>
    %800 = tpu.matmul %12, %799, %cst_268 {dimension_numbers = #tpu.dot_dimension_numbers<[1], [0], [0], [1], [0, 0, 1, 1], [], []>} : vector<16x16xbf16>, vector<16x16xbf16>, vector<16x16xf32> -> vector<16x16xf32>
    %801 = arith.truncf %800 : vector<16x16xf32> to vector<16x16xbf16>
    %cst_269 = arith.constant dense<0.000000e+00> : vector<16x16xf32>
    %802 = tpu.matmul %801, %21, %cst_269 {dimension_numbers = #tpu.dot_dimension_numbers<[1], [0], [0], [1], [0, 0, 1, 1], [], []>} : vector<16x16xbf16>, vector<16x16xbf16>, vector<16x16xf32> -> vector<16x16xf32>
    %cst_270 = arith.constant 5.000000e-01 : f32
    %803 = vector.broadcast %cst_270 : f32 to vector<16x16xf32>
    %804 = arith.cmpf ogt, %802, %803 : vector<16x16xf32>
    %805 = arith.extui %804 : vector<16x16xi1> to vector<16x16xi32>
    %806 = arith.sitofp %805 : vector<16x16xi32> to vector<16x16xf32>
    %cst_271 = arith.constant 0.221199214 : f32
    %807 = vector.broadcast %cst_271 : f32 to vector<16x16xf32>
    %808 = arith.mulf %806, %807 : vector<16x16xf32>
    %cst_272 = arith.constant 1.000000e+00 : f32
    %809 = vector.broadcast %cst_272 : f32 to vector<16x16xf32>
    %810 = arith.subf %809, %808 : vector<16x16xf32>
    %cst_273 = arith.constant 0.393469334 : f32
    %811 = vector.broadcast %cst_273 : f32 to vector<16x16xf32>
    %812 = arith.mulf %806, %811 : vector<16x16xf32>
    %cst_274 = arith.constant 1.000000e+00 : f32
    %813 = vector.broadcast %cst_274 : f32 to vector<16x16xf32>
    %814 = arith.subf %813, %812 : vector<16x16xf32>
    %815 = arith.mulf %768, %770 : vector<16x16xf32>
    %816 = arith.mulf %815, %814 : vector<16x16xf32>
    %817 = arith.addf %657, %816 : vector<16x16xf32>
    %818 = arith.mulf %768, %810 : vector<16x16xf32>
    %819 = arith.addf %659, %818 : vector<16x16xf32>
    %820 = arith.mulf %770, %810 : vector<16x16xf32>
    %821 = arith.addf %661, %820 : vector<16x16xf32>
    %cst_275 = arith.constant 1.000000e+00 : f32
    %822 = vector.broadcast %cst_275 : f32 to vector<16x16xf32>
    %823 = arith.subf %822, %768 : vector<16x16xf32>
    %cst_276 = arith.constant 1.000000e+00 : f32
    %824 = vector.broadcast %cst_276 : f32 to vector<16x16xf32>
    %825 = arith.subf %824, %770 : vector<16x16xf32>
    %826 = arith.mulf %823, %825 : vector<16x16xf32>
    %827 = arith.mulf %826, %814 : vector<16x16xf32>
    %828 = arith.addf %668, %827 : vector<16x16xf32>
    %829 = arith.addf %669, %810 : vector<16x16xf32>
    %830 = arith.truncf %353 : vector<16x16xf32> to vector<16x16xbf16>
    %cst_277 = arith.constant dense<0.000000e+00> : vector<16x16xf32>
    %831 = tpu.matmul %12, %830, %cst_277 {dimension_numbers = #tpu.dot_dimension_numbers<[1], [0], [0], [1], [0, 0, 1, 1], [], []>} : vector<16x16xbf16>, vector<16x16xbf16>, vector<16x16xf32> -> vector<16x16xf32>
    %832 = arith.truncf %831 : vector<16x16xf32> to vector<16x16xbf16>
    %cst_278 = arith.constant dense<0.000000e+00> : vector<16x16xf32>
    %833 = tpu.matmul %832, %21, %cst_278 {dimension_numbers = #tpu.dot_dimension_numbers<[1], [0], [0], [1], [0, 0, 1, 1], [], []>} : vector<16x16xbf16>, vector<16x16xbf16>, vector<16x16xf32> -> vector<16x16xf32>
    %cst_279 = arith.constant 5.000000e-01 : f32
    %834 = vector.broadcast %cst_279 : f32 to vector<16x16xf32>
    %835 = arith.cmpf ogt, %833, %834 : vector<16x16xf32>
    %836 = arith.extui %835 : vector<16x16xi1> to vector<16x16xi32>
    %837 = arith.sitofp %836 : vector<16x16xi32> to vector<16x16xf32>
    %cst_280 = arith.constant 0.221199214 : f32
    %838 = vector.broadcast %cst_280 : f32 to vector<16x16xf32>
    %839 = arith.mulf %837, %838 : vector<16x16xf32>
    %cst_281 = arith.constant 1.000000e+00 : f32
    %840 = vector.broadcast %cst_281 : f32 to vector<16x16xf32>
    %841 = arith.subf %840, %839 : vector<16x16xf32>
    %cst_282 = arith.constant 0.393469334 : f32
    %842 = vector.broadcast %cst_282 : f32 to vector<16x16xf32>
    %843 = arith.mulf %837, %842 : vector<16x16xf32>
    %cst_283 = arith.constant 1.000000e+00 : f32
    %844 = vector.broadcast %cst_283 : f32 to vector<16x16xf32>
    %845 = arith.subf %844, %843 : vector<16x16xf32>
    %846 = arith.mulf %777, %779 : vector<16x16xf32>
    %847 = arith.mulf %846, %845 : vector<16x16xf32>
    %848 = arith.addf %688, %847 : vector<16x16xf32>
    %849 = arith.mulf %777, %841 : vector<16x16xf32>
    %850 = arith.addf %690, %849 : vector<16x16xf32>
    %851 = arith.mulf %779, %841 : vector<16x16xf32>
    %852 = arith.addf %692, %851 : vector<16x16xf32>
    %cst_284 = arith.constant 1.000000e+00 : f32
    %853 = vector.broadcast %cst_284 : f32 to vector<16x16xf32>
    %854 = arith.subf %853, %777 : vector<16x16xf32>
    %cst_285 = arith.constant 1.000000e+00 : f32
    %855 = vector.broadcast %cst_285 : f32 to vector<16x16xf32>
    %856 = arith.subf %855, %779 : vector<16x16xf32>
    %857 = arith.mulf %854, %856 : vector<16x16xf32>
    %858 = arith.mulf %857, %845 : vector<16x16xf32>
    %859 = arith.addf %699, %858 : vector<16x16xf32>
    %860 = arith.addf %700, %841 : vector<16x16xf32>
    %861 = arith.truncf %373 : vector<16x16xf32> to vector<16x16xbf16>
    %cst_286 = arith.constant dense<0.000000e+00> : vector<16x16xf32>
    %862 = tpu.matmul %12, %861, %cst_286 {dimension_numbers = #tpu.dot_dimension_numbers<[1], [0], [0], [1], [0, 0, 1, 1], [], []>} : vector<16x16xbf16>, vector<16x16xbf16>, vector<16x16xf32> -> vector<16x16xf32>
    %863 = arith.truncf %862 : vector<16x16xf32> to vector<16x16xbf16>
    %cst_287 = arith.constant dense<0.000000e+00> : vector<16x16xf32>
    %864 = tpu.matmul %863, %21, %cst_287 {dimension_numbers = #tpu.dot_dimension_numbers<[1], [0], [0], [1], [0, 0, 1, 1], [], []>} : vector<16x16xbf16>, vector<16x16xbf16>, vector<16x16xf32> -> vector<16x16xf32>
    %cst_288 = arith.constant 5.000000e-01 : f32
    %865 = vector.broadcast %cst_288 : f32 to vector<16x16xf32>
    %866 = arith.cmpf ogt, %864, %865 : vector<16x16xf32>
    %867 = arith.extui %866 : vector<16x16xi1> to vector<16x16xi32>
    %868 = arith.sitofp %867 : vector<16x16xi32> to vector<16x16xf32>
    %cst_289 = arith.constant 0.221199214 : f32
    %869 = vector.broadcast %cst_289 : f32 to vector<16x16xf32>
    %870 = arith.mulf %868, %869 : vector<16x16xf32>
    %cst_290 = arith.constant 1.000000e+00 : f32
    %871 = vector.broadcast %cst_290 : f32 to vector<16x16xf32>
    %872 = arith.subf %871, %870 : vector<16x16xf32>
    %cst_291 = arith.constant 0.393469334 : f32
    %873 = vector.broadcast %cst_291 : f32 to vector<16x16xf32>
    %874 = arith.mulf %868, %873 : vector<16x16xf32>
    %cst_292 = arith.constant 1.000000e+00 : f32
    %875 = vector.broadcast %cst_292 : f32 to vector<16x16xf32>
    %876 = arith.subf %875, %874 : vector<16x16xf32>
    %877 = arith.mulf %786, %788 : vector<16x16xf32>
    %878 = arith.mulf %877, %876 : vector<16x16xf32>
    %879 = arith.addf %719, %878 : vector<16x16xf32>
    %880 = arith.mulf %786, %872 : vector<16x16xf32>
    %881 = arith.addf %721, %880 : vector<16x16xf32>
    %882 = arith.mulf %788, %872 : vector<16x16xf32>
    %883 = arith.addf %723, %882 : vector<16x16xf32>
    %cst_293 = arith.constant 1.000000e+00 : f32
    %884 = vector.broadcast %cst_293 : f32 to vector<16x16xf32>
    %885 = arith.subf %884, %786 : vector<16x16xf32>
    %cst_294 = arith.constant 1.000000e+00 : f32
    %886 = vector.broadcast %cst_294 : f32 to vector<16x16xf32>
    %887 = arith.subf %886, %788 : vector<16x16xf32>
    %888 = arith.mulf %885, %887 : vector<16x16xf32>
    %889 = arith.mulf %888, %876 : vector<16x16xf32>
    %890 = arith.addf %730, %889 : vector<16x16xf32>
    %891 = arith.addf %731, %872 : vector<16x16xf32>
    %c0_295 = arith.constant 0 : index
    %c0_296 = arith.constant 0 : index
    %c3_297 = arith.constant 3 : index
    %c0_298 = arith.constant 0 : index
    %c0_299 = arith.constant 0 : index
    %892 = vector.load %arg2[%c0_295, %c0_296, %c3_297, %c0_298, %c0_299] : memref<1x4x8x16x16xf32, #tpu.memory_space<vmem>>, vector<1x1x1x16x16xf32>
    %893 = vector.shape_cast %892 : vector<1x1x1x16x16xf32> to vector<16x16xf32>
    %c0_300 = arith.constant 0 : index
    %c1_301 = arith.constant 1 : index
    %c3_302 = arith.constant 3 : index
    %c0_303 = arith.constant 0 : index
    %c0_304 = arith.constant 0 : index
    %894 = vector.load %arg2[%c0_300, %c1_301, %c3_302, %c0_303, %c0_304] : memref<1x4x8x16x16xf32, #tpu.memory_space<vmem>>, vector<1x1x1x16x16xf32>
    %895 = vector.shape_cast %894 : vector<1x1x1x16x16xf32> to vector<16x16xf32>
    %c0_305 = arith.constant 0 : index
    %c2_306 = arith.constant 2 : index
    %c3_307 = arith.constant 3 : index
    %c0_308 = arith.constant 0 : index
    %c0_309 = arith.constant 0 : index
    %896 = vector.load %arg2[%c0_305, %c2_306, %c3_307, %c0_308, %c0_309] : memref<1x4x8x16x16xf32, #tpu.memory_space<vmem>>, vector<1x1x1x16x16xf32>
    %897 = vector.shape_cast %896 : vector<1x1x1x16x16xf32> to vector<16x16xf32>
    %c0_310 = arith.constant 0 : index
    %c3_311 = arith.constant 3 : index
    %c3_312 = arith.constant 3 : index
    %c0_313 = arith.constant 0 : index
    %c0_314 = arith.constant 0 : index
    %898 = vector.load %arg2[%c0_310, %c3_311, %c3_312, %c0_313, %c0_314] : memref<1x4x8x16x16xf32, #tpu.memory_space<vmem>>, vector<1x1x1x16x16xf32>
    %899 = vector.shape_cast %898 : vector<1x1x1x16x16xf32> to vector<16x16xf32>
    %900 = arith.maximumf %893, %895 : vector<16x16xf32>
    %901 = arith.maximumf %900, %897 : vector<16x16xf32>
    %902 = arith.maximumf %901, %899 : vector<16x16xf32>
    %903 = arith.subf %893, %902 : vector<16x16xf32>
    %904 = math.exp %903 : vector<16x16xf32>
    %905 = arith.subf %895, %902 : vector<16x16xf32>
    %906 = math.exp %905 : vector<16x16xf32>
    %907 = arith.subf %897, %902 : vector<16x16xf32>
    %908 = math.exp %907 : vector<16x16xf32>
    %909 = arith.subf %899, %902 : vector<16x16xf32>
    %910 = math.exp %909 : vector<16x16xf32>
    %911 = arith.addf %904, %906 : vector<16x16xf32>
    %912 = arith.addf %911, %908 : vector<16x16xf32>
    %913 = arith.addf %912, %910 : vector<16x16xf32>
    %cst_315 = arith.constant 1.000000e+00 : f32
    %914 = vector.broadcast %cst_315 : f32 to vector<16x16xf32>
    %915 = arith.divf %914, %913 : vector<16x16xf32>
    %cst_316 = arith.constant 0.000000e+00 : f32
    %916 = vector.broadcast %cst_316 : f32 to vector<16x16xf32>
    %917 = arith.mulf %904, %915 : vector<16x16xf32>
    %c0_i32_317 = arith.constant 0 : i32
    %918 = vector.broadcast %c0_i32_317 : i32 to vector<16x16xi32>
    %919 = arith.cmpi eq, %70, %918 : vector<16x16xi32>
    %920 = arith.extui %919 : vector<16x16xi1> to vector<16x16xi32>
    %921 = arith.sitofp %920 : vector<16x16xi32> to vector<16x16xf32>
    %922 = arith.addf %762, %921 : vector<16x16xf32>
    %923 = arith.mulf %917, %921 : vector<16x16xf32>
    %924 = arith.addf %764, %923 : vector<16x16xf32>
    %925 = arith.addf %765, %917 : vector<16x16xf32>
    %926 = arith.mulf %893, %921 : vector<16x16xf32>
    %927 = arith.addf %916, %926 : vector<16x16xf32>
    %928 = arith.mulf %906, %915 : vector<16x16xf32>
    %cst_318 = arith.constant 1.000000e+00 : f32
    %929 = vector.broadcast %cst_318 : f32 to vector<16x16xf32>
    %930 = arith.subf %929, %153 : vector<16x16xf32>
    %931 = arith.addf %771, %930 : vector<16x16xf32>
    %932 = arith.mulf %928, %930 : vector<16x16xf32>
    %933 = arith.addf %773, %932 : vector<16x16xf32>
    %934 = arith.addf %774, %928 : vector<16x16xf32>
    %935 = arith.mulf %895, %930 : vector<16x16xf32>
    %936 = arith.addf %927, %935 : vector<16x16xf32>
    %937 = arith.mulf %908, %915 : vector<16x16xf32>
    %cst_319 = arith.constant 1.000000e+00 : f32
    %938 = vector.broadcast %cst_319 : f32 to vector<16x16xf32>
    %939 = arith.subf %938, %221 : vector<16x16xf32>
    %940 = arith.addf %780, %939 : vector<16x16xf32>
    %941 = arith.mulf %937, %939 : vector<16x16xf32>
    %942 = arith.addf %782, %941 : vector<16x16xf32>
    %943 = arith.addf %783, %937 : vector<16x16xf32>
    %944 = arith.mulf %897, %939 : vector<16x16xf32>
    %945 = arith.addf %936, %944 : vector<16x16xf32>
    %946 = arith.mulf %910, %915 : vector<16x16xf32>
    %cst_320 = arith.constant 1.000000e+00 : f32
    %947 = vector.broadcast %cst_320 : f32 to vector<16x16xf32>
    %948 = arith.subf %947, %289 : vector<16x16xf32>
    %949 = arith.addf %789, %948 : vector<16x16xf32>
    %950 = arith.mulf %946, %948 : vector<16x16xf32>
    %951 = arith.addf %791, %950 : vector<16x16xf32>
    %952 = arith.addf %792, %946 : vector<16x16xf32>
    %953 = arith.mulf %899, %948 : vector<16x16xf32>
    %954 = arith.addf %945, %953 : vector<16x16xf32>
    %955 = math.log %913 : vector<16x16xf32>
    %956 = arith.addf %902, %955 : vector<16x16xf32>
    %957 = arith.subf %956, %954 : vector<16x16xf32>
    %958 = arith.addf %798, %957 : vector<16x16xf32>
    %959 = arith.truncf %335 : vector<16x16xf32> to vector<16x16xbf16>
    %cst_321 = arith.constant dense<0.000000e+00> : vector<16x16xf32>
    %960 = tpu.matmul %12, %959, %cst_321 {dimension_numbers = #tpu.dot_dimension_numbers<[1], [0], [0], [1], [0, 0, 1, 1], [], []>} : vector<16x16xbf16>, vector<16x16xbf16>, vector<16x16xf32> -> vector<16x16xf32>
    %961 = arith.truncf %960 : vector<16x16xf32> to vector<16x16xbf16>
    %cst_322 = arith.constant dense<0.000000e+00> : vector<16x16xf32>
    %962 = tpu.matmul %961, %21, %cst_322 {dimension_numbers = #tpu.dot_dimension_numbers<[1], [0], [0], [1], [0, 0, 1, 1], [], []>} : vector<16x16xbf16>, vector<16x16xbf16>, vector<16x16xf32> -> vector<16x16xf32>
    %cst_323 = arith.constant 5.000000e-01 : f32
    %963 = vector.broadcast %cst_323 : f32 to vector<16x16xf32>
    %964 = arith.cmpf ogt, %962, %963 : vector<16x16xf32>
    %965 = arith.extui %964 : vector<16x16xi1> to vector<16x16xi32>
    %966 = arith.sitofp %965 : vector<16x16xi32> to vector<16x16xf32>
    %cst_324 = arith.constant 0.221199214 : f32
    %967 = vector.broadcast %cst_324 : f32 to vector<16x16xf32>
    %968 = arith.mulf %966, %967 : vector<16x16xf32>
    %cst_325 = arith.constant 1.000000e+00 : f32
    %969 = vector.broadcast %cst_325 : f32 to vector<16x16xf32>
    %970 = arith.subf %969, %968 : vector<16x16xf32>
    %cst_326 = arith.constant 0.393469334 : f32
    %971 = vector.broadcast %cst_326 : f32 to vector<16x16xf32>
    %972 = arith.mulf %966, %971 : vector<16x16xf32>
    %cst_327 = arith.constant 1.000000e+00 : f32
    %973 = vector.broadcast %cst_327 : f32 to vector<16x16xf32>
    %974 = arith.subf %973, %972 : vector<16x16xf32>
    %975 = arith.mulf %928, %930 : vector<16x16xf32>
    %976 = arith.mulf %975, %974 : vector<16x16xf32>
    %977 = arith.addf %817, %976 : vector<16x16xf32>
    %978 = arith.mulf %928, %970 : vector<16x16xf32>
    %979 = arith.addf %819, %978 : vector<16x16xf32>
    %980 = arith.mulf %930, %970 : vector<16x16xf32>
    %981 = arith.addf %821, %980 : vector<16x16xf32>
    %cst_328 = arith.constant 1.000000e+00 : f32
    %982 = vector.broadcast %cst_328 : f32 to vector<16x16xf32>
    %983 = arith.subf %982, %928 : vector<16x16xf32>
    %cst_329 = arith.constant 1.000000e+00 : f32
    %984 = vector.broadcast %cst_329 : f32 to vector<16x16xf32>
    %985 = arith.subf %984, %930 : vector<16x16xf32>
    %986 = arith.mulf %983, %985 : vector<16x16xf32>
    %987 = arith.mulf %986, %974 : vector<16x16xf32>
    %988 = arith.addf %828, %987 : vector<16x16xf32>
    %989 = arith.addf %829, %970 : vector<16x16xf32>
    %990 = arith.truncf %355 : vector<16x16xf32> to vector<16x16xbf16>
    %cst_330 = arith.constant dense<0.000000e+00> : vector<16x16xf32>
    %991 = tpu.matmul %12, %990, %cst_330 {dimension_numbers = #tpu.dot_dimension_numbers<[1], [0], [0], [1], [0, 0, 1, 1], [], []>} : vector<16x16xbf16>, vector<16x16xbf16>, vector<16x16xf32> -> vector<16x16xf32>
    %992 = arith.truncf %991 : vector<16x16xf32> to vector<16x16xbf16>
    %cst_331 = arith.constant dense<0.000000e+00> : vector<16x16xf32>
    %993 = tpu.matmul %992, %21, %cst_331 {dimension_numbers = #tpu.dot_dimension_numbers<[1], [0], [0], [1], [0, 0, 1, 1], [], []>} : vector<16x16xbf16>, vector<16x16xbf16>, vector<16x16xf32> -> vector<16x16xf32>
    %cst_332 = arith.constant 5.000000e-01 : f32
    %994 = vector.broadcast %cst_332 : f32 to vector<16x16xf32>
    %995 = arith.cmpf ogt, %993, %994 : vector<16x16xf32>
    %996 = arith.extui %995 : vector<16x16xi1> to vector<16x16xi32>
    %997 = arith.sitofp %996 : vector<16x16xi32> to vector<16x16xf32>
    %cst_333 = arith.constant 0.221199214 : f32
    %998 = vector.broadcast %cst_333 : f32 to vector<16x16xf32>
    %999 = arith.mulf %997, %998 : vector<16x16xf32>
    %cst_334 = arith.constant 1.000000e+00 : f32
    %1000 = vector.broadcast %cst_334 : f32 to vector<16x16xf32>
    %1001 = arith.subf %1000, %999 : vector<16x16xf32>
    %cst_335 = arith.constant 0.393469334 : f32
    %1002 = vector.broadcast %cst_335 : f32 to vector<16x16xf32>
    %1003 = arith.mulf %997, %1002 : vector<16x16xf32>
    %cst_336 = arith.constant 1.000000e+00 : f32
    %1004 = vector.broadcast %cst_336 : f32 to vector<16x16xf32>
    %1005 = arith.subf %1004, %1003 : vector<16x16xf32>
    %1006 = arith.mulf %937, %939 : vector<16x16xf32>
    %1007 = arith.mulf %1006, %1005 : vector<16x16xf32>
    %1008 = arith.addf %848, %1007 : vector<16x16xf32>
    %1009 = arith.mulf %937, %1001 : vector<16x16xf32>
    %1010 = arith.addf %850, %1009 : vector<16x16xf32>
    %1011 = arith.mulf %939, %1001 : vector<16x16xf32>
    %1012 = arith.addf %852, %1011 : vector<16x16xf32>
    %cst_337 = arith.constant 1.000000e+00 : f32
    %1013 = vector.broadcast %cst_337 : f32 to vector<16x16xf32>
    %1014 = arith.subf %1013, %937 : vector<16x16xf32>
    %cst_338 = arith.constant 1.000000e+00 : f32
    %1015 = vector.broadcast %cst_338 : f32 to vector<16x16xf32>
    %1016 = arith.subf %1015, %939 : vector<16x16xf32>
    %1017 = arith.mulf %1014, %1016 : vector<16x16xf32>
    %1018 = arith.mulf %1017, %1005 : vector<16x16xf32>
    %1019 = arith.addf %859, %1018 : vector<16x16xf32>
    %1020 = arith.addf %860, %1001 : vector<16x16xf32>
    %1021 = arith.truncf %375 : vector<16x16xf32> to vector<16x16xbf16>
    %cst_339 = arith.constant dense<0.000000e+00> : vector<16x16xf32>
    %1022 = tpu.matmul %12, %1021, %cst_339 {dimension_numbers = #tpu.dot_dimension_numbers<[1], [0], [0], [1], [0, 0, 1, 1], [], []>} : vector<16x16xbf16>, vector<16x16xbf16>, vector<16x16xf32> -> vector<16x16xf32>
    %1023 = arith.truncf %1022 : vector<16x16xf32> to vector<16x16xbf16>
    %cst_340 = arith.constant dense<0.000000e+00> : vector<16x16xf32>
    %1024 = tpu.matmul %1023, %21, %cst_340 {dimension_numbers = #tpu.dot_dimension_numbers<[1], [0], [0], [1], [0, 0, 1, 1], [], []>} : vector<16x16xbf16>, vector<16x16xbf16>, vector<16x16xf32> -> vector<16x16xf32>
    %cst_341 = arith.constant 5.000000e-01 : f32
    %1025 = vector.broadcast %cst_341 : f32 to vector<16x16xf32>
    %1026 = arith.cmpf ogt, %1024, %1025 : vector<16x16xf32>
    %1027 = arith.extui %1026 : vector<16x16xi1> to vector<16x16xi32>
    %1028 = arith.sitofp %1027 : vector<16x16xi32> to vector<16x16xf32>
    %cst_342 = arith.constant 0.221199214 : f32
    %1029 = vector.broadcast %cst_342 : f32 to vector<16x16xf32>
    %1030 = arith.mulf %1028, %1029 : vector<16x16xf32>
    %cst_343 = arith.constant 1.000000e+00 : f32
    %1031 = vector.broadcast %cst_343 : f32 to vector<16x16xf32>
    %1032 = arith.subf %1031, %1030 : vector<16x16xf32>
    %cst_344 = arith.constant 0.393469334 : f32
    %1033 = vector.broadcast %cst_344 : f32 to vector<16x16xf32>
    %1034 = arith.mulf %1028, %1033 : vector<16x16xf32>
    %cst_345 = arith.constant 1.000000e+00 : f32
    %1035 = vector.broadcast %cst_345 : f32 to vector<16x16xf32>
    %1036 = arith.subf %1035, %1034 : vector<16x16xf32>
    %1037 = arith.mulf %946, %948 : vector<16x16xf32>
    %1038 = arith.mulf %1037, %1036 : vector<16x16xf32>
    %1039 = arith.addf %879, %1038 : vector<16x16xf32>
    %1040 = arith.mulf %946, %1032 : vector<16x16xf32>
    %1041 = arith.addf %881, %1040 : vector<16x16xf32>
    %1042 = arith.mulf %948, %1032 : vector<16x16xf32>
    %1043 = arith.addf %883, %1042 : vector<16x16xf32>
    %cst_346 = arith.constant 1.000000e+00 : f32
    %1044 = vector.broadcast %cst_346 : f32 to vector<16x16xf32>
    %1045 = arith.subf %1044, %946 : vector<16x16xf32>
    %cst_347 = arith.constant 1.000000e+00 : f32
    %1046 = vector.broadcast %cst_347 : f32 to vector<16x16xf32>
    %1047 = arith.subf %1046, %948 : vector<16x16xf32>
    %1048 = arith.mulf %1045, %1047 : vector<16x16xf32>
    %1049 = arith.mulf %1048, %1036 : vector<16x16xf32>
    %1050 = arith.addf %890, %1049 : vector<16x16xf32>
    %1051 = arith.addf %891, %1032 : vector<16x16xf32>
    %c0_348 = arith.constant 0 : index
    %c0_349 = arith.constant 0 : index
    %c4 = arith.constant 4 : index
    %c0_350 = arith.constant 0 : index
    %c0_351 = arith.constant 0 : index
    %1052 = vector.load %arg2[%c0_348, %c0_349, %c4, %c0_350, %c0_351] : memref<1x4x8x16x16xf32, #tpu.memory_space<vmem>>, vector<1x1x1x16x16xf32>
    %1053 = vector.shape_cast %1052 : vector<1x1x1x16x16xf32> to vector<16x16xf32>
    %c0_352 = arith.constant 0 : index
    %c1_353 = arith.constant 1 : index
    %c4_354 = arith.constant 4 : index
    %c0_355 = arith.constant 0 : index
    %c0_356 = arith.constant 0 : index
    %1054 = vector.load %arg2[%c0_352, %c1_353, %c4_354, %c0_355, %c0_356] : memref<1x4x8x16x16xf32, #tpu.memory_space<vmem>>, vector<1x1x1x16x16xf32>
    %1055 = vector.shape_cast %1054 : vector<1x1x1x16x16xf32> to vector<16x16xf32>
    %c0_357 = arith.constant 0 : index
    %c2_358 = arith.constant 2 : index
    %c4_359 = arith.constant 4 : index
    %c0_360 = arith.constant 0 : index
    %c0_361 = arith.constant 0 : index
    %1056 = vector.load %arg2[%c0_357, %c2_358, %c4_359, %c0_360, %c0_361] : memref<1x4x8x16x16xf32, #tpu.memory_space<vmem>>, vector<1x1x1x16x16xf32>
    %1057 = vector.shape_cast %1056 : vector<1x1x1x16x16xf32> to vector<16x16xf32>
    %c0_362 = arith.constant 0 : index
    %c3_363 = arith.constant 3 : index
    %c4_364 = arith.constant 4 : index
    %c0_365 = arith.constant 0 : index
    %c0_366 = arith.constant 0 : index
    %1058 = vector.load %arg2[%c0_362, %c3_363, %c4_364, %c0_365, %c0_366] : memref<1x4x8x16x16xf32, #tpu.memory_space<vmem>>, vector<1x1x1x16x16xf32>
    %1059 = vector.shape_cast %1058 : vector<1x1x1x16x16xf32> to vector<16x16xf32>
    %1060 = arith.maximumf %1053, %1055 : vector<16x16xf32>
    %1061 = arith.maximumf %1060, %1057 : vector<16x16xf32>
    %1062 = arith.maximumf %1061, %1059 : vector<16x16xf32>
    %1063 = arith.subf %1053, %1062 : vector<16x16xf32>
    %1064 = math.exp %1063 : vector<16x16xf32>
    %1065 = arith.subf %1055, %1062 : vector<16x16xf32>
    %1066 = math.exp %1065 : vector<16x16xf32>
    %1067 = arith.subf %1057, %1062 : vector<16x16xf32>
    %1068 = math.exp %1067 : vector<16x16xf32>
    %1069 = arith.subf %1059, %1062 : vector<16x16xf32>
    %1070 = math.exp %1069 : vector<16x16xf32>
    %1071 = arith.addf %1064, %1066 : vector<16x16xf32>
    %1072 = arith.addf %1071, %1068 : vector<16x16xf32>
    %1073 = arith.addf %1072, %1070 : vector<16x16xf32>
    %cst_367 = arith.constant 1.000000e+00 : f32
    %1074 = vector.broadcast %cst_367 : f32 to vector<16x16xf32>
    %1075 = arith.divf %1074, %1073 : vector<16x16xf32>
    %cst_368 = arith.constant 0.000000e+00 : f32
    %1076 = vector.broadcast %cst_368 : f32 to vector<16x16xf32>
    %1077 = arith.mulf %1064, %1075 : vector<16x16xf32>
    %c0_i32_369 = arith.constant 0 : i32
    %1078 = vector.broadcast %c0_i32_369 : i32 to vector<16x16xi32>
    %1079 = arith.cmpi eq, %74, %1078 : vector<16x16xi32>
    %1080 = arith.extui %1079 : vector<16x16xi1> to vector<16x16xi32>
    %1081 = arith.sitofp %1080 : vector<16x16xi32> to vector<16x16xf32>
    %1082 = arith.addf %922, %1081 : vector<16x16xf32>
    %1083 = arith.mulf %1077, %1081 : vector<16x16xf32>
    %1084 = arith.addf %924, %1083 : vector<16x16xf32>
    %1085 = arith.addf %925, %1077 : vector<16x16xf32>
    %1086 = arith.mulf %1053, %1081 : vector<16x16xf32>
    %1087 = arith.addf %1076, %1086 : vector<16x16xf32>
    %1088 = arith.mulf %1066, %1075 : vector<16x16xf32>
    %cst_370 = arith.constant 1.000000e+00 : f32
    %1089 = vector.broadcast %cst_370 : f32 to vector<16x16xf32>
    %1090 = arith.subf %1089, %157 : vector<16x16xf32>
    %1091 = arith.addf %931, %1090 : vector<16x16xf32>
    %1092 = arith.mulf %1088, %1090 : vector<16x16xf32>
    %1093 = arith.addf %933, %1092 : vector<16x16xf32>
    %1094 = arith.addf %934, %1088 : vector<16x16xf32>
    %1095 = arith.mulf %1055, %1090 : vector<16x16xf32>
    %1096 = arith.addf %1087, %1095 : vector<16x16xf32>
    %1097 = arith.mulf %1068, %1075 : vector<16x16xf32>
    %cst_371 = arith.constant 1.000000e+00 : f32
    %1098 = vector.broadcast %cst_371 : f32 to vector<16x16xf32>
    %1099 = arith.subf %1098, %225 : vector<16x16xf32>
    %1100 = arith.addf %940, %1099 : vector<16x16xf32>
    %1101 = arith.mulf %1097, %1099 : vector<16x16xf32>
    %1102 = arith.addf %942, %1101 : vector<16x16xf32>
    %1103 = arith.addf %943, %1097 : vector<16x16xf32>
    %1104 = arith.mulf %1057, %1099 : vector<16x16xf32>
    %1105 = arith.addf %1096, %1104 : vector<16x16xf32>
    %1106 = arith.mulf %1070, %1075 : vector<16x16xf32>
    %cst_372 = arith.constant 1.000000e+00 : f32
    %1107 = vector.broadcast %cst_372 : f32 to vector<16x16xf32>
    %1108 = arith.subf %1107, %293 : vector<16x16xf32>
    %1109 = arith.addf %949, %1108 : vector<16x16xf32>
    %1110 = arith.mulf %1106, %1108 : vector<16x16xf32>
    %1111 = arith.addf %951, %1110 : vector<16x16xf32>
    %1112 = arith.addf %952, %1106 : vector<16x16xf32>
    %1113 = arith.mulf %1059, %1108 : vector<16x16xf32>
    %1114 = arith.addf %1105, %1113 : vector<16x16xf32>
    %1115 = math.log %1073 : vector<16x16xf32>
    %1116 = arith.addf %1062, %1115 : vector<16x16xf32>
    %1117 = arith.subf %1116, %1114 : vector<16x16xf32>
    %1118 = arith.addf %958, %1117 : vector<16x16xf32>
    %1119 = arith.truncf %337 : vector<16x16xf32> to vector<16x16xbf16>
    %cst_373 = arith.constant dense<0.000000e+00> : vector<16x16xf32>
    %1120 = tpu.matmul %12, %1119, %cst_373 {dimension_numbers = #tpu.dot_dimension_numbers<[1], [0], [0], [1], [0, 0, 1, 1], [], []>} : vector<16x16xbf16>, vector<16x16xbf16>, vector<16x16xf32> -> vector<16x16xf32>
    %1121 = arith.truncf %1120 : vector<16x16xf32> to vector<16x16xbf16>
    %cst_374 = arith.constant dense<0.000000e+00> : vector<16x16xf32>
    %1122 = tpu.matmul %1121, %21, %cst_374 {dimension_numbers = #tpu.dot_dimension_numbers<[1], [0], [0], [1], [0, 0, 1, 1], [], []>} : vector<16x16xbf16>, vector<16x16xbf16>, vector<16x16xf32> -> vector<16x16xf32>
    %cst_375 = arith.constant 5.000000e-01 : f32
    %1123 = vector.broadcast %cst_375 : f32 to vector<16x16xf32>
    %1124 = arith.cmpf ogt, %1122, %1123 : vector<16x16xf32>
    %1125 = arith.extui %1124 : vector<16x16xi1> to vector<16x16xi32>
    %1126 = arith.sitofp %1125 : vector<16x16xi32> to vector<16x16xf32>
    %cst_376 = arith.constant 0.221199214 : f32
    %1127 = vector.broadcast %cst_376 : f32 to vector<16x16xf32>
    %1128 = arith.mulf %1126, %1127 : vector<16x16xf32>
    %cst_377 = arith.constant 1.000000e+00 : f32
    %1129 = vector.broadcast %cst_377 : f32 to vector<16x16xf32>
    %1130 = arith.subf %1129, %1128 : vector<16x16xf32>
    %cst_378 = arith.constant 0.393469334 : f32
    %1131 = vector.broadcast %cst_378 : f32 to vector<16x16xf32>
    %1132 = arith.mulf %1126, %1131 : vector<16x16xf32>
    %cst_379 = arith.constant 1.000000e+00 : f32
    %1133 = vector.broadcast %cst_379 : f32 to vector<16x16xf32>
    %1134 = arith.subf %1133, %1132 : vector<16x16xf32>
    %1135 = arith.mulf %1088, %1090 : vector<16x16xf32>
    %1136 = arith.mulf %1135, %1134 : vector<16x16xf32>
    %1137 = arith.addf %977, %1136 : vector<16x16xf32>
    %1138 = arith.mulf %1088, %1130 : vector<16x16xf32>
    %1139 = arith.addf %979, %1138 : vector<16x16xf32>
    %1140 = arith.mulf %1090, %1130 : vector<16x16xf32>
    %1141 = arith.addf %981, %1140 : vector<16x16xf32>
    %cst_380 = arith.constant 1.000000e+00 : f32
    %1142 = vector.broadcast %cst_380 : f32 to vector<16x16xf32>
    %1143 = arith.subf %1142, %1088 : vector<16x16xf32>
    %cst_381 = arith.constant 1.000000e+00 : f32
    %1144 = vector.broadcast %cst_381 : f32 to vector<16x16xf32>
    %1145 = arith.subf %1144, %1090 : vector<16x16xf32>
    %1146 = arith.mulf %1143, %1145 : vector<16x16xf32>
    %1147 = arith.mulf %1146, %1134 : vector<16x16xf32>
    %1148 = arith.addf %988, %1147 : vector<16x16xf32>
    %1149 = arith.addf %989, %1130 : vector<16x16xf32>
    %1150 = arith.truncf %357 : vector<16x16xf32> to vector<16x16xbf16>
    %cst_382 = arith.constant dense<0.000000e+00> : vector<16x16xf32>
    %1151 = tpu.matmul %12, %1150, %cst_382 {dimension_numbers = #tpu.dot_dimension_numbers<[1], [0], [0], [1], [0, 0, 1, 1], [], []>} : vector<16x16xbf16>, vector<16x16xbf16>, vector<16x16xf32> -> vector<16x16xf32>
    %1152 = arith.truncf %1151 : vector<16x16xf32> to vector<16x16xbf16>
    %cst_383 = arith.constant dense<0.000000e+00> : vector<16x16xf32>
    %1153 = tpu.matmul %1152, %21, %cst_383 {dimension_numbers = #tpu.dot_dimension_numbers<[1], [0], [0], [1], [0, 0, 1, 1], [], []>} : vector<16x16xbf16>, vector<16x16xbf16>, vector<16x16xf32> -> vector<16x16xf32>
    %cst_384 = arith.constant 5.000000e-01 : f32
    %1154 = vector.broadcast %cst_384 : f32 to vector<16x16xf32>
    %1155 = arith.cmpf ogt, %1153, %1154 : vector<16x16xf32>
    %1156 = arith.extui %1155 : vector<16x16xi1> to vector<16x16xi32>
    %1157 = arith.sitofp %1156 : vector<16x16xi32> to vector<16x16xf32>
    %cst_385 = arith.constant 0.221199214 : f32
    %1158 = vector.broadcast %cst_385 : f32 to vector<16x16xf32>
    %1159 = arith.mulf %1157, %1158 : vector<16x16xf32>
    %cst_386 = arith.constant 1.000000e+00 : f32
    %1160 = vector.broadcast %cst_386 : f32 to vector<16x16xf32>
    %1161 = arith.subf %1160, %1159 : vector<16x16xf32>
    %cst_387 = arith.constant 0.393469334 : f32
    %1162 = vector.broadcast %cst_387 : f32 to vector<16x16xf32>
    %1163 = arith.mulf %1157, %1162 : vector<16x16xf32>
    %cst_388 = arith.constant 1.000000e+00 : f32
    %1164 = vector.broadcast %cst_388 : f32 to vector<16x16xf32>
    %1165 = arith.subf %1164, %1163 : vector<16x16xf32>
    %1166 = arith.mulf %1097, %1099 : vector<16x16xf32>
    %1167 = arith.mulf %1166, %1165 : vector<16x16xf32>
    %1168 = arith.addf %1008, %1167 : vector<16x16xf32>
    %1169 = arith.mulf %1097, %1161 : vector<16x16xf32>
    %1170 = arith.addf %1010, %1169 : vector<16x16xf32>
    %1171 = arith.mulf %1099, %1161 : vector<16x16xf32>
    %1172 = arith.addf %1012, %1171 : vector<16x16xf32>
    %cst_389 = arith.constant 1.000000e+00 : f32
    %1173 = vector.broadcast %cst_389 : f32 to vector<16x16xf32>
    %1174 = arith.subf %1173, %1097 : vector<16x16xf32>
    %cst_390 = arith.constant 1.000000e+00 : f32
    %1175 = vector.broadcast %cst_390 : f32 to vector<16x16xf32>
    %1176 = arith.subf %1175, %1099 : vector<16x16xf32>
    %1177 = arith.mulf %1174, %1176 : vector<16x16xf32>
    %1178 = arith.mulf %1177, %1165 : vector<16x16xf32>
    %1179 = arith.addf %1019, %1178 : vector<16x16xf32>
    %1180 = arith.addf %1020, %1161 : vector<16x16xf32>
    %1181 = arith.truncf %377 : vector<16x16xf32> to vector<16x16xbf16>
    %cst_391 = arith.constant dense<0.000000e+00> : vector<16x16xf32>
    %1182 = tpu.matmul %12, %1181, %cst_391 {dimension_numbers = #tpu.dot_dimension_numbers<[1], [0], [0], [1], [0, 0, 1, 1], [], []>} : vector<16x16xbf16>, vector<16x16xbf16>, vector<16x16xf32> -> vector<16x16xf32>
    %1183 = arith.truncf %1182 : vector<16x16xf32> to vector<16x16xbf16>
    %cst_392 = arith.constant dense<0.000000e+00> : vector<16x16xf32>
    %1184 = tpu.matmul %1183, %21, %cst_392 {dimension_numbers = #tpu.dot_dimension_numbers<[1], [0], [0], [1], [0, 0, 1, 1], [], []>} : vector<16x16xbf16>, vector<16x16xbf16>, vector<16x16xf32> -> vector<16x16xf32>
    %cst_393 = arith.constant 5.000000e-01 : f32
    %1185 = vector.broadcast %cst_393 : f32 to vector<16x16xf32>
    %1186 = arith.cmpf ogt, %1184, %1185 : vector<16x16xf32>
    %1187 = arith.extui %1186 : vector<16x16xi1> to vector<16x16xi32>
    %1188 = arith.sitofp %1187 : vector<16x16xi32> to vector<16x16xf32>
    %cst_394 = arith.constant 0.221199214 : f32
    %1189 = vector.broadcast %cst_394 : f32 to vector<16x16xf32>
    %1190 = arith.mulf %1188, %1189 : vector<16x16xf32>
    %cst_395 = arith.constant 1.000000e+00 : f32
    %1191 = vector.broadcast %cst_395 : f32 to vector<16x16xf32>
    %1192 = arith.subf %1191, %1190 : vector<16x16xf32>
    %cst_396 = arith.constant 0.393469334 : f32
    %1193 = vector.broadcast %cst_396 : f32 to vector<16x16xf32>
    %1194 = arith.mulf %1188, %1193 : vector<16x16xf32>
    %cst_397 = arith.constant 1.000000e+00 : f32
    %1195 = vector.broadcast %cst_397 : f32 to vector<16x16xf32>
    %1196 = arith.subf %1195, %1194 : vector<16x16xf32>
    %1197 = arith.mulf %1106, %1108 : vector<16x16xf32>
    %1198 = arith.mulf %1197, %1196 : vector<16x16xf32>
    %1199 = arith.addf %1039, %1198 : vector<16x16xf32>
    %1200 = arith.mulf %1106, %1192 : vector<16x16xf32>
    %1201 = arith.addf %1041, %1200 : vector<16x16xf32>
    %1202 = arith.mulf %1108, %1192 : vector<16x16xf32>
    %1203 = arith.addf %1043, %1202 : vector<16x16xf32>
    %cst_398 = arith.constant 1.000000e+00 : f32
    %1204 = vector.broadcast %cst_398 : f32 to vector<16x16xf32>
    %1205 = arith.subf %1204, %1106 : vector<16x16xf32>
    %cst_399 = arith.constant 1.000000e+00 : f32
    %1206 = vector.broadcast %cst_399 : f32 to vector<16x16xf32>
    %1207 = arith.subf %1206, %1108 : vector<16x16xf32>
    %1208 = arith.mulf %1205, %1207 : vector<16x16xf32>
    %1209 = arith.mulf %1208, %1196 : vector<16x16xf32>
    %1210 = arith.addf %1050, %1209 : vector<16x16xf32>
    %1211 = arith.addf %1051, %1192 : vector<16x16xf32>
    %c0_400 = arith.constant 0 : index
    %c0_401 = arith.constant 0 : index
    %c5 = arith.constant 5 : index
    %c0_402 = arith.constant 0 : index
    %c0_403 = arith.constant 0 : index
    %1212 = vector.load %arg2[%c0_400, %c0_401, %c5, %c0_402, %c0_403] : memref<1x4x8x16x16xf32, #tpu.memory_space<vmem>>, vector<1x1x1x16x16xf32>
    %1213 = vector.shape_cast %1212 : vector<1x1x1x16x16xf32> to vector<16x16xf32>
    %c0_404 = arith.constant 0 : index
    %c1_405 = arith.constant 1 : index
    %c5_406 = arith.constant 5 : index
    %c0_407 = arith.constant 0 : index
    %c0_408 = arith.constant 0 : index
    %1214 = vector.load %arg2[%c0_404, %c1_405, %c5_406, %c0_407, %c0_408] : memref<1x4x8x16x16xf32, #tpu.memory_space<vmem>>, vector<1x1x1x16x16xf32>
    %1215 = vector.shape_cast %1214 : vector<1x1x1x16x16xf32> to vector<16x16xf32>
    %c0_409 = arith.constant 0 : index
    %c2_410 = arith.constant 2 : index
    %c5_411 = arith.constant 5 : index
    %c0_412 = arith.constant 0 : index
    %c0_413 = arith.constant 0 : index
    %1216 = vector.load %arg2[%c0_409, %c2_410, %c5_411, %c0_412, %c0_413] : memref<1x4x8x16x16xf32, #tpu.memory_space<vmem>>, vector<1x1x1x16x16xf32>
    %1217 = vector.shape_cast %1216 : vector<1x1x1x16x16xf32> to vector<16x16xf32>
    %c0_414 = arith.constant 0 : index
    %c3_415 = arith.constant 3 : index
    %c5_416 = arith.constant 5 : index
    %c0_417 = arith.constant 0 : index
    %c0_418 = arith.constant 0 : index
    %1218 = vector.load %arg2[%c0_414, %c3_415, %c5_416, %c0_417, %c0_418] : memref<1x4x8x16x16xf32, #tpu.memory_space<vmem>>, vector<1x1x1x16x16xf32>
    %1219 = vector.shape_cast %1218 : vector<1x1x1x16x16xf32> to vector<16x16xf32>
    %1220 = arith.maximumf %1213, %1215 : vector<16x16xf32>
    %1221 = arith.maximumf %1220, %1217 : vector<16x16xf32>
    %1222 = arith.maximumf %1221, %1219 : vector<16x16xf32>
    %1223 = arith.subf %1213, %1222 : vector<16x16xf32>
    %1224 = math.exp %1223 : vector<16x16xf32>
    %1225 = arith.subf %1215, %1222 : vector<16x16xf32>
    %1226 = math.exp %1225 : vector<16x16xf32>
    %1227 = arith.subf %1217, %1222 : vector<16x16xf32>
    %1228 = math.exp %1227 : vector<16x16xf32>
    %1229 = arith.subf %1219, %1222 : vector<16x16xf32>
    %1230 = math.exp %1229 : vector<16x16xf32>
    %1231 = arith.addf %1224, %1226 : vector<16x16xf32>
    %1232 = arith.addf %1231, %1228 : vector<16x16xf32>
    %1233 = arith.addf %1232, %1230 : vector<16x16xf32>
    %cst_419 = arith.constant 1.000000e+00 : f32
    %1234 = vector.broadcast %cst_419 : f32 to vector<16x16xf32>
    %1235 = arith.divf %1234, %1233 : vector<16x16xf32>
    %cst_420 = arith.constant 0.000000e+00 : f32
    %1236 = vector.broadcast %cst_420 : f32 to vector<16x16xf32>
    %1237 = arith.mulf %1224, %1235 : vector<16x16xf32>
    %c0_i32_421 = arith.constant 0 : i32
    %1238 = vector.broadcast %c0_i32_421 : i32 to vector<16x16xi32>
    %1239 = arith.cmpi eq, %78, %1238 : vector<16x16xi32>
    %1240 = arith.extui %1239 : vector<16x16xi1> to vector<16x16xi32>
    %1241 = arith.sitofp %1240 : vector<16x16xi32> to vector<16x16xf32>
    %1242 = arith.addf %1082, %1241 : vector<16x16xf32>
    %1243 = arith.mulf %1237, %1241 : vector<16x16xf32>
    %1244 = arith.addf %1084, %1243 : vector<16x16xf32>
    %1245 = arith.addf %1085, %1237 : vector<16x16xf32>
    %1246 = arith.mulf %1213, %1241 : vector<16x16xf32>
    %1247 = arith.addf %1236, %1246 : vector<16x16xf32>
    %1248 = arith.mulf %1226, %1235 : vector<16x16xf32>
    %cst_422 = arith.constant 1.000000e+00 : f32
    %1249 = vector.broadcast %cst_422 : f32 to vector<16x16xf32>
    %1250 = arith.subf %1249, %161 : vector<16x16xf32>
    %1251 = arith.addf %1091, %1250 : vector<16x16xf32>
    %1252 = arith.mulf %1248, %1250 : vector<16x16xf32>
    %1253 = arith.addf %1093, %1252 : vector<16x16xf32>
    %1254 = arith.addf %1094, %1248 : vector<16x16xf32>
    %1255 = arith.mulf %1215, %1250 : vector<16x16xf32>
    %1256 = arith.addf %1247, %1255 : vector<16x16xf32>
    %1257 = arith.mulf %1228, %1235 : vector<16x16xf32>
    %cst_423 = arith.constant 1.000000e+00 : f32
    %1258 = vector.broadcast %cst_423 : f32 to vector<16x16xf32>
    %1259 = arith.subf %1258, %229 : vector<16x16xf32>
    %1260 = arith.addf %1100, %1259 : vector<16x16xf32>
    %1261 = arith.mulf %1257, %1259 : vector<16x16xf32>
    %1262 = arith.addf %1102, %1261 : vector<16x16xf32>
    %1263 = arith.addf %1103, %1257 : vector<16x16xf32>
    %1264 = arith.mulf %1217, %1259 : vector<16x16xf32>
    %1265 = arith.addf %1256, %1264 : vector<16x16xf32>
    %1266 = arith.mulf %1230, %1235 : vector<16x16xf32>
    %cst_424 = arith.constant 1.000000e+00 : f32
    %1267 = vector.broadcast %cst_424 : f32 to vector<16x16xf32>
    %1268 = arith.subf %1267, %297 : vector<16x16xf32>
    %1269 = arith.addf %1109, %1268 : vector<16x16xf32>
    %1270 = arith.mulf %1266, %1268 : vector<16x16xf32>
    %1271 = arith.addf %1111, %1270 : vector<16x16xf32>
    %1272 = arith.addf %1112, %1266 : vector<16x16xf32>
    %1273 = arith.mulf %1219, %1268 : vector<16x16xf32>
    %1274 = arith.addf %1265, %1273 : vector<16x16xf32>
    %1275 = math.log %1233 : vector<16x16xf32>
    %1276 = arith.addf %1222, %1275 : vector<16x16xf32>
    %1277 = arith.subf %1276, %1274 : vector<16x16xf32>
    %1278 = arith.addf %1118, %1277 : vector<16x16xf32>
    %1279 = arith.truncf %339 : vector<16x16xf32> to vector<16x16xbf16>
    %cst_425 = arith.constant dense<0.000000e+00> : vector<16x16xf32>
    %1280 = tpu.matmul %12, %1279, %cst_425 {dimension_numbers = #tpu.dot_dimension_numbers<[1], [0], [0], [1], [0, 0, 1, 1], [], []>} : vector<16x16xbf16>, vector<16x16xbf16>, vector<16x16xf32> -> vector<16x16xf32>
    %1281 = arith.truncf %1280 : vector<16x16xf32> to vector<16x16xbf16>
    %cst_426 = arith.constant dense<0.000000e+00> : vector<16x16xf32>
    %1282 = tpu.matmul %1281, %21, %cst_426 {dimension_numbers = #tpu.dot_dimension_numbers<[1], [0], [0], [1], [0, 0, 1, 1], [], []>} : vector<16x16xbf16>, vector<16x16xbf16>, vector<16x16xf32> -> vector<16x16xf32>
    %cst_427 = arith.constant 5.000000e-01 : f32
    %1283 = vector.broadcast %cst_427 : f32 to vector<16x16xf32>
    %1284 = arith.cmpf ogt, %1282, %1283 : vector<16x16xf32>
    %1285 = arith.extui %1284 : vector<16x16xi1> to vector<16x16xi32>
    %1286 = arith.sitofp %1285 : vector<16x16xi32> to vector<16x16xf32>
    %cst_428 = arith.constant 0.221199214 : f32
    %1287 = vector.broadcast %cst_428 : f32 to vector<16x16xf32>
    %1288 = arith.mulf %1286, %1287 : vector<16x16xf32>
    %cst_429 = arith.constant 1.000000e+00 : f32
    %1289 = vector.broadcast %cst_429 : f32 to vector<16x16xf32>
    %1290 = arith.subf %1289, %1288 : vector<16x16xf32>
    %cst_430 = arith.constant 0.393469334 : f32
    %1291 = vector.broadcast %cst_430 : f32 to vector<16x16xf32>
    %1292 = arith.mulf %1286, %1291 : vector<16x16xf32>
    %cst_431 = arith.constant 1.000000e+00 : f32
    %1293 = vector.broadcast %cst_431 : f32 to vector<16x16xf32>
    %1294 = arith.subf %1293, %1292 : vector<16x16xf32>
    %1295 = arith.mulf %1248, %1250 : vector<16x16xf32>
    %1296 = arith.mulf %1295, %1294 : vector<16x16xf32>
    %1297 = arith.addf %1137, %1296 : vector<16x16xf32>
    %1298 = arith.mulf %1248, %1290 : vector<16x16xf32>
    %1299 = arith.addf %1139, %1298 : vector<16x16xf32>
    %1300 = arith.mulf %1250, %1290 : vector<16x16xf32>
    %1301 = arith.addf %1141, %1300 : vector<16x16xf32>
    %cst_432 = arith.constant 1.000000e+00 : f32
    %1302 = vector.broadcast %cst_432 : f32 to vector<16x16xf32>
    %1303 = arith.subf %1302, %1248 : vector<16x16xf32>
    %cst_433 = arith.constant 1.000000e+00 : f32
    %1304 = vector.broadcast %cst_433 : f32 to vector<16x16xf32>
    %1305 = arith.subf %1304, %1250 : vector<16x16xf32>
    %1306 = arith.mulf %1303, %1305 : vector<16x16xf32>
    %1307 = arith.mulf %1306, %1294 : vector<16x16xf32>
    %1308 = arith.addf %1148, %1307 : vector<16x16xf32>
    %1309 = arith.addf %1149, %1290 : vector<16x16xf32>
    %1310 = arith.truncf %359 : vector<16x16xf32> to vector<16x16xbf16>
    %cst_434 = arith.constant dense<0.000000e+00> : vector<16x16xf32>
    %1311 = tpu.matmul %12, %1310, %cst_434 {dimension_numbers = #tpu.dot_dimension_numbers<[1], [0], [0], [1], [0, 0, 1, 1], [], []>} : vector<16x16xbf16>, vector<16x16xbf16>, vector<16x16xf32> -> vector<16x16xf32>
    %1312 = arith.truncf %1311 : vector<16x16xf32> to vector<16x16xbf16>
    %cst_435 = arith.constant dense<0.000000e+00> : vector<16x16xf32>
    %1313 = tpu.matmul %1312, %21, %cst_435 {dimension_numbers = #tpu.dot_dimension_numbers<[1], [0], [0], [1], [0, 0, 1, 1], [], []>} : vector<16x16xbf16>, vector<16x16xbf16>, vector<16x16xf32> -> vector<16x16xf32>
    %cst_436 = arith.constant 5.000000e-01 : f32
    %1314 = vector.broadcast %cst_436 : f32 to vector<16x16xf32>
    %1315 = arith.cmpf ogt, %1313, %1314 : vector<16x16xf32>
    %1316 = arith.extui %1315 : vector<16x16xi1> to vector<16x16xi32>
    %1317 = arith.sitofp %1316 : vector<16x16xi32> to vector<16x16xf32>
    %cst_437 = arith.constant 0.221199214 : f32
    %1318 = vector.broadcast %cst_437 : f32 to vector<16x16xf32>
    %1319 = arith.mulf %1317, %1318 : vector<16x16xf32>
    %cst_438 = arith.constant 1.000000e+00 : f32
    %1320 = vector.broadcast %cst_438 : f32 to vector<16x16xf32>
    %1321 = arith.subf %1320, %1319 : vector<16x16xf32>
    %cst_439 = arith.constant 0.393469334 : f32
    %1322 = vector.broadcast %cst_439 : f32 to vector<16x16xf32>
    %1323 = arith.mulf %1317, %1322 : vector<16x16xf32>
    %cst_440 = arith.constant 1.000000e+00 : f32
    %1324 = vector.broadcast %cst_440 : f32 to vector<16x16xf32>
    %1325 = arith.subf %1324, %1323 : vector<16x16xf32>
    %1326 = arith.mulf %1257, %1259 : vector<16x16xf32>
    %1327 = arith.mulf %1326, %1325 : vector<16x16xf32>
    %1328 = arith.addf %1168, %1327 : vector<16x16xf32>
    %1329 = arith.mulf %1257, %1321 : vector<16x16xf32>
    %1330 = arith.addf %1170, %1329 : vector<16x16xf32>
    %1331 = arith.mulf %1259, %1321 : vector<16x16xf32>
    %1332 = arith.addf %1172, %1331 : vector<16x16xf32>
    %cst_441 = arith.constant 1.000000e+00 : f32
    %1333 = vector.broadcast %cst_441 : f32 to vector<16x16xf32>
    %1334 = arith.subf %1333, %1257 : vector<16x16xf32>
    %cst_442 = arith.constant 1.000000e+00 : f32
    %1335 = vector.broadcast %cst_442 : f32 to vector<16x16xf32>
    %1336 = arith.subf %1335, %1259 : vector<16x16xf32>
    %1337 = arith.mulf %1334, %1336 : vector<16x16xf32>
    %1338 = arith.mulf %1337, %1325 : vector<16x16xf32>
    %1339 = arith.addf %1179, %1338 : vector<16x16xf32>
    %1340 = arith.addf %1180, %1321 : vector<16x16xf32>
    %1341 = arith.truncf %379 : vector<16x16xf32> to vector<16x16xbf16>
    %cst_443 = arith.constant dense<0.000000e+00> : vector<16x16xf32>
    %1342 = tpu.matmul %12, %1341, %cst_443 {dimension_numbers = #tpu.dot_dimension_numbers<[1], [0], [0], [1], [0, 0, 1, 1], [], []>} : vector<16x16xbf16>, vector<16x16xbf16>, vector<16x16xf32> -> vector<16x16xf32>
    %1343 = arith.truncf %1342 : vector<16x16xf32> to vector<16x16xbf16>
    %cst_444 = arith.constant dense<0.000000e+00> : vector<16x16xf32>
    %1344 = tpu.matmul %1343, %21, %cst_444 {dimension_numbers = #tpu.dot_dimension_numbers<[1], [0], [0], [1], [0, 0, 1, 1], [], []>} : vector<16x16xbf16>, vector<16x16xbf16>, vector<16x16xf32> -> vector<16x16xf32>
    %cst_445 = arith.constant 5.000000e-01 : f32
    %1345 = vector.broadcast %cst_445 : f32 to vector<16x16xf32>
    %1346 = arith.cmpf ogt, %1344, %1345 : vector<16x16xf32>
    %1347 = arith.extui %1346 : vector<16x16xi1> to vector<16x16xi32>
    %1348 = arith.sitofp %1347 : vector<16x16xi32> to vector<16x16xf32>
    %cst_446 = arith.constant 0.221199214 : f32
    %1349 = vector.broadcast %cst_446 : f32 to vector<16x16xf32>
    %1350 = arith.mulf %1348, %1349 : vector<16x16xf32>
    %cst_447 = arith.constant 1.000000e+00 : f32
    %1351 = vector.broadcast %cst_447 : f32 to vector<16x16xf32>
    %1352 = arith.subf %1351, %1350 : vector<16x16xf32>
    %cst_448 = arith.constant 0.393469334 : f32
    %1353 = vector.broadcast %cst_448 : f32 to vector<16x16xf32>
    %1354 = arith.mulf %1348, %1353 : vector<16x16xf32>
    %cst_449 = arith.constant 1.000000e+00 : f32
    %1355 = vector.broadcast %cst_449 : f32 to vector<16x16xf32>
    %1356 = arith.subf %1355, %1354 : vector<16x16xf32>
    %1357 = arith.mulf %1266, %1268 : vector<16x16xf32>
    %1358 = arith.mulf %1357, %1356 : vector<16x16xf32>
    %1359 = arith.addf %1199, %1358 : vector<16x16xf32>
    %1360 = arith.mulf %1266, %1352 : vector<16x16xf32>
    %1361 = arith.addf %1201, %1360 : vector<16x16xf32>
    %1362 = arith.mulf %1268, %1352 : vector<16x16xf32>
    %1363 = arith.addf %1203, %1362 : vector<16x16xf32>
    %cst_450 = arith.constant 1.000000e+00 : f32
    %1364 = vector.broadcast %cst_450 : f32 to vector<16x16xf32>
    %1365 = arith.subf %1364, %1266 : vector<16x16xf32>
    %cst_451 = arith.constant 1.000000e+00 : f32
    %1366 = vector.broadcast %cst_451 : f32 to vector<16x16xf32>
    %1367 = arith.subf %1366, %1268 : vector<16x16xf32>
    %1368 = arith.mulf %1365, %1367 : vector<16x16xf32>
    %1369 = arith.mulf %1368, %1356 : vector<16x16xf32>
    %1370 = arith.addf %1210, %1369 : vector<16x16xf32>
    %1371 = arith.addf %1211, %1352 : vector<16x16xf32>
    %c0_452 = arith.constant 0 : index
    %c0_453 = arith.constant 0 : index
    %c6 = arith.constant 6 : index
    %c0_454 = arith.constant 0 : index
    %c0_455 = arith.constant 0 : index
    %1372 = vector.load %arg2[%c0_452, %c0_453, %c6, %c0_454, %c0_455] : memref<1x4x8x16x16xf32, #tpu.memory_space<vmem>>, vector<1x1x1x16x16xf32>
    %1373 = vector.shape_cast %1372 : vector<1x1x1x16x16xf32> to vector<16x16xf32>
    %c0_456 = arith.constant 0 : index
    %c1_457 = arith.constant 1 : index
    %c6_458 = arith.constant 6 : index
    %c0_459 = arith.constant 0 : index
    %c0_460 = arith.constant 0 : index
    %1374 = vector.load %arg2[%c0_456, %c1_457, %c6_458, %c0_459, %c0_460] : memref<1x4x8x16x16xf32, #tpu.memory_space<vmem>>, vector<1x1x1x16x16xf32>
    %1375 = vector.shape_cast %1374 : vector<1x1x1x16x16xf32> to vector<16x16xf32>
    %c0_461 = arith.constant 0 : index
    %c2_462 = arith.constant 2 : index
    %c6_463 = arith.constant 6 : index
    %c0_464 = arith.constant 0 : index
    %c0_465 = arith.constant 0 : index
    %1376 = vector.load %arg2[%c0_461, %c2_462, %c6_463, %c0_464, %c0_465] : memref<1x4x8x16x16xf32, #tpu.memory_space<vmem>>, vector<1x1x1x16x16xf32>
    %1377 = vector.shape_cast %1376 : vector<1x1x1x16x16xf32> to vector<16x16xf32>
    %c0_466 = arith.constant 0 : index
    %c3_467 = arith.constant 3 : index
    %c6_468 = arith.constant 6 : index
    %c0_469 = arith.constant 0 : index
    %c0_470 = arith.constant 0 : index
    %1378 = vector.load %arg2[%c0_466, %c3_467, %c6_468, %c0_469, %c0_470] : memref<1x4x8x16x16xf32, #tpu.memory_space<vmem>>, vector<1x1x1x16x16xf32>
    %1379 = vector.shape_cast %1378 : vector<1x1x1x16x16xf32> to vector<16x16xf32>
    %1380 = arith.maximumf %1373, %1375 : vector<16x16xf32>
    %1381 = arith.maximumf %1380, %1377 : vector<16x16xf32>
    %1382 = arith.maximumf %1381, %1379 : vector<16x16xf32>
    %1383 = arith.subf %1373, %1382 : vector<16x16xf32>
    %1384 = math.exp %1383 : vector<16x16xf32>
    %1385 = arith.subf %1375, %1382 : vector<16x16xf32>
    %1386 = math.exp %1385 : vector<16x16xf32>
    %1387 = arith.subf %1377, %1382 : vector<16x16xf32>
    %1388 = math.exp %1387 : vector<16x16xf32>
    %1389 = arith.subf %1379, %1382 : vector<16x16xf32>
    %1390 = math.exp %1389 : vector<16x16xf32>
    %1391 = arith.addf %1384, %1386 : vector<16x16xf32>
    %1392 = arith.addf %1391, %1388 : vector<16x16xf32>
    %1393 = arith.addf %1392, %1390 : vector<16x16xf32>
    %cst_471 = arith.constant 1.000000e+00 : f32
    %1394 = vector.broadcast %cst_471 : f32 to vector<16x16xf32>
    %1395 = arith.divf %1394, %1393 : vector<16x16xf32>
    %cst_472 = arith.constant 0.000000e+00 : f32
    %1396 = vector.broadcast %cst_472 : f32 to vector<16x16xf32>
    %1397 = arith.mulf %1384, %1395 : vector<16x16xf32>
    %c0_i32_473 = arith.constant 0 : i32
    %1398 = vector.broadcast %c0_i32_473 : i32 to vector<16x16xi32>
    %1399 = arith.cmpi eq, %82, %1398 : vector<16x16xi32>
    %1400 = arith.extui %1399 : vector<16x16xi1> to vector<16x16xi32>
    %1401 = arith.sitofp %1400 : vector<16x16xi32> to vector<16x16xf32>
    %1402 = arith.addf %1242, %1401 : vector<16x16xf32>
    %1403 = arith.mulf %1397, %1401 : vector<16x16xf32>
    %1404 = arith.addf %1244, %1403 : vector<16x16xf32>
    %1405 = arith.addf %1245, %1397 : vector<16x16xf32>
    %1406 = arith.mulf %1373, %1401 : vector<16x16xf32>
    %1407 = arith.addf %1396, %1406 : vector<16x16xf32>
    %1408 = arith.mulf %1386, %1395 : vector<16x16xf32>
    %cst_474 = arith.constant 1.000000e+00 : f32
    %1409 = vector.broadcast %cst_474 : f32 to vector<16x16xf32>
    %1410 = arith.subf %1409, %165 : vector<16x16xf32>
    %1411 = arith.addf %1251, %1410 : vector<16x16xf32>
    %1412 = arith.mulf %1408, %1410 : vector<16x16xf32>
    %1413 = arith.addf %1253, %1412 : vector<16x16xf32>
    %1414 = arith.addf %1254, %1408 : vector<16x16xf32>
    %1415 = arith.mulf %1375, %1410 : vector<16x16xf32>
    %1416 = arith.addf %1407, %1415 : vector<16x16xf32>
    %1417 = arith.mulf %1388, %1395 : vector<16x16xf32>
    %cst_475 = arith.constant 1.000000e+00 : f32
    %1418 = vector.broadcast %cst_475 : f32 to vector<16x16xf32>
    %1419 = arith.subf %1418, %233 : vector<16x16xf32>
    %1420 = arith.addf %1260, %1419 : vector<16x16xf32>
    %1421 = arith.mulf %1417, %1419 : vector<16x16xf32>
    %1422 = arith.addf %1262, %1421 : vector<16x16xf32>
    %1423 = arith.addf %1263, %1417 : vector<16x16xf32>
    %1424 = arith.mulf %1377, %1419 : vector<16x16xf32>
    %1425 = arith.addf %1416, %1424 : vector<16x16xf32>
    %1426 = arith.mulf %1390, %1395 : vector<16x16xf32>
    %cst_476 = arith.constant 1.000000e+00 : f32
    %1427 = vector.broadcast %cst_476 : f32 to vector<16x16xf32>
    %1428 = arith.subf %1427, %301 : vector<16x16xf32>
    %1429 = arith.addf %1269, %1428 : vector<16x16xf32>
    %1430 = arith.mulf %1426, %1428 : vector<16x16xf32>
    %1431 = arith.addf %1271, %1430 : vector<16x16xf32>
    %1432 = arith.addf %1272, %1426 : vector<16x16xf32>
    %1433 = arith.mulf %1379, %1428 : vector<16x16xf32>
    %1434 = arith.addf %1425, %1433 : vector<16x16xf32>
    %1435 = math.log %1393 : vector<16x16xf32>
    %1436 = arith.addf %1382, %1435 : vector<16x16xf32>
    %1437 = arith.subf %1436, %1434 : vector<16x16xf32>
    %1438 = arith.addf %1278, %1437 : vector<16x16xf32>
    %1439 = arith.truncf %341 : vector<16x16xf32> to vector<16x16xbf16>
    %cst_477 = arith.constant dense<0.000000e+00> : vector<16x16xf32>
    %1440 = tpu.matmul %12, %1439, %cst_477 {dimension_numbers = #tpu.dot_dimension_numbers<[1], [0], [0], [1], [0, 0, 1, 1], [], []>} : vector<16x16xbf16>, vector<16x16xbf16>, vector<16x16xf32> -> vector<16x16xf32>
    %1441 = arith.truncf %1440 : vector<16x16xf32> to vector<16x16xbf16>
    %cst_478 = arith.constant dense<0.000000e+00> : vector<16x16xf32>
    %1442 = tpu.matmul %1441, %21, %cst_478 {dimension_numbers = #tpu.dot_dimension_numbers<[1], [0], [0], [1], [0, 0, 1, 1], [], []>} : vector<16x16xbf16>, vector<16x16xbf16>, vector<16x16xf32> -> vector<16x16xf32>
    %cst_479 = arith.constant 5.000000e-01 : f32
    %1443 = vector.broadcast %cst_479 : f32 to vector<16x16xf32>
    %1444 = arith.cmpf ogt, %1442, %1443 : vector<16x16xf32>
    %1445 = arith.extui %1444 : vector<16x16xi1> to vector<16x16xi32>
    %1446 = arith.sitofp %1445 : vector<16x16xi32> to vector<16x16xf32>
    %cst_480 = arith.constant 0.221199214 : f32
    %1447 = vector.broadcast %cst_480 : f32 to vector<16x16xf32>
    %1448 = arith.mulf %1446, %1447 : vector<16x16xf32>
    %cst_481 = arith.constant 1.000000e+00 : f32
    %1449 = vector.broadcast %cst_481 : f32 to vector<16x16xf32>
    %1450 = arith.subf %1449, %1448 : vector<16x16xf32>
    %cst_482 = arith.constant 0.393469334 : f32
    %1451 = vector.broadcast %cst_482 : f32 to vector<16x16xf32>
    %1452 = arith.mulf %1446, %1451 : vector<16x16xf32>
    %cst_483 = arith.constant 1.000000e+00 : f32
    %1453 = vector.broadcast %cst_483 : f32 to vector<16x16xf32>
    %1454 = arith.subf %1453, %1452 : vector<16x16xf32>
    %1455 = arith.mulf %1408, %1410 : vector<16x16xf32>
    %1456 = arith.mulf %1455, %1454 : vector<16x16xf32>
    %1457 = arith.addf %1297, %1456 : vector<16x16xf32>
    %1458 = arith.mulf %1408, %1450 : vector<16x16xf32>
    %1459 = arith.addf %1299, %1458 : vector<16x16xf32>
    %1460 = arith.mulf %1410, %1450 : vector<16x16xf32>
    %1461 = arith.addf %1301, %1460 : vector<16x16xf32>
    %cst_484 = arith.constant 1.000000e+00 : f32
    %1462 = vector.broadcast %cst_484 : f32 to vector<16x16xf32>
    %1463 = arith.subf %1462, %1408 : vector<16x16xf32>
    %cst_485 = arith.constant 1.000000e+00 : f32
    %1464 = vector.broadcast %cst_485 : f32 to vector<16x16xf32>
    %1465 = arith.subf %1464, %1410 : vector<16x16xf32>
    %1466 = arith.mulf %1463, %1465 : vector<16x16xf32>
    %1467 = arith.mulf %1466, %1454 : vector<16x16xf32>
    %1468 = arith.addf %1308, %1467 : vector<16x16xf32>
    %1469 = arith.addf %1309, %1450 : vector<16x16xf32>
    %1470 = arith.truncf %361 : vector<16x16xf32> to vector<16x16xbf16>
    %cst_486 = arith.constant dense<0.000000e+00> : vector<16x16xf32>
    %1471 = tpu.matmul %12, %1470, %cst_486 {dimension_numbers = #tpu.dot_dimension_numbers<[1], [0], [0], [1], [0, 0, 1, 1], [], []>} : vector<16x16xbf16>, vector<16x16xbf16>, vector<16x16xf32> -> vector<16x16xf32>
    %1472 = arith.truncf %1471 : vector<16x16xf32> to vector<16x16xbf16>
    %cst_487 = arith.constant dense<0.000000e+00> : vector<16x16xf32>
    %1473 = tpu.matmul %1472, %21, %cst_487 {dimension_numbers = #tpu.dot_dimension_numbers<[1], [0], [0], [1], [0, 0, 1, 1], [], []>} : vector<16x16xbf16>, vector<16x16xbf16>, vector<16x16xf32> -> vector<16x16xf32>
    %cst_488 = arith.constant 5.000000e-01 : f32
    %1474 = vector.broadcast %cst_488 : f32 to vector<16x16xf32>
    %1475 = arith.cmpf ogt, %1473, %1474 : vector<16x16xf32>
    %1476 = arith.extui %1475 : vector<16x16xi1> to vector<16x16xi32>
    %1477 = arith.sitofp %1476 : vector<16x16xi32> to vector<16x16xf32>
    %cst_489 = arith.constant 0.221199214 : f32
    %1478 = vector.broadcast %cst_489 : f32 to vector<16x16xf32>
    %1479 = arith.mulf %1477, %1478 : vector<16x16xf32>
    %cst_490 = arith.constant 1.000000e+00 : f32
    %1480 = vector.broadcast %cst_490 : f32 to vector<16x16xf32>
    %1481 = arith.subf %1480, %1479 : vector<16x16xf32>
    %cst_491 = arith.constant 0.393469334 : f32
    %1482 = vector.broadcast %cst_491 : f32 to vector<16x16xf32>
    %1483 = arith.mulf %1477, %1482 : vector<16x16xf32>
    %cst_492 = arith.constant 1.000000e+00 : f32
    %1484 = vector.broadcast %cst_492 : f32 to vector<16x16xf32>
    %1485 = arith.subf %1484, %1483 : vector<16x16xf32>
    %1486 = arith.mulf %1417, %1419 : vector<16x16xf32>
    %1487 = arith.mulf %1486, %1485 : vector<16x16xf32>
    %1488 = arith.addf %1328, %1487 : vector<16x16xf32>
    %1489 = arith.mulf %1417, %1481 : vector<16x16xf32>
    %1490 = arith.addf %1330, %1489 : vector<16x16xf32>
    %1491 = arith.mulf %1419, %1481 : vector<16x16xf32>
    %1492 = arith.addf %1332, %1491 : vector<16x16xf32>
    %cst_493 = arith.constant 1.000000e+00 : f32
    %1493 = vector.broadcast %cst_493 : f32 to vector<16x16xf32>
    %1494 = arith.subf %1493, %1417 : vector<16x16xf32>
    %cst_494 = arith.constant 1.000000e+00 : f32
    %1495 = vector.broadcast %cst_494 : f32 to vector<16x16xf32>
    %1496 = arith.subf %1495, %1419 : vector<16x16xf32>
    %1497 = arith.mulf %1494, %1496 : vector<16x16xf32>
    %1498 = arith.mulf %1497, %1485 : vector<16x16xf32>
    %1499 = arith.addf %1339, %1498 : vector<16x16xf32>
    %1500 = arith.addf %1340, %1481 : vector<16x16xf32>
    %1501 = arith.truncf %381 : vector<16x16xf32> to vector<16x16xbf16>
    %cst_495 = arith.constant dense<0.000000e+00> : vector<16x16xf32>
    %1502 = tpu.matmul %12, %1501, %cst_495 {dimension_numbers = #tpu.dot_dimension_numbers<[1], [0], [0], [1], [0, 0, 1, 1], [], []>} : vector<16x16xbf16>, vector<16x16xbf16>, vector<16x16xf32> -> vector<16x16xf32>
    %1503 = arith.truncf %1502 : vector<16x16xf32> to vector<16x16xbf16>
    %cst_496 = arith.constant dense<0.000000e+00> : vector<16x16xf32>
    %1504 = tpu.matmul %1503, %21, %cst_496 {dimension_numbers = #tpu.dot_dimension_numbers<[1], [0], [0], [1], [0, 0, 1, 1], [], []>} : vector<16x16xbf16>, vector<16x16xbf16>, vector<16x16xf32> -> vector<16x16xf32>
    %cst_497 = arith.constant 5.000000e-01 : f32
    %1505 = vector.broadcast %cst_497 : f32 to vector<16x16xf32>
    %1506 = arith.cmpf ogt, %1504, %1505 : vector<16x16xf32>
    %1507 = arith.extui %1506 : vector<16x16xi1> to vector<16x16xi32>
    %1508 = arith.sitofp %1507 : vector<16x16xi32> to vector<16x16xf32>
    %cst_498 = arith.constant 0.221199214 : f32
    %1509 = vector.broadcast %cst_498 : f32 to vector<16x16xf32>
    %1510 = arith.mulf %1508, %1509 : vector<16x16xf32>
    %cst_499 = arith.constant 1.000000e+00 : f32
    %1511 = vector.broadcast %cst_499 : f32 to vector<16x16xf32>
    %1512 = arith.subf %1511, %1510 : vector<16x16xf32>
    %cst_500 = arith.constant 0.393469334 : f32
    %1513 = vector.broadcast %cst_500 : f32 to vector<16x16xf32>
    %1514 = arith.mulf %1508, %1513 : vector<16x16xf32>
    %cst_501 = arith.constant 1.000000e+00 : f32
    %1515 = vector.broadcast %cst_501 : f32 to vector<16x16xf32>
    %1516 = arith.subf %1515, %1514 : vector<16x16xf32>
    %1517 = arith.mulf %1426, %1428 : vector<16x16xf32>
    %1518 = arith.mulf %1517, %1516 : vector<16x16xf32>
    %1519 = arith.addf %1359, %1518 : vector<16x16xf32>
    %1520 = arith.mulf %1426, %1512 : vector<16x16xf32>
    %1521 = arith.addf %1361, %1520 : vector<16x16xf32>
    %1522 = arith.mulf %1428, %1512 : vector<16x16xf32>
    %1523 = arith.addf %1363, %1522 : vector<16x16xf32>
    %cst_502 = arith.constant 1.000000e+00 : f32
    %1524 = vector.broadcast %cst_502 : f32 to vector<16x16xf32>
    %1525 = arith.subf %1524, %1426 : vector<16x16xf32>
    %cst_503 = arith.constant 1.000000e+00 : f32
    %1526 = vector.broadcast %cst_503 : f32 to vector<16x16xf32>
    %1527 = arith.subf %1526, %1428 : vector<16x16xf32>
    %1528 = arith.mulf %1525, %1527 : vector<16x16xf32>
    %1529 = arith.mulf %1528, %1516 : vector<16x16xf32>
    %1530 = arith.addf %1370, %1529 : vector<16x16xf32>
    %1531 = arith.addf %1371, %1512 : vector<16x16xf32>
    %c0_504 = arith.constant 0 : index
    %c0_505 = arith.constant 0 : index
    %c7 = arith.constant 7 : index
    %c0_506 = arith.constant 0 : index
    %c0_507 = arith.constant 0 : index
    %1532 = vector.load %arg2[%c0_504, %c0_505, %c7, %c0_506, %c0_507] : memref<1x4x8x16x16xf32, #tpu.memory_space<vmem>>, vector<1x1x1x16x16xf32>
    %1533 = vector.shape_cast %1532 : vector<1x1x1x16x16xf32> to vector<16x16xf32>
    %c0_508 = arith.constant 0 : index
    %c1_509 = arith.constant 1 : index
    %c7_510 = arith.constant 7 : index
    %c0_511 = arith.constant 0 : index
    %c0_512 = arith.constant 0 : index
    %1534 = vector.load %arg2[%c0_508, %c1_509, %c7_510, %c0_511, %c0_512] : memref<1x4x8x16x16xf32, #tpu.memory_space<vmem>>, vector<1x1x1x16x16xf32>
    %1535 = vector.shape_cast %1534 : vector<1x1x1x16x16xf32> to vector<16x16xf32>
    %c0_513 = arith.constant 0 : index
    %c2_514 = arith.constant 2 : index
    %c7_515 = arith.constant 7 : index
    %c0_516 = arith.constant 0 : index
    %c0_517 = arith.constant 0 : index
    %1536 = vector.load %arg2[%c0_513, %c2_514, %c7_515, %c0_516, %c0_517] : memref<1x4x8x16x16xf32, #tpu.memory_space<vmem>>, vector<1x1x1x16x16xf32>
    %1537 = vector.shape_cast %1536 : vector<1x1x1x16x16xf32> to vector<16x16xf32>
    %c0_518 = arith.constant 0 : index
    %c3_519 = arith.constant 3 : index
    %c7_520 = arith.constant 7 : index
    %c0_521 = arith.constant 0 : index
    %c0_522 = arith.constant 0 : index
    %1538 = vector.load %arg2[%c0_518, %c3_519, %c7_520, %c0_521, %c0_522] : memref<1x4x8x16x16xf32, #tpu.memory_space<vmem>>, vector<1x1x1x16x16xf32>
    %1539 = vector.shape_cast %1538 : vector<1x1x1x16x16xf32> to vector<16x16xf32>
    %1540 = arith.maximumf %1533, %1535 : vector<16x16xf32>
    %1541 = arith.maximumf %1540, %1537 : vector<16x16xf32>
    %1542 = arith.maximumf %1541, %1539 : vector<16x16xf32>
    %1543 = arith.subf %1533, %1542 : vector<16x16xf32>
    %1544 = math.exp %1543 : vector<16x16xf32>
    %1545 = arith.subf %1535, %1542 : vector<16x16xf32>
    %1546 = math.exp %1545 : vector<16x16xf32>
    %1547 = arith.subf %1537, %1542 : vector<16x16xf32>
    %1548 = math.exp %1547 : vector<16x16xf32>
    %1549 = arith.subf %1539, %1542 : vector<16x16xf32>
    %1550 = math.exp %1549 : vector<16x16xf32>
    %1551 = arith.addf %1544, %1546 : vector<16x16xf32>
    %1552 = arith.addf %1551, %1548 : vector<16x16xf32>
    %1553 = arith.addf %1552, %1550 : vector<16x16xf32>
    %cst_523 = arith.constant 1.000000e+00 : f32
    %1554 = vector.broadcast %cst_523 : f32 to vector<16x16xf32>
    %1555 = arith.divf %1554, %1553 : vector<16x16xf32>
    %cst_524 = arith.constant 0.000000e+00 : f32
    %1556 = vector.broadcast %cst_524 : f32 to vector<16x16xf32>
    %1557 = arith.mulf %1544, %1555 : vector<16x16xf32>
    %c0_i32_525 = arith.constant 0 : i32
    %1558 = vector.broadcast %c0_i32_525 : i32 to vector<16x16xi32>
    %1559 = arith.cmpi eq, %86, %1558 : vector<16x16xi32>
    %1560 = arith.extui %1559 : vector<16x16xi1> to vector<16x16xi32>
    %1561 = arith.sitofp %1560 : vector<16x16xi32> to vector<16x16xf32>
    %1562 = arith.addf %1402, %1561 : vector<16x16xf32>
    %1563 = arith.mulf %1557, %1561 : vector<16x16xf32>
    %1564 = arith.addf %1404, %1563 : vector<16x16xf32>
    %1565 = arith.addf %1405, %1557 : vector<16x16xf32>
    %1566 = arith.mulf %1533, %1561 : vector<16x16xf32>
    %1567 = arith.addf %1556, %1566 : vector<16x16xf32>
    %1568 = arith.mulf %1546, %1555 : vector<16x16xf32>
    %cst_526 = arith.constant 1.000000e+00 : f32
    %1569 = vector.broadcast %cst_526 : f32 to vector<16x16xf32>
    %1570 = arith.subf %1569, %169 : vector<16x16xf32>
    %1571 = arith.addf %1411, %1570 : vector<16x16xf32>
    %1572 = arith.mulf %1568, %1570 : vector<16x16xf32>
    %1573 = arith.addf %1413, %1572 : vector<16x16xf32>
    %1574 = arith.addf %1414, %1568 : vector<16x16xf32>
    %1575 = arith.mulf %1535, %1570 : vector<16x16xf32>
    %1576 = arith.addf %1567, %1575 : vector<16x16xf32>
    %1577 = arith.mulf %1548, %1555 : vector<16x16xf32>
    %cst_527 = arith.constant 1.000000e+00 : f32
    %1578 = vector.broadcast %cst_527 : f32 to vector<16x16xf32>
    %1579 = arith.subf %1578, %237 : vector<16x16xf32>
    %1580 = arith.addf %1420, %1579 : vector<16x16xf32>
    %1581 = arith.mulf %1577, %1579 : vector<16x16xf32>
    %1582 = arith.addf %1422, %1581 : vector<16x16xf32>
    %1583 = arith.addf %1423, %1577 : vector<16x16xf32>
    %1584 = arith.mulf %1537, %1579 : vector<16x16xf32>
    %1585 = arith.addf %1576, %1584 : vector<16x16xf32>
    %1586 = arith.mulf %1550, %1555 : vector<16x16xf32>
    %cst_528 = arith.constant 1.000000e+00 : f32
    %1587 = vector.broadcast %cst_528 : f32 to vector<16x16xf32>
    %1588 = arith.subf %1587, %305 : vector<16x16xf32>
    %1589 = arith.addf %1429, %1588 : vector<16x16xf32>
    %1590 = arith.mulf %1586, %1588 : vector<16x16xf32>
    %1591 = arith.addf %1431, %1590 : vector<16x16xf32>
    %1592 = arith.addf %1432, %1586 : vector<16x16xf32>
    %1593 = arith.mulf %1539, %1588 : vector<16x16xf32>
    %1594 = arith.addf %1585, %1593 : vector<16x16xf32>
    %1595 = math.log %1553 : vector<16x16xf32>
    %1596 = arith.addf %1542, %1595 : vector<16x16xf32>
    %1597 = arith.subf %1596, %1594 : vector<16x16xf32>
    %1598 = arith.addf %1438, %1597 : vector<16x16xf32>
    %1599 = arith.truncf %343 : vector<16x16xf32> to vector<16x16xbf16>
    %cst_529 = arith.constant dense<0.000000e+00> : vector<16x16xf32>
    %1600 = tpu.matmul %12, %1599, %cst_529 {dimension_numbers = #tpu.dot_dimension_numbers<[1], [0], [0], [1], [0, 0, 1, 1], [], []>} : vector<16x16xbf16>, vector<16x16xbf16>, vector<16x16xf32> -> vector<16x16xf32>
    %1601 = arith.truncf %1600 : vector<16x16xf32> to vector<16x16xbf16>
    %cst_530 = arith.constant dense<0.000000e+00> : vector<16x16xf32>
    %1602 = tpu.matmul %1601, %21, %cst_530 {dimension_numbers = #tpu.dot_dimension_numbers<[1], [0], [0], [1], [0, 0, 1, 1], [], []>} : vector<16x16xbf16>, vector<16x16xbf16>, vector<16x16xf32> -> vector<16x16xf32>
    %cst_531 = arith.constant 5.000000e-01 : f32
    %1603 = vector.broadcast %cst_531 : f32 to vector<16x16xf32>
    %1604 = arith.cmpf ogt, %1602, %1603 : vector<16x16xf32>
    %1605 = arith.extui %1604 : vector<16x16xi1> to vector<16x16xi32>
    %1606 = arith.sitofp %1605 : vector<16x16xi32> to vector<16x16xf32>
    %cst_532 = arith.constant 0.221199214 : f32
    %1607 = vector.broadcast %cst_532 : f32 to vector<16x16xf32>
    %1608 = arith.mulf %1606, %1607 : vector<16x16xf32>
    %cst_533 = arith.constant 1.000000e+00 : f32
    %1609 = vector.broadcast %cst_533 : f32 to vector<16x16xf32>
    %1610 = arith.subf %1609, %1608 : vector<16x16xf32>
    %cst_534 = arith.constant 0.393469334 : f32
    %1611 = vector.broadcast %cst_534 : f32 to vector<16x16xf32>
    %1612 = arith.mulf %1606, %1611 : vector<16x16xf32>
    %cst_535 = arith.constant 1.000000e+00 : f32
    %1613 = vector.broadcast %cst_535 : f32 to vector<16x16xf32>
    %1614 = arith.subf %1613, %1612 : vector<16x16xf32>
    %1615 = arith.mulf %1568, %1570 : vector<16x16xf32>
    %1616 = arith.mulf %1615, %1614 : vector<16x16xf32>
    %1617 = arith.addf %1457, %1616 : vector<16x16xf32>
    %1618 = arith.mulf %1568, %1610 : vector<16x16xf32>
    %1619 = arith.addf %1459, %1618 : vector<16x16xf32>
    %1620 = arith.mulf %1570, %1610 : vector<16x16xf32>
    %1621 = arith.addf %1461, %1620 : vector<16x16xf32>
    %cst_536 = arith.constant 1.000000e+00 : f32
    %1622 = vector.broadcast %cst_536 : f32 to vector<16x16xf32>
    %1623 = arith.subf %1622, %1568 : vector<16x16xf32>
    %cst_537 = arith.constant 1.000000e+00 : f32
    %1624 = vector.broadcast %cst_537 : f32 to vector<16x16xf32>
    %1625 = arith.subf %1624, %1570 : vector<16x16xf32>
    %1626 = arith.mulf %1623, %1625 : vector<16x16xf32>
    %1627 = arith.mulf %1626, %1614 : vector<16x16xf32>
    %1628 = arith.addf %1468, %1627 : vector<16x16xf32>
    %1629 = arith.addf %1469, %1610 : vector<16x16xf32>
    %1630 = arith.truncf %363 : vector<16x16xf32> to vector<16x16xbf16>
    %cst_538 = arith.constant dense<0.000000e+00> : vector<16x16xf32>
    %1631 = tpu.matmul %12, %1630, %cst_538 {dimension_numbers = #tpu.dot_dimension_numbers<[1], [0], [0], [1], [0, 0, 1, 1], [], []>} : vector<16x16xbf16>, vector<16x16xbf16>, vector<16x16xf32> -> vector<16x16xf32>
    %1632 = arith.truncf %1631 : vector<16x16xf32> to vector<16x16xbf16>
    %cst_539 = arith.constant dense<0.000000e+00> : vector<16x16xf32>
    %1633 = tpu.matmul %1632, %21, %cst_539 {dimension_numbers = #tpu.dot_dimension_numbers<[1], [0], [0], [1], [0, 0, 1, 1], [], []>} : vector<16x16xbf16>, vector<16x16xbf16>, vector<16x16xf32> -> vector<16x16xf32>
    %cst_540 = arith.constant 5.000000e-01 : f32
    %1634 = vector.broadcast %cst_540 : f32 to vector<16x16xf32>
    %1635 = arith.cmpf ogt, %1633, %1634 : vector<16x16xf32>
    %1636 = arith.extui %1635 : vector<16x16xi1> to vector<16x16xi32>
    %1637 = arith.sitofp %1636 : vector<16x16xi32> to vector<16x16xf32>
    %cst_541 = arith.constant 0.221199214 : f32
    %1638 = vector.broadcast %cst_541 : f32 to vector<16x16xf32>
    %1639 = arith.mulf %1637, %1638 : vector<16x16xf32>
    %cst_542 = arith.constant 1.000000e+00 : f32
    %1640 = vector.broadcast %cst_542 : f32 to vector<16x16xf32>
    %1641 = arith.subf %1640, %1639 : vector<16x16xf32>
    %cst_543 = arith.constant 0.393469334 : f32
    %1642 = vector.broadcast %cst_543 : f32 to vector<16x16xf32>
    %1643 = arith.mulf %1637, %1642 : vector<16x16xf32>
    %cst_544 = arith.constant 1.000000e+00 : f32
    %1644 = vector.broadcast %cst_544 : f32 to vector<16x16xf32>
    %1645 = arith.subf %1644, %1643 : vector<16x16xf32>
    %1646 = arith.mulf %1577, %1579 : vector<16x16xf32>
    %1647 = arith.mulf %1646, %1645 : vector<16x16xf32>
    %1648 = arith.addf %1488, %1647 : vector<16x16xf32>
    %1649 = arith.mulf %1577, %1641 : vector<16x16xf32>
    %1650 = arith.addf %1490, %1649 : vector<16x16xf32>
    %1651 = arith.mulf %1579, %1641 : vector<16x16xf32>
    %1652 = arith.addf %1492, %1651 : vector<16x16xf32>
    %cst_545 = arith.constant 1.000000e+00 : f32
    %1653 = vector.broadcast %cst_545 : f32 to vector<16x16xf32>
    %1654 = arith.subf %1653, %1577 : vector<16x16xf32>
    %cst_546 = arith.constant 1.000000e+00 : f32
    %1655 = vector.broadcast %cst_546 : f32 to vector<16x16xf32>
    %1656 = arith.subf %1655, %1579 : vector<16x16xf32>
    %1657 = arith.mulf %1654, %1656 : vector<16x16xf32>
    %1658 = arith.mulf %1657, %1645 : vector<16x16xf32>
    %1659 = arith.addf %1499, %1658 : vector<16x16xf32>
    %1660 = arith.addf %1500, %1641 : vector<16x16xf32>
    %1661 = arith.truncf %383 : vector<16x16xf32> to vector<16x16xbf16>
    %cst_547 = arith.constant dense<0.000000e+00> : vector<16x16xf32>
    %1662 = tpu.matmul %12, %1661, %cst_547 {dimension_numbers = #tpu.dot_dimension_numbers<[1], [0], [0], [1], [0, 0, 1, 1], [], []>} : vector<16x16xbf16>, vector<16x16xbf16>, vector<16x16xf32> -> vector<16x16xf32>
    %1663 = arith.truncf %1662 : vector<16x16xf32> to vector<16x16xbf16>
    %cst_548 = arith.constant dense<0.000000e+00> : vector<16x16xf32>
    %1664 = tpu.matmul %1663, %21, %cst_548 {dimension_numbers = #tpu.dot_dimension_numbers<[1], [0], [0], [1], [0, 0, 1, 1], [], []>} : vector<16x16xbf16>, vector<16x16xbf16>, vector<16x16xf32> -> vector<16x16xf32>
    %cst_549 = arith.constant 5.000000e-01 : f32
    %1665 = vector.broadcast %cst_549 : f32 to vector<16x16xf32>
    %1666 = arith.cmpf ogt, %1664, %1665 : vector<16x16xf32>
    %1667 = arith.extui %1666 : vector<16x16xi1> to vector<16x16xi32>
    %1668 = arith.sitofp %1667 : vector<16x16xi32> to vector<16x16xf32>
    %cst_550 = arith.constant 0.221199214 : f32
    %1669 = vector.broadcast %cst_550 : f32 to vector<16x16xf32>
    %1670 = arith.mulf %1668, %1669 : vector<16x16xf32>
    %cst_551 = arith.constant 1.000000e+00 : f32
    %1671 = vector.broadcast %cst_551 : f32 to vector<16x16xf32>
    %1672 = arith.subf %1671, %1670 : vector<16x16xf32>
    %cst_552 = arith.constant 0.393469334 : f32
    %1673 = vector.broadcast %cst_552 : f32 to vector<16x16xf32>
    %1674 = arith.mulf %1668, %1673 : vector<16x16xf32>
    %cst_553 = arith.constant 1.000000e+00 : f32
    %1675 = vector.broadcast %cst_553 : f32 to vector<16x16xf32>
    %1676 = arith.subf %1675, %1674 : vector<16x16xf32>
    %1677 = arith.mulf %1586, %1588 : vector<16x16xf32>
    %1678 = arith.mulf %1677, %1676 : vector<16x16xf32>
    %1679 = arith.addf %1519, %1678 : vector<16x16xf32>
    %1680 = arith.mulf %1586, %1672 : vector<16x16xf32>
    %1681 = arith.addf %1521, %1680 : vector<16x16xf32>
    %1682 = arith.mulf %1588, %1672 : vector<16x16xf32>
    %1683 = arith.addf %1523, %1682 : vector<16x16xf32>
    %cst_554 = arith.constant 1.000000e+00 : f32
    %1684 = vector.broadcast %cst_554 : f32 to vector<16x16xf32>
    %1685 = arith.subf %1684, %1586 : vector<16x16xf32>
    %cst_555 = arith.constant 1.000000e+00 : f32
    %1686 = vector.broadcast %cst_555 : f32 to vector<16x16xf32>
    %1687 = arith.subf %1686, %1588 : vector<16x16xf32>
    %1688 = arith.mulf %1685, %1687 : vector<16x16xf32>
    %1689 = arith.mulf %1688, %1676 : vector<16x16xf32>
    %1690 = arith.addf %1530, %1689 : vector<16x16xf32>
    %1691 = arith.addf %1531, %1672 : vector<16x16xf32>
    %c0_556 = arith.constant 0 : index
    %c0_557 = arith.constant 0 : index
    %c0_558 = arith.constant 0 : index
    %1692 = vector.load %arg5[%c0_556, %c0_557, %c0_558] : memref<28x16x16xf32, #tpu.memory_space<vmem>>, vector<1x16x16xf32>
    %1693 = vector.shape_cast %1692 : vector<1x16x16xf32> to vector<16x16xf32>
    %1694 = arith.addf %1693, %1562 : vector<16x16xf32>
    %c0_559 = arith.constant 0 : index
    %c0_560 = arith.constant 0 : index
    %c0_561 = arith.constant 0 : index
    %1695 = vector.load %arg5[%c0_559, %c0_560, %c0_561] : memref<28x16x16xf32, #tpu.memory_space<vmem>>, vector<1x16x16xf32>
    %1696 = vector.shape_cast %1695 : vector<1x16x16xf32> to vector<16x16xf32>
    %1697 = vector.shape_cast %1694 : vector<16x16xf32> to vector<1x16x16xf32>
    tpu.vector_store %arg5[%c0_559, %c0_560, %c0_561], %1697 {strides = array<i32>} : memref<28x16x16xf32, #tpu.memory_space<vmem>>, vector<1x16x16xf32>,
    %c1_562 = arith.constant 1 : index
    %c0_563 = arith.constant 0 : index
    %c0_564 = arith.constant 0 : index
    %1698 = vector.load %arg5[%c1_562, %c0_563, %c0_564] : memref<28x16x16xf32, #tpu.memory_space<vmem>>, vector<1x16x16xf32>
    %1699 = vector.shape_cast %1698 : vector<1x16x16xf32> to vector<16x16xf32>
    %1700 = arith.addf %1699, %1571 : vector<16x16xf32>
    %c1_565 = arith.constant 1 : index
    %c0_566 = arith.constant 0 : index
    %c0_567 = arith.constant 0 : index
    %1701 = vector.load %arg5[%c1_565, %c0_566, %c0_567] : memref<28x16x16xf32, #tpu.memory_space<vmem>>, vector<1x16x16xf32>
    %1702 = vector.shape_cast %1701 : vector<1x16x16xf32> to vector<16x16xf32>
    %1703 = vector.shape_cast %1700 : vector<16x16xf32> to vector<1x16x16xf32>
    tpu.vector_store %arg5[%c1_565, %c0_566, %c0_567], %1703 {strides = array<i32>} : memref<28x16x16xf32, #tpu.memory_space<vmem>>, vector<1x16x16xf32>,
    %c2_568 = arith.constant 2 : index
    %c0_569 = arith.constant 0 : index
    %c0_570 = arith.constant 0 : index
    %1704 = vector.load %arg5[%c2_568, %c0_569, %c0_570] : memref<28x16x16xf32, #tpu.memory_space<vmem>>, vector<1x16x16xf32>
    %1705 = vector.shape_cast %1704 : vector<1x16x16xf32> to vector<16x16xf32>
    %1706 = arith.addf %1705, %1580 : vector<16x16xf32>
    %c2_571 = arith.constant 2 : index
    %c0_572 = arith.constant 0 : index
    %c0_573 = arith.constant 0 : index
    %1707 = vector.load %arg5[%c2_571, %c0_572, %c0_573] : memref<28x16x16xf32, #tpu.memory_space<vmem>>, vector<1x16x16xf32>
    %1708 = vector.shape_cast %1707 : vector<1x16x16xf32> to vector<16x16xf32>
    %1709 = vector.shape_cast %1706 : vector<16x16xf32> to vector<1x16x16xf32>
    tpu.vector_store %arg5[%c2_571, %c0_572, %c0_573], %1709 {strides = array<i32>} : memref<28x16x16xf32, #tpu.memory_space<vmem>>, vector<1x16x16xf32>,
    %c3_574 = arith.constant 3 : index
    %c0_575 = arith.constant 0 : index
    %c0_576 = arith.constant 0 : index
    %1710 = vector.load %arg5[%c3_574, %c0_575, %c0_576] : memref<28x16x16xf32, #tpu.memory_space<vmem>>, vector<1x16x16xf32>
    %1711 = vector.shape_cast %1710 : vector<1x16x16xf32> to vector<16x16xf32>
    %1712 = arith.addf %1711, %1589 : vector<16x16xf32>
    %c3_577 = arith.constant 3 : index
    %c0_578 = arith.constant 0 : index
    %c0_579 = arith.constant 0 : index
    %1713 = vector.load %arg5[%c3_577, %c0_578, %c0_579] : memref<28x16x16xf32, #tpu.memory_space<vmem>>, vector<1x16x16xf32>
    %1714 = vector.shape_cast %1713 : vector<1x16x16xf32> to vector<16x16xf32>
    %1715 = vector.shape_cast %1712 : vector<16x16xf32> to vector<1x16x16xf32>
    tpu.vector_store %arg5[%c3_577, %c0_578, %c0_579], %1715 {strides = array<i32>} : memref<28x16x16xf32, #tpu.memory_space<vmem>>, vector<1x16x16xf32>,
    %c4_580 = arith.constant 4 : index
    %c0_581 = arith.constant 0 : index
    %c0_582 = arith.constant 0 : index
    %1716 = vector.load %arg5[%c4_580, %c0_581, %c0_582] : memref<28x16x16xf32, #tpu.memory_space<vmem>>, vector<1x16x16xf32>
    %1717 = vector.shape_cast %1716 : vector<1x16x16xf32> to vector<16x16xf32>
    %1718 = arith.addf %1717, %1564 : vector<16x16xf32>
    %c4_583 = arith.constant 4 : index
    %c0_584 = arith.constant 0 : index
    %c0_585 = arith.constant 0 : index
    %1719 = vector.load %arg5[%c4_583, %c0_584, %c0_585] : memref<28x16x16xf32, #tpu.memory_space<vmem>>, vector<1x16x16xf32>
    %1720 = vector.shape_cast %1719 : vector<1x16x16xf32> to vector<16x16xf32>
    %1721 = vector.shape_cast %1718 : vector<16x16xf32> to vector<1x16x16xf32>
    tpu.vector_store %arg5[%c4_583, %c0_584, %c0_585], %1721 {strides = array<i32>} : memref<28x16x16xf32, #tpu.memory_space<vmem>>, vector<1x16x16xf32>,
    %c5_586 = arith.constant 5 : index
    %c0_587 = arith.constant 0 : index
    %c0_588 = arith.constant 0 : index
    %1722 = vector.load %arg5[%c5_586, %c0_587, %c0_588] : memref<28x16x16xf32, #tpu.memory_space<vmem>>, vector<1x16x16xf32>
    %1723 = vector.shape_cast %1722 : vector<1x16x16xf32> to vector<16x16xf32>
    %1724 = arith.addf %1723, %1573 : vector<16x16xf32>
    %c5_589 = arith.constant 5 : index
    %c0_590 = arith.constant 0 : index
    %c0_591 = arith.constant 0 : index
    %1725 = vector.load %arg5[%c5_589, %c0_590, %c0_591] : memref<28x16x16xf32, #tpu.memory_space<vmem>>, vector<1x16x16xf32>
    %1726 = vector.shape_cast %1725 : vector<1x16x16xf32> to vector<16x16xf32>
    %1727 = vector.shape_cast %1724 : vector<16x16xf32> to vector<1x16x16xf32>
    tpu.vector_store %arg5[%c5_589, %c0_590, %c0_591], %1727 {strides = array<i32>} : memref<28x16x16xf32, #tpu.memory_space<vmem>>, vector<1x16x16xf32>,
    %c6_592 = arith.constant 6 : index
    %c0_593 = arith.constant 0 : index
    %c0_594 = arith.constant 0 : index
    %1728 = vector.load %arg5[%c6_592, %c0_593, %c0_594] : memref<28x16x16xf32, #tpu.memory_space<vmem>>, vector<1x16x16xf32>
    %1729 = vector.shape_cast %1728 : vector<1x16x16xf32> to vector<16x16xf32>
    %1730 = arith.addf %1729, %1582 : vector<16x16xf32>
    %c6_595 = arith.constant 6 : index
    %c0_596 = arith.constant 0 : index
    %c0_597 = arith.constant 0 : index
    %1731 = vector.load %arg5[%c6_595, %c0_596, %c0_597] : memref<28x16x16xf32, #tpu.memory_space<vmem>>, vector<1x16x16xf32>
    %1732 = vector.shape_cast %1731 : vector<1x16x16xf32> to vector<16x16xf32>
    %1733 = vector.shape_cast %1730 : vector<16x16xf32> to vector<1x16x16xf32>
    tpu.vector_store %arg5[%c6_595, %c0_596, %c0_597], %1733 {strides = array<i32>} : memref<28x16x16xf32, #tpu.memory_space<vmem>>, vector<1x16x16xf32>,
    %c7_598 = arith.constant 7 : index
    %c0_599 = arith.constant 0 : index
    %c0_600 = arith.constant 0 : index
    %1734 = vector.load %arg5[%c7_598, %c0_599, %c0_600] : memref<28x16x16xf32, #tpu.memory_space<vmem>>, vector<1x16x16xf32>
    %1735 = vector.shape_cast %1734 : vector<1x16x16xf32> to vector<16x16xf32>
    %1736 = arith.addf %1735, %1591 : vector<16x16xf32>
    %c7_601 = arith.constant 7 : index
    %c0_602 = arith.constant 0 : index
    %c0_603 = arith.constant 0 : index
    %1737 = vector.load %arg5[%c7_601, %c0_602, %c0_603] : memref<28x16x16xf32, #tpu.memory_space<vmem>>, vector<1x16x16xf32>
    %1738 = vector.shape_cast %1737 : vector<1x16x16xf32> to vector<16x16xf32>
    %1739 = vector.shape_cast %1736 : vector<16x16xf32> to vector<1x16x16xf32>
    tpu.vector_store %arg5[%c7_601, %c0_602, %c0_603], %1739 {strides = array<i32>} : memref<28x16x16xf32, #tpu.memory_space<vmem>>, vector<1x16x16xf32>,
    %c8 = arith.constant 8 : index
    %c0_604 = arith.constant 0 : index
    %c0_605 = arith.constant 0 : index
    %1740 = vector.load %arg5[%c8, %c0_604, %c0_605] : memref<28x16x16xf32, #tpu.memory_space<vmem>>, vector<1x16x16xf32>
    %1741 = vector.shape_cast %1740 : vector<1x16x16xf32> to vector<16x16xf32>
    %1742 = arith.addf %1741, %1565 : vector<16x16xf32>
    %c8_606 = arith.constant 8 : index
    %c0_607 = arith.constant 0 : index
    %c0_608 = arith.constant 0 : index
    %1743 = vector.load %arg5[%c8_606, %c0_607, %c0_608] : memref<28x16x16xf32, #tpu.memory_space<vmem>>, vector<1x16x16xf32>
    %1744 = vector.shape_cast %1743 : vector<1x16x16xf32> to vector<16x16xf32>
    %1745 = vector.shape_cast %1742 : vector<16x16xf32> to vector<1x16x16xf32>
    tpu.vector_store %arg5[%c8_606, %c0_607, %c0_608], %1745 {strides = array<i32>} : memref<28x16x16xf32, #tpu.memory_space<vmem>>, vector<1x16x16xf32>,
    %c9 = arith.constant 9 : index
    %c0_609 = arith.constant 0 : index
    %c0_610 = arith.constant 0 : index
    %1746 = vector.load %arg5[%c9, %c0_609, %c0_610] : memref<28x16x16xf32, #tpu.memory_space<vmem>>, vector<1x16x16xf32>
    %1747 = vector.shape_cast %1746 : vector<1x16x16xf32> to vector<16x16xf32>
    %1748 = arith.addf %1747, %1574 : vector<16x16xf32>
    %c9_611 = arith.constant 9 : index
    %c0_612 = arith.constant 0 : index
    %c0_613 = arith.constant 0 : index
    %1749 = vector.load %arg5[%c9_611, %c0_612, %c0_613] : memref<28x16x16xf32, #tpu.memory_space<vmem>>, vector<1x16x16xf32>
    %1750 = vector.shape_cast %1749 : vector<1x16x16xf32> to vector<16x16xf32>
    %1751 = vector.shape_cast %1748 : vector<16x16xf32> to vector<1x16x16xf32>
    tpu.vector_store %arg5[%c9_611, %c0_612, %c0_613], %1751 {strides = array<i32>} : memref<28x16x16xf32, #tpu.memory_space<vmem>>, vector<1x16x16xf32>,
    %c10 = arith.constant 10 : index
    %c0_614 = arith.constant 0 : index
    %c0_615 = arith.constant 0 : index
    %1752 = vector.load %arg5[%c10, %c0_614, %c0_615] : memref<28x16x16xf32, #tpu.memory_space<vmem>>, vector<1x16x16xf32>
    %1753 = vector.shape_cast %1752 : vector<1x16x16xf32> to vector<16x16xf32>
    %1754 = arith.addf %1753, %1583 : vector<16x16xf32>
    %c10_616 = arith.constant 10 : index
    %c0_617 = arith.constant 0 : index
    %c0_618 = arith.constant 0 : index
    %1755 = vector.load %arg5[%c10_616, %c0_617, %c0_618] : memref<28x16x16xf32, #tpu.memory_space<vmem>>, vector<1x16x16xf32>
    %1756 = vector.shape_cast %1755 : vector<1x16x16xf32> to vector<16x16xf32>
    %1757 = vector.shape_cast %1754 : vector<16x16xf32> to vector<1x16x16xf32>
    tpu.vector_store %arg5[%c10_616, %c0_617, %c0_618], %1757 {strides = array<i32>} : memref<28x16x16xf32, #tpu.memory_space<vmem>>, vector<1x16x16xf32>,
    %c11 = arith.constant 11 : index
    %c0_619 = arith.constant 0 : index
    %c0_620 = arith.constant 0 : index
    %1758 = vector.load %arg5[%c11, %c0_619, %c0_620] : memref<28x16x16xf32, #tpu.memory_space<vmem>>, vector<1x16x16xf32>
    %1759 = vector.shape_cast %1758 : vector<1x16x16xf32> to vector<16x16xf32>
    %1760 = arith.addf %1759, %1592 : vector<16x16xf32>
    %c11_621 = arith.constant 11 : index
    %c0_622 = arith.constant 0 : index
    %c0_623 = arith.constant 0 : index
    %1761 = vector.load %arg5[%c11_621, %c0_622, %c0_623] : memref<28x16x16xf32, #tpu.memory_space<vmem>>, vector<1x16x16xf32>
    %1762 = vector.shape_cast %1761 : vector<1x16x16xf32> to vector<16x16xf32>
    %1763 = vector.shape_cast %1760 : vector<16x16xf32> to vector<1x16x16xf32>
    tpu.vector_store %arg5[%c11_621, %c0_622, %c0_623], %1763 {strides = array<i32>} : memref<28x16x16xf32, #tpu.memory_space<vmem>>, vector<1x16x16xf32>,
    %c12 = arith.constant 12 : index
    %c0_624 = arith.constant 0 : index
    %c0_625 = arith.constant 0 : index
    %1764 = vector.load %arg5[%c12, %c0_624, %c0_625] : memref<28x16x16xf32, #tpu.memory_space<vmem>>, vector<1x16x16xf32>
    %1765 = vector.shape_cast %1764 : vector<1x16x16xf32> to vector<16x16xf32>
    %1766 = arith.addf %1765, %1598 : vector<16x16xf32>
    %c12_626 = arith.constant 12 : index
    %c0_627 = arith.constant 0 : index
    %c0_628 = arith.constant 0 : index
    %1767 = vector.load %arg5[%c12_626, %c0_627, %c0_628] : memref<28x16x16xf32, #tpu.memory_space<vmem>>, vector<1x16x16xf32>
    %1768 = vector.shape_cast %1767 : vector<1x16x16xf32> to vector<16x16xf32>
    %1769 = vector.shape_cast %1766 : vector<16x16xf32> to vector<1x16x16xf32>
    tpu.vector_store %arg5[%c12_626, %c0_627, %c0_628], %1769 {strides = array<i32>} : memref<28x16x16xf32, #tpu.memory_space<vmem>>, vector<1x16x16xf32>,
    %c13 = arith.constant 13 : index
    %c0_629 = arith.constant 0 : index
    %c0_630 = arith.constant 0 : index
    %1770 = vector.load %arg5[%c13, %c0_629, %c0_630] : memref<28x16x16xf32, #tpu.memory_space<vmem>>, vector<1x16x16xf32>
    %1771 = vector.shape_cast %1770 : vector<1x16x16xf32> to vector<16x16xf32>
    %1772 = arith.addf %1771, %1617 : vector<16x16xf32>
    %c13_631 = arith.constant 13 : index
    %c0_632 = arith.constant 0 : index
    %c0_633 = arith.constant 0 : index
    %1773 = vector.load %arg5[%c13_631, %c0_632, %c0_633] : memref<28x16x16xf32, #tpu.memory_space<vmem>>, vector<1x16x16xf32>
    %1774 = vector.shape_cast %1773 : vector<1x16x16xf32> to vector<16x16xf32>
    %1775 = vector.shape_cast %1772 : vector<16x16xf32> to vector<1x16x16xf32>
    tpu.vector_store %arg5[%c13_631, %c0_632, %c0_633], %1775 {strides = array<i32>} : memref<28x16x16xf32, #tpu.memory_space<vmem>>, vector<1x16x16xf32>,
    %c14 = arith.constant 14 : index
    %c0_634 = arith.constant 0 : index
    %c0_635 = arith.constant 0 : index
    %1776 = vector.load %arg5[%c14, %c0_634, %c0_635] : memref<28x16x16xf32, #tpu.memory_space<vmem>>, vector<1x16x16xf32>
    %1777 = vector.shape_cast %1776 : vector<1x16x16xf32> to vector<16x16xf32>
    %1778 = arith.addf %1777, %1619 : vector<16x16xf32>
    %c14_636 = arith.constant 14 : index
    %c0_637 = arith.constant 0 : index
    %c0_638 = arith.constant 0 : index
    %1779 = vector.load %arg5[%c14_636, %c0_637, %c0_638] : memref<28x16x16xf32, #tpu.memory_space<vmem>>, vector<1x16x16xf32>
    %1780 = vector.shape_cast %1779 : vector<1x16x16xf32> to vector<16x16xf32>
    %1781 = vector.shape_cast %1778 : vector<16x16xf32> to vector<1x16x16xf32>
    tpu.vector_store %arg5[%c14_636, %c0_637, %c0_638], %1781 {strides = array<i32>} : memref<28x16x16xf32, #tpu.memory_space<vmem>>, vector<1x16x16xf32>,
    %c15 = arith.constant 15 : index
    %c0_639 = arith.constant 0 : index
    %c0_640 = arith.constant 0 : index
    %1782 = vector.load %arg5[%c15, %c0_639, %c0_640] : memref<28x16x16xf32, #tpu.memory_space<vmem>>, vector<1x16x16xf32>
    %1783 = vector.shape_cast %1782 : vector<1x16x16xf32> to vector<16x16xf32>
    %1784 = arith.addf %1783, %1621 : vector<16x16xf32>
    %c15_641 = arith.constant 15 : index
    %c0_642 = arith.constant 0 : index
    %c0_643 = arith.constant 0 : index
    %1785 = vector.load %arg5[%c15_641, %c0_642, %c0_643] : memref<28x16x16xf32, #tpu.memory_space<vmem>>, vector<1x16x16xf32>
    %1786 = vector.shape_cast %1785 : vector<1x16x16xf32> to vector<16x16xf32>
    %1787 = vector.shape_cast %1784 : vector<16x16xf32> to vector<1x16x16xf32>
    tpu.vector_store %arg5[%c15_641, %c0_642, %c0_643], %1787 {strides = array<i32>} : memref<28x16x16xf32, #tpu.memory_space<vmem>>, vector<1x16x16xf32>,
    %c16 = arith.constant 16 : index
    %c0_644 = arith.constant 0 : index
    %c0_645 = arith.constant 0 : index
    %1788 = vector.load %arg5[%c16, %c0_644, %c0_645] : memref<28x16x16xf32, #tpu.memory_space<vmem>>, vector<1x16x16xf32>
    %1789 = vector.shape_cast %1788 : vector<1x16x16xf32> to vector<16x16xf32>
    %1790 = arith.addf %1789, %1628 : vector<16x16xf32>
    %c16_646 = arith.constant 16 : index
    %c0_647 = arith.constant 0 : index
    %c0_648 = arith.constant 0 : index
    %1791 = vector.load %arg5[%c16_646, %c0_647, %c0_648] : memref<28x16x16xf32, #tpu.memory_space<vmem>>, vector<1x16x16xf32>
    %1792 = vector.shape_cast %1791 : vector<1x16x16xf32> to vector<16x16xf32>
    %1793 = vector.shape_cast %1790 : vector<16x16xf32> to vector<1x16x16xf32>
    tpu.vector_store %arg5[%c16_646, %c0_647, %c0_648], %1793 {strides = array<i32>} : memref<28x16x16xf32, #tpu.memory_space<vmem>>, vector<1x16x16xf32>,
    %c17 = arith.constant 17 : index
    %c0_649 = arith.constant 0 : index
    %c0_650 = arith.constant 0 : index
    %1794 = vector.load %arg5[%c17, %c0_649, %c0_650] : memref<28x16x16xf32, #tpu.memory_space<vmem>>, vector<1x16x16xf32>
    %1795 = vector.shape_cast %1794 : vector<1x16x16xf32> to vector<16x16xf32>
    %1796 = arith.addf %1795, %1629 : vector<16x16xf32>
    %c17_651 = arith.constant 17 : index
    %c0_652 = arith.constant 0 : index
    %c0_653 = arith.constant 0 : index
    %1797 = vector.load %arg5[%c17_651, %c0_652, %c0_653] : memref<28x16x16xf32, #tpu.memory_space<vmem>>, vector<1x16x16xf32>
    %1798 = vector.shape_cast %1797 : vector<1x16x16xf32> to vector<16x16xf32>
    %1799 = vector.shape_cast %1796 : vector<16x16xf32> to vector<1x16x16xf32>
    tpu.vector_store %arg5[%c17_651, %c0_652, %c0_653], %1799 {strides = array<i32>} : memref<28x16x16xf32, #tpu.memory_space<vmem>>, vector<1x16x16xf32>,
    %c18 = arith.constant 18 : index
    %c0_654 = arith.constant 0 : index
    %c0_655 = arith.constant 0 : index
    %1800 = vector.load %arg5[%c18, %c0_654, %c0_655] : memref<28x16x16xf32, #tpu.memory_space<vmem>>, vector<1x16x16xf32>
    %1801 = vector.shape_cast %1800 : vector<1x16x16xf32> to vector<16x16xf32>
    %1802 = arith.addf %1801, %1648 : vector<16x16xf32>
    %c18_656 = arith.constant 18 : index
    %c0_657 = arith.constant 0 : index
    %c0_658 = arith.constant 0 : index
    %1803 = vector.load %arg5[%c18_656, %c0_657, %c0_658] : memref<28x16x16xf32, #tpu.memory_space<vmem>>, vector<1x16x16xf32>
    %1804 = vector.shape_cast %1803 : vector<1x16x16xf32> to vector<16x16xf32>
    %1805 = vector.shape_cast %1802 : vector<16x16xf32> to vector<1x16x16xf32>
    tpu.vector_store %arg5[%c18_656, %c0_657, %c0_658], %1805 {strides = array<i32>} : memref<28x16x16xf32, #tpu.memory_space<vmem>>, vector<1x16x16xf32>,
    %c19 = arith.constant 19 : index
    %c0_659 = arith.constant 0 : index
    %c0_660 = arith.constant 0 : index
    %1806 = vector.load %arg5[%c19, %c0_659, %c0_660] : memref<28x16x16xf32, #tpu.memory_space<vmem>>, vector<1x16x16xf32>
    %1807 = vector.shape_cast %1806 : vector<1x16x16xf32> to vector<16x16xf32>
    %1808 = arith.addf %1807, %1650 : vector<16x16xf32>
    %c19_661 = arith.constant 19 : index
    %c0_662 = arith.constant 0 : index
    %c0_663 = arith.constant 0 : index
    %1809 = vector.load %arg5[%c19_661, %c0_662, %c0_663] : memref<28x16x16xf32, #tpu.memory_space<vmem>>, vector<1x16x16xf32>
    %1810 = vector.shape_cast %1809 : vector<1x16x16xf32> to vector<16x16xf32>
    %1811 = vector.shape_cast %1808 : vector<16x16xf32> to vector<1x16x16xf32>
    tpu.vector_store %arg5[%c19_661, %c0_662, %c0_663], %1811 {strides = array<i32>} : memref<28x16x16xf32, #tpu.memory_space<vmem>>, vector<1x16x16xf32>,
    %c20 = arith.constant 20 : index
    %c0_664 = arith.constant 0 : index
    %c0_665 = arith.constant 0 : index
    %1812 = vector.load %arg5[%c20, %c0_664, %c0_665] : memref<28x16x16xf32, #tpu.memory_space<vmem>>, vector<1x16x16xf32>
    %1813 = vector.shape_cast %1812 : vector<1x16x16xf32> to vector<16x16xf32>
    %1814 = arith.addf %1813, %1652 : vector<16x16xf32>
    %c20_666 = arith.constant 20 : index
    %c0_667 = arith.constant 0 : index
    %c0_668 = arith.constant 0 : index
    %1815 = vector.load %arg5[%c20_666, %c0_667, %c0_668] : memref<28x16x16xf32, #tpu.memory_space<vmem>>, vector<1x16x16xf32>
    %1816 = vector.shape_cast %1815 : vector<1x16x16xf32> to vector<16x16xf32>
    %1817 = vector.shape_cast %1814 : vector<16x16xf32> to vector<1x16x16xf32>
    tpu.vector_store %arg5[%c20_666, %c0_667, %c0_668], %1817 {strides = array<i32>} : memref<28x16x16xf32, #tpu.memory_space<vmem>>, vector<1x16x16xf32>,
    %c21 = arith.constant 21 : index
    %c0_669 = arith.constant 0 : index
    %c0_670 = arith.constant 0 : index
    %1818 = vector.load %arg5[%c21, %c0_669, %c0_670] : memref<28x16x16xf32, #tpu.memory_space<vmem>>, vector<1x16x16xf32>
    %1819 = vector.shape_cast %1818 : vector<1x16x16xf32> to vector<16x16xf32>
    %1820 = arith.addf %1819, %1659 : vector<16x16xf32>
    %c21_671 = arith.constant 21 : index
    %c0_672 = arith.constant 0 : index
    %c0_673 = arith.constant 0 : index
    %1821 = vector.load %arg5[%c21_671, %c0_672, %c0_673] : memref<28x16x16xf32, #tpu.memory_space<vmem>>, vector<1x16x16xf32>
    %1822 = vector.shape_cast %1821 : vector<1x16x16xf32> to vector<16x16xf32>
    %1823 = vector.shape_cast %1820 : vector<16x16xf32> to vector<1x16x16xf32>
    tpu.vector_store %arg5[%c21_671, %c0_672, %c0_673], %1823 {strides = array<i32>} : memref<28x16x16xf32, #tpu.memory_space<vmem>>, vector<1x16x16xf32>,
    %c22 = arith.constant 22 : index
    %c0_674 = arith.constant 0 : index
    %c0_675 = arith.constant 0 : index
    %1824 = vector.load %arg5[%c22, %c0_674, %c0_675] : memref<28x16x16xf32, #tpu.memory_space<vmem>>, vector<1x16x16xf32>
    %1825 = vector.shape_cast %1824 : vector<1x16x16xf32> to vector<16x16xf32>
    %1826 = arith.addf %1825, %1660 : vector<16x16xf32>
    %c22_676 = arith.constant 22 : index
    %c0_677 = arith.constant 0 : index
    %c0_678 = arith.constant 0 : index
    %1827 = vector.load %arg5[%c22_676, %c0_677, %c0_678] : memref<28x16x16xf32, #tpu.memory_space<vmem>>, vector<1x16x16xf32>
    %1828 = vector.shape_cast %1827 : vector<1x16x16xf32> to vector<16x16xf32>
    %1829 = vector.shape_cast %1826 : vector<16x16xf32> to vector<1x16x16xf32>
    tpu.vector_store %arg5[%c22_676, %c0_677, %c0_678], %1829 {strides = array<i32>} : memref<28x16x16xf32, #tpu.memory_space<vmem>>, vector<1x16x16xf32>,
    %c23 = arith.constant 23 : index
    %c0_679 = arith.constant 0 : index
    %c0_680 = arith.constant 0 : index
    %1830 = vector.load %arg5[%c23, %c0_679, %c0_680] : memref<28x16x16xf32, #tpu.memory_space<vmem>>, vector<1x16x16xf32>
    %1831 = vector.shape_cast %1830 : vector<1x16x16xf32> to vector<16x16xf32>
    %1832 = arith.addf %1831, %1679 : vector<16x16xf32>
    %c23_681 = arith.constant 23 : index
    %c0_682 = arith.constant 0 : index
    %c0_683 = arith.constant 0 : index
    %1833 = vector.load %arg5[%c23_681, %c0_682, %c0_683] : memref<28x16x16xf32, #tpu.memory_space<vmem>>, vector<1x16x16xf32>
    %1834 = vector.shape_cast %1833 : vector<1x16x16xf32> to vector<16x16xf32>
    %1835 = vector.shape_cast %1832 : vector<16x16xf32> to vector<1x16x16xf32>
    tpu.vector_store %arg5[%c23_681, %c0_682, %c0_683], %1835 {strides = array<i32>} : memref<28x16x16xf32, #tpu.memory_space<vmem>>, vector<1x16x16xf32>,
    %c24 = arith.constant 24 : index
    %c0_684 = arith.constant 0 : index
    %c0_685 = arith.constant 0 : index
    %1836 = vector.load %arg5[%c24, %c0_684, %c0_685] : memref<28x16x16xf32, #tpu.memory_space<vmem>>, vector<1x16x16xf32>
    %1837 = vector.shape_cast %1836 : vector<1x16x16xf32> to vector<16x16xf32>
    %1838 = arith.addf %1837, %1681 : vector<16x16xf32>
    %c24_686 = arith.constant 24 : index
    %c0_687 = arith.constant 0 : index
    %c0_688 = arith.constant 0 : index
    %1839 = vector.load %arg5[%c24_686, %c0_687, %c0_688] : memref<28x16x16xf32, #tpu.memory_space<vmem>>, vector<1x16x16xf32>
    %1840 = vector.shape_cast %1839 : vector<1x16x16xf32> to vector<16x16xf32>
    %1841 = vector.shape_cast %1838 : vector<16x16xf32> to vector<1x16x16xf32>
    tpu.vector_store %arg5[%c24_686, %c0_687, %c0_688], %1841 {strides = array<i32>} : memref<28x16x16xf32, #tpu.memory_space<vmem>>, vector<1x16x16xf32>,
    %c25 = arith.constant 25 : index
    %c0_689 = arith.constant 0 : index
    %c0_690 = arith.constant 0 : index
    %1842 = vector.load %arg5[%c25, %c0_689, %c0_690] : memref<28x16x16xf32, #tpu.memory_space<vmem>>, vector<1x16x16xf32>
    %1843 = vector.shape_cast %1842 : vector<1x16x16xf32> to vector<16x16xf32>
    %1844 = arith.addf %1843, %1683 : vector<16x16xf32>
    %c25_691 = arith.constant 25 : index
    %c0_692 = arith.constant 0 : index
    %c0_693 = arith.constant 0 : index
    %1845 = vector.load %arg5[%c25_691, %c0_692, %c0_693] : memref<28x16x16xf32, #tpu.memory_space<vmem>>, vector<1x16x16xf32>
    %1846 = vector.shape_cast %1845 : vector<1x16x16xf32> to vector<16x16xf32>
    %1847 = vector.shape_cast %1844 : vector<16x16xf32> to vector<1x16x16xf32>
    tpu.vector_store %arg5[%c25_691, %c0_692, %c0_693], %1847 {strides = array<i32>} : memref<28x16x16xf32, #tpu.memory_space<vmem>>, vector<1x16x16xf32>,
    %c26 = arith.constant 26 : index
    %c0_694 = arith.constant 0 : index
    %c0_695 = arith.constant 0 : index
    %1848 = vector.load %arg5[%c26, %c0_694, %c0_695] : memref<28x16x16xf32, #tpu.memory_space<vmem>>, vector<1x16x16xf32>
    %1849 = vector.shape_cast %1848 : vector<1x16x16xf32> to vector<16x16xf32>
    %1850 = arith.addf %1849, %1690 : vector<16x16xf32>
    %c26_696 = arith.constant 26 : index
    %c0_697 = arith.constant 0 : index
    %c0_698 = arith.constant 0 : index
    %1851 = vector.load %arg5[%c26_696, %c0_697, %c0_698] : memref<28x16x16xf32, #tpu.memory_space<vmem>>, vector<1x16x16xf32>
    %1852 = vector.shape_cast %1851 : vector<1x16x16xf32> to vector<16x16xf32>
    %1853 = vector.shape_cast %1850 : vector<16x16xf32> to vector<1x16x16xf32>
    tpu.vector_store %arg5[%c26_696, %c0_697, %c0_698], %1853 {strides = array<i32>} : memref<28x16x16xf32, #tpu.memory_space<vmem>>, vector<1x16x16xf32>,
    %c27 = arith.constant 27 : index
    %c0_699 = arith.constant 0 : index
    %c0_700 = arith.constant 0 : index
    %1854 = vector.load %arg5[%c27, %c0_699, %c0_700] : memref<28x16x16xf32, #tpu.memory_space<vmem>>, vector<1x16x16xf32>
    %1855 = vector.shape_cast %1854 : vector<1x16x16xf32> to vector<16x16xf32>
    %1856 = arith.addf %1855, %1691 : vector<16x16xf32>
    %c27_701 = arith.constant 27 : index
    %c0_702 = arith.constant 0 : index
    %c0_703 = arith.constant 0 : index
    %1857 = vector.load %arg5[%c27_701, %c0_702, %c0_703] : memref<28x16x16xf32, #tpu.memory_space<vmem>>, vector<1x16x16xf32>
    %1858 = vector.shape_cast %1857 : vector<1x16x16xf32> to vector<16x16xf32>
    %1859 = vector.shape_cast %1856 : vector<16x16xf32> to vector<1x16x16xf32>
    tpu.vector_store %arg5[%c27_701, %c0_702, %c0_703], %1859 {strides = array<i32>} : memref<28x16x16xf32, #tpu.memory_space<vmem>>, vector<1x16x16xf32>,
    %c0_i32_704 = arith.constant 0 : i32
    %1860 = arith.cmpi eq, %arg1, %c0_i32_704 : i32
    %1861 = arith.extui %1860 : i1 to i32
    %c0_i32_705 = arith.constant 0 : i32
    %1862 = arith.cmpi ne, %1861, %c0_i32_705 : i32
    scf.if %1862 {
      %c0_706 = arith.constant 0 : index
      %c0_707 = arith.constant 0 : index
      %c0_708 = arith.constant 0 : index
      %1863 = vector.load %arg5[%c0_706, %c0_707, %c0_708] : memref<28x16x16xf32, #tpu.memory_space<vmem>>, vector<28x16x16xf32>
      %cst_709 = arith.constant dense<0.000000e+00> : vector<28x16xf32>
      %1864 = vector.multi_reduction <add>, %1863, %cst_709 [2] : vector<28x16x16xf32> to vector<28x16xf32>
      %cst_710 = arith.constant dense<0.000000e+00> : vector<28xf32>
      %1865 = vector.multi_reduction <add>, %1864, %cst_710 [1] : vector<28x16xf32> to vector<28xf32>
      %1866 = vector.shape_cast %1865 : vector<28xf32> to vector<28x1xf32>
      %c0_711 = arith.constant 0 : index
      %c0_712 = arith.constant 0 : index
      %c0_713 = arith.constant 0 : index
      %1867 = vector.load %arg4[%c0_711, %c0_712, %c0_713] : memref<1x28x1xf32, #tpu.memory_space<vmem>>, vector<1x28x1xf32>
      %1868 = vector.shape_cast %1867 : vector<1x28x1xf32> to vector<28x1xf32>
      %1869 = vector.shape_cast %1866 : vector<28x1xf32> to vector<1x28x1xf32>
      tpu.vector_store %arg4[%c0_711, %c0_712, %c0_713], %1869 {strides = array<i32>} : memref<1x28x1xf32, #tpu.memory_space<vmem>>, vector<1x28x1xf32>,
    } else {
    }
    return
  }
  func.func @transform_0(%arg0: i32, %arg1: i32) -> (i32, i32, i32, i32, i32) {
    %c0_i32 = arith.constant 0 : i32
    %c0_i32_0 = arith.constant 0 : i32
    %c0_i32_1 = arith.constant 0 : i32
    %c0_i32_2 = arith.constant 0 : i32
    return %arg0, %c0_i32, %arg1, %c0_i32_0, %c0_i32_1 : i32, i32, i32, i32, i32
  }
  func.func @transform_1(%arg0: i32, %arg1: i32) -> (i32, i32, i32, i32) {
    %c0_i32 = arith.constant 0 : i32
    %c0_i32_0 = arith.constant 0 : i32
    %c0_i32_1 = arith.constant 0 : i32
    %c0_i32_2 = arith.constant 0 : i32
    return %arg0, %c0_i32, %c0_i32_0, %c0_i32_1 : i32, i32, i32, i32
  }
  func.func @transform_2(%arg0: i32, %arg1: i32) -> (i32, i32, i32) {
    %c0_i32 = arith.constant 0 : i32
    %c0_i32_0 = arith.constant 0 : i32
    %c0_i32_1 = arith.constant 0 : i32
    return %arg0, %c0_i32, %c0_i32_0 : i32, i32, i32
  }
}

</mosaic_0001>

<bundles_post_ra>
// kernel: combined_loss_pallas.1
= control target key start
LH: loop header
LB: loop body
LE: loop exit
PB: predicated region body
PF: predicated region fallthrough
CT: control target
= control target key end

     0   :  { %7 = vsyncpa [#allocation4], 0  ;;  %s11525_s0 = inlined_call_operand.hbm [shape: f32[2,4,8,16,16], index: 0, kind: input, shape index: {}]   ;;  %s11526_s1 = inlined_call_operand.hbm [shape: s32[2,8,16,16], index: 1, kind: input, shape index: {}]   ;;  %s11527_s2 = inlined_call_operand.hbm [shape: f32[2,28,1], index: 2, kind: output, shape index: {}]  }
   0x1   :  { %9 = vsyncpa [#allocation4 + $0x1], 0 }
   0x2   :  { %10 = vsyncpa [#allocation7], 0 }
   0x3   :  { %12 = vsyncpa [#allocation7 + $0x1], 0 }
   0x4   :  { %13 = vsyncpa [#allocation5], 0 }
   0x5   :  { %15 = vsyncpa [#allocation5 + $0x1], 0  ;;  %s7057_s9 = smov 0   ;;  %s7059_s10 = smov 0  }
   0x6   :  { %s7061_s11 = smov 0   ;;  %s7063_s12 = smov 0  }
   0x7   :  { %s7065_s13 = smov 0   ;;  %s7067_s14 = smov 0  }
   0x8 LB: > { %s5838_s15 = sadd.s32 4294967295, %s7030_s14   ;;  %s5839_s16 = sadd.s32 4294967294, %s7030_s14   ;;  %s7030_s14 = sphi %s7067_s14, %s21_s14   ;;  %s7026_s13 = sphi %s7065_s13, %s12613_s13   ;;  %s7022_s12 = sphi %s7063_s12, %s12612_s12   ;;  %s7018_s11 = sphi %s7061_s11, %s12611_s11   ;;  %s7014_s10 = sphi %s7059_s10, %s12610_s10   ;;  %s7010_s9 = sphi %s7057_s9, %s12609_s9  }
   0x9   : > { %s33_s17 = sadd.s32 1, %s7026_s13  ;;  %s42_s18 = sadd.s32 1, %s7018_s11 }
   0xa   : > { %p35_p0 = scmp.ge.s32.totalorder %s33_s17, 2  ;;  %p49_p1 = scmp.ne.s32.totalorder %s7018_s11, %s7014_s10 }
   0xb   : > { %p50_p2 = scmp.eq.s32.totalorder %s7030_s14, 0  ;;  %p55_p3 = scmp.ne.s32.totalorder %s7014_s10, %s7010_s9 }
   0xc   : > { %s12615_s17 = smov (%p35_p0, %s33_s17), 0  ;;  %p56_p5 = scmp.eq.s32.totalorder %s5838_s15, 0 }
   0xd   : > { %p7098_p4 = por %p50_p2, %p49_p1  ;;  %s37_s20 = ssub.s32 %s7026_s13, %s12615_s17 }
   0xe   : > { %p105_p6 = scmp.eq.s32.totalorder %s5838_s15, 1  ;;  %p40_p7 = scmp.eq.s32.totalorder %s37_s20, 0 }
   0xf   : > { %p7104_p8 = por %p56_p5, %p55_p3  ;;  %p111_p10 = scmp.eq.s32.totalorder %s5839_s16, 1 }
  0x10   : > { %p7108_p9 = por %p105_p6, %p49_p1  ;;  %p6591_p13 = scmp.lt.s32.totalorder %s7030_s14, 2 }
  0x11   : > { %s11885_s21 = scalar_select %p7104_p8, 1, 0 }
  0x12   : > { %s11886_s22 = scalar_select %p7108_p9, 1, 0 }
  0x13   : > { %s7113_s23 = scalar_select %p40_p7, %s7018_s11, %s42_s18  }
  0x14   : > { %p7115_p11 = por %p111_p10, %p55_p3  ;;  %s7122_s25 = sand.u32 1, %s7018_s11  }
  0x15   : > { %s5842_s26 = sshll.u32 %s7122_s25, 9  ;;  %s6187_s27 = sshll.u32 %s7026_s13, 13 }
  0x16   : > { %s11887_s24 = scalar_select %p7115_p11, 1, 0 }
  0x17   : > { %s7129_s30 = scalar_lea.hbm %s11525_s0, %s6187_s27  ;;  %s135_s3 = scalar_lea.vmem [#allocation3], %s5842_s26 }
  0x18   : > { %s145_s4 = sshll.u32 %s135_s3, 4  ;;  %p7135_p0 = pnand %p6591_p13, %p7098_p4  ;;  %s7131_s4 = int_to_ptr.vmem [resolvable:$true] %s145_s4 }
  0x19   : > { %s132_s6 = scalar_lea.sflag [#allocation4], %s7122_s25  ;;  %s6884_s7 = scalar_lea.hbm %s7129_s30, 8192 }
  0x1a   : > { %p6885_p2 = scmp.ne.s32.totalorder %s7129_s30, %s6884_s7  ;;  %p6886_p3 = pneg %p7135_p0 }
  0x1b   : > { %s6889_s16 = scalar_lea.hbm %s11525_s0, 16384  ;;  %p6890_p4 = scmp.lt.u32.totalorder %s7129_s30, %s11525_s0 }
  0x1c   : > { %p6887_p5 = pnand %p6886_p3, %p6885_p2  ;;  %p6891_p7 = scmp.lt.u32.totalorder %s6889_s16, %s6884_s7 }
  0x1d   : > { %p6893_p13 = scmp.lt.u32.totalorder %s6884_s7, %s7129_s30 }
  0x1e   : > { %p6888_p6 = pneg %p6887_p5  ;;  %p6892_p10 = por %p6891_p7, %p6890_p4 }
  0x20   : > { %p6894_p12 = por %p6893_p13, %p6892_p10 }
  0x22   : > { %p6895_p1 = pnand %p6894_p12, %p6888_p6 }
  0x24   : > { %6898 = shalt.err (!%p6895_p1)
}
  0x25   : > { %s6899_s20 = scalar_lea.vmem %s7131_s4, 8192  ;;  %s7032_s26 = smov [#allocation3]  }
  0x26   : > { %p6900_p2 = scmp.ne.s32.totalorder %s7131_s4, %s6899_s20  ;;  %s6904_s27 = sshll.u32 %s7032_s26, 4  ;;  %s6905_s27 = int_to_ptr.vmem [resolvable:$false] %s6904_s27 }
  0x27   : > { %s6906_s28 = scalar_lea.vmem %s6905_s27, 16384  ;;  %p6907_p9 = scmp.lt.s32.totalorder %s7131_s4, %s6905_s27 }
  0x28   : > { %p6902_p5 = pnand %p6900_p2, %p6886_p3  ;;  %p6908_p4 = scmp.lt.s32.totalorder %s6906_s28, %s6899_s20 }
  0x2a   : > { %p6903_p11 = pneg %p6902_p5  ;;  %p6909_p7 = por %p6908_p4, %p6907_p9 }
  0x2c   : > { %p6910_p10 = pnand %p6909_p7, %p6903_p11 }
  0x2e   : > { %6913 = shalt.err (!%p6910_p10)
}
  0x2f   : > { %s7033_s29 = smov 128   ;;  %s7034_s3 = smov 8  }
  0x30   : > { %6583 = dma.hbm_to_vmem [thread:$0]  (!%p7135_p0), %s7129_s30, 8192, %s7131_s4, %s132_s6, %s7033_s29, %s7033_s29, %s7034_s3  }
  0x31   : > { %p174_p9 = scmp.lt.s32.totalorder %s7030_s14, 3  ;;  %s5845_s7 = sshll.u32 %s7122_s25, 7 }
  0x32   : > { %s6188_s8 = sshll.u32 %s7026_s13, 11  ;;  %p11889_p11 = scmp.ge.s32.totalorder %s7030_s14, 1 }
  0x33   : > { %s7183_s19 = scalar_lea.hbm %s11526_s1, %s6188_s8  ;;  %s159_s20 = scalar_lea.vmem [#allocation6], %s5845_s7 }
  0x34   : > { %p7176_p12 = pnand %p11889_p11, %p174_p9  ;;  %s166_s26 = sshll.u32 %s159_s20, 4  ;;  %s7185_s26 = int_to_ptr.vmem [resolvable:$true] %s166_s26 }
  0x35   : > { %s156_s30 = scalar_lea.sflag [#allocation7], %s7122_s25  ;;  %s6914_s4 = scalar_lea.hbm %s7183_s19, 2048 }
  0x36   : > { %p6915_p1 = scmp.ne.s32.totalorder %s7183_s19, %s6914_s4  ;;  %s6919_s28 = scalar_lea.hbm %s11526_s1, 4096 }
  0x37   : > { %p6920_p2 = scmp.lt.u32.totalorder %s7183_s19, %s11526_s1  ;;  %p6921_p5 = scmp.lt.u32.totalorder %s6919_s28, %s6914_s4 }
  0x38   : > { %p6917_p6 = pnand %p6915_p1, %p6886_p3  ;;  %p6923_p7 = scmp.lt.u32.totalorder %s6914_s4, %s7183_s19 }
  0x39   : > { %p6922_p4 = por %p6921_p5, %p6920_p2 }
  0x3a   : > { %p6918_p13 = pneg %p6917_p6 }
  0x3b   : > { %p6924_p10 = por %p6923_p7, %p6922_p4 }
  0x3d   : > { %p6925_p9 = pnand %p6924_p10, %p6918_p13 }
  0x3f   : > { %6928 = shalt.err (!%p6925_p9)
}
  0x40   : > { %s6929_s7 = scalar_lea.vmem %s7185_s26, 2048  ;;  %s7035_s18 = smov [#allocation6]  }
  0x41   : > { %p6930_p11 = scmp.ne.s32.totalorder %s7185_s26, %s6929_s7  ;;  %s6934_s20 = sshll.u32 %s7035_s18, 4  ;;  %s6935_s20 = int_to_ptr.vmem [resolvable:$false] %s6934_s20 }
  0x42   : > { %s6936_s6 = scalar_lea.vmem %s6935_s20, 4096  ;;  %p6937_p8 = scmp.lt.s32.totalorder %s7185_s26, %s6935_s20 }
  0x43   : > { %p6932_p1 = pnand %p6930_p11, %p6886_p3  ;;  %p6938_p2 = scmp.lt.s32.totalorder %s6936_s6, %s6929_s7 }
  0x45   : > { %p6933_p6 = pneg %p6932_p1  ;;  %p6939_p5 = por %p6938_p2, %p6937_p8 }
  0x47   : > { %p6940_p4 = pnand %p6939_p5, %p6933_p6 }
  0x49   : > { %6943 = shalt.err (!%p6940_p4)
}
  0x4a   : > { %6586 = dma.hbm_to_vmem [thread:$0]  (!%p7135_p0), %s7183_s19, 2048, %s7185_s26, %s156_s30, %s7033_s29, %s7033_s29, %s7034_s3  }
  0x4b   : > { %178 = sbr.rel (%p7176_p12) target bundleno = 1251 (0x4e3), region = 28 }
  0x52   : > { %s7219_s4 = sand.u32 1, %s7014_s10   ;;  %p11891_p8 = scmp.ne.s32.totalorder %s11885_s21, 0 }
  0x53   : > { %s5849_s27 = sshll.u32 %s7219_s4, 9  ;;  %s181_s28 = scalar_lea.sflag [#allocation4], %s7219_s4 }
  0x54   : > { %s7223_s5 = scalar_lea.vmem [#allocation3], %s5849_s27 }
  0x55   : > { %6997 = dma.done.wait (%p11891_p8), %s181_s28, 8192  }
  0x56   : > { %6999 = vsyncadd (%p11891_p8), %s181_s28, 4294959104  ;;  %s5850_s25 = sshll.u32 %s7219_s4, 7  ;;  %s190_s29 = scalar_lea.sflag [#allocation7], %s7219_s4 }
  0x57   : > { %s7231_s3 = scalar_lea.vmem [#allocation6], %s5850_s25 }
  0x58   : > { %7001 = dma.done.wait (%p11891_p8), %s190_s29, 2048  }
  0x59   : > { %7003 = vsyncadd (%p11891_p8), %s190_s29, 4294965248  ;;  %vm225_vm0 = vcmask 130048   ;;  %v11534_v0 = vmov 0.0   ;;  %vm7037_vm1 = vmmov 0   ;;  %v7356_v1 = vld [vmem:[%s7231_s3] sm:$0xff]  ;;  %v7359_v2 = vld [vmem:[%s7231_s3 + $0x8] sm:$0xff]  ;;  %v283_v3 = vlaneseq }
  0x5a   : > { %6286 = vmatprep.subr.bf16.mxu0 %v11534_v0  ;;  %226 = vst.msk [vmem:[#allocation2] sm:$0xff] %vm225_vm0, %v11534_v0  ;;  %227 = vst.msk [vmem:[#allocation2 + $0x8] sm:$0xff] %vm225_vm0, %v11534_v0  ;;  %6288 = vmatprep.mubr.msk.bf16.mxu0 %vm7037_vm1, %v11534_v0  ;;  %vm432_vm2 = vcmp.ne.s32.totalorder %v7356_v1, 1  ;;  %vm433_vm3 = vcmp.ne.s32.totalorder %v7359_v2, 1  ;;  %v7366_v5 = vld [vmem:[%s7231_s3 + $0x10] sm:$0xff]  ;;  %v7371_v7 = vld [vmem:[%s7231_s3 + $0x18] sm:$0xff] }
  0x5b   : > { %228 = vst.msk [vmem:[#allocation2 + $0x10] sm:$0xff] %vm225_vm0, %v11534_v0  ;;  %229 = vst.msk [vmem:[#allocation2 + $0x18] sm:$0xff] %vm225_vm0, %v11534_v0  ;;  %6292 = vmatprep.subr.bf16.mxu1 %v11534_v0  ;;  %6294 = vmatprep.mubr.msk.bf16.mxu1 %vm7037_vm1, %v11534_v0  ;;  %v7362_v4 = vand.u32 127, %v283_v3  ;;  %v7368_v6 = vshrl.u32 %v283_v3, 7  ;;  %v7374_v8 = vsel %vm432_vm2, 1.0, %v11534_v0  ;;  %v7377_v9 = vld [vmem:[%s7231_s3 + $0x20] sm:$0xff] }
  0x5c   : > { %234 = vst.msk [vmem:[#allocation2 + $0x40] sm:$0xff] %vm225_vm0, %v11534_v0  ;;  %235 = vst.msk [vmem:[#allocation2 + $0x48] sm:$0xff] %vm225_vm0, %v11534_v0  ;;  %v7380_v10 = vld [vmem:[%s7231_s3 + $0x28] sm:$0xff]  ;;  %v7383_v11 = vld [vmem:[%s7231_s3 + $0x30] sm:$0xff]  ;;  %v7386_v12 = vsel %vm433_vm3, 1.0, %v11534_v0  ;;  %vm465_vm4 = vcmp.ne.s32.totalorder %v7366_v5, 1 }
  0x5d   : > { %242 = vst.msk [vmem:[#allocation2 + $0x80] sm:$0xff] %vm225_vm0, %v11534_v0  ;;  %243 = vst.msk [vmem:[#allocation2 + $0x88] sm:$0xff] %vm225_vm0, %v11534_v0  ;;  %v7390_v13 = vsub.s32 %v7368_v6, %v7362_v4  ;;  %v7393_v14 = vld [vmem:[%s7231_s3 + $0x38] sm:$0xff]  ;;  %v7397_v15 = vld [vmem:[%s7231_s3 + $0x40] sm:$0xff]  ;;  %v7406_v18 = vmul.f32 0.0, %v7374_v8  ;;  %vm466_vm5 = vcmp.ne.s32.totalorder %v7371_v7, 1 }
  0x5e   : > { %230 = vst.msk [vmem:[#allocation2 + $0x20] sm:$0xff] %vm225_vm0, %v11534_v0  ;;  %231 = vst.msk [vmem:[#allocation2 + $0x28] sm:$0xff] %vm225_vm0, %v11534_v0  ;;  %v7400_v16 = vld [vmem:[%s7231_s3 + $0x48] sm:$0xff]  ;;  %v7403_v17 = vld [vmem:[%s7231_s3 + $0x50] sm:$0xff]  ;;  %v7410_v19 = vmul.f32 0.0, %v7386_v12  ;;  %vm471_vm6 = vcmp.ne.s32.totalorder %v7377_v9, 1 }
  0x5f   : > { %232 = vst.msk [vmem:[#allocation2 + $0x30] sm:$0xff] %vm225_vm0, %v11534_v0  ;;  %233 = vst.msk [vmem:[#allocation2 + $0x38] sm:$0xff] %vm225_vm0, %v11534_v0  ;;  %vm472_vm7 = vcmp.ne.s32.totalorder %v7380_v10, 1  ;;  %vm477_vm8 = vcmp.ne.s32.totalorder %v7383_v11, 1  ;;  %v7416_v20 = vld [vmem:[%s7231_s3 + $0x58] sm:$0xff]  ;;  %v7419_v21 = vsel %vm465_vm4, 1.0, %v11534_v0  ;;  %v726_v35 = vadd.f32 %v7406_v18, %v7406_v18 }
  0x60   : > { %236 = vst.msk [vmem:[#allocation2 + $0x50] sm:$0xff] %vm225_vm0, %v11534_v0  ;;  %237 = vst.msk [vmem:[#allocation2 + $0x58] sm:$0xff] %vm225_vm0, %v11534_v0  ;;  %vm478_vm9 = vcmp.ne.s32.totalorder %v7393_v14, 1  ;;  %v7423_v22 = vadd.s32 8, %v7368_v6  ;;  %v7427_v24 = vld [vmem:[%s7231_s3 + $0x60] sm:$0xff]  ;;  %v7430_v25 = vsel %vm466_vm5, 1.0, %v11534_v0  ;;  %v727_v36 = vadd.f32 %v7410_v19, %v7410_v19 }
  0x61   : > { %238 = vst.msk [vmem:[#allocation2 + $0x60] sm:$0xff] %vm225_vm0, %v11534_v0  ;;  %239 = vst.msk [vmem:[#allocation2 + $0x68] sm:$0xff] %vm225_vm0, %v11534_v0  ;;  %vm483_vm10 = vcmp.ne.s32.totalorder %v7397_v15, 1  ;;  %vm484_vm11 = vcmp.ne.s32.totalorder %v7400_v16, 1  ;;  %vm489_vm12 = vcmp.ne.s32.totalorder %v7403_v17, 1  ;;  %v846_v26 = vld [vmem:[%s7223_s5] sm:$0xff]  ;;  %v728_v43 = vadd.f32 %v726_v35, %v7406_v18 }
  0x62   : > { %240 = vst.msk [vmem:[#allocation2 + $0x70] sm:$0xff] %vm225_vm0, %v11534_v0  ;;  %241 = vst.msk [vmem:[#allocation2 + $0x78] sm:$0xff] %vm225_vm0, %v11534_v0  ;;  %v7437_v27 = vsel %vm471_vm6, 1.0, %v11534_v0  ;;  %v7440_v28 = vsel %vm472_vm7, 1.0, %v11534_v0  ;;  %v7443_v29 = vsel %vm477_vm8, 1.0, %v11534_v0  ;;  %v7446_v30 = vld [vmem:[%s7223_s5 + $0x8] sm:$0xff]  ;;  %v729_v44 = vadd.f32 %v727_v36, %v7410_v19 }
  0x63   : > { %244 = vst.msk [vmem:[#allocation2 + $0x90] sm:$0xff] %vm225_vm0, %v11534_v0  ;;  %245 = vst.msk [vmem:[#allocation2 + $0x98] sm:$0xff] %vm225_vm0, %v11534_v0  ;;  %v5960_v31 = vld [vmem:[%s7223_s5 + $0x80] sm:$0xff]  ;;  %v7450_v32 = vld [vmem:[%s7223_s5 + $0x88] sm:$0xff]  ;;  %v7458_v34 = vsel %vm478_vm9, 1.0, %v11534_v0  ;;  %vm490_vm13 = vcmp.ne.s32.totalorder %v7416_v20, 1  ;;  %v730_v51 = vadd.f32 %v7374_v8, %v728_v43 }
  0x64   : > { %246 = vst.msk [vmem:[#allocation2 + $0xa0] sm:$0xff] %vm225_vm0, %v11534_v0  ;;  %247 = vst.msk [vmem:[#allocation2 + $0xa8] sm:$0xff] %vm225_vm0, %v11534_v0  ;;  %v7453_v33 = vld [vmem:[%s7231_s3 + $0x68] sm:$0xff]  ;;  %v7466_v37 = vsel %vm483_vm10, 1.0, %v11534_v0  ;;  %v7469_v38 = vsel %vm484_vm11, 1.0, %v11534_v0  ;;  %v7472_v39 = vsel %vm489_vm12, 1.0, %v11534_v0  ;;  %v857_v45 = vmax.f32 %v846_v26, %v5960_v31 }
  0x65   : > { %248 = vst.msk [vmem:[#allocation2 + $0xb0] sm:$0xff] %vm225_vm0, %v11534_v0  ;;  %249 = vst.msk [vmem:[#allocation2 + $0xb8] sm:$0xff] %vm225_vm0, %v11534_v0  ;;  %vm495_vm14 = vcmp.ne.s32.totalorder %v7427_v24, 1  ;;  %v5962_v40 = vld [vmem:[%s7223_s5 + $0x100] sm:$0xff]  ;;  %v7477_v41 = vld [vmem:[%s7223_s5 + $0x108] sm:$0xff]  ;;  %v858_v46 = vmax.f32 %v7446_v30, %v7450_v32  ;;  %v7485_v47 = vsel %vm490_vm13, 1.0, %v11534_v0  ;;  %v731_v52 = vadd.f32 %v7386_v12, %v729_v44 }
  0x66   : > { %250 = vst.msk [vmem:[#allocation2 + $0xc0] sm:$0xff] %vm225_vm0, %v11534_v0  ;;  %251 = vst.msk [vmem:[#allocation2 + $0xc8] sm:$0xff] %vm225_vm0, %v11534_v0  ;;  %v5868_v42 = vld [vmem:[%s7231_s3 + $0x70] sm:$0xff]  ;;  %vm496_vm15 = vcmp.ne.s32.totalorder %v7453_v33, 1  ;;  %v7489_v48 = vld [vmem:[%s7223_s5 + $0x180] sm:$0xff]  ;;  %vm899_vm2 = vcmp.eq.s32.totalorder %v7356_v1, 0  ;;  %v859_v53 = vmax.f32 %v857_v45, %v5962_v40  ;;  %v732_v58 = vadd.f32 %v7419_v21, %v730_v51 }
  0x67   : > { %252 = vst.msk [vmem:[#allocation2 + $0xd0] sm:$0xff] %vm225_vm0, %v11534_v0  ;;  %253 = vst.msk [vmem:[#allocation2 + $0xd8] sm:$0xff] %vm225_vm0, %v11534_v0  ;;  %v7492_v49 = vld [vmem:[%s7223_s5 + $0x188] sm:$0xff]  ;;  %vm900_vm3 = vcmp.eq.s32.totalorder %v7359_v2, 0  ;;  %v5869_v50 = vld [vmem:[%s7231_s3 + $0x78] sm:$0xff]  ;;  %v860_v54 = vmax.f32 %v858_v46, %v7477_v41  ;;  %v7503_v55 = vsel %vm495_vm14, 1.0, %v11534_v0  ;;  %v733_v59 = vadd.f32 %v7430_v25, %v731_v52 }
  0x68   : > { %254 = vst.msk [vmem:[#allocation2 + $0xe0] sm:$0xff] %vm225_vm0, %v11534_v0  ;;  %255 = vst.msk [vmem:[#allocation2 + $0xe8] sm:$0xff] %vm225_vm0, %v11534_v0  ;;  %vm501_vm4 = vcmp.ne.s32.totalorder %v5868_v42, 1  ;;  %v7506_v56 = vsel %vm899_vm2, 1.0, %v11534_v0  ;;  %v7509_v57 = vsel %vm900_vm3, 1.0, %v11534_v0  ;;  %v7514_v60 = vmax.f32 %v859_v53, %v7489_v48  ;;  %v7564_v42 = vld [vmem:[%s7223_s5 + $0x90] sm:$0xff] }
  0x69   : > { %256 = vst.msk [vmem:[#allocation2 + $0xf0] sm:$0xff] %vm225_vm0, %v11534_v0  ;;  %257 = vst.msk [vmem:[#allocation2 + $0xf8] sm:$0xff] %vm225_vm0, %v11534_v0  ;;  %v7517_v61 = vmax.f32 %v860_v54, %v7492_v49  ;;  %vm502_vm5 = vcmp.ne.s32.totalorder %v5869_v50, 1  ;;  %v913_v62 = vmul.f32 %v7506_v56, %v846_v26  ;;  %v914_v63 = vmul.f32 %v7509_v57, %v7446_v30  ;;  %s5851_s21 = sshll.u32 %s7219_s4, 5  ;;  %s6189_s26 = sshll.u32 %s7022_s12, 9 }
  0x6a   : > { %258 = vst.msk [vmem:[#allocation2 + $0x100] sm:$0xff] %vm225_vm0, %v11534_v0  ;;  %259 = vst.msk [vmem:[#allocation2 + $0x108] sm:$0xff] %vm225_vm0, %v11534_v0  ;;  %v7523_v3 = vsub.f32 1.0, %v7374_v8  ;;  %v734_v35 = vadd.f32 %v7437_v27, %v732_v58  ;;  %v735_v36 = vadd.f32 %v7440_v28, %v733_v59  ;;  %v863_v43 = vsub.f32 %v846_v26, %v7514_v60  ;;  %s218_s15 = scalar_lea.vmem [#allocation8], %s5851_s21  ;;  %s11476_s16 = scalar_lea.hbm %s11527_s2, %s6189_s26 }
  0x6b   : > { %260 = vst.msk [vmem:[#allocation2 + $0x110] sm:$0xff] %vm225_vm0, %v11534_v0  ;;  %261 = vst.msk [vmem:[#allocation2 + $0x118] sm:$0xff] %vm225_vm0, %v11534_v0  ;;  %v7529_v44 = vsub.f32 1.0, %v7386_v12  ;;  %v864_v45 = vsub.f32 %v7446_v30, %v7517_v61  ;;  %v869_v46 = vsub.f32 %v5960_v31, %v7514_v60  ;;  %v870_v51 = vsub.f32 %v7450_v32, %v7517_v61  ;;  %s5689_s19 = sshll.u32 %s218_s15, 4  ;;  %s5676_s7 = scalar_lea.sflag [#allocation5], %s7219_s4  ;;  %s11471_s19 = int_to_ptr.vmem [resolvable:$true] %s5689_s19 }
  0x6c   : > { %262 = vst.msk [vmem:[#allocation2 + $0x120] sm:$0xff] %vm225_vm0, %v11534_v0  ;;  %263 = vst.msk [vmem:[#allocation2 + $0x128] sm:$0xff] %vm225_vm0, %v11534_v0  ;;  %v929_v52 = vmul.f32 %v5960_v31, %v7523_v3  ;;  %v736_v53 = vadd.f32 %v7443_v29, %v734_v35  ;;  %v737_v54 = vadd.f32 %v7458_v34, %v735_v36  ;;  %v7545_v30 = vsel %vm496_vm15, 1.0, %v11534_v0  ;;  %s6944_s18 = scalar_lea.vmem %s11471_s19, 512  ;;  %p12606_p3 = scmp.ne.s32.totalorder %s11886_s22, 0 }
  0x6d   : > { %264 = vst.msk [vmem:[#allocation2 + $0x130] sm:$0xff] %vm225_vm0, %v11534_v0  ;;  %265 = vst.msk [vmem:[#allocation2 + $0x138] sm:$0xff] %vm225_vm0, %v11534_v0  ;;  %v875_v26 = vsub.f32 %v5962_v40, %v7514_v60  ;;  %v930_v58 = vmul.f32 %v7450_v32, %v7529_v44  ;;  %v7549_v59 = vsel %vm501_vm4, 1.0, %v11534_v0  ;;  %v7553_v31 = vsel %vm502_vm5, 1.0, %v11534_v0  ;;  %p6945_p0 = scmp.ne.s32.totalorder %s11471_s19, %s6944_s18  ;;  %s7039_s12 = smov [#allocation8]  }
  0x6e   : > { %266 = vst.msk [vmem:[#allocation2 + $0x140] sm:$0xff] %vm225_vm0, %v11534_v0  ;;  %267 = vst.msk [vmem:[#allocation2 + $0x148] sm:$0xff] %vm225_vm0, %v11534_v0  ;;  %v865_v35 = vmul.f32 1.442695, %v863_v43  ;;  %v7556_v40 = vmul.f32 0.0, %v7549_v59  ;;  %v738_v32 = vadd.f32 %v7466_v37, %v736_v53  ;;  %v739_v36 = vadd.f32 %v7469_v38, %v737_v54  ;;  %s6948_s20 = sshll.u32 %s7039_s12, 4  ;;  %s6949_s20 = int_to_ptr.vmem [resolvable:$false] %s6948_s20 }
  0x6f   : > { %268 = vst.msk [vmem:[#allocation2 + $0x150] sm:$0xff] %vm225_vm0, %v11534_v0  ;;  %269 = vst.msk [vmem:[#allocation2 + $0x158] sm:$0xff] %vm225_vm0, %v11534_v0  ;;  %v871_v23 = vmul.f32 1.442695, %v869_v46  ;;  %v876_v50 = vsub.f32 %v7477_v41, %v7517_v61  ;;  %v7568_v43 = vadd.f32 %v929_v52, %v913_v62  ;;  %v881_v41 = vsub.f32 %v7489_v48, %v7514_v60  ;;  %p6946_p12 = pnand %p6945_p0, %p12606_p3  ;;  %s6950_s6 = scalar_lea.vmem %s6949_s20, 1024 }
  0x70   : > { %270 = vst.msk [vmem:[#allocation2 + $0x160] sm:$0xff] %vm225_vm0, %v11534_v0  ;;  %271 = vst.msk [vmem:[#allocation2 + $0x168] sm:$0xff] %vm225_vm0, %v11534_v0  ;;  %v7580_v46 = vsub.f32 %v739_v36, %v7410_v19  ;;  %6648 = vpow2.f32 %v865_v35  ;;  %v975_v62 = vpack.c.bf16 %v737_v54, %v736_v53  ;;  %v7602_v48 = vmul.f32 0.0, %v7553_v31  ;;  %v7607_v54 = vld [vmem:[%s7223_s5 + $0x198] sm:$0xff]  ;;  %p6951_p7 = scmp.lt.s32.totalorder %s11471_s19, %s6949_s20  ;;  %p6952_p10 = scmp.lt.s32.totalorder %s6950_s6, %s6944_s18 }
  0x71   : > { %272 = vst.msk [vmem:[#allocation2 + $0x170] sm:$0xff] %vm225_vm0, %v11534_v0  ;;  %273 = vst.msk [vmem:[#allocation2 + $0x178] sm:$0xff] %vm225_vm0, %v11534_v0  ;;  %6650 = vpow2.f32 %v871_v23  ;;  %v882_v53 = vsub.f32 %v7492_v49, %v7517_v61  ;;  %vm1408_vm6 = vcmp.eq.s32.totalorder %v7366_v5, 0  ;;  %vm1409_vm7 = vcmp.eq.s32.totalorder %v7371_v7, 0  ;;  %v7686_v5 = vld [vmem:[%s7223_s5 + $0xa0] sm:$0xff]  ;;  %p6947_p13 = pneg %p6946_p12 }
  0x72   : > { %274 = vst.msk [vmem:[#allocation2 + $0x180] sm:$0xff] %vm225_vm0, %v11534_v0  ;;  %275 = vst.msk [vmem:[#allocation2 + $0x188] sm:$0xff] %vm225_vm0, %v11534_v0  ;;  %6287 = vmatpush3.bf16.msra.mxu0 %v975_v62  ;;  %vm534_vm8 = vcmp.ne.s32.totalorder %v7356_v1, 2  ;;  %vm535_vm9 = vcmp.ne.s32.totalorder %v7359_v2, 2  ;;  %vm1913_vm10 = vcmp.eq.s32.totalorder %v7377_v9, 0  ;;  %vm1914_vm11 = vcmp.eq.s32.totalorder %v7380_v10, 0  ;;  %p6953_p9 = por %p6952_p10, %p6951_p7 }
  0x73   : > { %276 = vst.msk [vmem:[#allocation2 + $0x190] sm:$0xff] %vm225_vm0, %v11534_v0  ;;  %277 = vst.msk [vmem:[#allocation2 + $0x198] sm:$0xff] %vm225_vm0, %v11534_v0  ;;  %vm2418_vm12 = vcmp.eq.s32.totalorder %v7383_v11, 0  ;;  %vm630_vm13 = vcmp.ne.s32.totalorder %v7356_v1, 3  ;;  %vm631_vm14 = vcmp.ne.s32.totalorder %v7359_v2, 3  ;;  %vm2419_vm15 = vcmp.eq.s32.totalorder %v7393_v14, 0 }
  0x74   : > { %278 = vst.msk [vmem:[#allocation2 + $0x1a0] sm:$0xff] %vm225_vm0, %v11534_v0  ;;  %279 = vst.msk [vmem:[#allocation2 + $0x1a8] sm:$0xff] %vm225_vm0, %v11534_v0  ;;  %vm2923_vm2 = vcmp.eq.s32.totalorder %v7397_v15, 0  ;;  %vm2924_vm3 = vcmp.eq.s32.totalorder %v7400_v16, 0  ;;  %p6954_p11 = pnand %p6953_p9, %p6947_p13 }
  0x75   : > { %280 = vst.msk [vmem:[#allocation2 + $0x1b0] sm:$0xff] %vm225_vm0, %v11534_v0  ;;  %281 = vst.msk [vmem:[#allocation2 + $0x1b8] sm:$0xff] %vm225_vm0, %v11534_v0  ;;  %v7571_v0 = vld [vmem:[%s7223_s5 + $0x18] sm:$0xff] }
  0x76   : > { %11892 = vst [vmem:[#allocation12_spill] sm:$0xff] %v7362_v4  ;;  %11893 = vst [vmem:[#allocation13_spill] sm:$0xff] %v7368_v6  ;;  %v7561_v6 = vld [vmem:[%s7223_s5 + $0x10] sm:$0xff] }
  0x77   : > { %11894 = vst [vmem:[#allocation14_spill] sm:$0xff] %v7403_v17  ;;  %11895 = vst [vmem:[#allocation15_spill] sm:$0xff] %v7416_v20  ;;  %v7574_v20 = vld [vmem:[%s7223_s5 + $0x98] sm:$0xff]  ;;  %v7577_v17 = vsub.f32 %v738_v32, %v7406_v18  ;;  %v1366_v52 = vmax.f32 %v7561_v6, %v7564_v42 }
  0x78   : > { %11896 = vst [vmem:[#allocation16_spill] sm:$0xff] %v7427_v24  ;;  %11897 = vst [vmem:[#allocation17_spill] sm:$0xff] %v7443_v29  ;;  %v873_v24 = vmul.f32 1.442695, %v870_v51  ;;  %v7588_v51 = vld [vmem:[%s7223_s5 + $0x118] sm:$0xff] }
  0x79   : > { %11898 = vst [vmem:[#allocation18_spill] sm:$0xff] %v7453_v33  ;;  %11899 = vst [vmem:[#allocation19_spill] sm:$0xff] %v7458_v34  ;;  %v867_v33 = vmul.f32 1.442695, %v864_v45  ;;  %v5990_v45 = vld [vmem:[%s7223_s5 + $0x110] sm:$0xff]  ;;  %v742_v32 = vadd.f32 %v7472_v39, %v7577_v17 }
  0x7a   : > { %11900 = vst [vmem:[#allocation20_spill] sm:$0xff] %v7466_v37  ;;  %11901 = vst [vmem:[#allocation21_spill] sm:$0xff] %v7469_v38  ;;  %v877_v38 = vmul.f32 1.442695, %v875_v26  ;;  %v7582_v37 = vadd.f32 %v930_v58, %v914_v63  ;;  %v743_v26 = vadd.f32 %v7485_v47, %v7580_v46  ;;  %v7597_v63 = vld [vmem:[%s7223_s5 + $0x190] sm:$0xff]  ;;  %v1367_v58 = vmax.f32 %v7571_v0, %v7574_v20 }
  0x7b   : > { %11902 = vst [vmem:[#allocation22_spill] sm:$0xff] %v7514_v60  ;;  %11903 = vst [vmem:[#allocation23_spill] sm:$0xff] %v7517_v61  ;;  %6652 = vpow2.f32 %v867_v33  ;;  %v1368_v35 = vmax.f32 %v1366_v52, %v5990_v45  ;;  %v7610_v36 = vsub.f32 %v742_v32, %v7406_v18  ;;  %v11912_v60 = vmov 0.0  }
  0x7c   : > { %11904 = vst [vmem:[#allocation24_spill] sm:$0xff] %v7523_v3  ;;  %11905 = vst [vmem:[#allocation25_spill] sm:$0xff] %v7529_v44  ;;  %v7613_v23 = vsub.f32 %v743_v26, %v7410_v19  ;;  %6654 = vpow2.f32 %v873_v24  ;;  %6298 = vmatprep.subr.bf16.mxu0 %v11912_v60  ;;  %v883_v33 = vmul.f32 1.442695, %v881_v41  ;;  %v885_v24 = vmul.f32 1.442695, %v882_v53 }
  0x7d   : > { %11906 = vst [vmem:[#allocation26_spill] sm:$0xff] %v7568_v43  ;;  %11907 = vst [vmem:[#allocation27_spill] sm:$0xff] %v7577_v17  ;;  %v879_v43 = vmul.f32 1.442695, %v876_v50  ;;  %v746_v49 = vadd.f32 %v7503_v55, %v7610_v36  ;;  %6656 = vpow2.f32 %v877_v38  ;;  %v7833_v10 = vsel %vm1913_vm10, 1.0, %v11912_v60 }
  0x7e   : > { %11908 = vst [vmem:[#allocation28_spill] sm:$0xff] %v7580_v46  ;;  %11909 = vst [vmem:[#allocation29_spill] sm:$0xff] %v7582_v37  ;;  %v1369_v37 = vmax.f32 %v1367_v58, %v7588_v51  ;;  %v7618_v46 = vmax.f32 %v1368_v35, %v7597_v63  ;;  %v747_v62 = vadd.f32 %v7545_v30, %v7613_v23 }
  0x7f   : > { %11910 = vst [vmem:[#allocation30_spill] sm:$0xff] %v7610_v36  ;;  %11911 = vst [vmem:[#allocation31_spill] sm:$0xff] %v7613_v23  ;;  %v7632_v41 = vsub.f32 %v746_v49, %v7406_v18  ;;  %6658 = vpow2.f32 %v879_v43 }
  0x80   : > { %11913 = vst [vmem:[#allocation32_spill] sm:$0xff] %v7618_v46  ;;  %v7625_v52 = vmax.f32 %v1369_v37, %v7607_v54  ;;  %v1372_v32 = vsub.f32 %v7561_v6, %v7618_v46  ;;  %v1378_v50 = vsub.f32 %v7564_v42, %v7618_v46  ;;  %v7635_v26 = vsub.f32 %v747_v62, %v7410_v19  ;;  %v7647_v19 = vpop.eup %6648 }
  0x81   : > { %11915 = vst [vmem:[#allocation34_spill] sm:$0xff] %v7632_v41  ;;  %v1384_v38 = vsub.f32 %v5990_v45, %v7618_v46  ;;  %v750_v61 = vadd.f32 %v7549_v59, %v7632_v41  ;;  %6660 = vpow2.f32 %v883_v33  ;;  %v1390_v43 = vsub.f32 %v7597_v63, %v7618_v46  ;;  %v7652_v45 = vpop.eup %6650 }
  0x82   : > { %11914 = vst [vmem:[#allocation33_spill] sm:$0xff] %v7625_v52  ;;  %11916 = vst [vmem:[#allocation35_spill] sm:$0xff] %v7635_v26  ;;  %v1373_v58 = vsub.f32 %v7571_v0, %v7625_v52  ;;  %v1374_v37 = vmul.f32 1.442695, %v1372_v32  ;;  %v1379_v53 = vsub.f32 %v7574_v20, %v7625_v52  ;;  %v1380_v35 = vmul.f32 1.442695, %v1378_v50 }
  0x83   : > { %v751_v18 = vadd.f32 %v7553_v31, %v7635_v26  ;;  %6662 = vpow2.f32 %v885_v24  ;;  %11917 = vst [vmem:[#allocation36_spill] sm:$0xff] %v7652_v45  ;;  %v7655_v62 = vsub.f32 %v750_v61, %v7374_v8  ;;  %v1386_v33 = vmul.f32 1.442695, %v1384_v38 }
  0x84   : > { %v1376_v49 = vmul.f32 1.442695, %v1373_v58  ;;  %6664 = vpow2.f32 %v1374_v37  ;;  %v1382_v24 = vmul.f32 1.442695, %v1379_v53  ;;  %v7674_v61 = vsel %vm1409_vm7, 1.0, %v11912_v60  ;;  %v7683_v53 = vld [vmem:[%s7223_s5 + $0x20] sm:$0xff] }
  0x85   : > { %11918 = vst [vmem:[#allocation37_spill] sm:$0xff] %v7655_v62  ;;  %v7658_v32 = vsub.f32 %v751_v18, %v7386_v12  ;;  %v7660_v50 = vpop.eup %6652  ;;  %6666 = vpow2.f32 %v1380_v35  ;;  %v754_v7 = vadd.f32 %v7655_v62, %v7556_v40  ;;  %v7671_v12 = vsel %vm1408_vm6, 1.0, %v11912_v60 }
  0x86   : > { %v7662_v58 = vpop.eup %6654  ;;  %v887_v63 = vadd.f32 %v7652_v45, %v7647_v19  ;;  %6668 = vpow2.f32 %v1376_v49  ;;  %v1385_v38 = vsub.f32 %v7588_v51, %v7625_v52  ;;  %v1422_v37 = vmul.f32 %v7671_v12, %v7561_v6 }
  0x87   : > { %11919 = vst [vmem:[#allocation38_spill] sm:$0xff] %v7658_v32  ;;  %11920 = vst [vmem:[#allocation39_spill] sm:$0xff] %v7662_v58  ;;  %v755_v8 = vadd.f32 %v7658_v32, %v7602_v48  ;;  %v7688_v35 = vpop.eup %6656  ;;  %v7691_v18 = vsub.f32 %v754_v7, %v7419_v21  ;;  %6670 = vpow2.f32 %v1386_v33  ;;  %v1392_v51 = vmul.f32 1.442695, %v1390_v43  ;;  %v7711_v43 = vld [vmem:[%s7223_s5 + $0x28] sm:$0xff] }
  0x88   : > { %11921 = vst [vmem:[#allocation40_spill] sm:$0xff] %v7688_v35  ;;  %v888_v45 = vadd.f32 %v7662_v58, %v7660_v50  ;;  %6672 = vpow2.f32 %v1382_v24  ;;  %v1423_v6 = vmul.f32 %v7674_v61, %v7571_v0  ;;  %v7701_v46 = vsub.f32 1.0, %v7419_v21  ;;  %v7714_v24 = vld [vmem:[%s7223_s5 + $0xa8] sm:$0xff] }
  0x89   : > { %11922 = vst [vmem:[#allocation41_spill] sm:$0xff] %v7691_v18  ;;  %v7694_v49 = vsub.f32 %v755_v8, %v7430_v25  ;;  %v758_v32 = vadd.f32 %v7691_v18, %v7556_v40  ;;  %v7708_v33 = vsub.f32 1.0, %v7430_v25  ;;  %v7717_v8 = vld [vmem:[%s7223_s5 + $0x120] sm:$0xff]  ;;  %v1871_v0 = vmax.f32 %v7683_v53, %v7686_v5  ;;  %v7721_v21 = vpop.eup %6658 }
  0x8a   : > { %11924 = vst [vmem:[#allocation43_spill] sm:$0xff] %v7701_v46  ;;  %11926 = vst [vmem:[#allocation45_spill] sm:$0xff] %v7721_v21  ;;  %v889_v58 = vadd.f32 %v7688_v35, %v887_v63  ;;  %v1388_v18 = vmul.f32 1.442695, %v1385_v38  ;;  %v1438_v25 = vmul.f32 %v7564_v42, %v7701_v46  ;;  %6674 = vpow2.f32 %v1392_v51  ;;  %v7739_v38 = vld [vmem:[%s7223_s5 + $0x128] sm:$0xff]  ;;  %v7742_v35 = vld [vmem:[%s7223_s5 + $0x1a0] sm:$0xff] }
  0x8b   : > { %11923 = vst [vmem:[#allocation42_spill] sm:$0xff] %v7694_v49  ;;  %v759_v7 = vadd.f32 %v7694_v49, %v7602_v48  ;;  %11925 = vst [vmem:[#allocation44_spill] sm:$0xff] %v7708_v33  ;;  %v1391_v49 = vsub.f32 %v7607_v54, %v7625_v52  ;;  %v7728_v62 = vpop.eup %6660  ;;  %v7731_v26 = vsub.f32 %v758_v32, %v7437_v27 }
  0x8c   : > { %11927 = vst [vmem:[#allocation46_spill] sm:$0xff] %v7728_v62  ;;  %v1439_v63 = vmul.f32 %v7574_v20, %v7708_v33  ;;  %v7747_v42 = vadd.f32 %v1438_v25, %v1422_v37  ;;  %v1872_v32 = vmax.f32 %v7711_v43, %v7714_v24  ;;  %v890_v23 = vadd.f32 %v7721_v21, %v888_v45  ;;  %v7766_v37 = vld [vmem:[%s7223_s5 + $0x1a8] sm:$0xff] }
  0x8d   : > { %11928 = vst [vmem:[#allocation47_spill] sm:$0xff] %v7731_v26  ;;  %v7734_v41 = vsub.f32 %v759_v7, %v7440_v28  ;;  %v7744_v54 = vpop.eup %6662  ;;  %v1873_v7 = vmax.f32 %v1871_v0, %v7717_v8  ;;  %v7756_v20 = vadd.f32 %v7731_v26, %v7556_v40  ;;  %v1394_v0 = vmul.f32 1.442695, %v1391_v49  ;;  %v7868_v26 = vld [vmem:[%s7223_s5 + $0x138] sm:$0xff] }
  0x8e   : > { %11930 = vst [vmem:[#allocation49_spill] sm:$0xff] %v7744_v54  ;;  %11931 = vst [vmem:[#allocation50_spill] sm:$0xff] %v7747_v42  ;;  %v7752_v52 = vpop.eup %6664  ;;  %v7763_v36 = vadd.f32 %v1439_v63, %v1423_v6  ;;  %v1874_v42 = vmax.f32 %v1872_v32, %v7739_v38  ;;  %v7780_v6 = vadd.f32 %v7728_v62, %v889_v58  ;;  %6676 = vpow2.f32 %v1388_v18 }
  0x8f   : > { %11929 = vst [vmem:[#allocation48_spill] sm:$0xff] %v7734_v41  ;;  %11932 = vst [vmem:[#allocation51_spill] sm:$0xff] %v7756_v20  ;;  %v7760_v51 = vadd.f32 %v7734_v41, %v7602_v48  ;;  %v7768_v25 = vpop.eup %6666  ;;  %v7773_v40 = vmax.f32 %v1873_v7, %v7742_v35  ;;  %v7796_v58 = vadd.f32 %v7744_v54, %v890_v23  ;;  %v11941_v45 = vsub.s32 0, %v7390_v13  ;;  %v7865_v41 = vld [vmem:[%s7223_s5 + $0x130] sm:$0xff] }
  0x90   : > { %11934 = vst [vmem:[#allocation53_spill] sm:$0xff] %v7763_v36  ;;  %11935 = vst [vmem:[#allocation54_spill] sm:$0xff] %v7768_v25  ;;  %v7782_v63 = vpop.eup %6668  ;;  %v1396_v49 = vadd.f32 %v7768_v25, %v7752_v52  ;;  %v7787_v32 = vmax.f32 %v1874_v42, %v7766_v37  ;;  %v7800_v18 = vsub.s32 %v7423_v22, %v7362_v4  ;;  %v5904_v62 = vsel %vm534_vm8, 1.0, %v11912_v60 }
  0x91   : > { %11933 = vst [vmem:[#allocation52_spill] sm:$0xff] %v7760_v51  ;;  %11936 = vst [vmem:[#allocation55_spill] sm:$0xff] %v7773_v40  ;;  %v1877_v7 = vsub.f32 %v7683_v53, %v7773_v40  ;;  %v1883_v48 = vsub.f32 %v7686_v5, %v7773_v40  ;;  %v7793_v21 = vpop.eup %6670  ;;  %v7805_v42 = vmin.u32 %v11941_v45, %v7390_v13  ;;  %v5905_v23 = vsel %vm535_vm9, 1.0, %v11912_v60 }
  0x92   : > { %11937 = vst [vmem:[#allocation56_spill] sm:$0xff] %v7780_v6  ;;  %11938 = vst [vmem:[#allocation57_spill] sm:$0xff] %v7787_v32  ;;  %v7807_v25 = vpop.eup %6672  ;;  %v1878_v22 = vsub.f32 %v7711_v43, %v7787_v32  ;;  %6678 = vrcp.f32 %v7780_v6  ;;  %v1884_v45 = vsub.f32 %v7714_v24, %v7787_v32  ;;  %v1398_v4 = vadd.f32 %v7793_v21, %v1396_v49 }
  0x93   : > { %11939 = vst [vmem:[#allocation58_spill] sm:$0xff] %v7793_v21  ;;  %11940 = vst [vmem:[#allocation59_spill] sm:$0xff] %v7796_v58  ;;  %v1879_v13 = vmul.f32 1.442695, %v1877_v7  ;;  %6680 = vpow2.f32 %v1394_v0  ;;  %v1885_v54 = vmul.f32 1.442695, %v1883_v48  ;;  %v1889_v36 = vsub.f32 %v7717_v8, %v7773_v40 }
  0x94   : > { %11942 = vst [vmem:[#allocation60_spill] sm:$0xff] %v7805_v42  ;;  %11943 = vst [vmem:[#allocation61_spill] sm:$0xff] %v7807_v25  ;;  %v7825_v51 = vpop.eup %6674  ;;  %v7827_v9 = vmul.f32 0.0, %v5904_v62  ;;  %6682 = vrcp.f32 %v7796_v58  ;;  %v1890_v7 = vsub.f32 %v7739_v38, %v7787_v32  ;;  %v7836_v0 = vld [vmem:[%s7223_s5 + $0x30] sm:$0xff]  ;;  %v1397_v48 = vadd.f32 %v7807_v25, %v7782_v63  ;;  %v7846_v21 = vld [vmem:[%s7223_s5 + $0x38] sm:$0xff] }
  0x95   : > { %11944 = vst [vmem:[#allocation62_spill] sm:$0xff] %v7825_v51  ;;  %v1881_v8 = vmul.f32 1.442695, %v1878_v22  ;;  %v1895_v62 = vsub.f32 %v7742_v35, %v7773_v40  ;;  %v7843_v49 = vsel %vm1914_vm11, 1.0, %v11912_v60  ;;  %v7849_v38 = vld [vmem:[%s7223_s5 + $0xb0] sm:$0xff]  ;;  %v7852_v58 = vld [vmem:[%s7223_s5 + $0xb8] sm:$0xff]  ;;  %6684 = vpow2.f32 %v1879_v13 }
  0x96   : > { %11945 = vst [vmem:[#allocation63_spill] sm:$0xff] %v7827_v9  ;;  %v1887_v6 = vmul.f32 1.442695, %v1884_v45  ;;  %v1927_v20 = vmul.f32 %v7833_v10, %v7683_v53  ;;  %v1928_v22 = vmul.f32 %v7843_v49, %v7711_v43  ;;  %v7859_v35 = vadd.f32 %v7825_v51, %v1398_v4 }
  0x97   : > { %6686 = vpow2.f32 %v1885_v54  ;;  %v1891_v25 = vmul.f32 1.442695, %v1889_v36  ;;  %v7862_v40 = vsub.f32 1.0, %v7437_v27  ;;  %v1893_v45 = vmul.f32 1.442695, %v1890_v7  ;;  %v7884_v54 = vld [vmem:[%s7223_s5 + $0x1b0] sm:$0xff] }
  0x98   : > { %11946 = vst [vmem:[#allocation64_spill] sm:$0xff] %v7859_v35  ;;  %v7870_v13 = vpop.eup %6676  ;;  %v7873_v53 = vsub.f32 1.0, %v7440_v28  ;;  %v2376_v4 = vmax.f32 %v7836_v0, %v7849_v38  ;;  %v2377_v36 = vmax.f32 %v7846_v21, %v7852_v58  ;;  %6688 = vpow2.f32 %v1881_v8 }
  0x99   : > { %11947 = vst [vmem:[#allocation65_spill] sm:$0xff] %v7862_v40  ;;  %11948 = vst [vmem:[#allocation66_spill] sm:$0xff] %v7870_v13  ;;  %v1896_v27 = vsub.f32 %v7766_v37, %v7787_v32  ;;  %v1943_v43 = vmul.f32 %v7686_v5, %v7862_v40  ;;  %6690 = vpow2.f32 %v1887_v6  ;;  %v1399_v37 = vadd.f32 %v7870_v13, %v1397_v48  ;;  %v7897_v5 = vld [vmem:[%s7223_s5 + $0x1b8] sm:$0xff] }
  0x9a   : > { %11949 = vst [vmem:[#allocation67_spill] sm:$0xff] %v7873_v53  ;;  %v1944_v28 = vmul.f32 %v7714_v24, %v7873_v53  ;;  %v2378_v7 = vmax.f32 %v2376_v4, %v7865_v41  ;;  %v2379_v51 = vmax.f32 %v2377_v36, %v7868_v26  ;;  %6692 = vrcp.f32 %v7859_v35  ;;  %v8012_v35 = vld [vmem:[%s7223_s5 + $0xc8] sm:$0xff] }
  0x9b   : > { %v7894_v8 = vadd.f32 %v1943_v43, %v1927_v20  ;;  %v7908_v6 = vsel %vm2418_vm12, 1.0, %v11912_v60  ;;  %v7912_v36 = vmul.f32 0.0, %v5905_v23  ;;  %6694 = vpow2.f32 %v1891_v25 }
  0x9c   : > { %v7899_v32 = vpop.eup %6678  ;;  %v7902_v11 = vadd.f32 %v1944_v28, %v1928_v22  ;;  %v7905_v24 = vmax.f32 %v2378_v7, %v7884_v54  ;;  %v1897_v20 = vmul.f32 1.442695, %v1895_v62  ;;  %v7916_v48 = vmul.f32 %v7908_v6, %v7836_v0 }
  0x9d   : > { %11950 = vst [vmem:[#allocation68_spill] sm:$0xff] %v7894_v8  ;;  %11951 = vst [vmem:[#allocation69_spill] sm:$0xff] %v7899_v32  ;;  %v7910_v4 = vpop.eup %6680  ;;  %v1414_v22 = vadd.f32 %v7671_v12, %v7506_v56  ;;  %6696 = vpow2.f32 %v1893_v45  ;;  %v1899_v28 = vmul.f32 1.442695, %v1896_v27  ;;  %v7923_v7 = vmax.f32 %v2379_v51, %v7897_v5 }
  0x9e   : > { %11952 = vst [vmem:[#allocation70_spill] sm:$0xff] %v7902_v11  ;;  %11953 = vst [vmem:[#allocation71_spill] sm:$0xff] %v7905_v24  ;;  %v7918_v43 = vpop.eup %6682  ;;  %v7928_v23 = vsel %vm630_vm13, 1.0, %v11912_v60  ;;  %v7933_v25 = vsel %vm631_vm14, 1.0, %v11912_v60  ;;  %v7937_v62 = vadd.f32 %v7827_v9, %v7827_v9  ;;  %v1415_v45 = vadd.f32 %v7674_v61, %v7509_v57 }
  0x9f   : > { %11954 = vst [vmem:[#allocation72_spill] sm:$0xff] %v7910_v4  ;;  %11955 = vst [vmem:[#allocation73_spill] sm:$0xff] %v7912_v36  ;;  %v7941_v27 = vpop.eup %6684  ;;  %v7945_v51 = vmul.f32 %v7899_v32, %v7647_v19  ;;  %v7948_v1 = vadd.f32 %v7910_v4, %v1399_v37  ;;  %v7952_v2 = vadd.f32 %v7701_v46, %v7523_v3  ;;  %6698 = vpow2.f32 %v1897_v20  ;;  %v6070_v3 = vld [vmem:[%s7223_s5 + $0x40] sm:$0xff] }
  0xa0   : > { %11956 = vst [vmem:[#allocation74_spill] sm:$0xff] %v7918_v43  ;;  %11957 = vst [vmem:[#allocation75_spill] sm:$0xff] %v7923_v7  ;;  %v2382_v13 = vsub.f32 %v7836_v0, %v7905_v24  ;;  %v7960_v8 = vmul.f32 %v7918_v43, %v7660_v50  ;;  %v2388_v19 = vsub.f32 %v7849_v38, %v7905_v24  ;;  %6700 = vpow2.f32 %v1899_v28 }
  0xa1   : > { %11958 = vst [vmem:[#allocation76_spill] sm:$0xff] %v7928_v23  ;;  %11959 = vst [vmem:[#allocation77_spill] sm:$0xff] %v7933_v25  ;;  %v7956_v11 = vpop.eup %6686  ;;  %v7967_v37 = vadd.f32 %v7708_v33, %v7529_v44  ;;  %v7970_v0 = vadd.f32 %v7833_v10, %v1414_v22  ;;  %v2383_v4 = vsub.f32 %v7846_v21, %v7923_v7  ;;  %6702 = vrcp.f32 %v7948_v1 }
  0xa2   : > { %11960 = vst [vmem:[#allocation78_spill] sm:$0xff] %v7937_v62  ;;  %11961 = vst [vmem:[#allocation79_spill] sm:$0xff] %v7948_v1  ;;  %v7974_v50 = vpop.eup %6688  ;;  %v7978_v20 = vmul.f32 %v7506_v56, %v7945_v51  ;;  %v7982_v14 = vmul.f32 %v7509_v57, %v7960_v8  ;;  %v7985_v28 = vadd.f32 %v7843_v49, %v1415_v45  ;;  %v2384_v46 = vmul.f32 1.442695, %v2382_v13  ;;  %v8006_v1 = vld [vmem:[%s7223_s5 + $0x48] sm:$0xff]  ;;  %v8009_v13 = vld [vmem:[%s7223_s5 + $0xc0] sm:$0xff] }
  0xa3   : > { %11962 = vst [vmem:[#allocation80_spill] sm:$0xff] %v7956_v11  ;;  %v2389_v22 = vsub.f32 %v7852_v58, %v7923_v7  ;;  %v7989_v33 = vpop.eup %6690  ;;  %v7993_v44 = vsel %vm2419_vm15, 1.0, %v11912_v60  ;;  %v7996_v56 = vsub.f32 1.0, %v7443_v29  ;;  %v1901_v57 = vadd.f32 %v7956_v11, %v7941_v27 }
  0xa4   : > { %11963 = vst [vmem:[#allocation81_spill] sm:$0xff] %v7989_v33  ;;  %v2390_v45 = vmul.f32 1.442695, %v2388_v19  ;;  %v2394_v43 = vsub.f32 %v7865_v41, %v7905_v24  ;;  %v2395_v32 = vsub.f32 %v7868_v26, %v7923_v7  ;;  %v8014_v29 = vpop.eup %6692  ;;  %v2386_v17 = vmul.f32 1.442695, %v2383_v4 }
  0xa5   : > { %11964 = vst [vmem:[#allocation82_spill] sm:$0xff] %v7996_v56  ;;  %11965 = vst [vmem:[#allocation83_spill] sm:$0xff] %v8014_v29  ;;  %v2400_v11 = vsub.f32 %v7884_v54, %v7905_v24  ;;  %v2401_v19 = vsub.f32 %v7897_v5, %v7923_v7  ;;  %v2433_v41 = vmul.f32 %v7993_v44, %v7846_v21  ;;  %v8022_v26 = vpop.eup %6694  ;;  %v2392_v4 = vmul.f32 1.442695, %v2389_v22  ;;  %v8032_v54 = vld [vmem:[%s7223_s5 + $0x140] sm:$0xff] }
  0xa6   : > { %11966 = vst [vmem:[#allocation84_spill] sm:$0xff] %v8022_v26  ;;  %v1406_v62 = vmul.f32 %v8014_v29, %v7752_v52  ;;  %v1902_v9 = vadd.f32 %v7989_v33, %v7974_v50  ;;  %v8029_v36 = vsub.f32 1.0, %v7458_v34  ;;  %6704 = vpow2.f32 %v2384_v46  ;;  %v8044_v33 = vld [vmem:[%s7223_s5 + $0x148] sm:$0xff]  ;;  %v8047_v24 = vld [vmem:[%s7223_s5 + $0x1c0] sm:$0xff] }
  0xa7   : > { %v8034_v5 = vpop.eup %6696  ;;  %v2448_v21 = vmul.f32 %v7849_v38, %v7996_v56  ;;  %v2881_v7 = vmax.f32 %v6070_v3, %v8009_v13  ;;  %v2882_v52 = vmax.f32 %v8006_v1, %v8012_v35  ;;  %6706 = vpow2.f32 %v2390_v45 }
  0xa8   : > { %11967 = vst [vmem:[#allocation85_spill] sm:$0xff] %v8029_v36  ;;  %11968 = vst [vmem:[#allocation86_spill] sm:$0xff] %v8034_v5  ;;  %v2396_v29 = vmul.f32 1.442695, %v2394_v43  ;;  %v2449_v22 = vmul.f32 %v7852_v58, %v8029_v36  ;;  %v1903_v46 = vadd.f32 %v8022_v26, %v1901_v57  ;;  %v2398_v38 = vmul.f32 1.442695, %v2395_v32 }
  0xa9   : > { %v8052_v34 = vadd.f32 %v2448_v21, %v7916_v48  ;;  %v2883_v25 = vmax.f32 %v2881_v7, %v8032_v54  ;;  %v8055_v45 = vpop.eup %6698  ;;  %v1904_v43 = vadd.f32 %v8034_v5, %v1902_v9  ;;  %6708 = vpow2.f32 %v2386_v17  ;;  %v8074_v17 = vld [vmem:[%s7223_s5 + $0x1c8] sm:$0xff] }
  0xaa   : > { %11970 = vst [vmem:[#allocation88_spill] sm:$0xff] %v8055_v45  ;;  %v8058_v58 = vadd.f32 %v2449_v22, %v2433_v41  ;;  %v8061_v23 = vpop.eup %6700  ;;  %v2884_v15 = vmax.f32 %v2882_v52, %v8044_v33  ;;  %v8068_v48 = vsel %vm2923_vm2, 1.0, %v11912_v60  ;;  %v8071_v7 = vsel %vm2924_vm3, 1.0, %v11912_v60 }
  0xab   : > { %11969 = vst [vmem:[#allocation87_spill] sm:$0xff] %v8052_v34  ;;  %11972 = vst [vmem:[#allocation90_spill] sm:$0xff] %v8061_v23  ;;  %v8065_v32 = vmax.f32 %v2883_v25, %v8047_v24  ;;  %6710 = vpow2.f32 %v2396_v29  ;;  %v2402_v9 = vmul.f32 1.442695, %v2400_v11  ;;  %v2937_v57 = vmul.f32 %v8068_v48, %v6070_v3  ;;  %v8079_v41 = vpop.eup %6702 }
  0xac   : > { %11971 = vst [vmem:[#allocation89_spill] sm:$0xff] %v8058_v58  ;;  %v2938_v16 = vmul.f32 %v8071_v7, %v8006_v1  ;;  %11974 = vst [vmem:[#allocation92_spill] sm:$0xff] %v8079_v41  ;;  %v8082_v25 = vadd.f32 %v8055_v45, %v1903_v46  ;;  %6712 = vpow2.f32 %v2392_v4  ;;  %v1407_v29 = vmul.f32 %v8079_v41, %v7782_v63  ;;  %v11989_v41 = vld [vmem:[#allocation15_spill] sm:$0xff] }
  0xad   : > { %11973 = vst [vmem:[#allocation91_spill] sm:$0xff] %v8065_v32  ;;  %v2887_v21 = vsub.f32 %v6070_v3, %v8065_v32  ;;  %v2893_v52 = vsub.f32 %v8009_v13, %v8065_v32  ;;  %v1416_v11 = vmul.f32 %v7671_v12, %v1406_v62  ;;  %v8091_v22 = vadd.f32 %v8061_v23, %v1904_v43 }
  0xae   : > { %11975 = vst [vmem:[#allocation93_spill] sm:$0xff] %v8082_v25  ;;  %v1935_v5 = vadd.f32 %v7862_v40, %v7952_v2  ;;  %v1936_v46 = vadd.f32 %v7873_v53, %v7967_v37  ;;  %6714 = vpow2.f32 %v2398_v38  ;;  %v8098_v3 = vmax.f32 %v2884_v15, %v8074_v17  ;;  %v11978_v38 = vld [vmem:[#allocation20_spill] sm:$0xff]  ;;  %v8173_v40 = vld [vmem:[%s7223_s5 + $0x158] sm:$0xff] }
  0xaf   : > { %11976 = vst [vmem:[#allocation94_spill] sm:$0xff] %v8091_v22  ;;  %v2889_v4 = vmul.f32 1.442695, %v2887_v21  ;;  %6716 = vpow2.f32 %v2402_v9  ;;  %v8102_v63 = vadd.f32 %v7908_v6, %v7970_v0  ;;  %v2895_v12 = vmul.f32 1.442695, %v2893_v52 }
  0xb0   : > { %11977 = vst [vmem:[#allocation95_spill] sm:$0xff] %v8098_v3  ;;  %v2899_v43 = vsub.f32 %v8032_v54, %v8065_v32  ;;  %v8106_v23 = vpop.eup %6704  ;;  %v1417_v2 = vmul.f32 %v7674_v61, %v1407_v29  ;;  %6718 = vrcp.f32 %v8082_v25  ;;  %v2404_v37 = vmul.f32 1.442695, %v2401_v19 }
  0xb1   : > { %v8111_v15 = vsub.f32 1.0, %v11978_v38  ;;  %v8113_v9 = vpop.eup %6706  ;;  %v8116_v0 = vadd.f32 %v1416_v11, %v7978_v20  ;;  %v8119_v21 = vadd.f32 %v1406_v62, %v7945_v51  ;;  %v8122_v54 = vadd.f32 %v1407_v29, %v7960_v8  ;;  %v11981_v51 = vld [vmem:[#allocation21_spill] sm:$0xff]  ;;  %v8140_v11 = vld [vmem:[%s7223_s5 + $0xd0] sm:$0xff] }
  0xb2   : > { %11980 = vst [vmem:[#allocation96_spill] sm:$0xff] %v8113_v9  ;;  %6720 = vrcp.f32 %v8091_v22  ;;  %v2888_v61 = vsub.f32 %v8006_v1, %v8098_v3  ;;  %v2905_v19 = vsub.f32 %v8047_v24, %v8065_v32  ;;  %v2425_v8 = vadd.f32 %v7993_v44, %v7985_v28  ;;  %v6098_v1 = vld [vmem:[%s7223_s5 + $0x50] sm:$0xff] }
  0xb3   : > { %11979 = vst [vmem:[#allocation20_spill] sm:$0xff] %v8111_v15  ;;  %6722 = vpow2.f32 %v2889_v4  ;;  %v2953_v20 = vmul.f32 %v8009_v13, %v8111_v15  ;;  %v8131_v52 = vpop.eup %6708  ;;  %v2901_v62 = vmul.f32 1.442695, %v2899_v43  ;;  %v8136_v29 = vsub.f32 1.0, %v11981_v51  ;;  %v8154_v43 = vld [vmem:[%s7223_s5 + $0xd8] sm:$0xff]  ;;  %v8166_v51 = vld [vmem:[%s7223_s5 + $0x150] sm:$0xff] }
  0xb4   : > { %6724 = vpow2.f32 %v2895_v12  ;;  %v8143_v4 = vadd.f32 %v1417_v2, %v7982_v14  ;;  %v2406_v24 = vadd.f32 %v8113_v9, %v8106_v23  ;;  %v2440_v13 = vadd.f32 %v7996_v56, %v1935_v5  ;;  %v8151_v12 = vld [vmem:[%s7223_s5 + $0x58] sm:$0xff] }
  0xb5   : > { %11982 = vst [vmem:[#allocation21_spill] sm:$0xff] %v8136_v29  ;;  %v2894_v28 = vsub.f32 %v8012_v35, %v8098_v3  ;;  %v8156_v38 = vpop.eup %6710  ;;  %6726 = vpow2.f32 %v2404_v37  ;;  %v8159_v14 = vadd.f32 %v8029_v36, %v1936_v46  ;;  %v2900_v2 = vsub.f32 %v8044_v33, %v8098_v3  ;;  %v8179_v33 = vld [vmem:[%s7223_s5 + $0x1d0] sm:$0xff] }
  0xb6   : > { %11983 = vst [vmem:[#allocation97_spill] sm:$0xff] %v8156_v38  ;;  %v2954_v5 = vmul.f32 %v8012_v35, %v8136_v29  ;;  %v8168_v56 = vpop.eup %6712  ;;  %v2891_v9 = vmul.f32 1.442695, %v2888_v61  ;;  %v2907_v45 = vmul.f32 1.442695, %v2905_v19  ;;  %v8170_v53 = vadd.f32 %v2953_v20, %v2937_v57  ;;  %v11987_v36 = vld [vmem:[#allocation14_spill] sm:$0xff] }
  0xb7   : > { %11984 = vst [vmem:[#allocation98_spill] sm:$0xff] %v8168_v56  ;;  %v3386_v46 = vmax.f32 %v6098_v1, %v8140_v11  ;;  %6728 = vpow2.f32 %v2901_v62  ;;  %v3387_v35 = vmax.f32 %v8151_v12, %v8154_v43  ;;  %vm3428_vm4 = vcmp.eq.s32.totalorder %v11987_v36, 0  ;;  %v8188_v19 = vld [vmem:[%s7223_s5 + $0x1d8] sm:$0xff] }
  0xb8   : > { %11985 = vst [vmem:[#allocation99_spill] sm:$0xff] %v8170_v53  ;;  %v8176_v37 = vadd.f32 %v2954_v5, %v2938_v16  ;;  %v8184_v26 = vpop.eup %6714  ;;  %v2408_v61 = vadd.f32 %v8156_v38, %v2406_v24  ;;  %v2897_v57 = vmul.f32 1.442695, %v2894_v28  ;;  %vm3429_vm5 = vcmp.eq.s32.totalorder %v11989_v41, 0 }
  0xb9   : > { %11988 = vst [vmem:[#allocation14_spill] sm:$0xff] %v8184_v26  ;;  %v3388_v20 = vmax.f32 %v3386_v46, %v8166_v51  ;;  %v8192_v16 = vpop.eup %6716  ;;  %v2407_v62 = vadd.f32 %v8168_v56, %v8131_v52  ;;  %v3389_v5 = vmax.f32 %v3387_v35, %v8173_v40  ;;  %v8198_v36 = vsel %vm3428_vm4, 1.0, %v11912_v60 }
  0xba   : > { %11986 = vst [vmem:[#allocation100_spill] sm:$0xff] %v8176_v37  ;;  %11990 = vst [vmem:[#allocation15_spill] sm:$0xff] %v8192_v16  ;;  %v8201_v32 = vsel %vm3429_vm5, 1.0, %v11912_v60  ;;  %v8203_v24 = vpop.eup %6718  ;;  %6730 = vpow2.f32 %v2891_v9  ;;  %v8209_v41 = vmul.f32 %v8198_v36, %v6098_v1  ;;  %v2906_v56 = vsub.f32 %v8074_v17, %v8098_v3 }
  0xbb   : > { %11991 = vst [vmem:[#allocation101_spill] sm:$0xff] %v8203_v24  ;;  %v8206_v28 = vmax.f32 %v3388_v20, %v8179_v33  ;;  %v8213_v46 = vmul.f32 %v8201_v32, %v8151_v12  ;;  %v1911_v38 = vmul.f32 %v8203_v24, %v7941_v27  ;;  %6732 = vpow2.f32 %v2907_v45 }
  0xbc   : > { %v8215_v35 = vpop.eup %6720  ;;  %v8222_v9 = vmax.f32 %v3389_v5, %v8188_v19  ;;  %v8227_v37 = vadd.f32 %v8192_v16, %v2408_v61  ;;  %6734 = vpow2.f32 %v2897_v57  ;;  %v2903_v17 = vmul.f32 1.442695, %v2900_v2 }
  0xbd   : > { %11992 = vst [vmem:[#allocation102_spill] sm:$0xff] %v8206_v28  ;;  %11993 = vst [vmem:[#allocation103_spill] sm:$0xff] %v8215_v35  ;;  %v8224_v20 = vpop.eup %6722  ;;  %v3392_v53 = vsub.f32 %v6098_v1, %v8206_v28  ;;  %v3398_v58 = vsub.f32 %v8140_v11, %v8206_v28  ;;  %v1912_v45 = vmul.f32 %v8215_v35, %v7974_v50  ;;  %v2909_v50 = vmul.f32 1.442695, %v2906_v56  ;;  %v8256_v35 = vld [vmem:[%s7223_s5 + $0x60] sm:$0xff] }
  0xbe   : > { %11994 = vst [vmem:[#allocation104_spill] sm:$0xff] %v8222_v9  ;;  %11995 = vst [vmem:[#allocation105_spill] sm:$0xff] %v8227_v37  ;;  %v8232_v27 = vpop.eup %6724  ;;  %v8238_v5 = vadd.f32 %v8068_v48, %v8102_v63  ;;  %v3393_v61 = vsub.f32 %v8151_v12, %v8222_v9  ;;  %v2409_v1 = vadd.f32 %v8184_v26, %v2407_v62  ;;  %v8259_v62 = vld [vmem:[%s7223_s5 + $0xe0] sm:$0xff]  ;;  %6736 = vrcp.f32 %v8227_v37 }
  0xbf   : > { %11996 = vst [vmem:[#allocation106_spill] sm:$0xff] %v8232_v27  ;;  %v8244_v57 = vadd.f32 %v8071_v7, %v2425_v8  ;;  %v3394_v16 = vmul.f32 1.442695, %v3392_v53  ;;  %v3399_v24 = vsub.f32 %v8154_v43, %v8222_v9  ;;  %v8248_v3 = vpop.eup %6726  ;;  %v8251_v2 = vadd.f32 %v8111_v15, %v2440_v13  ;;  %v6127_v15 = vld [vmem:[%s7223_s5 + $0x68] sm:$0xff] }
  0xc0   : > { %11997 = vst [vmem:[#allocation107_spill] sm:$0xff] %v8248_v3  ;;  %v3400_v63 = vmul.f32 1.442695, %v3398_v58  ;;  %v3404_v12 = vsub.f32 %v8166_v51, %v8206_v28  ;;  %v1921_v53 = vmul.f32 %v7833_v10, %v1911_v38  ;;  %v8263_v8 = vadd.f32 %v1911_v38, %v8119_v21 }
  0xc1   : > { %v2911_v56 = vadd.f32 %v8232_v27, %v8224_v20  ;;  %v8268_v58 = vpop.eup %6728  ;;  %v8271_v13 = vmul.f32 %v7843_v49, %v1912_v45  ;;  %v8274_v51 = vadd.f32 %v1912_v45, %v8122_v54  ;;  %6738 = vpow2.f32 %v2903_v17  ;;  %v8289_v45 = vld [vmem:[%s7223_s5 + $0xe8] sm:$0xff]  ;;  %v8292_v17 = vld [vmem:[%s7223_s5 + $0x160] sm:$0xff] }
  0xc2   : > { %11998 = vst [vmem:[#allocation108_spill] sm:$0xff] %v8268_v58  ;;  %v3396_v10 = vmul.f32 1.442695, %v3393_v61  ;;  %v8277_v21 = vadd.f32 %v8248_v3, %v2409_v1  ;;  %6740 = vpow2.f32 %v3394_v16  ;;  %v3402_v38 = vmul.f32 1.442695, %v3399_v24  ;;  %v12007_v3 = vld [vmem:[#allocation18_spill] sm:$0xff] }
  0xc3   : > { %v3891_v27 = vmax.f32 %v8256_v35, %v8259_v62  ;;  %6742 = vpow2.f32 %v3400_v63  ;;  %v3406_v26 = vmul.f32 1.442695, %v3404_v12  ;;  %v8283_v49 = vsub.f32 1.0, %v7472_v39  ;;  %v8310_v12 = vld [vmem:[%s7223_s5 + $0x168] sm:$0xff] }
  0xc4   : > { %11999 = vst [vmem:[#allocation109_spill] sm:$0xff] %v8277_v21  ;;  %v8286_v54 = vsub.f32 1.0, %v7485_v47  ;;  %v8294_v16 = vpop.eup %6730  ;;  %6744 = vpow2.f32 %v2909_v50  ;;  %v2913_v24 = vadd.f32 %v8268_v58, %v2911_v56  ;;  %v3405_v61 = vsub.f32 %v8173_v40, %v8222_v9  ;;  %v8313_v56 = vld [vmem:[%s7223_s5 + $0x1e0] sm:$0xff] }
  0xc5   : > { %12000 = vst [vmem:[#allocation110_spill] sm:$0xff] %v8283_v49  ;;  %v3410_v1 = vsub.f32 %v8179_v33, %v8206_v28  ;;  %v8301_v39 = vpop.eup %6732  ;;  %6746 = vpow2.f32 %v3396_v10  ;;  %v3411_v47 = vsub.f32 %v8188_v19, %v8222_v9  ;;  %v3458_v63 = vmul.f32 %v8140_v11, %v8283_v49  ;;  %v12004_v58 = vld [vmem:[#allocation16_spill] sm:$0xff] }
  0xc6   : > { %12001 = vst [vmem:[#allocation111_spill] sm:$0xff] %v8286_v54  ;;  %12002 = vst [vmem:[#allocation112_spill] sm:$0xff] %v8301_v39  ;;  %v3459_v50 = vmul.f32 %v8154_v43, %v8286_v54  ;;  %v8315_v40 = vpop.eup %6734  ;;  %6748 = vpow2.f32 %v3402_v38  ;;  %v3892_v33 = vmax.f32 %v6127_v15, %v8289_v45  ;;  %v3893_v10 = vmax.f32 %v3891_v27, %v8292_v17  ;;  %v8327_v43 = vld [vmem:[%s7223_s5 + $0x1e8] sm:$0xff] }
  0xc7   : > { %12003 = vst [vmem:[#allocation113_spill] sm:$0xff] %v8315_v40  ;;  %vm3933_vm6 = vcmp.eq.s32.totalorder %v12004_v58, 0  ;;  %6750 = vpow2.f32 %v3406_v26  ;;  %v8321_v19 = vadd.f32 %v3458_v63, %v8209_v41  ;;  %vm3934_vm7 = vcmp.eq.s32.totalorder %v12007_v3, 0 }
  0xc8   : > { %v8324_v11 = vadd.f32 %v3459_v50, %v8213_v46  ;;  %v8331_v9 = vadd.f32 %v8301_v39, %v2913_v24  ;;  %v3894_v38 = vmax.f32 %v3892_v33, %v8310_v12  ;;  %v8335_v27 = vmax.f32 %v3893_v10, %v8313_v56  ;;  %v8344_v3 = vpop.eup %6736 }
  0xc9   : > { %12005 = vst [vmem:[#allocation16_spill] sm:$0xff] %v8321_v19  ;;  %v8338_v26 = vsel %vm3933_vm6, 1.0, %v11912_v60  ;;  %v2912_v41 = vadd.f32 %v8315_v40, %v8294_v16  ;;  %v3408_v46 = vmul.f32 1.442695, %v3405_v61  ;;  %v3412_v58 = vmul.f32 1.442695, %v3410_v1 }
  0xca   : > { %12006 = vst [vmem:[#allocation114_spill] sm:$0xff] %v8324_v11  ;;  %12008 = vst [vmem:[#allocation18_spill] sm:$0xff] %v8331_v9  ;;  %v3947_v63 = vmul.f32 %v8338_v26, %v8256_v35  ;;  %v8347_v24 = vmax.f32 %v3894_v38, %v8327_v43  ;;  %v3897_v50 = vsub.f32 %v8256_v35, %v8335_v27  ;;  %v8354_v10 = vsel %vm3934_vm7, 1.0, %v11912_v60 }
  0xcb   : > { %12009 = vst [vmem:[#allocation115_spill] sm:$0xff] %v8335_v27  ;;  %12010 = vst [vmem:[#allocation116_spill] sm:$0xff] %v8344_v3  ;;  %v3903_v33 = vsub.f32 %v8259_v62, %v8335_v27  ;;  %v8356_v39 = vpop.eup %6738  ;;  %v8359_v61 = vadd.f32 %v1921_v53, %v8116_v0  ;;  %6752 = vrcp.f32 %v8277_v21  ;;  %v3414_v1 = vmul.f32 1.442695, %v3411_v47 }
  0xcc   : > { %12011 = vst [vmem:[#allocation117_spill] sm:$0xff] %v8347_v24  ;;  %12012 = vst [vmem:[#allocation118_spill] sm:$0xff] %v8356_v39  ;;  %v3948_v38 = vmul.f32 %v8354_v10, %v6127_v15  ;;  %v8363_v40 = vpop.eup %6740  ;;  %6754 = vrcp.f32 %v8331_v9  ;;  %v3898_v35 = vsub.f32 %v6127_v15, %v8347_v24  ;;  %v3899_v11 = vmul.f32 1.442695, %v3897_v50 }
  0xcd   : > { %v3904_v28 = vsub.f32 %v8289_v45, %v8347_v24  ;;  %v8369_v19 = vpop.eup %6742  ;;  %v2946_v0 = vadd.f32 %v8136_v29, %v8159_v14  ;;  %6756 = vpow2.f32 %v3408_v46  ;;  %v3434_v53 = vadd.f32 %v8198_v36, %v8238_v5  ;;  %v4890_v29 = vld [vmem:[#allocation2 + $0x8] sm:$0xff] }
  0xce   : > { %12013 = vst [vmem:[#allocation119_spill] sm:$0xff] %v8369_v19  ;;  %v3905_v47 = vmul.f32 1.442695, %v3903_v33  ;;  %v8375_v21 = vpop.eup %6744  ;;  %v2914_v34 = vadd.f32 %v8356_v39, %v2912_v41  ;;  %6758 = vpow2.f32 %v3412_v58  ;;  %v3901_v15 = vmul.f32 1.442695, %v3898_v35 }
  0xcf   : > { %12014 = vst [vmem:[#allocation120_spill] sm:$0xff] %v8375_v21  ;;  %v3909_v50 = vsub.f32 %v8292_v17, %v8335_v27  ;;  %v8380_v9 = vpop.eup %6746  ;;  %6760 = vpow2.f32 %v3414_v1  ;;  %v3907_v22 = vmul.f32 1.442695, %v3904_v28  ;;  %v3910_v14 = vsub.f32 %v8310_v12, %v8347_v24  ;;  %v8410_v1 = vld [vmem:[%s7223_s5 + $0x70] sm:$0xff] }
  0xd0   : > { %v8385_v5 = vsub.f32 1.0, %v7503_v55  ;;  %v8387_v46 = vpop.eup %6748  ;;  %v3416_v41 = vadd.f32 %v8369_v19, %v8363_v40  ;;  %v3435_v58 = vadd.f32 %v8201_v32, %v8244_v57  ;;  %6762 = vpow2.f32 %v3899_v11  ;;  %v8437_v19 = vld [vmem:[%s7223_s5 + $0x170] sm:$0xff] }
  0xd1   : > { %12016 = vst [vmem:[#allocation122_spill] sm:$0xff] %v8387_v46  ;;  %v3915_v28 = vsub.f32 %v8313_v56, %v8335_v27  ;;  %v8395_v17 = vpop.eup %6750  ;;  %v3450_v55 = vadd.f32 %v8283_v49, %v8251_v2  ;;  %6764 = vpow2.f32 %v3905_v47  ;;  %v3916_v12 = vsub.f32 %v8327_v43, %v8347_v24  ;;  %v8423_v47 = vld [vmem:[%s7223_s5 + $0xf8] sm:$0xff] }
  0xd2   : > { %12015 = vst [vmem:[#allocation121_spill] sm:$0xff] %v8385_v5  ;;  %12017 = vst [vmem:[#allocation123_spill] sm:$0xff] %v8395_v17  ;;  %v3963_v33 = vmul.f32 %v8259_v62, %v8385_v5  ;;  %v8404_v57 = vadd.f32 %v8375_v21, %v2914_v34  ;;  %v8407_v11 = vadd.f32 %v8286_v54, %v2946_v0  ;;  %6766 = vpow2.f32 %v3901_v15  ;;  %v8417_v62 = vld [vmem:[%s7223_s5 + $0x78] sm:$0xff]  ;;  %v8420_v34 = vld [vmem:[%s7223_s5 + $0xf0] sm:$0xff] }
  0xd3   : > { %v3911_v56 = vmul.f32 1.442695, %v3909_v50  ;;  %6768 = vpow2.f32 %v3907_v22  ;;  %v3913_v2 = vmul.f32 1.442695, %v3910_v14  ;;  %v3939_v35 = vadd.f32 %v8338_v26, %v3434_v53  ;;  %v8440_v21 = vld [vmem:[%s7223_s5 + $0x178] sm:$0xff] }
  0xd4   : > { %12018 = vst [vmem:[#allocation124_spill] sm:$0xff] %v8404_v57  ;;  %v8414_v43 = vsub.f32 1.0, %v7545_v30  ;;  %v3417_v0 = vadd.f32 %v8387_v46, %v8380_v9  ;;  %v3418_v22 = vadd.f32 %v8395_v17, %v3416_v41  ;;  %v3917_v15 = vmul.f32 1.442695, %v3915_v28 }
  0xd5   : > { %v3940_v50 = vadd.f32 %v8354_v10, %v3435_v58  ;;  %v8429_v14 = vpop.eup %6752  ;;  %v3919_v30 = vmul.f32 1.442695, %v3916_v12  ;;  %v3955_v53 = vadd.f32 %v8385_v5, %v3450_v55  ;;  %v8434_v49 = vadd.f32 %v3963_v33, %v3947_v63  ;;  %v8449_v55 = vld [vmem:[%s7231_s3 + $0x70] sm:$0xff]  ;;  %v8460_v33 = vld [vmem:[%s7223_s5 + $0x1f8] sm:$0xff] }
  0xd6   : > { %12019 = vst [vmem:[#allocation125_spill] sm:$0xff] %v8414_v43  ;;  %12020 = vst [vmem:[#allocation126_spill] sm:$0xff] %v8429_v14  ;;  %v3964_v54 = vmul.f32 %v8289_v45, %v8414_v43  ;;  %v8442_v41 = vpop.eup %6754  ;;  %6770 = vpow2.f32 %v3911_v56  ;;  %v4396_v58 = vmax.f32 %v8410_v1, %v8420_v34  ;;  %v4397_v28 = vmax.f32 %v8417_v62, %v8423_v47  ;;  %v8457_v12 = vld [vmem:[%s7223_s5 + $0x1f0] sm:$0xff]  ;;  %v8463_v56 = vld [vmem:[%s7231_s3 + $0x78] sm:$0xff] }
  0xd7   : > { %12021 = vst [vmem:[#allocation127_spill] sm:$0xff] %v8434_v49  ;;  %12022 = vst [vmem:[#allocation128_spill] sm:$0xff] %v8442_v41  ;;  %vm4438_vm8 = vcmp.eq.s32.totalorder %v8449_v55, 0  ;;  %v8452_v45 = vpop.eup %6756  ;;  %6772 = vpow2.f32 %v3913_v2  ;;  %vm4439_vm9 = vcmp.eq.s32.totalorder %v8463_v56, 0  ;;  %v4889_v2 = vld [vmem:[#allocation2] sm:$0xff]  ;;  %vm296_vm10 = vcmp.le.s32.totalorder %v7805_v42, 3 }
  0xd8   : > { %12023 = vst [vmem:[#allocation129_spill] sm:$0xff] %v8452_v45  ;;  %v8454_v63 = vadd.f32 %v3964_v54, %v3948_v38  ;;  %12025 = vst [vmem:[#allocation131_spill] sm:$0xff] %v8460_v33  ;;  %v8467_v5 = vsel %vm4438_vm8, 1.0, %v11912_v60  ;;  %v8469_v39 = vpop.eup %6758  ;;  %v4398_v17 = vmax.f32 %v4396_v58, %v8437_v19  ;;  %v4399_v46 = vmax.f32 %v4397_v28, %v8440_v21 }
  0xd9   : > { %12026 = vst [vmem:[#allocation132_spill] sm:$0xff] %v8463_v56  ;;  %12027 = vst [vmem:[#allocation133_spill] sm:$0xff] %v8469_v39  ;;  %v8474_v54 = vsel %vm4439_vm9, 1.0, %v11912_v60  ;;  %v4444_v38 = vadd.f32 %v8467_v5, %v3939_v35  ;;  %v8477_v24 = vpop.eup %6760  ;;  %v8482_v27 = vmul.f32 %v8467_v5, %v8410_v1  ;;  %v8489_v28 = vsub.f32 1.0, %v7549_v59 }
  0xda   : > { %12024 = vst [vmem:[#allocation130_spill] sm:$0xff] %v8454_v63  ;;  %12028 = vst [vmem:[#allocation134_spill] sm:$0xff] %v8477_v24  ;;  %v4445_v63 = vadd.f32 %v8474_v54, %v3940_v50  ;;  %v8486_v58 = vmul.f32 %v8474_v54, %v8417_v62  ;;  %v8491_v49 = vpop.eup %6762  ;;  %v3419_v35 = vadd.f32 %v8452_v45, %v3417_v0  ;;  %6774 = vpow2.f32 %v3917_v15 }
  0xdb   : > { %12029 = vst [vmem:[#allocation135_spill] sm:$0xff] %v8482_v27  ;;  %12031 = vst [vmem:[#allocation137_spill] sm:$0xff] %v8489_v28  ;;  %v8495_v37 = vmax.f32 %v4398_v17, %v8457_v12  ;;  %v8498_v50 = vmax.f32 %v4399_v46, %v8460_v33  ;;  %v8500_v25 = vpop.eup %6764  ;;  %v8503_v27 = vadd.f32 %v8469_v39, %v3418_v22  ;;  %6776 = vpow2.f32 %v3919_v30  ;;  %v4897_v39 = vld [vmem:[#allocation2 + $0x18] sm:$0xff] }
  0xdc   : > { %12030 = vst [vmem:[#allocation136_spill] sm:$0xff] %v8486_v58  ;;  %12034 = vst [vmem:[#allocation140_spill] sm:$0xff] %v8500_v25  ;;  %v4891_v58 = vadd.f32 %v4889_v2, %v4444_v38  ;;  %v4892_v59 = vadd.f32 %v4890_v29, %v4445_v63  ;;  %v8505_v56 = vpop.eup %6766  ;;  %6778 = vrcp.f32 %v8404_v57  ;;  %v3956_v22 = vadd.f32 %v8414_v43, %v8407_v11  ;;  %v4896_v2 = vld [vmem:[#allocation2 + $0x10] sm:$0xff] }
  0xdd   : > { %12032 = vst [vmem:[#allocation138_spill] sm:$0xff] %v8495_v37  ;;  %12033 = vst [vmem:[#allocation139_spill] sm:$0xff] %v8498_v50  ;;  %v4402_v0 = vsub.f32 %v8410_v1, %v8495_v37  ;;  %v4403_v17 = vsub.f32 %v8417_v62, %v8498_v50  ;;  %v4408_v46 = vsub.f32 %v8420_v34, %v8495_v37  ;;  %v8514_v15 = vpop.eup %6768  ;;  %v8521_v30 = vsub.f32 1.0, %v7553_v31 }
  0xde   : > { %12035 = vst [vmem:[#allocation141_spill] sm:$0xff] %v8503_v27  ;;  %12036 = vst [vmem:[#allocation142_spill] sm:$0xff] %v8514_v15  ;;  %v4409_v29 = vsub.f32 %v8423_v47, %v8498_v50  ;;  %v4460_v63 = vadd.f32 %v8489_v28, %v3955_v53  ;;  %v8527_v1 = vadd.f32 %v8477_v24, %v3419_v35  ;;  %6780 = vrcp.f32 %v8503_v27 }
  0xdf   : > { %12037 = vst [vmem:[#allocation143_spill] sm:$0xff] %v8521_v30  ;;  %4893 = vst.msk [vmem:[#allocation2] sm:$0xff] %vm225_vm0, %v4891_v58  ;;  %v4404_v62 = vmul.f32 1.442695, %v4402_v0  ;;  %v4406_v38 = vmul.f32 1.442695, %v4403_v17  ;;  %v4414_v11 = vsub.f32 %v8437_v19, %v8495_v37  ;;  %v3921_v31 = vadd.f32 %v8500_v25, %v8491_v49 }
  0xe0   : > { %4894 = vst.msk [vmem:[#allocation2 + $0x8] sm:$0xff] %vm225_vm0, %v4892_v59  ;;  %12038 = vst [vmem:[#allocation144_spill] sm:$0xff] %v8527_v1  ;;  %v4410_v43 = vmul.f32 1.442695, %v4408_v46  ;;  %v4415_v53 = vsub.f32 %v8440_v21, %v8498_v50  ;;  %v8536_v58 = vpop.eup %6770  ;;  %v3922_v35 = vadd.f32 %v8514_v15, %v8505_v56  ;;  %v4412_v59 = vmul.f32 1.442695, %v4409_v29 }
  0xe1   : > { %12039 = vst [vmem:[#allocation145_spill] sm:$0xff] %v8536_v58  ;;  %v4420_v0 = vsub.f32 %v8457_v12, %v8495_v37  ;;  %v294_v17 = vsub.s32 0, %v7800_v18  ;;  %v8543_v24 = vpop.eup %6772  ;;  %6782 = vpow2.f32 %v4404_v62  ;;  %v4421_v46 = vsub.f32 %v8460_v33, %v8498_v50 }
  0xe2   : > { %12040 = vst [vmem:[#allocation146_spill] sm:$0xff] %v8543_v24  ;;  %v4461_v25 = vadd.f32 %v8521_v30, %v3956_v22  ;;  %v4898_v45 = vadd.f32 %v4896_v2, %v4460_v63  ;;  %v1924_v57 = vadd.f32 %v8271_v13, %v8143_v4  ;;  %v2416_v29 = vmul.f32 %v8344_v3, %v8106_v23  ;;  %v8589_v2 = vld [vmem:[%s7231_s3] sm:$0xff] }
  0xe3   : > { %6784 = vpow2.f32 %v4406_v38  ;;  %v4416_v15 = vmul.f32 1.442695, %v4414_v11  ;;  %v2417_v27 = vmul.f32 %v8429_v14, %v8131_v52  ;;  %v3923_v62 = vadd.f32 %v8536_v58, %v3921_v31  ;;  %v8671_v14 = vld [vmem:[%s7231_s3 + $0x30] sm:$0xff] }
  0xe4   : > { %6786 = vpow2.f32 %v4410_v43  ;;  %v4418_v37 = vmul.f32 1.442695, %v4415_v53  ;;  %4900 = vst.msk [vmem:[#allocation2 + $0x10] sm:$0xff] %vm225_vm0, %v4898_v45  ;;  %v8556_v22 = vpop.eup %6774  ;;  %v3924_v4 = vadd.f32 %v8543_v24, %v3922_v35  ;;  %v4422_v13 = vmul.f32 1.442695, %v4420_v0  ;;  %v12049_v53 = vld [vmem:[#allocation77_spill] sm:$0xff] }
  0xe5   : > { %12041 = vst [vmem:[#allocation147_spill] sm:$0xff] %v8556_v22  ;;  %6788 = vrcp.f32 %v8527_v1  ;;  %v4899_v63 = vadd.f32 %v4897_v39, %v4461_v25  ;;  %v8560_v23 = vpop.eup %6776  ;;  %v4424_v38 = vmul.f32 1.442695, %v4421_v46  ;;  %v8563_v52 = vmin.u32 %v294_v17, %v7800_v18 }
  0xe6   : > { %12042 = vst [vmem:[#allocation148_spill] sm:$0xff] %v8560_v23  ;;  %6790 = vpow2.f32 %v4412_v59  ;;  %v8566_v43 = vpop.eup %6778  ;;  %v2426_v45 = vmul.f32 %v7908_v6, %v2416_v29  ;;  %v2427_v11 = vmul.f32 %v7993_v44, %v2417_v27  ;;  %v5854_v25 = vsel %vm296_vm10, 1.0, %v11912_v60  ;;  %v12050_v59 = vld [vmem:[#allocation73_spill] sm:$0xff] }
  0xe7   : > { %12043 = vst [vmem:[#allocation149_spill] sm:$0xff] %v8563_v52  ;;  %12044 = vst [vmem:[#allocation150_spill] sm:$0xff] %v8566_v43  ;;  %6792 = vpow2.f32 %v4416_v15  ;;  %v8575_v39 = vadd.f32 %v8556_v22, %v3923_v62  ;;  %vm297_vm11 = vcmp.le.s32.totalorder %v8563_v52, 3  ;;  %v8579_v18 = vadd.f32 %v8560_v23, %v3924_v4  ;;  %v8655_v22 = vld [vmem:[%s7231_s3 + $0x28] sm:$0xff] }
  0xe8   : > { %4901 = vst.msk [vmem:[#allocation2 + $0x18] sm:$0xff] %vm225_vm0, %v4899_v63  ;;  %6794 = vpow2.f32 %v4418_v37  ;;  %v5855_v44 = vsel %vm297_vm11, 1.0, %v11912_v60  ;;  %v8584_v6 = vpop.eup %6780  ;;  %vm558_vm12 = vcmp.ne.s32.totalorder %v8589_v2, 2  ;;  %v12048_v37 = vld [vmem:[#allocation76_spill] sm:$0xff]  ;;  %v8596_v35 = vmul.f32 0.0, %v12049_v53 }
  0xe9   : > { %12045 = vst [vmem:[#allocation151_spill] sm:$0xff] %v8575_v39  ;;  %12046 = vst [vmem:[#allocation152_spill] sm:$0xff] %v8579_v18  ;;  %6796 = vpow2.f32 %v4422_v13  ;;  %v8586_v15 = vpack.c.bf16 %v5855_v44, %v5854_v25  ;;  %v8593_v31 = vmul.f32 0.0, %v12048_v37  ;;  %v767_v0 = vadd.f32 %v12050_v59, %v12050_v59  ;;  %v8608_v13 = vld [vmem:[%s7231_s3 + $0x8] sm:$0xff]  ;;  %v8646_v53 = vld [vmem:[%s7231_s3 + $0x20] sm:$0xff] }
  0xea   : > { %12047 = vst [vmem:[#allocation153_spill] sm:$0xff] %v8584_v6  ;;  %6798 = vpow2.f32 %v4424_v38  ;;  %v2430_v17 = vadd.f32 %v2416_v29, %v8263_v8  ;;  %v2428_v62 = vadd.f32 %v2426_v45, %v8359_v61  ;;  %v2431_v4 = vadd.f32 %v2417_v27, %v8274_v51  ;;  %v8618_v29 = vld [vmem:[%s7231_s3 + $0x10] sm:$0xff]  ;;  %v8629_v61 = vld [vmem:[%s7231_s3 + $0x18] sm:$0xff] }
  0xeb   : > { %v8601_v46 = vpop.eup %6782  ;;  %6289 = vmatmul.mubr.msk.bf16.vlgmr.msra.gmra.mrb[0].mxu0 %vm225_vm0, %v8586_v15  ;;  %vm559_vm13 = vcmp.ne.s32.totalorder %v8608_v13, 2  ;;  %v2429_v38 = vadd.f32 %v2427_v11, %v1924_v57  ;;  %6800 = vrcp.f32 %v8575_v39  ;;  %v8615_v8 = vsel %vm558_vm12, 1.0, %v11912_v60  ;;  %v12052_v57 = vld [vmem:[#allocation63_spill] sm:$0xff]  ;;  %v12053_v45 = vld [vmem:[#allocation78_spill] sm:$0xff] }
  0xec   : > { %vm564_vm14 = vcmp.ne.s32.totalorder %v8618_v29, 2  ;;  %6300 = vmatprep.mubr.msk.bf16.mxu0 %vm7037_vm1, %v11912_v60  ;;  %v2921_v27 = vmul.f32 %v8442_v41, %v8224_v20  ;;  %6802 = vrcp.f32 %v8579_v18  ;;  %vm565_vm15 = vcmp.ne.s32.totalorder %v8629_v61, 2 }
  0xed   : > { %v8611_v63 = vpop.eup %6784  ;;  %v768_v11 = vadd.f32 %v12053_v45, %v12052_v57  ;;  %v2922_v44 = vmul.f32 %v8566_v43, %v8294_v16  ;;  %v8643_v20 = vsel %vm559_vm13, 1.0, %v11912_v60  ;;  %vm570_vm2 = vcmp.ne.s32.totalorder %v8646_v53, 2 }
  0xee   : > { %v8623_v51 = vpop.eup %6786  ;;  %12055 = vst [vmem:[#allocation73_spill] sm:$0xff] %v8643_v20  ;;  %v8652_v23 = vsel %vm564_vm14, 1.0, %v11912_v60  ;;  %vm571_vm3 = vcmp.ne.s32.totalorder %v8655_v22, 2  ;;  %v769_v16 = vadd.f32 %v767_v0, %v12050_v59  ;;  %v2931_v58 = vmul.f32 %v8068_v48, %v2921_v27  ;;  %v8681_v48 = vld [vmem:[%s7231_s3 + $0x38] sm:$0xff] }
  0xef   : > { %12051 = vst [vmem:[#allocation76_spill] sm:$0xff] %v8623_v51  ;;  %v8634_v25 = vpop.eup %6788  ;;  %v4426_v37 = vadd.f32 %v8623_v51, %v8601_v46  ;;  %v770_v51 = vadd.f32 %v8615_v8, %v768_v11  ;;  %v8668_v41 = vsel %vm565_vm15, 1.0, %v11912_v60  ;;  %vm576_vm4 = vcmp.ne.s32.totalorder %v8671_v14, 2 }
  0xf0   : > { %12054 = vst [vmem:[#allocation77_spill] sm:$0xff] %v8634_v25  ;;  %v8649_v45 = vpop.eup %6790  ;;  %v8678_v11 = vsel %vm570_vm2, 1.0, %v11912_v60  ;;  %vm577_vm5 = vcmp.ne.s32.totalorder %v8681_v48, 2  ;;  %v2932_v1 = vmul.f32 %v8071_v7, %v2922_v44  ;;  %v8692_v52 = vsel %vm571_vm3, 1.0, %v11912_v60 }
  0xf1   : > { %12056 = vst [vmem:[#allocation63_spill] sm:$0xff] %v8649_v45  ;;  %v8660_v24 = vpop.eup %6792  ;;  %v4427_v43 = vadd.f32 %v8649_v45, %v8611_v63  ;;  %v771_v45 = vadd.f32 %v8643_v20, %v769_v16  ;;  %v2935_v42 = vadd.f32 %v2921_v27, %v2430_v17  ;;  %v8701_v16 = vsel %vm576_vm4, 1.0, %v11912_v60 }
  0xf2   : > { %12057 = vst [vmem:[#allocation78_spill] sm:$0xff] %v8660_v24  ;;  %v8674_v3 = vpop.eup %6794  ;;  %v4428_v0 = vadd.f32 %v8660_v24, %v4426_v37  ;;  %v772_v37 = vadd.f32 %v8652_v23, %v770_v51  ;;  %v2936_v33 = vadd.f32 %v2922_v44, %v2431_v4  ;;  %v3426_v17 = vmul.f32 %v8584_v6, %v8363_v40 }
  0xf3   : > { %12058 = vst [vmem:[#allocation154_spill] sm:$0xff] %v8674_v3  ;;  %v8685_v18 = vpop.eup %6796  ;;  %v4429_v39 = vadd.f32 %v8674_v3, %v4427_v43  ;;  %v773_v7 = vadd.f32 %v8668_v41, %v771_v45  ;;  %v8708_v3 = vsel %vm577_vm5, 1.0, %v11912_v60  ;;  %v3427_v27 = vmul.f32 %v8634_v25, %v8380_v9 }
  0xf4   : > { %12059 = vst [vmem:[#allocation155_spill] sm:$0xff] %v8685_v18  ;;  %v8695_v24 = vpop.eup %6798  ;;  %v8698_v50 = vadd.f32 %v8685_v18, %v4428_v0  ;;  %v774_v51 = vadd.f32 %v8678_v11, %v772_v37  ;;  %v2933_v4 = vadd.f32 %v2931_v58, %v2428_v62  ;;  %v3436_v40 = vmul.f32 %v8198_v36, %v3426_v17 }
  0xf5   : > { %12060 = vst [vmem:[#allocation156_spill] sm:$0xff] %v8695_v24  ;;  %v8705_v43 = vadd.f32 %v8695_v24, %v4429_v39  ;;  %v775_v0 = vadd.f32 %v8692_v52, %v773_v7  ;;  %v8717_v45 = vpop.eup %6800  ;;  %v2934_v39 = vadd.f32 %v2932_v1, %v2429_v38  ;;  %v3437_v24 = vmul.f32 %v8201_v32, %v3427_v27 }
  0xf6   : > { %6804 = vrcp.f32 %v8698_v50  ;;  %12061 = vst [vmem:[#allocation157_spill] sm:$0xff] %v8717_v45  ;;  %v8721_v44 = vadd.f32 %v8701_v16, %v774_v51  ;;  %v8723_v37 = vpop.eup %6802  ;;  %v806_v7 = vadd.f32 %v8593_v31, %v8593_v31  ;;  %v807_v1 = vadd.f32 %v8596_v35, %v8596_v35 }
  0xf7   : > { %6806 = vrcp.f32 %v8705_v43  ;;  %12062 = vst [vmem:[#allocation158_spill] sm:$0xff] %v8723_v37  ;;  %v8728_v9 = vadd.f32 %v8708_v3, %v775_v0  ;;  %vm654_vm6 = vcmp.ne.s32.totalorder %v8589_v2, 3  ;;  %vm655_vm7 = vcmp.ne.s32.totalorder %v8608_v13, 3 }
  0xf8   : > { %v3440_v62 = vadd.f32 %v3426_v17, %v2935_v42  ;;  %v3441_v36 = vadd.f32 %v3427_v27, %v2936_v33  ;;  %v3931_v32 = vmul.f32 %v8717_v45, %v8491_v49  ;;  %v3932_v38 = vmul.f32 %v8723_v37, %v8505_v56  ;;  %v12079_v45 = vld [vmem:[#allocation132_spill] sm:$0xff] }
  0xf9   : > { %v1104_v58 = vpack.c.bf16 %v8728_v9, %v8721_v44  ;;  %v3438_v51 = vadd.f32 %v3436_v40, %v2933_v4  ;;  %v3439_v0 = vadd.f32 %v3437_v24, %v2934_v39  ;;  %vm660_vm8 = vcmp.ne.s32.totalorder %v8618_v29, 3 }
  0xfa   : > { %vm661_vm9 = vcmp.ne.s32.totalorder %v8629_v61, 3  ;;  %v3941_v18 = vmul.f32 %v8338_v26, %v3931_v32  ;;  %v3942_v2 = vmul.f32 %v8354_v10, %v3932_v38  ;;  %v8748_v42 = vsel %vm654_vm6, 1.0, %v11912_v60 }
  0xfb   : > { %6299 = vmatpush3.bf16.msra.mxu0 %v1104_v58  ;;  %v8751_v49 = vsel %vm655_vm7, 1.0, %v11912_v60  ;;  %vm666_vm12 = vcmp.ne.s32.totalorder %v8646_v53, 3  ;;  %vm667_vm13 = vcmp.ne.s32.totalorder %v8655_v22, 3  ;;  %v808_v24 = vadd.f32 %v806_v7, %v8593_v31  ;;  %v4946_v53 = vld [vmem:[#allocation2 + $0x88] sm:$0xff] }
  0xfc   : > { %6310 = vmatprep.subr.bf16.mxu0 %v11912_v60  ;;  %12063 = vst [vmem:[#allocation159_spill] sm:$0xff] %v8751_v49  ;;  %v809_v33 = vadd.f32 %v807_v1, %v8596_v35  ;;  %v3945_v56 = vadd.f32 %v3931_v32, %v3440_v62  ;;  %v3946_v26 = vadd.f32 %v3932_v38, %v3441_v36  ;;  %v8760_v10 = vsel %vm660_vm8, 1.0, %v11912_v60  ;;  %v4945_v62 = vld [vmem:[#allocation2 + $0x80] sm:$0xff] }
  0xfd   : > { %v8763_v13 = vsel %vm661_vm9, 1.0, %v11912_v60  ;;  %vm672_vm14 = vcmp.ne.s32.totalorder %v8671_v14, 3  ;;  %vm673_vm15 = vcmp.ne.s32.totalorder %v8681_v48, 3  ;;  %v810_v61 = vadd.f32 %v8748_v42, %v808_v24 }
  0xfe   : > { %6301 = vmatmul.mubr.msk.bf16.vlgmr.msra.gmra.mrb[4].mxu0 %vm225_vm0, %v8586_v15  ;;  %v811_v17 = vadd.f32 %v8751_v49, %v809_v33  ;;  %v3943_v4 = vadd.f32 %v3941_v18, %v3438_v51  ;;  %v8780_v40 = vsel %vm666_vm12, 1.0, %v11912_v60  ;;  %v8785_v7 = vsel %vm667_vm13, 1.0, %v11912_v60  ;;  %v4918_v33 = vld [vmem:[#allocation2 + $0x48] sm:$0xff] }
  0xff   : > { %6312 = vmatprep.mubr.msk.bf16.mxu0 %vm7037_vm1, %v11912_v60  ;;  %v3944_v1 = vadd.f32 %v3942_v2, %v3439_v0  ;;  %v812_v18 = vadd.f32 %v8760_v10, %v810_v61  ;;  %v8795_v38 = vsel %vm672_vm14, 1.0, %v11912_v60  ;;  %v8800_v22 = vsel %vm673_vm15, 1.0, %v11912_v60  ;;  %v4917_v0 = vld [vmem:[#allocation2 + $0x40] sm:$0xff] }
 0x100   : > { %v8765_v29 = vpop.eup %6804  ;;  %v813_v36 = vadd.f32 %v8763_v13, %v811_v17  ;;  %6808 = vlog2.f32 %v8698_v50 }
 0x101   : > { %12064 = vst [vmem:[#allocation160_spill] sm:$0xff] %v8765_v29  ;;  %v8773_v27 = vpop.eup %6806  ;;  %v4436_v39 = vmul.f32 %v8765_v29, %v8601_v46  ;;  %v814_v2 = vadd.f32 %v8780_v40, %v812_v18  ;;  %6810 = vlog2.f32 %v8705_v43 }
 0x102   : > { %12065 = vst [vmem:[#allocation161_spill] sm:$0xff] %v8773_v27  ;;  %v4437_v58 = vmul.f32 %v8773_v27, %v8611_v63 }
 0x103   : > { %v4446_v46 = vmul.f32 %v8467_v5, %v4436_v39  ;;  %v4450_v32 = vadd.f32 %v4436_v39, %v3945_v56  ;;  %v815_v5 = vadd.f32 %v8785_v7, %v813_v36  ;;  %v816_v17 = vadd.f32 %v8795_v38, %v814_v2 }
 0x104   : > { %v4447_v63 = vmul.f32 %v8474_v54, %v4437_v58  ;;  %v4451_v51 = vadd.f32 %v4437_v58, %v3946_v26  ;;  %v12066_v58 = vld [vmem:[#allocation27_spill] sm:$0xff] }
 0x105   : > { %v4448_v24 = vadd.f32 %v4446_v46, %v3943_v4  ;;  %v4947_v56 = vadd.f32 %v4945_v62, %v4450_v32  ;;  %v817_v48 = vadd.f32 %v8800_v22, %v815_v5  ;;  %v12067_v4 = vld [vmem:[#allocation28_spill] sm:$0xff] }
 0x106   : > { %v4449_v14 = vadd.f32 %v4447_v63, %v3944_v1  ;;  %v4948_v61 = vadd.f32 %v4946_v53, %v4451_v51  ;;  %v1484_v18 = vpack.c.bf16 %v12067_v4, %v12066_v58  ;;  %v6850_v62 = vld [vmem:[%s7231_s3 + $0x40] sm:$0xff]  ;;  %v6851_v1 = vld [vmem:[%s7231_s3 + $0x48] sm:$0xff] }
 0x107   : > { %v4919_v39 = vadd.f32 %v4917_v0, %v4448_v24  ;;  %4949 = vst.msk [vmem:[#allocation2 + $0x80] sm:$0xff] %vm225_vm0, %v4947_v56  ;;  %v1229_v26 = vpack.c.bf16 %v817_v48, %v816_v17  ;;  %vm582_vm2 = vcmp.ne.s32.totalorder %v6850_v62, 2  ;;  %vm583_vm3 = vcmp.ne.s32.totalorder %v6851_v1, 2  ;;  %v12068_v24 = vld [vmem:[#allocation30_spill] sm:$0xff] }
 0x108   : > { %v4920_v54 = vadd.f32 %v4918_v33, %v4449_v14  ;;  %4950 = vst.msk [vmem:[#allocation2 + $0x88] sm:$0xff] %vm225_vm0, %v4948_v61  ;;  %v8816_v36 = vsel %vm582_vm2, 1.0, %v11912_v60  ;;  %v8820_v46 = vsel %vm583_vm3, 1.0, %v11912_v60  ;;  %vm678_vm4 = vcmp.ne.s32.totalorder %v6850_v62, 3  ;;  %v12069_v33 = vld [vmem:[#allocation31_spill] sm:$0xff] }
 0x109   : > { %4921 = vst.msk [vmem:[#allocation2 + $0x40] sm:$0xff] %vm225_vm0, %v4919_v39  ;;  %6311 = vmatpush3.bf16.msra.mxu0 %v1229_v26  ;;  %v778_v32 = vadd.f32 %v8816_v36, %v8721_v44  ;;  %v779_v53 = vadd.f32 %v8820_v46, %v8728_v9  ;;  %vm679_vm5 = vcmp.ne.s32.totalorder %v6851_v1, 3  ;;  %v8834_v44 = vsel %vm678_vm4, 1.0, %v11912_v60  ;;  %v6852_v39 = vld [vmem:[%s7231_s3 + $0x50] sm:$0xff] }
 0x10a   : > { %4922 = vst.msk [vmem:[#allocation2 + $0x48] sm:$0xff] %vm225_vm0, %v4920_v54  ;;  %6322 = vmatprep.subr.bf16.mxu0 %v11912_v60  ;;  %v8837_v9 = vsel %vm679_vm5, 1.0, %v11912_v60  ;;  %v818_v2 = vadd.f32 %v8834_v44, %v816_v17  ;;  %v1989_v56 = vpack.c.bf16 %v12069_v33, %v12068_v24  ;;  %vm588_vm6 = vcmp.ne.s32.totalorder %v6852_v39, 2  ;;  %v6853_v17 = vld [vmem:[%s7231_s3 + $0x58] sm:$0xff] }
 0x10b   : > { %v780_v63 = vsub.f32 %v778_v32, %v12052_v57  ;;  %v781_v51 = vsub.f32 %v779_v53, %v12050_v59  ;;  %v819_v5 = vadd.f32 %v8837_v9, %v817_v48  ;;  %vm589_vm7 = vcmp.ne.s32.totalorder %v6853_v17, 2  ;;  %v12072_v53 = vld [vmem:[#allocation34_spill] sm:$0xff] }
 0x10c   : > { %6313 = vmatmul.mubr.msk.bf16.vlgmr.msra.gmra.mrb[8].mxu0 %vm225_vm0, %v8586_v15  ;;  %v820_v14 = vsub.f32 %v818_v2, %v8593_v31  ;;  %v8853_v48 = vsel %vm588_vm6, 1.0, %v11912_v60  ;;  %vm684_vm8 = vcmp.ne.s32.totalorder %v6852_v39, 3  ;;  %v8856_v26 = vsel %vm589_vm7, 1.0, %v11912_v60  ;;  %vm9067_vm6 = vmpackc.low %vm297_vm11, %vm296_vm10 }
 0x10d   : > { %6323 = vmatpush3.bf16.msra.mxu0 %v1484_v18  ;;  %6324 = vmatprep.mubr.msk.bf16.mxu0 %vm7037_vm1, %v11912_v60  ;;  %v1609_v0 = vpack.c.bf16 %v781_v51, %v780_v63  ;;  %v821_v61 = vsub.f32 %v819_v5, %v8596_v35  ;;  %12070 = vst [vmem:[#allocation27_spill] sm:$0xff] %v8856_v26  ;;  %vm685_vm9 = vcmp.ne.s32.totalorder %v6853_v17, 3  ;;  %v8860_v4 = vsel %vm684_vm8, 1.0, %v11912_v60  ;;  %v6854_v5 = vld [vmem:[%s7231_s3 + $0x60] sm:$0xff] }
 0x10e   : > { %6334 = vmatprep.subr.bf16.mxu0 %v11912_v60  ;;  %v782_v58 = vadd.f32 %v8853_v48, %v780_v63  ;;  %v8863_v18 = vsel %vm685_vm9, 1.0, %v11912_v60  ;;  %v783_v62 = vadd.f32 %v8856_v26, %v781_v51  ;;  %v822_v1 = vadd.f32 %v8860_v4, %v820_v14  ;;  %v12073_v63 = vld [vmem:[#allocation35_spill] sm:$0xff]  ;;  %v6855_v51 = vld [vmem:[%s7231_s3 + $0x68] sm:$0xff] }
 0x10f   : > { %v1734_v54 = vpack.c.bf16 %v821_v61, %v820_v14  ;;  %12071 = vst [vmem:[#allocation28_spill] sm:$0xff] %v8863_v18  ;;  %v823_v32 = vadd.f32 %v8863_v18, %v821_v61  ;;  %vm594_vm12 = vcmp.ne.s32.totalorder %v6854_v5, 2  ;;  %vm595_vm13 = vcmp.ne.s32.totalorder %v6855_v51, 2 }
 0x110   : > { %v784_v2 = vsub.f32 %v782_v58, %v12052_v57  ;;  %v785_v24 = vsub.f32 %v783_v62, %v12050_v59  ;;  %v8880_v33 = vsel %vm594_vm12, 1.0, %v11912_v60  ;;  %v8883_v39 = vsel %vm595_vm13, 1.0, %v11912_v60 }
 0x111   : > { %12074 = vst [vmem:[#allocation30_spill] sm:$0xff] %v8883_v39  ;;  %vm690_vm14 = vcmp.ne.s32.totalorder %v6854_v5, 3  ;;  %v824_v61 = vsub.f32 %v822_v1, %v8593_v31  ;;  %v825_v17 = vsub.f32 %v823_v32, %v8596_v35  ;;  %vm691_vm15 = vcmp.ne.s32.totalorder %v6855_v51, 3 }
 0x112   : > { %v786_v14 = vadd.f32 %v8880_v33, %v784_v2  ;;  %v8893_v62 = vsel %vm690_vm14, 1.0, %v11912_v60  ;;  %vm600_vm2 = vcmp.ne.s32.totalorder %v8449_v55, 2  ;;  %vm601_vm3 = vcmp.ne.s32.totalorder %v12079_v45, 2 }
 0x113   : > { %12075 = vst [vmem:[#allocation31_spill] sm:$0xff] %v8893_v62  ;;  %v826_v1 = vadd.f32 %v8893_v62, %v824_v61  ;;  %v2114_v6 = vpack.c.bf16 %v785_v24, %v784_v2  ;;  %v5924_v27 = vsel %vm600_vm2, 1.0, %v11912_v60  ;;  %v4469_v2 = vmul.f32 %v8423_v47, %v8521_v30  ;;  %v6809_v62 = vpop.eup %6808 }
 0x114   : > { %6325 = vmatmul.mubr.msk.bf16.vlgmr.msra.gmra.mrb[12].mxu0 %vm225_vm0, %v8586_v15  ;;  %v8890_v58 = vsub.f32 %v786_v14, %v12052_v57  ;;  %v5925_v57 = vsel %vm601_vm3, 1.0, %v11912_v60  ;;  %vm696_vm4 = vcmp.ne.s32.totalorder %v8449_v55, 3  ;;  %vm697_vm5 = vcmp.ne.s32.totalorder %v12079_v45, 3 }
 0x115   : > { %6335 = vmatpush3.bf16.msra.mxu0 %v1609_v0  ;;  %6336 = vmatprep.mubr.msk.bf16.mxu0 %vm7037_vm1, %v11912_v60  ;;  %v8896_v0 = vsel %vm691_vm15, 1.0, %v11912_v60  ;;  %v8911_v51 = vsub.f32 %v826_v1, %v8593_v31 }
 0x116   : > { %6346 = vmatprep.subr.bf16.mxu0 %v11912_v60  ;;  %12076 = vst [vmem:[#allocation34_spill] sm:$0xff] %v8896_v0  ;;  %v827_v32 = vadd.f32 %v8896_v0, %v825_v17  ;;  %v790_v31 = vadd.f32 %v5924_v27, %v8890_v58  ;;  %v12091_v0 = vld [vmem:[#allocation48_spill] sm:$0xff] }
 0x118   : > { %v8914_v14 = vsub.f32 %v827_v32, %v8596_v35  ;;  %v4468_v35 = vmul.f32 %v8420_v34, %v8489_v28  ;;  %v8931_v32 = vsub.f32 %v790_v31, %v8615_v8  ;;  %v12081_v34 = vld [vmem:[#allocation135_spill] sm:$0xff]  ;;  %v8945_v31 = vsub.f32 1.0, %v5925_v57 }
 0x11a   : > { %v4485_v28 = vmul.f32 %v8440_v21, %v8945_v31 }
 0x11c   : > { %6337 = vmatmul.mubr.msk.bf16.vlgmr.msra.gmra.mrb[16].mxu0 %vm225_vm0, %v8586_v15 }
 0x11d   : > { %6347 = vmatpush3.bf16.msra.mxu0 %v1734_v54  ;;  %6348 = vmatprep.mubr.msk.bf16.mxu0 %vm7037_vm1, %v11912_v60  ;;  %v787_v54 = vadd.f32 %v8883_v39, %v785_v24  ;;  %v8935_v24 = vsub.f32 1.0, %v5924_v27 }
 0x11e   : > { %6358 = vmatprep.subr.bf16.mxu0 %v11912_v60 }
 0x11f   : > { %v8901_v5 = vsub.f32 %v787_v54, %v12050_v59  ;;  %v12077_v59 = vld [vmem:[#allocation37_spill] sm:$0xff]  ;;  %v12078_v54 = vld [vmem:[#allocation38_spill] sm:$0xff]  ;;  %12080 = vst [vmem:[#allocation35_spill] sm:$0xff] %v8935_v24  ;;  %v4484_v47 = vmul.f32 %v8437_v19, %v8935_v24  ;;  %v2239_v19 = vpack.c.bf16 %v825_v17, %v824_v61  ;;  %v612_v61 = vmul.f32 0.0, %v5924_v27 }
 0x120   : > { %12082 = vst [vmem:[#allocation37_spill] sm:$0xff] %v8945_v31  ;;  %v12087_v31 = vld [vmem:[#allocation42_spill] sm:$0xff] }
 0x121   : > { %v791_v1 = vadd.f32 %v5925_v57, %v8901_v5 }
 0x123   : > { %v8940_v29 = vsub.f32 %v791_v1, %v8643_v20  ;;  %v5953_v1 = vsel %vm697_vm5, 1.0, %v11912_v60 }
 0x124   : > { %6349 = vmatmul.mubr.msk.bf16.vlgmr.msra.gmra.mrb[20].mxu0 %vm225_vm0, %v8586_v15  ;;  %v831_v37 = vadd.f32 %v5953_v1, %v8914_v14  ;;  %v8971_v21 = vsub.f32 1.0, %v5953_v1 }
 0x125   : > { %6359 = vmatpush3.bf16.msra.mxu0 %v1989_v56  ;;  %6360 = vmatprep.mubr.msk.bf16.mxu0 %vm7037_vm1, %v11912_v60  ;;  %v4470_v56 = vadd.f32 %v4468_v35, %v12081_v34  ;;  %v12083_v34 = vld [vmem:[#allocation136_spill] sm:$0xff] }
 0x126   : > { %6370 = vmatprep.subr.bf16.mxu0 %v11912_v60  ;;  %v4471_v55 = vadd.f32 %v4469_v2, %v12083_v34  ;;  %v8966_v24 = vsub.f32 %v831_v37, %v8751_v49  ;;  %12085 = vst [vmem:[#allocation132_spill] sm:$0xff] %v8971_v21  ;;  %v12086_v34 = vld [vmem:[#allocation41_spill] sm:$0xff]  ;;  %v613_v37 = vmul.f32 0.0, %v5925_v57 }
 0x127   : > { %v4486_v30 = vadd.f32 %v4484_v47, %v4470_v56  ;;  %v794_v56 = vadd.f32 %v8931_v32, %v612_v61 }
 0x128   : > { %v4487_v17 = vadd.f32 %v4485_v28, %v4471_v55  ;;  %v795_v28 = vadd.f32 %v8940_v29, %v613_v37  ;;  %v12090_v55 = vld [vmem:[#allocation47_spill] sm:$0xff] }
 0x12c   : > { %6361 = vmatmul.mubr.msk.bf16.vlgmr.msra.gmra.mrb[24].mxu0 %vm225_vm0, %v8586_v15 }
 0x12d   : > { %6371 = vmatpush3.bf16.msra.mxu0 %v2114_v6  ;;  %6372 = vmatprep.mubr.msk.bf16.mxu0 %vm7037_vm1, %v11912_v60  ;;  %v5952_v6 = vsel %vm696_vm4, 1.0, %v11912_v60 }
 0x12e   : > { %6382 = vmatprep.subr.bf16.mxu0 %v11912_v60  ;;  %v830_v35 = vadd.f32 %v5952_v6, %v8911_v51  ;;  %v8959_v25 = vsub.f32 1.0, %v5952_v6  ;;  %v708_v47 = vmul.f32 0.0, %v5952_v6  ;;  %v12092_v6 = vld [vmem:[#allocation51_spill] sm:$0xff] }
 0x130   : > { %12084 = vst [vmem:[#allocation38_spill] sm:$0xff] %v8959_v25  ;;  %v8962_v45 = vsub.f32 %v830_v35, %v8748_v42  ;;  %v4500_v2 = vmul.f32 %v8457_v12, %v8959_v25  ;;  %v12088_v12 = vld [vmem:[#allocation131_spill] sm:$0xff]  ;;  %v709_v35 = vmul.f32 0.0, %v5953_v1  ;;  %v12093_v1 = vld [vmem:[#allocation17_spill] sm:$0xff] }
 0x131   : > { %v4501_v43 = vmul.f32 %v12088_v12, %v8971_v21  ;;  %v8996_v21 = vsub.f32 %v795_v28, %v8668_v41  ;;  %v12094_v25 = vsub.f32 %v12092_v6, %v12093_v1  ;;  %v12099_v6 = vpack.c.bf16 %v12073_v63, %v12072_v53 }
 0x132   : > { %v8985_v27 = vadd.f32 %v4500_v2, %v4486_v30  ;;  %v834_v50 = vadd.f32 %v8962_v45, %v708_v47  ;;  %v835_v12 = vadd.f32 %v8966_v24, %v709_v35  ;;  %v12095_v30 = vld [vmem:[#allocation52_spill] sm:$0xff]  ;;  %v12096_v2 = vld [vmem:[#allocation19_spill] sm:$0xff] }
 0x133   : > { %v12097_v18 = vsub.f32 %v12095_v30, %v12096_v2  ;;  %v799_v49 = vadd.f32 %v8996_v21, %v613_v37  ;;  %v9025_v1 = vadd.f32 %v4501_v43, %v4487_v17  ;;  %v4505_v30 = vmul.f32 0.6931472, %v6809_v62  ;;  %v12102_v43 = vld [vmem:[#allocation139_spill] sm:$0xff] }
 0x134   : > { %6373 = vmatmul.mubr.msk.bf16.vlgmr.msra.gmra.mrb[28].mxu0 %vm225_vm0, %v8586_v15  ;;  %12089 = vst [vmem:[#allocation135_spill] sm:$0xff] %v8985_v27  ;;  %v9007_v57 = vsub.f32 %v834_v50, %v8760_v10  ;;  %v12167_v27 = vld [vmem:[#allocation152_spill] sm:$0xff] }
 0x135   : > { %6383 = vmatpush3.bf16.msra.mxu0 %v2239_v19  ;;  %6384 = vmatprep.mubr.msk.bf16.mxu0 %vm7037_vm1, %v11912_v60  ;;  %v8991_v19 = vsub.f32 %v794_v56, %v8652_v23  ;;  %v9004_v39 = vpack.c.bf16 %v12097_v18, %v12094_v25  ;;  %v9010_v56 = vsub.f32 %v835_v12, %v8763_v13  ;;  %v6811_v12 = vpop.eup %6810 }
 0x136   : > { %6394 = vmatprep.subr.bf16.mxu0 %v11912_v60  ;;  %v838_v18 = vadd.f32 %v9007_v57, %v708_v47  ;;  %12098 = vst [vmem:[#allocation136_spill] sm:$0xff] %v9025_v1  ;;  %v9028_v2 = vsub.f32 %v799_v49, %v8692_v52  ;;  %v12100_v49 = vld [vmem:[#allocation138_spill] sm:$0xff]  ;;  %v6877_v1 = vld [vmem:[%s7223_s5 + $0x108] sm:$0xff] }
 0x137   : > { %v798_v26 = vadd.f32 %v8991_v19, %v612_v61  ;;  %v839_v50 = vadd.f32 %v9010_v56, %v709_v35  ;;  %v9044_v62 = vadd.f32 %v4505_v30, %v12100_v49 }
 0x138   : > { %v9036_v28 = vsub.f32 %v838_v18, %v8780_v40  ;;  %v803_v63 = vadd.f32 %v9028_v2, %v613_v37 }
 0x139   : > { %v9019_v25 = vsub.f32 %v798_v26, %v8678_v11  ;;  %v4507_v26 = vmul.f32 0.6931472, %v6811_v12  ;;  %v9039_v20 = vsub.f32 %v839_v50, %v8785_v7  ;;  %12101 = vst [vmem:[#allocation41_spill] sm:$0xff] %v9044_v62 }
 0x13a   : > { %v805_v30 = vsub.f32 %v803_v63, %v8708_v3  ;;  %v12109_v63 = vpack.c.bf16 %v8914_v14, %v8911_v51  ;;  %v12112_v51 = vpack.c.bf16 %v8966_v24, %v8962_v45  ;;  %v12114_v14 = vpack.c.bf16 %v8996_v21, %v8991_v19 }
 0x13b   : > { %v802_v17 = vadd.f32 %v9019_v25, %v612_v61  ;;  %v4134_v53 = vpack.c.bf16 %v9028_v2, %v9019_v25  ;;  %v4259_v18 = vpack.c.bf16 %v9039_v20, %v9036_v28  ;;  %v842_v61 = vadd.f32 %v9036_v28, %v708_v47 }
 0x13c   : > { %6385 = vmatmul.mubr.msk.bf16.vlgmr.msra.gmra.mrb[32].mxu0 %vm225_vm0, %v8586_v15  ;;  %v843_v49 = vadd.f32 %v9039_v20, %v709_v35  ;;  %v12108_v35 = vpack.c.bf16 %v8901_v5, %v8890_v58  ;;  %v12110_v58 = vpack.c.bf16 %v12078_v54, %v12077_v59  ;;  %v12111_v5 = vpack.c.bf16 %v8940_v29, %v8931_v32 }
 0x13d   : > { %6395 = vmatpush3.bf16.msra.mxu0 %v12099_v6  ;;  %6396 = vmatprep.mubr.msk.bf16.mxu0 %vm7037_vm1, %v11912_v60  ;;  %v9050_v6 = vadd.f32 %v4507_v26, %v12102_v43  ;;  %v804_v50 = vsub.f32 %v802_v17, %v8701_v16  ;;  %v844_v25 = vsub.f32 %v842_v61, %v8795_v38  ;;  %v11731_v43 = vmov 1.0|1.0  }
 0x13e   : > { %6406 = vmatprep.subr.bf16.mxu0 %v11912_v60  ;;  %v845_v28 = vsub.f32 %v843_v49, %v8800_v22  ;;  %6293 = vmatpush3.bf16.msk.msra.mxu1 %vm9067_vm6, %v11731_v43  ;;  %v12113_v29 = vpack.c.bf16 %v12087_v31, %v12086_v34  ;;  %v12115_v59 = vpack.c.bf16 %v9010_v56, %v9007_v57 }
 0x13f   : > { %12103 = vst [vmem:[#allocation42_spill] sm:$0xff] %v9050_v6  ;;  %v4639_v47 = vpack.c.bf16 %v805_v30, %v804_v50  ;;  %6304 = vmatprep.subr.bf16.mxu1 %v11912_v60  ;;  %v12116_v54 = vpack.c.bf16 %v12091_v0, %v12090_v55  ;;  %v12172_v6 = vld [vmem:[#allocation127_spill] sm:$0xff] }
 0x140   : > { %v4764_v20 = vpack.c.bf16 %v845_v28, %v844_v25 }
 0x144   : > { %6397 = vmatmul.mubr.msk.bf16.vlgmr.msra.gmra.mrb[36].mxu0 %vm225_vm0, %v8586_v15 }
 0x145   : > { %6407 = vmatpush3.bf16.msra.mxu0 %v12108_v35  ;;  %6408 = vmatprep.mubr.msk.bf16.mxu0 %vm7037_vm1, %v11912_v60 }
 0x146   : > { %6418 = vmatprep.subr.bf16.mxu0 %v11912_v60 }
 0x14c   : > { %6409 = vmatmul.mubr.msk.bf16.vlgmr.msra.gmra.mrb[40].mxu0 %vm225_vm0, %v8586_v15 }
 0x14d   : > { %6419 = vmatpush3.bf16.msra.mxu0 %v12109_v63  ;;  %6420 = vmatprep.mubr.msk.bf16.mxu0 %vm7037_vm1, %v11912_v60 }
 0x14e   : > { %6430 = vmatprep.subr.bf16.mxu0 %v11912_v60 }
 0x154   : > { %6421 = vmatmul.mubr.msk.bf16.vlgmr.msra.gmra.mrb[44].mxu0 %vm225_vm0, %v8586_v15 }
 0x155   : > { %6431 = vmatpush3.bf16.msra.mxu0 %v12110_v58  ;;  %6432 = vmatprep.mubr.msk.bf16.mxu0 %vm7037_vm1, %v11912_v60 }
 0x156   : > { %6442 = vmatprep.subr.bf16.mxu0 %v11912_v60 }
 0x15c   : > { %6433 = vmatmul.mubr.msk.bf16.vlgmr.msra.gmra.mrb[48].mxu0 %vm225_vm0, %v8586_v15 }
 0x15d   : > { %6443 = vmatpush3.bf16.msra.mxu0 %v12111_v5  ;;  %6444 = vmatprep.mubr.msk.bf16.mxu0 %vm7037_vm1, %v11912_v60 }
 0x15e   : > { %6454 = vmatprep.subr.bf16.mxu0 %v11912_v60 }
 0x164   : > { %6445 = vmatmul.mubr.msk.bf16.vlgmr.msra.gmra.mrb[52].mxu0 %vm225_vm0, %v8586_v15 }
 0x165   : > { %6455 = vmatpush3.bf16.msra.mxu0 %v12112_v51  ;;  %6456 = vmatprep.mubr.msk.bf16.mxu0 %vm7037_vm1, %v11912_v60 }
 0x166   : > { %6466 = vmatprep.subr.bf16.mxu0 %v11912_v60 }
 0x16c   : > { %6457 = vmatmul.mubr.msk.bf16.vlgmr.msra.gmra.mrb[56].mxu0 %vm225_vm0, %v8586_v15 }
 0x16d   : > { %6467 = vmatpush3.bf16.msra.mxu0 %v12113_v29  ;;  %6468 = vmatprep.mubr.msk.bf16.mxu0 %vm7037_vm1, %v11912_v60 }
 0x16e   : > { %6478 = vmatprep.subr.bf16.mxu0 %v11912_v60 }
 0x174   : > { %6469 = vmatmul.mubr.msk.bf16.vlgmr.msra.gmra.mrb[60].mxu0 %vm225_vm0, %v8586_v15 }
 0x175   : > { %6479 = vmatpush3.bf16.msra.mxu0 %v12114_v14  ;;  %6480 = vmatprep.mubr.msk.bf16.mxu0 %vm7037_vm1, %v11912_v60 }
 0x176   : > { %6490 = vmatprep.subr.bf16.mxu0 %v11912_v60 }
 0x17c   : > { %6481 = vmatmul.mubr.msk.bf16.vlgmr.msra.gmra.mrb[64].mxu0 %vm225_vm0, %v8586_v15 }
 0x17d   : > { %6491 = vmatpush3.bf16.msra.mxu0 %v12115_v59  ;;  %6492 = vmatprep.mubr.msk.bf16.mxu0 %vm7037_vm1, %v11912_v60 }
 0x17e   : > { %6502 = vmatprep.subr.bf16.mxu0 %v11912_v60 }
 0x184   : > { %6493 = vmatmul.mubr.msk.bf16.vlgmr.msra.gmra.mrb[68].mxu0 %vm225_vm0, %v8586_v15 }
 0x185   : > { %6503 = vmatpush3.bf16.msra.mxu0 %v12116_v54  ;;  %6504 = vmatprep.mubr.msk.bf16.mxu0 %vm7037_vm1, %v11912_v60 }
 0x186   : > { %6514 = vmatprep.subr.bf16.mxu0 %v11912_v60 }
 0x18c   : > { %6505 = vmatmul.mubr.msk.bf16.vlgmr.msra.gmra.mrb[72].mxu0 %vm225_vm0, %v8586_v15 }
 0x18d   : > { %6515 = vmatpush3.bf16.msra.mxu0 %v4134_v53  ;;  %6516 = vmatprep.mubr.msk.bf16.mxu0 %vm7037_vm1, %v11912_v60 }
 0x18e   : > { %6526 = vmatprep.subr.bf16.mxu0 %v11912_v60 }
 0x194   : > { %6517 = vmatmul.mubr.msk.bf16.vlgmr.msra.gmra.mrb[76].mxu0 %vm225_vm0, %v8586_v15 }
 0x195   : > { %6527 = vmatpush3.bf16.msra.mxu0 %v4259_v18  ;;  %6528 = vmatprep.mubr.msk.bf16.mxu0 %vm7037_vm1, %v11912_v60 }
 0x196   : > { %6538 = vmatprep.subr.bf16.mxu0 %v11912_v60 }
 0x19c   : > { %6529 = vmatmul.mubr.msk.bf16.vlgmr.msra.gmra.mrb[80].mxu0 %vm225_vm0, %v8586_v15 }
 0x19d   : > { %6539 = vmatpush3.bf16.msra.mxu0 %v9004_v39  ;;  %6540 = vmatprep.mubr.msk.bf16.mxu0 %vm7037_vm1, %v11912_v60 }
 0x19e   : > { %6550 = vmatprep.subr.bf16.mxu0 %v11912_v60 }
 0x1a4   : > { %6541 = vmatmul.mubr.msk.bf16.vlgmr.msra.gmra.mrb[84].mxu0 %vm225_vm0, %v8586_v15 }
 0x1a5   : > { %6551 = vmatpush3.bf16.msra.mxu0 %v4639_v47  ;;  %6552 = vmatprep.mubr.msk.bf16.mxu0 %vm7037_vm1, %v11912_v60 }
 0x1a6   : > { %6562 = vmatprep.subr.bf16.mxu0 %v11912_v60 }
 0x1ac   : > { %6553 = vmatmul.mubr.msk.bf16.vlgmr.msra.gmra.mrb[88].mxu0 %vm225_vm0, %v8586_v15 }
 0x1ad   : > { %6563 = vmatpush3.bf16.msra.mxu0 %v4764_v20  ;;  %6564 = vmatprep.mubr.msk.bf16.mxu0 %vm7037_vm1, %v11912_v60 }
 0x1b4   : > { %6565 = vmatmul.mubr.msk.bf16.vlgmr.msra.gmra.mrb[92].mxu0 %vm225_vm0, %v8586_v15 }
 0x1be   : > { %v1014_v0 = vpop.f32.mrb[0].mxu0 }
 0x1bf   : > { %v6290_v39 = vpop.f32.mrb[1].mxu0 }
 0x1c0   : > { %v1017_v32 = vpop.f32.mrb[2].mxu0 }
 0x1c1   : > { %v1021_v24 = vpack.c.bf16 %v1017_v32, %v1014_v0  ;;  %v6291_v31 = vpop.f32.mrb[3].mxu0 }
 0x1c3   : > { %6295 = vmatmul.mubr.msk.bf16.vlgmr.msra.gmra.mrb[0].mxu1 %vm225_vm0, %v1021_v24 }
 0x1c4   : > { %6305 = vmatpush3.bf16.msk.msra.mxu1 %vm9067_vm6, %v11731_v43  ;;  %6306 = vmatprep.mubr.msk.bf16.mxu1 %vm7037_vm1, %v11912_v60 }
 0x1c5   : > { %6316 = vmatprep.subr.bf16.mxu1 %v11912_v60 }
 0x1d1   : > { %v1139_v45 = vpop.f32.mrb[4].mxu0 }
 0x1d2   : > { %v6302_v21 = vpop.f32.mrb[5].mxu0 }
 0x1d3   : > { %v1142_v34 = vpop.f32.mrb[6].mxu0 }
 0x1d4   : > { %v1146_v15 = vpack.c.bf16 %v1142_v34, %v1139_v45  ;;  %v6303_v55 = vpop.f32.mrb[7].mxu0 }
 0x1d6   : > { %6307 = vmatmul.mubr.msk.bf16.vlgmr.msra.gmra.mrb[4].mxu1 %vm225_vm0, %v1146_v15 }
 0x1d7   : > { %6317 = vmatpush3.bf16.msk.msra.mxu1 %vm9067_vm6, %v11731_v43  ;;  %6318 = vmatprep.mubr.msk.bf16.mxu1 %vm7037_vm1, %v11912_v60 }
 0x1d8   : > { %6328 = vmatprep.subr.bf16.mxu1 %v11912_v60 }
 0x1df   : > { %v1264_v57 = vpop.f32.mrb[8].mxu0 }
 0x1e0   : > { %v6314_v19 = vpop.f32.mrb[9].mxu0 }
 0x1e1   : > { %v1267_v56 = vpop.f32.mrb[10].mxu0 }
 0x1e2   : > { %v1271_v53 = vpack.c.bf16 %v1267_v56, %v1264_v57  ;;  %v6315_v18 = vpop.f32.mrb[11].mxu0 }
 0x1e4   : > { %6319 = vmatmul.mubr.msk.bf16.vlgmr.msra.gmra.mrb[8].mxu1 %vm225_vm0, %v1271_v53 }
 0x1e5   : > { %6329 = vmatpush3.bf16.msk.msra.mxu1 %vm9067_vm6, %v11731_v43  ;;  %6330 = vmatprep.mubr.msk.bf16.mxu1 %vm7037_vm1, %v11912_v60 }
 0x1e6   : > { %6340 = vmatprep.subr.bf16.mxu1 %v11912_v60 }
 0x1e7   : > { %v1519_v50 = vpop.f32.mrb[12].mxu0 }
 0x1e8   : > { %v6326_v61 = vpop.f32.mrb[13].mxu0 }
 0x1e9   : > { %v1522_v30 = vpop.f32.mrb[14].mxu0 }
 0x1ea   : > { %v1526_v49 = vpack.c.bf16 %v1522_v30, %v1519_v50  ;;  %v6327_v25 = vpop.f32.mrb[15].mxu0 }
 0x1ec   : > { %6331 = vmatmul.mubr.msk.bf16.vlgmr.msra.gmra.mrb[12].mxu1 %vm225_vm0, %v1526_v49 }
 0x1ed   : > { %6341 = vmatpush3.bf16.msk.msra.mxu1 %vm9067_vm6, %v11731_v43  ;;  %6342 = vmatprep.mubr.msk.bf16.mxu1 %vm7037_vm1, %v11912_v60 }
 0x1ee   : > { %6352 = vmatprep.subr.bf16.mxu1 %v11912_v60 }
 0x1ef   : > { %v1644_v2 = vpop.f32.mrb[16].mxu0 }
 0x1f0   : > { %v6338_v26 = vpop.f32.mrb[17].mxu0 }
 0x1f1   : > { %v1647_v47 = vpop.f32.mrb[18].mxu0  ;;  %v12117_v26 = vld [vmem:[#allocation64_spill] sm:$0xff] }
 0x1f2   : > { %v1651_v28 = vpack.c.bf16 %v1647_v47, %v1644_v2  ;;  %v6339_v20 = vpop.f32.mrb[19].mxu0  ;;  %6812 = vlog2.f32 %v12117_v26  ;;  %v12118_v47 = vld [vmem:[#allocation79_spill] sm:$0xff] }
 0x1f3   : > { %6814 = vlog2.f32 %v12118_v47  ;;  %v9255_v20 = vsub.f32 1.0, %v8652_v23  ;;  %v12133_v47 = vld [vmem:[#allocation94_spill] sm:$0xff] }
 0x1f4   : > { %6343 = vmatmul.mubr.msk.bf16.vlgmr.msra.gmra.mrb[16].mxu1 %vm225_vm0, %v1651_v28 }
 0x1f5   : > { %6353 = vmatpush3.bf16.msk.msra.mxu1 %vm9067_vm6, %v11731_v43  ;;  %6354 = vmatprep.mubr.msk.bf16.mxu1 %vm7037_vm1, %v11912_v60  ;;  %12119 = vst [vmem:[#allocation131_spill] sm:$0xff] %v9255_v20 }
 0x1f6   : > { %6364 = vmatprep.subr.bf16.mxu1 %v11912_v60 }
 0x1f7   : > { %v1769_v35 = vpop.f32.mrb[20].mxu0 }
 0x1f8   : > { %v6350_v63 = vpop.f32.mrb[21].mxu0 }
 0x1f9   : > { %v1772_v58 = vpop.f32.mrb[22].mxu0  ;;  %v9258_v63 = vsub.f32 1.0, %v8668_v41 }
 0x1fa   : > { %v1776_v5 = vpack.c.bf16 %v1772_v58, %v1769_v35  ;;  %v6351_v51 = vpop.f32.mrb[23].mxu0 }
 0x1fb   : > { %12120 = vst [vmem:[#allocation47_spill] sm:$0xff] %v9258_v63 }
 0x1fc   : > { %6355 = vmatmul.mubr.msk.bf16.vlgmr.msra.gmra.mrb[20].mxu1 %vm225_vm0, %v1776_v5  ;;  %v6856_v5 = vld [vmem:[%s7223_s5 + $0x110] sm:$0xff] }
 0x1fd   : > { %6365 = vmatpush3.bf16.msk.msra.mxu1 %vm9067_vm6, %v11731_v43  ;;  %6366 = vmatprep.mubr.msk.bf16.mxu1 %vm7037_vm1, %v11912_v60  ;;  %v1454_v51 = vmul.f32 %v6856_v5, %v9255_v20  ;;  %v9309_v5 = vsub.f32 1.0, %v8780_v40 }
 0x1fe   : > { %6376 = vmatprep.subr.bf16.mxu1 %v11912_v60 }
 0x1ff   : > { %v2024_v29 = vpop.f32.mrb[24].mxu0  ;;  %12134 = vst [vmem:[#allocation139_spill] sm:$0xff] %v9309_v5 }
 0x200   : > { %v6362_v14 = vpop.f32.mrb[25].mxu0 }
 0x201   : > { %v2027_v59 = vpop.f32.mrb[26].mxu0  ;;  %v9266_v14 = vsub.f32 1.0, %v8692_v52  ;;  %v9279_v52 = vsub.f32 1.0, %v8708_v3 }
 0x202   : > { %v2031_v54 = vpack.c.bf16 %v2027_v59, %v2024_v29  ;;  %v6363_v0 = vpop.f32.mrb[27].mxu0  ;;  %v9263_v29 = vsub.f32 1.0, %v8678_v11  ;;  %v9282_v11 = vsub.f32 1.0, %v8760_v10 }
 0x203   : > { %12122 = vst [vmem:[#allocation51_spill] sm:$0xff] %v9266_v14  ;;  %v6857_v0 = vld [vmem:[%s7223_s5 + $0x118] sm:$0xff]  ;;  %12124 = vst [vmem:[#allocation52_spill] sm:$0xff] %v9279_v52 }
 0x204   : > { %6367 = vmatmul.mubr.msk.bf16.vlgmr.msra.gmra.mrb[24].mxu1 %vm225_vm0, %v2031_v54  ;;  %12121 = vst [vmem:[#allocation48_spill] sm:$0xff] %v9263_v29  ;;  %v1455_v23 = vmul.f32 %v6857_v0, %v9258_v63  ;;  %12125 = vst [vmem:[#allocation19_spill] sm:$0xff] %v9282_v11  ;;  %v9315_v0 = vsub.f32 1.0, %v8795_v38 }
 0x205   : > { %6377 = vmatpush3.bf16.msk.msra.mxu1 %vm9067_vm6, %v11731_v43  ;;  %6378 = vmatprep.mubr.msk.bf16.mxu1 %vm7037_vm1, %v11912_v60 }
 0x206   : > { %6388 = vmatprep.subr.bf16.mxu1 %v11912_v60  ;;  %12136 = vst [vmem:[#allocation149_spill] sm:$0xff] %v9315_v0 }
 0x207   : > { %v2149_v39 = vpop.f32.mrb[28].mxu0 }
 0x208   : > { %v6374_v32 = vpop.f32.mrb[29].mxu0 }
 0x209   : > { %v2152_v24 = vpop.f32.mrb[30].mxu0  ;;  %v6859_v32 = vld [vmem:[%s7223_s5 + $0x128] sm:$0xff] }
 0x20a   : > { %v2156_v31 = vpack.c.bf16 %v2152_v24, %v2149_v39  ;;  %v6375_v45 = vpop.f32.mrb[31].mxu0  ;;  %v6858_v39 = vld [vmem:[%s7223_s5 + $0x120] sm:$0xff]  ;;  %v1960_v24 = vmul.f32 %v6859_v32, %v9266_v14  ;;  %v12138_v32 = vld [vmem:[#allocation87_spill] sm:$0xff] }
 0x20b   : > { %v1959_v41 = vmul.f32 %v6858_v39, %v9263_v29  ;;  %v12126_v45 = vld [vmem:[#allocation93_spill] sm:$0xff] }
 0x20c   : > { %6379 = vmatmul.mubr.msk.bf16.vlgmr.msra.gmra.mrb[28].mxu1 %vm225_vm0, %v2156_v31  ;;  %v9275_v31 = vsub.f32 1.0, %v8701_v16  ;;  %6816 = vlog2.f32 %v12126_v45  ;;  %v6813_v16 = vpop.eup %6812  ;;  %v12139_v45 = vld [vmem:[#allocation89_spill] sm:$0xff] }
 0x20d   : > { %6389 = vmatpush3.bf16.msk.msra.mxu1 %vm9067_vm6, %v11731_v43  ;;  %6390 = vmatprep.mubr.msk.bf16.mxu1 %vm7037_vm1, %v11912_v60  ;;  %v6815_v10 = vpop.eup %6814 }
 0x20e   : > { %6400 = vmatprep.subr.bf16.mxu1 %v11912_v60  ;;  %12123 = vst [vmem:[#allocation17_spill] sm:$0xff] %v9275_v31 }
 0x20f   : > { %v2274_v21 = vpop.f32.mrb[32].mxu0 }
 0x210   : > { %v6386_v34 = vpop.f32.mrb[33].mxu0 }
 0x211   : > { %v2277_v15 = vpop.f32.mrb[34].mxu0 }
 0x212   : > { %v2281_v55 = vpack.c.bf16 %v2277_v15, %v2274_v21  ;;  %v6387_v57 = vpop.f32.mrb[35].mxu0  ;;  %v12127_v21 = vld [vmem:[#allocation50_spill] sm:$0xff] }
 0x213   : > { %v1456_v34 = vadd.f32 %v1454_v51, %v12127_v21  ;;  %v6860_v15 = vld [vmem:[%s7223_s5 + $0x130] sm:$0xff]  ;;  %v9312_v51 = vsub.f32 1.0, %v8785_v7  ;;  %v9323_v21 = vsub.f32 1.0, %v8800_v22  ;;  %v6864_v7 = vld [vmem:[%s7223_s5 + $0x1a0] sm:$0xff] }
 0x214   : > { %6391 = vmatmul.mubr.msk.bf16.vlgmr.msra.gmra.mrb[32].mxu1 %vm225_vm0, %v2281_v55  ;;  %v2464_v3 = vmul.f32 %v6860_v15, %v9275_v31  ;;  %v6861_v55 = vld [vmem:[%s7223_s5 + $0x138] sm:$0xff]  ;;  %v1975_v15 = vmul.f32 %v6864_v7, %v9309_v5 }
 0x215   : > { %6401 = vmatpush3.bf16.msk.msra.mxu1 %vm9067_vm6, %v11731_v43  ;;  %6402 = vmatprep.mubr.msk.bf16.mxu1 %vm7037_vm1, %v11912_v60  ;;  %v2465_v57 = vmul.f32 %v6861_v55, %v9279_v52  ;;  %12135 = vst [vmem:[#allocation60_spill] sm:$0xff] %v9312_v51  ;;  %12140 = vst [vmem:[#allocation64_spill] sm:$0xff] %v9323_v21  ;;  %v6866_v55 = vld [vmem:[%s7223_s5 + $0x1b0] sm:$0xff] }
 0x216   : > { %6412 = vmatprep.subr.bf16.mxu1 %v11912_v60 }
 0x217   : > { %v2529_v19 = vpop.f32.mrb[36].mxu0 }
 0x218   : > { %v6398_v56 = vpop.f32.mrb[37].mxu0 }
 0x219   : > { %v2532_v53 = vpop.f32.mrb[38].mxu0  ;;  %v6862_v56 = vld [vmem:[%s7223_s5 + $0x190] sm:$0xff] }
 0x21a   : > { %v2536_v18 = vpack.c.bf16 %v2532_v53, %v2529_v19  ;;  %v6399_v50 = vpop.f32.mrb[39].mxu0  ;;  %v9297_v19 = vsub.f32 1.0, %v8763_v13  ;;  %v1470_v53 = vmul.f32 %v6862_v56, %v9282_v11  ;;  %v2480_v56 = vmul.f32 %v6866_v55, %v9315_v0 }
 0x21c   : > { %6403 = vmatmul.mubr.msk.bf16.vlgmr.msra.gmra.mrb[36].mxu1 %vm225_vm0, %v2536_v18  ;;  %12128 = vst [vmem:[#allocation138_spill] sm:$0xff] %v9297_v19  ;;  %v12129_v18 = vld [vmem:[#allocation105_spill] sm:$0xff]  ;;  %v9320_v40 = vadd.f32 %v1470_v53, %v1456_v34  ;;  %v9339_v53 = vsub.f32 1.0, %v8816_v36  ;;  %v9354_v36 = vsub.f32 1.0, %v8615_v8  ;;  %v6869_v8 = vld [vmem:[%s7223_s5 + $0x100] sm:$0xff] }
 0x21d   : > { %6413 = vmatpush3.bf16.msk.msra.mxu1 %vm9067_vm6, %v11731_v43  ;;  %6414 = vmatprep.mubr.msk.bf16.mxu1 %vm7037_vm1, %v11912_v60  ;;  %6818 = vlog2.f32 %v12129_v18  ;;  %v12141_v18 = vld [vmem:[#allocation141_spill] sm:$0xff] }
 0x21e   : > { %6424 = vmatprep.subr.bf16.mxu1 %v11912_v60  ;;  %6820 = vlog2.f32 %v12133_v47  ;;  %12143 = vst [vmem:[#allocation79_spill] sm:$0xff] %v9339_v53  ;;  %12146 = vst [vmem:[#allocation93_spill] sm:$0xff] %v9354_v36  ;;  %v6817_v47 = vpop.eup %6816 }
 0x21f   : > { %v2654_v61 = vpop.f32.mrb[40].mxu0  ;;  %v1980_v55 = vmul.f32 0.6931472, %v6817_v47 }
 0x220   : > { %v6410_v30 = vpop.f32.mrb[41].mxu0 }
 0x221   : > { %v2657_v49 = vpop.f32.mrb[42].mxu0 }
 0x222   : > { %v2661_v25 = vpack.c.bf16 %v2657_v49, %v2654_v61  ;;  %v6411_v2 = vpop.f32.mrb[43].mxu0  ;;  %v12130_v61 = vld [vmem:[#allocation53_spill] sm:$0xff]  ;;  %v12131_v49 = vld [vmem:[#allocation68_spill] sm:$0xff] }
 0x223   : > { %v1457_v30 = vadd.f32 %v1455_v23, %v12130_v61  ;;  %v12132_v2 = vld [vmem:[#allocation70_spill] sm:$0xff] }
 0x224   : > { %6415 = vmatmul.mubr.msk.bf16.vlgmr.msra.gmra.mrb[40].mxu1 %vm225_vm0, %v2661_v25  ;;  %v1961_v25 = vadd.f32 %v1959_v41, %v12131_v49  ;;  %v1962_v26 = vadd.f32 %v1960_v24, %v12132_v2  ;;  %v12137_v23 = vld [vmem:[#allocation18_spill] sm:$0xff]  ;;  %v2466_v24 = vadd.f32 %v2464_v3, %v12138_v32  ;;  %v12142_v3 = vld [vmem:[#allocation32_spill] sm:$0xff]  ;;  %v12145_v49 = vld [vmem:[#allocation33_spill] sm:$0xff] }
 0x225   : > { %6425 = vmatpush3.bf16.msk.msra.mxu1 %vm9067_vm6, %v11731_v43  ;;  %6426 = vmatprep.mubr.msk.bf16.mxu1 %vm7037_vm1, %v11912_v60  ;;  %6822 = vlog2.f32 %v12137_v23  ;;  %v12149_v23 = vld [vmem:[#allocation109_spill] sm:$0xff] }
 0x226   : > { %6436 = vmatprep.subr.bf16.mxu1 %v11912_v60  ;;  %6824 = vlog2.f32 %v12141_v18 }
 0x227   : > { %v2779_v28 = vpop.f32.mrb[44].mxu0  ;;  %v6819_v32 = vpop.eup %6818 }
 0x228   : > { %v6422_v35 = vpop.f32.mrb[45].mxu0  ;;  %v2485_v47 = vmul.f32 0.6931472, %v6819_v32  ;;  %v12159_v32 = vld [vmem:[#allocation55_spill] sm:$0xff] }
 0x229   : > { %v2782_v58 = vpop.f32.mrb[46].mxu0  ;;  %v6863_v35 = vld [vmem:[%s7223_s5 + $0x198] sm:$0xff] }
 0x22a   : > { %v2786_v59 = vpack.c.bf16 %v2782_v58, %v2779_v28  ;;  %v6423_v54 = vpop.f32.mrb[47].mxu0  ;;  %v1471_v13 = vmul.f32 %v6863_v35, %v9297_v19  ;;  %v1475_v58 = vmul.f32 0.6931472, %v6813_v16  ;;  %v2467_v16 = vadd.f32 %v2465_v57, %v12139_v45  ;;  %v6867_v57 = vld [vmem:[%s7223_s5 + $0x1b8] sm:$0xff]  ;;  %v6868_v35 = vld [vmem:[%s7223_s5 + $0x140] sm:$0xff] }
 0x22b   : > { %v1477_v54 = vmul.f32 0.6931472, %v6815_v10  ;;  %v6865_v10 = vld [vmem:[%s7223_s5 + $0x1a8] sm:$0xff]  ;;  %v2481_v22 = vmul.f32 %v6867_v57, %v9323_v21  ;;  %v9371_v45 = vadd.f32 %v2480_v56, %v2466_v24  ;;  %v9380_v57 = vsub.f32 1.0, %v8748_v42  ;;  %v12151_v24 = vld [vmem:[#allocation99_spill] sm:$0xff]  ;;  %v12156_v42 = vld [vmem:[#allocation26_spill] sm:$0xff] }
 0x22c   : > { %6427 = vmatmul.mubr.msk.bf16.vlgmr.msra.gmra.mrb[44].mxu1 %vm225_vm0, %v2786_v59  ;;  %v1976_v38 = vmul.f32 %v6865_v10, %v9312_v51  ;;  %v9334_v34 = vadd.f32 %v1475_v58, %v12142_v3  ;;  %v9347_v61 = vadd.f32 %v1471_v13, %v1457_v30  ;;  %v2969_v58 = vmul.f32 %v6868_v35, %v9339_v53  ;;  %v6870_v10 = vld [vmem:[%s7223_s5 + $0x148] sm:$0xff]  ;;  %v12155_v35 = vld [vmem:[#allocation124_spill] sm:$0xff] }
 0x22d   : > { %6437 = vmatpush3.bf16.msk.msra.mxu1 %vm9067_vm6, %v11731_v43  ;;  %6438 = vmatprep.mubr.msk.bf16.mxu1 %vm7037_vm1, %v11912_v60  ;;  %v9350_v2 = vadd.f32 %v1477_v54, %v12145_v49  ;;  %v9362_v13 = vadd.f32 %v1975_v15, %v1961_v25  ;;  %v9373_v7 = vadd.f32 %v2481_v22, %v2467_v16  ;;  %v9384_v16 = vsub.f32 1.0, %v8834_v44 }
 0x22e   : > { %6448 = vmatprep.subr.bf16.mxu1 %v11912_v60  ;;  %v9364_v54 = vadd.f32 %v1976_v38, %v1962_v26  ;;  %v6821_v26 = vpop.eup %6820  ;;  %12150 = vst [vmem:[#allocation105_spill] sm:$0xff] %v9380_v57  ;;  %v2971_v56 = vadd.f32 %v2969_v58, %v12151_v24  ;;  %v9387_v22 = vsub.f32 1.0, %v8837_v9  ;;  %v6871_v58 = vld [vmem:[%s7223_s5 + $0x180] sm:$0xff] }
 0x22f   : > { %v3034_v50 = vpop.f32.mrb[48].mxu0  ;;  %12152 = vst [vmem:[#allocation53_spill] sm:$0xff] %v9384_v16  ;;  %v6823_v49 = vpop.eup %6822  ;;  %v961_v44 = vmul.f32 %v6871_v58, %v9380_v57  ;;  %v12166_v38 = vld [vmem:[#allocation16_spill] sm:$0xff] }
 0x230   : > { %v6434_v28 = vpop.f32.mrb[49].mxu0  ;;  %12153 = vst [vmem:[#allocation68_spill] sm:$0xff] %v9387_v22  ;;  %v2990_v24 = vmul.f32 0.6931472, %v6823_v49 }
 0x231   : > { %v3037_v59 = vpop.f32.mrb[50].mxu0  ;;  %v9357_v28 = vsub.f32 1.0, %v8820_v46  ;;  %v6876_v46 = vld [vmem:[%s7223_s5 + $0x1d0] sm:$0xff] }
 0x232   : > { %v3041_v39 = vpack.c.bf16 %v3037_v59, %v3034_v50  ;;  %v6435_v41 = vpop.f32.mrb[51].mxu0  ;;  %v12144_v50 = vld [vmem:[#allocation56_spill] sm:$0xff]  ;;  %v12148_v59 = vld [vmem:[#allocation151_spill] sm:$0xff] }
 0x233   : > { %6826 = vlog2.f32 %v12144_v50  ;;  %12147 = vst [vmem:[#allocation50_spill] sm:$0xff] %v9357_v28  ;;  %v945_v41 = vmul.f32 %v6869_v8, %v9354_v36  ;;  %v2970_v25 = vmul.f32 %v6870_v10, %v9357_v28  ;;  %v9390_v50 = vsub.f32 1.0, %v8853_v48 }
 0x234   : > { %6439 = vmatmul.mubr.msk.bf16.vlgmr.msra.gmra.mrb[48].mxu1 %vm225_vm0, %v3041_v39  ;;  %6828 = vlog2.f32 %v12148_v59  ;;  %v9403_v8 = vsub.f32 1.0, %v8880_v33  ;;  %v9411_v10 = vadd.f32 %v1980_v55, %v12159_v32 }
 0x235   : > { %6449 = vmatpush3.bf16.msk.msra.mxu1 %vm9067_vm6, %v11731_v43  ;;  %6450 = vmatprep.mubr.msk.bf16.mxu1 %vm7037_vm1, %v11912_v60  ;;  %6830 = vlog2.f32 %v12149_v23  ;;  %12154 = vst [vmem:[#allocation70_spill] sm:$0xff] %v9390_v50  ;;  %v947_v59 = vadd.f32 %v945_v41, %v12156_v42  ;;  %v12157_v23 = vld [vmem:[#allocation100_spill] sm:$0xff]  ;;  %v6825_v41 = vpop.eup %6824 }
 0x236   : > { %6460 = vmatprep.subr.bf16.mxu1 %v11912_v60  ;;  %6832 = vlog2.f32 %v12155_v35  ;;  %v9398_v9 = vadd.f32 %v2970_v25, %v12157_v23  ;;  %12158 = vst [vmem:[#allocation94_spill] sm:$0xff] %v9403_v8  ;;  %v6873_v25 = vld [vmem:[%s7223_s5 + $0x1c0] sm:$0xff]  ;;  %v9420_v35 = vsub.f32 1.0, %v8860_v4  ;;  %v12162_v23 = vld [vmem:[#allocation59_spill] sm:$0xff] }
 0x237   : > { %v3159_v30 = vpop.f32.mrb[52].mxu0  ;;  %v6875_v42 = vld [vmem:[%s7223_s5 + $0x160] sm:$0xff]  ;;  %v963_v12 = vadd.f32 %v961_v44, %v947_v59  ;;  %v12170_v44 = vld [vmem:[#allocation22_spill] sm:$0xff] }
 0x238   : > { %v6446_v39 = vpop.f32.mrb[53].mxu0  ;;  %12161 = vst [vmem:[#allocation18_spill] sm:$0xff] %v9420_v35  ;;  %v3979_v55 = vmul.f32 %v6875_v42, %v9403_v8  ;;  %v3490_v42 = vmul.f32 %v6876_v46, %v9420_v35  ;;  %v12171_v46 = vld [vmem:[#allocation91_spill] sm:$0xff]  ;;  %v6878_v35 = vld [vmem:[%s7223_s5 + $0x1e0] sm:$0xff] }
 0x239   : > { %v3162_v15 = vpop.f32.mrb[54].mxu0  ;;  %v6872_v39 = vld [vmem:[%s7223_s5 + $0x150] sm:$0xff] }
 0x23a   : > { %v3166_v18 = vpack.c.bf16 %v3162_v15, %v3159_v30  ;;  %v6447_v3 = vpop.f32.mrb[55].mxu0  ;;  %v1982_v30 = vmul.f32 0.6931472, %v6821_v26  ;;  %v3474_v48 = vmul.f32 %v6872_v39, %v9390_v50  ;;  %v2985_v15 = vmul.f32 %v6873_v25, %v9384_v16  ;;  %v6874_v26 = vld [vmem:[%s7223_s5 + $0x1c8] sm:$0xff]  ;;  %v12163_v39 = vld [vmem:[#allocation71_spill] sm:$0xff] }
 0x23b   : > { %v12160_v3 = vld [vmem:[#allocation144_spill] sm:$0xff]  ;;  %v9426_v32 = vadd.f32 %v2485_v47, %v12163_v39  ;;  %v12168_v39 = vld [vmem:[#allocation31_spill] sm:$0xff] }
 0x23c   : > { %6451 = vmatmul.mubr.msk.bf16.vlgmr.msra.gmra.mrb[52].mxu1 %vm225_vm0, %v3166_v18  ;;  %v2986_v18 = vmul.f32 %v6874_v26, %v9387_v22  ;;  %6834 = vlog2.f32 %v12160_v3  ;;  %v12164_v26 = vld [vmem:[#allocation73_spill] sm:$0xff]  ;;  %v3476_v4 = vadd.f32 %v3474_v48, %v12166_v38  ;;  %v9436_v62 = vsub.f32 1.0, %v12168_v39 }
 0x23d   : > { %6461 = vmatpush3.bf16.msk.msra.mxu1 %vm9067_vm6, %v11731_v43  ;;  %6462 = vmatprep.mubr.msk.bf16.mxu1 %vm7037_vm1, %v11912_v60  ;;  %v6827_v33 = vpop.eup %6826  ;;  %6836 = vlog2.f32 %v12162_v23  ;;  %v9429_v3 = vsub.f32 1.0, %v12164_v26  ;;  %v3495_v43 = vmul.f32 0.6931472, %v6825_v41  ;;  %v1985_v38 = vsub.f32 %v9411_v10, %v9362_v13  ;;  %v12176_v13 = vld [vmem:[#allocation27_spill] sm:$0xff] }
 0x23e   : > { %6472 = vmatprep.subr.bf16.mxu1 %v11912_v60  ;;  %v966_v37 = vmul.f32 0.6931472, %v6827_v33  ;;  %v6829_v49 = vpop.eup %6828  ;;  %6838 = vlog2.f32 %v12167_v27  ;;  %12169 = vst [vmem:[#allocation89_spill] sm:$0xff] %v9436_v62  ;;  %v2987_v48 = vadd.f32 %v2985_v15, %v2971_v56  ;;  %v2993_v41 = vadd.f32 %v2990_v24, %v12171_v46 }
 0x23f   : > { %v3284_v58 = vpop.f32.mrb[56].mxu0  ;;  %12165 = vst [vmem:[#allocation87_spill] sm:$0xff] %v9429_v3  ;;  %v6831_v47 = vpop.eup %6830  ;;  %v946_v59 = vmul.f32 %v6877_v1, %v9429_v3  ;;  %v3981_v27 = vadd.f32 %v3979_v55, %v12172_v6  ;;  %v3995_v22 = vmul.f32 %v6878_v35, %v9436_v62  ;;  %v4000_v39 = vmul.f32 0.6931472, %v6829_v49  ;;  %v12178_v6 = vld [vmem:[#allocation102_spill] sm:$0xff] }
 0x240   : > { %v6458_v25 = vpop.f32.mrb[57].mxu0  ;;  %v969_v33 = vadd.f32 %v966_v37, %v12170_v44  ;;  %v12175_v37 = vld [vmem:[#allocation57_spill] sm:$0xff]  ;;  %v9455_v56 = vsub.f32 1.0, %v12176_v13  ;;  %v3492_v10 = vadd.f32 %v3490_v42, %v3476_v4  ;;  %v3498_v15 = vadd.f32 %v3495_v43, %v12178_v6 }
 0x241   : > { %v3287_v23 = vpop.f32.mrb[58].mxu0  ;;  %v12179_v24 = vmov 1.0|1.0   ;;  %v2490_v35 = vsub.f32 %v9426_v32, %v9371_v45  ;;  %v12181_v49 = vsub.f32 %v9334_v34, %v9320_v40  ;;  %v6879_v43 = vld [vmem:[%s7223_s5 + $0x188] sm:$0xff]  ;;  %v9473_v44 = vadd.f32 %v2986_v18, %v9398_v9  ;;  %v12182_v45 = vld [vmem:[#allocation30_spill] sm:$0xff]  ;;  %v12184_v40 = vld [vmem:[#allocation115_spill] sm:$0xff] }
 0x242   : > { %v3291_v25 = vpack.c.bf16 %v3287_v23, %v3284_v58  ;;  %v6459_v26 = vpop.f32.mrb[59].mxu0  ;;  %v971_v58 = vsub.f32 %v969_v33, %v963_v12  ;;  %v12173_v23 = vld [vmem:[#allocation159_spill] sm:$0xff]  ;;  %12177 = vst [vmem:[#allocation32_spill] sm:$0xff] %v9455_v56  ;;  %v6833_v12 = vpop.eup %6832  ;;  %v9478_v32 = vsub.f32 1.0, %v12182_v45  ;;  %v3997_v13 = vadd.f32 %v3995_v22, %v3981_v27 }
 0x243   : > { %v9449_v1 = vsub.f32 1.0, %v12173_v23  ;;  %v9452_v26 = vadd.f32 %v1982_v30, %v12175_v37  ;;  %v12180_v30 = vld [vmem:[#allocation29_spill] sm:$0xff]  ;;  %v6880_v33 = vld [vmem:[%s7223_s5 + $0x158] sm:$0xff]  ;;  %v2995_v37 = vsub.f32 %v2993_v41, %v2987_v48  ;;  %v4003_v34 = vadd.f32 %v4000_v39, %v12184_v40  ;;  %v12188_v39 = vld [vmem:[#allocation114_spill] sm:$0xff] }
 0x244   : > { %6463 = vmatmul.mubr.msk.bf16.vlgmr.msra.gmra.mrb[56].mxu1 %vm225_vm0, %v3291_v25  ;;  %v948_v55 = vadd.f32 %v946_v59, %v12180_v30  ;;  %v1482_v4 = vadd.f32 %v12181_v49, %v971_v58  ;;  %v2487_v25 = vmul.f32 0.6931472, %v6831_v47  ;;  %v3475_v46 = vmul.f32 %v6880_v33, %v9455_v56  ;;  %12183 = vst [vmem:[#allocation56_spill] sm:$0xff] %v9478_v32  ;;  %v12185_v49 = vld [vmem:[#allocation28_spill] sm:$0xff]  ;;  %v12187_v27 = vld [vmem:[#allocation75_spill] sm:$0xff] }
 0x245   : > { %12174 = vst [vmem:[#allocation141_spill] sm:$0xff] %v9449_v1  ;;  %6473 = vmatpush3.bf16.msk.msra.mxu1 %vm9067_vm6, %v12179_v24  ;;  %6474 = vmatprep.mubr.msk.bf16.mxu1 %vm7037_vm1, %v11912_v60  ;;  %v962_v42 = vmul.f32 %v6879_v43, %v9449_v1  ;;  %v2992_v30 = vmul.f32 0.6931472, %v6833_v12  ;;  %v9482_v9 = vsub.f32 1.0, %v12185_v49  ;;  %v3500_v18 = vsub.f32 %v3498_v15, %v3492_v10  ;;  %v6881_v43 = vld [vmem:[%s7223_s5 + $0x168] sm:$0xff]  ;;  %v6882_v12 = vld [vmem:[%s7223_s5 + $0x1d8] sm:$0xff] }
 0x246   : > { %6484 = vmatprep.subr.bf16.mxu1 %v11912_v60  ;;  %v6835_v59 = vpop.eup %6834  ;;  %v1987_v6 = vadd.f32 %v1985_v38, %v1482_v4  ;;  %v3980_v33 = vmul.f32 %v6881_v43, %v9478_v32  ;;  %v2489_v38 = vadd.f32 %v2487_v25, %v12187_v27  ;;  %v3477_v4 = vadd.f32 %v3475_v46, %v12188_v39 }
 0x247   : > { %v3539_v23 = vpop.f32.mrb[60].mxu0  ;;  %v6837_v47 = vpop.eup %6836  ;;  %12186 = vst [vmem:[#allocation33_spill] sm:$0xff] %v9482_v9  ;;  %v964_v48 = vadd.f32 %v962_v42, %v948_v55  ;;  %v3491_v40 = vmul.f32 %v6882_v12, %v9482_v9  ;;  %v3497_v15 = vmul.f32 0.6931472, %v6835_v59  ;;  %v4005_v49 = vsub.f32 %v4003_v34, %v3997_v13  ;;  %v6883_v59 = vld [vmem:[%s7223_s5 + $0x1e8] sm:$0xff] }
 0x248   : > { %v6470_v58 = vpop.f32.mrb[61].mxu0  ;;  %v2492_v16 = vadd.f32 %v2490_v35, %v1987_v6  ;;  %v968_v22 = vmul.f32 0.6931472, %v6837_v47  ;;  %v6839_v41 = vpop.eup %6838  ;;  %v12191_v35 = vld [vmem:[#allocation23_spill] sm:$0xff]  ;;  %v1986_v42 = vsub.f32 %v9452_v26, %v9364_v54  ;;  %v12193_v6 = vld [vmem:[#allocation130_spill] sm:$0xff]  ;;  %v2491_v54 = vsub.f32 %v2489_v38, %v9373_v7  ;;  %v12194_v47 = vld [vmem:[#allocation104_spill] sm:$0xff] }
 0x249   : > { %v3542_v45 = vpop.f32.mrb[62].mxu0  ;;  %v12189_v58 = vld [vmem:[#allocation34_spill] sm:$0xff]  ;;  %v3982_v46 = vadd.f32 %v3980_v33, %v12193_v6  ;;  %v3493_v34 = vadd.f32 %v3491_v40, %v3477_v4  ;;  %v12197_v12 = vld [vmem:[#allocation117_spill] sm:$0xff] }
 0x24a   : > { %v3546_v62 = vpack.c.bf16 %v3542_v45, %v3539_v23  ;;  %v6471_v8 = vpop.f32.mrb[63].mxu0  ;;  %v9491_v10 = vsub.f32 1.0, %v12189_v58  ;;  %v970_v55 = vadd.f32 %v968_v22, %v12191_v35  ;;  %v12192_v23 = vld [vmem:[#allocation95_spill] sm:$0xff]  ;;  %v12196_v45 = vsub.f32 %v9350_v2, %v9347_v61 }
 0x24b   : > { %v2997_v8 = vadd.f32 %v2995_v37, %v2492_v16  ;;  %v2994_v25 = vadd.f32 %v2992_v30, %v12192_v23  ;;  %v4002_v16 = vmul.f32 0.6931472, %v6839_v41  ;;  %v3499_v30 = vadd.f32 %v3497_v15, %v12194_v47 }
 0x24c   : > { %12190 = vst [vmem:[#allocation151_spill] sm:$0xff] %v9491_v10  ;;  %6475 = vmatmul.mubr.msk.bf16.vlgmr.msra.gmra.mrb[60].mxu1 %vm225_vm0, %v3546_v62  ;;  %v3996_v62 = vmul.f32 %v6883_v59, %v9491_v10  ;;  %v972_v13 = vsub.f32 %v970_v55, %v964_v48  ;;  %v1446_v2 = vadd.f32 %v9255_v20, %v9354_v36 }
 0x24d   : > { %6485 = vmatpush3.bf16.msk.msra.mxu1 %vm9067_vm6, %v12179_v24  ;;  %6486 = vmatprep.mubr.msk.bf16.mxu1 %vm7037_vm1, %v11912_v60  ;;  %v3502_v37 = vadd.f32 %v3500_v18, %v2997_v8  ;;  %v2996_v27 = vsub.f32 %v2994_v25, %v9473_v44  ;;  %v4004_v18 = vadd.f32 %v4002_v16, %v12197_v12 }
 0x24e   : > { %6496 = vmatprep.subr.bf16.mxu1 %v11912_v60  ;;  %v1483_v22 = vadd.f32 %v12196_v45, %v972_v13  ;;  %v3998_v39 = vadd.f32 %v3996_v62, %v3982_v46  ;;  %v3501_v38 = vsub.f32 %v3499_v30, %v3493_v34  ;;  %v1447_v35 = vadd.f32 %v9258_v63, %v9429_v3  ;;  %v12199_v13 = vld [vmem:[#allocation36_spill] sm:$0xff] }
 0x24f   : > { %v3664_v26 = vpop.f32.mrb[64].mxu0  ;;  %v9509_v33 = vadd.f32 %v4005_v49, %v3502_v37  ;;  %v1951_v23 = vadd.f32 %v9263_v29, %v1446_v2  ;;  %v1462_v46 = vadd.f32 %v9282_v11, %v9380_v57  ;;  %v1463_v62 = vadd.f32 %v9297_v19, %v9449_v1 }
 0x250   : > { %v6482_v43 = vpop.f32.mrb[65].mxu0  ;;  %v1988_v7 = vadd.f32 %v1986_v42, %v1483_v22  ;;  %v4006_v61 = vsub.f32 %v4004_v18, %v3998_v39  ;;  %v1952_v6 = vadd.f32 %v9266_v14, %v1447_v35  ;;  %v12202_v39 = vld [vmem:[#allocation74_spill] sm:$0xff] }
 0x251   : > { %12195 = vst [vmem:[#allocation109_spill] sm:$0xff] %v9509_v33  ;;  %v3667_v41 = vpop.f32.mrb[66].mxu0  ;;  %v2456_v59 = vadd.f32 %v9275_v31, %v1951_v23  ;;  %v1967_v30 = vadd.f32 %v9309_v5, %v1462_v46  ;;  %v12208_v23 = vld [vmem:[#allocation46_spill] sm:$0xff] }
 0x252   : > { %v3671_v48 = vpack.c.bf16 %v3667_v41, %v3664_v26  ;;  %v6483_v58 = vpop.f32.mrb[67].mxu0  ;;  %v2493_v4 = vadd.f32 %v2491_v54, %v1988_v7  ;;  %v12200_v54 = vld [vmem:[#allocation69_spill] sm:$0xff]  ;;  %v2457_v47 = vadd.f32 %v9279_v52, %v1952_v6  ;;  %v12201_v41 = vld [vmem:[#allocation39_spill] sm:$0xff]  ;;  %v12204_v7 = vld [vmem:[#allocation40_spill] sm:$0xff] }
 0x253   : > { %v9545_v26 = vmul.f32 %v12200_v54, %v12199_v13  ;;  %v2961_v22 = vadd.f32 %v9339_v53, %v2456_v59  ;;  %v9553_v12 = vmul.f32 %v12202_v39, %v12201_v41  ;;  %v9584_v6 = vmul.f32 %v12200_v54, %v12208_v23  ;;  %v12212_v41 = vld [vmem:[#allocation94_spill] sm:$0xff] }
 0x254   : > { %6487 = vmatmul.mubr.msk.bf16.vlgmr.msra.gmra.mrb[64].mxu1 %vm225_vm0, %v3671_v48  ;;  %v2998_v44 = vadd.f32 %v2996_v27, %v2493_v4  ;;  %v1968_v27 = vadd.f32 %v9312_v51, %v1463_v62  ;;  %v12203_v48 = vld [vmem:[#allocation24_spill] sm:$0xff]  ;;  %v12205_v4 = vld [vmem:[#allocation45_spill] sm:$0xff]  ;;  %v2962_v2 = vadd.f32 %v9357_v28, %v2457_v47  ;;  %v12215_v33 = vld [vmem:[#allocation54_spill] sm:$0xff] }
 0x255   : > { %6497 = vmatpush3.bf16.msk.msra.mxu1 %vm9067_vm6, %v12179_v24  ;;  %6498 = vmatprep.mubr.msk.bf16.mxu1 %vm7037_vm1, %v11912_v60  ;;  %v1092_v18 = vsub.f32 1.0, %v9545_v26  ;;  %v1094_v58 = vsub.f32 1.0, %v12203_v48  ;;  %v1093_v35 = vsub.f32 1.0, %v9553_v12  ;;  %12209 = vst [vmem:[#allocation26_spill] sm:$0xff] %v9584_v6 }
 0x256   : > { %6508 = vmatprep.subr.bf16.mxu1 %v11912_v60  ;;  %v3503_v49 = vadd.f32 %v3501_v38, %v2998_v44  ;;  %v9560_v38 = vmul.f32 %v12200_v54, %v12204_v7  ;;  %v2472_v44 = vadd.f32 %v9315_v0, %v1967_v30  ;;  %v3467_v47 = vadd.f32 %v9455_v56, %v2962_v2  ;;  %v12210_v30 = vld [vmem:[#allocation53_spill] sm:$0xff]  ;;  %v12213_v7 = vld [vmem:[#allocation68_spill] sm:$0xff] }
 0x257   : > { %v3789_v40 = vpop.f32.mrb[68].mxu0  ;;  %v9586_v59 = vmul.f32 %v1094_v58, %v1092_v18  ;;  %v12211_v54 = vld [vmem:[#allocation49_spill] sm:$0xff]  ;;  %v1220_v58 = vsub.f32 1.0, %v9429_v3  ;;  %v1344_v2 = vsub.f32 1.0, %v9380_v57  ;;  %v9644_v56 = vmul.f32 %v9380_v57, %v9584_v6 }
 0x258   : > { %v6494_v15 = vpop.f32.mrb[69].mxu0  ;;  %v9528_v25 = vadd.f32 %v4006_v61, %v3503_v49  ;;  %v9569_v61 = vmul.f32 %v12202_v39, %v12205_v4 }
 0x259   : > { %v3792_v8 = vpop.f32.mrb[70].mxu0  ;;  %v2473_v15 = vadd.f32 %v9323_v21, %v1968_v27  ;;  %12225 = vst [vmem:[#allocation73_spill] sm:$0xff] %v9644_v56 }
 0x25a   : > { %v3796_v55 = vpack.c.bf16 %v3792_v8, %v3789_v40  ;;  %v6495_v42 = vpop.f32.mrb[71].mxu0  ;;  %12198 = vst [vmem:[#allocation99_spill] sm:$0xff] %v9528_v25  ;;  %12206 = vst [vmem:[#allocation124_spill] sm:$0xff] %v9569_v61  ;;  %v3466_v40 = vadd.f32 %v9390_v50, %v2961_v22  ;;  %v9578_v8 = vmul.f32 %v12203_v48, %v9545_v26 }
 0x25b   : > { %v2978_v4 = vadd.f32 %v12213_v7, %v2473_v15  ;;  %v9621_v15 = vmul.f32 %v9429_v3, %v9569_v61  ;;  %v12228_v3 = vld [vmem:[#allocation58_spill] sm:$0xff] }
 0x25c   : > { %6499 = vmatmul.mubr.msk.bf16.vlgmr.msra.gmra.mrb[68].mxu1 %vm225_vm0, %v3796_v55  ;;  %v12207_v55 = vld [vmem:[#allocation25_spill] sm:$0xff]  ;;  %v3971_v18 = vadd.f32 %v12212_v41, %v3466_v40 }
 0x25d   : > { %6509 = vmatpush3.bf16.msk.msra.mxu1 %vm9067_vm6, %v12179_v24  ;;  %6510 = vmatprep.mubr.msk.bf16.mxu1 %vm7037_vm1, %v11912_v60  ;;  %v1095_v42 = vsub.f32 1.0, %v12207_v55  ;;  %v9590_v62 = vmul.f32 %v12207_v55, %v9553_v12  ;;  %v3483_v41 = vadd.f32 %v9482_v9, %v2978_v4 }
 0x25e   : > { %6520 = vmatprep.subr.bf16.mxu1 %v11912_v60 }
 0x25f   : > { %v4044_v16 = vpop.f32.mrb[72].mxu0  ;;  %v9604_v23 = vmul.f32 %v1095_v42, %v1093_v35  ;;  %v12220_v35 = vld [vmem:[#allocation92_spill] sm:$0xff] }
 0x260   : > { %v6506_v37 = vpop.f32.mrb[73].mxu0 }
 0x261   : > { %v4047_v34 = vpop.f32.mrb[74].mxu0  ;;  %v1219_v37 = vsub.f32 1.0, %v9354_v36  ;;  %12214 = vst [vmem:[#allocation100_spill] sm:$0xff] %v9604_v23 }
 0x262   : > { %v4051_v43 = vpack.c.bf16 %v4047_v34, %v4044_v16  ;;  %v6507_v45 = vpop.f32.mrb[75].mxu0  ;;  %v1217_v16 = vsub.f32 1.0, %v9560_v38  ;;  %v1218_v34 = vsub.f32 1.0, %v9569_v61 }
 0x263   : > { %v9599_v45 = vmul.f32 %v12202_v39, %v12211_v54  ;;  %v9615_v39 = vmul.f32 %v9354_v36, %v9560_v38  ;;  %v1345_v54 = vsub.f32 1.0, %v9449_v1 }
 0x264   : > { %6511 = vmatmul.mubr.msk.bf16.vlgmr.msra.gmra.mrb[72].mxu1 %vm225_vm0, %v4051_v43  ;;  %v2977_v43 = vadd.f32 %v12210_v30, %v2472_v44  ;;  %v12216_v44 = vld [vmem:[#allocation83_spill] sm:$0xff]  ;;  %v9617_v40 = vmul.f32 %v1219_v37, %v1217_v16 }
 0x265   : > { %6521 = vmatpush3.bf16.msk.msra.mxu1 %vm9067_vm6, %v12179_v24  ;;  %6522 = vmatprep.mubr.msk.bf16.mxu1 %vm7037_vm1, %v11912_v60  ;;  %v9610_v25 = vmul.f32 %v12216_v44, %v12215_v33  ;;  %v3972_v33 = vadd.f32 %v9478_v32, %v3467_v47  ;;  %v1343_v37 = vsub.f32 1.0, %v9599_v45 }
 0x266   : > { %6532 = vmatprep.subr.bf16.mxu1 %v11912_v60  ;;  %12218 = vst [vmem:[#allocation144_spill] sm:$0xff] %v9617_v40  ;;  %v9653_v40 = vmul.f32 %v12216_v44, %v12228_v3 }
 0x267   : > { %v4169_v49 = vpop.f32.mrb[76].mxu0  ;;  %12217 = vst [vmem:[#allocation55_spill] sm:$0xff] %v9610_v25  ;;  %v1436_v23 = vadd.f32 %v9610_v25, %v9545_v26 }
 0x268   : > { %v6518_v46 = vpop.f32.mrb[77].mxu0  ;;  %12229 = vst [vmem:[#allocation152_spill] sm:$0xff] %v9653_v40 }
 0x269   : > { %v4172_v13 = vpop.f32.mrb[78].mxu0  ;;  %v1342_v46 = vsub.f32 1.0, %v9584_v6 }
 0x26a   : > { %v4176_v22 = vpack.c.bf16 %v4172_v13, %v4169_v49  ;;  %v6519_v27 = vpop.f32.mrb[79].mxu0  ;;  %v12219_v49 = vld [vmem:[#allocation61_spill] sm:$0xff]  ;;  %v12222_v13 = vld [vmem:[#allocation18_spill] sm:$0xff] }
 0x26b   : > { %v9625_v42 = vmul.f32 %v12220_v35, %v12219_v49  ;;  %v3482_v16 = vadd.f32 %v12222_v13, %v2977_v43  ;;  %v9640_v49 = vmul.f32 %v1220_v58, %v1218_v34  ;;  %v9647_v32 = vmul.f32 %v1344_v2, %v1342_v46  ;;  %v12227_v13 = vld [vmem:[#allocation43_spill] sm:$0xff]  ;;  %v12231_v46 = vld [vmem:[#allocation44_spill] sm:$0xff] }
 0x26c   : > { %6523 = vmatmul.mubr.msk.bf16.vlgmr.msra.gmra.mrb[76].mxu1 %vm225_vm0, %v4176_v22  ;;  %v12223_v22 = vld [vmem:[#allocation35_spill] sm:$0xff]  ;;  %v1597_v43 = vsub.f32 1.0, %v9610_v25  ;;  %v1599_v50 = vsub.f32 1.0, %v12227_v13  ;;  %v9657_v34 = vmul.f32 %v9449_v1, %v9599_v45  ;;  %v9661_v58 = vmul.f32 %v12227_v13, %v9610_v25 }
 0x26d   : > { %12221 = vst [vmem:[#allocation59_spill] sm:$0xff] %v9625_v42  ;;  %6533 = vmatpush3.bf16.msk.msra.mxu1 %vm9067_vm6, %v12179_v24  ;;  %6534 = vmatprep.mubr.msk.bf16.mxu1 %vm7037_vm1, %v11912_v60  ;;  %v9638_v27 = vadd.f32 %v12223_v22, %v3971_v18  ;;  %12224 = vst [vmem:[#allocation71_spill] sm:$0xff] %v9640_v49  ;;  %v1598_v4 = vsub.f32 1.0, %v9625_v42  ;;  %v1600_v2 = vsub.f32 1.0, %v12231_v46  ;;  %v12233_v22 = vld [vmem:[#allocation89_spill] sm:$0xff] }
 0x26e   : > { %6544 = vmatprep.subr.bf16.mxu1 %v11912_v60  ;;  %12226 = vst [vmem:[#allocation16_spill] sm:$0xff] %v9647_v32  ;;  %12230 = vst [vmem:[#allocation31_spill] sm:$0xff] %v9661_v58  ;;  %v12232_v32 = vld [vmem:[#allocation37_spill] sm:$0xff]  ;;  %v3987_v3 = vadd.f32 %v12233_v22, %v3482_v16  ;;  %v9669_v49 = vmul.f32 %v1345_v54, %v1343_v37  ;;  %v3988_v13 = vadd.f32 %v9491_v10, %v3483_v41  ;;  %v12238_v54 = vld [vmem:[#allocation62_spill] sm:$0xff] }
 0x26f   : > { %v4294_v47 = vpop.f32.mrb[80].mxu0  ;;  %v9666_v57 = vadd.f32 %v12232_v32, %v3972_v33  ;;  %v1434_v30 = vadd.f32 %v9661_v58, %v9578_v8  ;;  %v9680_v33 = vmul.f32 %v1599_v50, %v1597_v43  ;;  %v1722_v16 = vsub.f32 1.0, %v9653_v40 }
 0x270   : > { %v6530_v18 = vpop.f32.mrb[81].mxu0  ;;  %12234 = vst [vmem:[#allocation22_spill] sm:$0xff] %v9669_v49  ;;  %v1724_v37 = vsub.f32 1.0, %v9255_v20  ;;  %v1437_v41 = vadd.f32 %v9625_v42, %v9553_v12  ;;  %v9699_v50 = vmul.f32 %v9255_v20, %v9653_v40  ;;  %v1725_v43 = vsub.f32 1.0, %v9258_v63  ;;  %v12261_v49 = vld [vmem:[#allocation65_spill] sm:$0xff] }
 0x271   : > { %v4297_v9 = vpop.f32.mrb[82].mxu0  ;;  %v12235_v18 = vld [vmem:[#allocation66_spill] sm:$0xff]  ;;  %12237 = vst [vmem:[#allocation127_spill] sm:$0xff] %v9680_v33 }
 0x272   : > { %v9673_v1 = vmul.f32 %v12220_v35, %v12235_v18  ;;  %v4301_v36 = vpack.c.bf16 %v4297_v9, %v4294_v47  ;;  %v6531_v7 = vpop.f32.mrb[83].mxu0  ;;  %v9686_v18 = vmul.f32 %v12216_v44, %v12238_v54  ;;  %v9691_v9 = vmul.f32 %v12231_v46, %v9625_v42  ;;  %12242 = vst [vmem:[#allocation102_spill] sm:$0xff] %v9699_v50  ;;  %v12246_v54 = vld [vmem:[#allocation132_spill] sm:$0xff]  ;;  %v12249_v42 = vld [vmem:[#allocation101_spill] sm:$0xff] }
 0x273   : > { %v9695_v7 = vmul.f32 %v1600_v2, %v1598_v4  ;;  %v12244_v4 = vld [vmem:[#allocation72_spill] sm:$0xff]  ;;  %v9717_v10 = vadd.f32 %v12246_v54, %v3988_v13 }
 0x274   : > { %12236 = vst [vmem:[#allocation91_spill] sm:$0xff] %v9673_v1  ;;  %12239 = vst [vmem:[#allocation159_spill] sm:$0xff] %v9686_v18  ;;  %6535 = vmatmul.mubr.msk.bf16.vlgmr.msra.gmra.mrb[80].mxu1 %vm225_vm0, %v4301_v36  ;;  %v12243_v36 = vld [vmem:[#allocation38_spill] sm:$0xff]  ;;  %v1723_v47 = vsub.f32 1.0, %v9673_v1  ;;  %v9713_v2 = vmul.f32 %v12220_v35, %v12244_v4  ;;  %v1435_v20 = vadd.f32 %v9691_v9, %v9590_v62  ;;  %v1847_v35 = vsub.f32 1.0, %v9686_v18  ;;  %v12248_v46 = vld [vmem:[#allocation80_spill] sm:$0xff] }
 0x275   : > { %12240 = vst [vmem:[#allocation57_spill] sm:$0xff] %v9691_v9  ;;  %12241 = vst [vmem:[#allocation27_spill] sm:$0xff] %v9695_v7  ;;  %6545 = vmatpush3.bf16.msk.msra.mxu1 %vm9067_vm6, %v12179_v24  ;;  %6546 = vmatprep.mubr.msk.bf16.mxu1 %vm7037_vm1, %v11912_v60  ;;  %v9707_v44 = vadd.f32 %v12243_v36, %v3987_v3  ;;  %v1450_v3 = vadd.f32 %v9699_v50, %v9615_v39  ;;  %v1849_v4 = vsub.f32 1.0, %v9282_v11 }
 0x276   : > { %12245 = vst [vmem:[#allocation29_spill] sm:$0xff] %v9713_v2  ;;  %6556 = vmatprep.subr.bf16.mxu1 %v11912_v60  ;;  %v1452_v36 = vadd.f32 %v9653_v40, %v9560_v38  ;;  %v9725_v7 = vmul.f32 %v1724_v37, %v1722_v16  ;;  %v9731_v13 = vmul.f32 %v12249_v42, %v12248_v46  ;;  %v12253_v37 = vld [vmem:[#allocation81_spill] sm:$0xff]  ;;  %v1848_v46 = vsub.f32 1.0, %v9713_v2 }
 0x277   : > { %v4549_v22 = vpop.f32.mrb[84].mxu0  ;;  %v9735_v9 = vmul.f32 %v9258_v63, %v9673_v1  ;;  %v1453_v50 = vadd.f32 %v9673_v1, %v9569_v61  ;;  %v9741_v16 = vmul.f32 %v9282_v11, %v9686_v18  ;;  %v9747_v25 = vmul.f32 %v1725_v43, %v1723_v47  ;;  %v12257_v63 = vld [vmem:[#allocation84_spill] sm:$0xff] }
 0x278   : > { %12247 = vst [vmem:[#allocation30_spill] sm:$0xff] %v9725_v7  ;;  %12250 = vst [vmem:[#allocation115_spill] sm:$0xff] %v9731_v13  ;;  %v6542_v54 = vpop.f32.mrb[85].mxu0  ;;  %v12254_v7 = vld [vmem:[#allocation103_spill] sm:$0xff]  ;;  %v9753_v58 = vmul.f32 %v12249_v42, %v12257_v63  ;;  %v1468_v47 = vadd.f32 %v9686_v18, %v9584_v6  ;;  %v9761_v43 = vmul.f32 %v1849_v4, %v1847_v35  ;;  %v2102_v63 = vsub.f32 1.0, %v9731_v13  ;;  %v12264_v35 = vld [vmem:[#allocation86_spill] sm:$0xff] }
 0x279   : > { %12251 = vst [vmem:[#allocation28_spill] sm:$0xff] %v9735_v9  ;;  %12252 = vst [vmem:[#allocation75_spill] sm:$0xff] %v9741_v16  ;;  %v9745_v40 = vmul.f32 %v12254_v7, %v12253_v37  ;;  %v4552_v33 = vpop.f32.mrb[86].mxu0  ;;  %v1850_v54 = vsub.f32 1.0, %v9297_v19  ;;  %v1451_v11 = vadd.f32 %v9735_v9, %v9621_v15  ;;  %v1466_v37 = vadd.f32 %v9741_v16, %v9644_v56  ;;  %v12263_v16 = vld [vmem:[#allocation67_spill] sm:$0xff]  ;;  %v12267_v56 = vld [vmem:[#allocation88_spill] sm:$0xff] }
 0x27a   : > { %12256 = vst [vmem:[#allocation34_spill] sm:$0xff] %v9747_v25  ;;  %12258 = vst [vmem:[#allocation23_spill] sm:$0xff] %v9753_v58  ;;  %v4556_v1 = vpack.c.bf16 %v4552_v33, %v4549_v22  ;;  %v6543_v32 = vpop.f32.mrb[87].mxu0  ;;  %v9765_v25 = vmul.f32 %v9297_v19, %v9713_v2  ;;  %v2104_v22 = vsub.f32 1.0, %v12261_v49  ;;  %v2105_v18 = vsub.f32 1.0, %v12263_v16 }
 0x27b   : > { %12255 = vst [vmem:[#allocation114_spill] sm:$0xff] %v9745_v40  ;;  %12259 = vst [vmem:[#allocation95_spill] sm:$0xff] %v9761_v43  ;;  %v9772_v32 = vmul.f32 %v12261_v49, %v9731_v13  ;;  %v2103_v33 = vsub.f32 1.0, %v9745_v40  ;;  %v9778_v4 = vmul.f32 %v12254_v7, %v12264_v35  ;;  %v9787_v49 = vmul.f32 %v1850_v54, %v1848_v46 }
 0x27c   : > { %12260 = vst [vmem:[#allocation130_spill] sm:$0xff] %v9765_v25  ;;  %6547 = vmatmul.mubr.msk.bf16.vlgmr.msra.gmra.mrb[84].mxu1 %vm225_vm0, %v4556_v1  ;;  %v1469_v1 = vadd.f32 %v9713_v2, %v9599_v45  ;;  %v2227_v19 = vsub.f32 1.0, %v9753_v58  ;;  %v2229_v43 = vsub.f32 1.0, %v9263_v29  ;;  %v1467_v35 = vadd.f32 %v9765_v25, %v9657_v34  ;;  %v12272_v25 = vld [vmem:[#allocation90_spill] sm:$0xff] }
 0x27d   : > { %12262 = vst [vmem:[#allocation104_spill] sm:$0xff] %v9772_v32  ;;  %12265 = vst [vmem:[#allocation117_spill] sm:$0xff] %v9778_v4  ;;  %6557 = vmatpush3.bf16.msk.msra.mxu1 %vm9067_vm6, %v12179_v24  ;;  %6558 = vmatprep.mubr.msk.bf16.mxu1 %vm7037_vm1, %v11912_v60  ;;  %v1939_v9 = vadd.f32 %v9772_v32, %v1434_v30  ;;  %v1941_v6 = vadd.f32 %v9731_v13, %v1436_v23 }
 0x27e   : > { %12266 = vst [vmem:[#allocation36_spill] sm:$0xff] %v9787_v49  ;;  %6568 = vmatprep.subr.bf16.mxu1 %v11912_v60  ;;  %v9798_v61 = vmul.f32 %v12249_v42, %v12267_v56  ;;  %v9800_v46 = vmul.f32 %v2104_v22, %v2102_v63  ;;  %v9804_v54 = vmul.f32 %v12263_v16, %v9745_v40  ;;  %v2228_v42 = vsub.f32 1.0, %v9778_v4 }
 0x27f   : > { %v4674_v2 = vpop.f32.mrb[88].mxu0  ;;  %v9808_v49 = vmul.f32 %v9263_v29, %v9753_v58  ;;  %v9812_v30 = vmul.f32 %v12254_v7, %v12272_v25  ;;  %v1942_v13 = vadd.f32 %v9745_v40, %v1437_v41  ;;  %v9815_v56 = vmul.f32 %v2105_v18, %v2103_v33 }
 0x280   : > { %12268 = vst [vmem:[#allocation69_spill] sm:$0xff] %v9798_v61  ;;  %12269 = vst [vmem:[#allocation39_spill] sm:$0xff] %v9800_v46  ;;  %v6554_v23 = vpop.f32.mrb[89].mxu0  ;;  %v2230_v63 = vsub.f32 1.0, %v9266_v14  ;;  %v1940_v16 = vadd.f32 %v9804_v54, %v1435_v20  ;;  %v1957_v29 = vadd.f32 %v9753_v58, %v1452_v36  ;;  %v9822_v32 = vmul.f32 %v2229_v43, %v2227_v19  ;;  %v12278_v19 = vld [vmem:[#allocation96_spill] sm:$0xff] }
 0x281   : > { %12270 = vst [vmem:[#allocation74_spill] sm:$0xff] %v9804_v54  ;;  %12271 = vst [vmem:[#allocation24_spill] sm:$0xff] %v9808_v49  ;;  %v4677_v22 = vpop.f32.mrb[90].mxu0  ;;  %v1955_v46 = vadd.f32 %v9808_v49, %v1450_v3  ;;  %v9826_v41 = vmul.f32 %v9266_v14, %v9778_v4  ;;  %v2352_v18 = vsub.f32 1.0, %v9798_v61  ;;  %v2354_v33 = vsub.f32 1.0, %v9309_v5  ;;  %v12279_v3 = vld [vmem:[#allocation116_spill] sm:$0xff] }
 0x282   : > { %12273 = vst [vmem:[#allocation40_spill] sm:$0xff] %v9812_v30  ;;  %12274 = vst [vmem:[#allocation45_spill] sm:$0xff] %v9815_v56  ;;  %v4681_v25 = vpack.c.bf16 %v4677_v22, %v4674_v2  ;;  %v6555_v7 = vpop.f32.mrb[91].mxu0  ;;  %v9832_v23 = vmul.f32 %v9309_v5, %v9798_v61  ;;  %v2353_v20 = vsub.f32 1.0, %v9812_v30  ;;  %v2355_v36 = vsub.f32 1.0, %v9312_v51  ;;  %v12282_v14 = vld [vmem:[#allocation98_spill] sm:$0xff] }
 0x283   : > { %12275 = vst [vmem:[#allocation25_spill] sm:$0xff] %v9822_v32  ;;  %12276 = vst [vmem:[#allocation46_spill] sm:$0xff] %v9826_v41  ;;  %v9838_v2 = vmul.f32 %v12279_v3, %v12278_v19  ;;  %v1956_v43 = vadd.f32 %v9826_v41, %v1451_v11  ;;  %v1958_v22 = vadd.f32 %v9778_v4, %v1453_v50  ;;  %v12283_v32 = vld [vmem:[#allocation126_spill] sm:$0xff]  ;;  %v12285_v11 = vld [vmem:[#allocation97_spill] sm:$0xff] }
 0x284   : > { %12277 = vst [vmem:[#allocation49_spill] sm:$0xff] %v9832_v23  ;;  %6559 = vmatmul.mubr.msk.bf16.vlgmr.msra.gmra.mrb[88].mxu1 %vm225_vm0, %v4681_v25  ;;  %v9843_v7 = vmul.f32 %v2230_v63, %v2228_v42  ;;  %v9847_v5 = vmul.f32 %v12283_v32, %v12282_v14  ;;  %v1971_v19 = vadd.f32 %v9832_v23, %v1466_v37  ;;  %v12295_v4 = vld [vmem:[#allocation15_spill] sm:$0xff]  ;;  %v12358_v49 = vld [vmem:[#allocation133_spill] sm:$0xff] }
 0x285   : > { %12280 = vst [vmem:[#allocation54_spill] sm:$0xff] %v9838_v2  ;;  %6569 = vmatpush3.bf16.msk.msra.mxu1 %vm9067_vm6, %v12179_v24  ;;  %6570 = vmatprep.mubr.msk.bf16.mxu1 %vm7037_vm1, %v11912_v60  ;;  %v1973_v25 = vadd.f32 %v9798_v61, %v1468_v47  ;;  %v9858_v50 = vmul.f32 %v12279_v3, %v12285_v11  ;;  %v12289_v24 = vld [vmem:[#allocation14_spill] sm:$0xff]  ;;  %v12359_v56 = vld [vmem:[#allocation147_spill] sm:$0xff] }
 0x286   : > { %12281 = vst [vmem:[#allocation83_spill] sm:$0xff] %v9843_v7  ;;  %12284 = vst [vmem:[#allocation61_spill] sm:$0xff] %v9847_v5  ;;  %v9860_v42 = vmul.f32 %v2354_v33, %v2352_v18  ;;  %v9864_v14 = vmul.f32 %v9312_v51, %v9812_v30  ;;  %v1974_v17 = vadd.f32 %v9812_v30, %v1469_v1  ;;  %v12292_v47 = vld [vmem:[#allocation82_spill] sm:$0xff]  ;;  %v2607_v18 = vsub.f32 1.0, %v9838_v2 }
 0x287   : > { %12286 = vst [vmem:[#allocation92_spill] sm:$0xff] %v9858_v50  ;;  %v9869_v63 = vmul.f32 %v12283_v32, %v12289_v24  ;;  %v4799_v7 = vpop.f32.mrb[92].mxu0  ;;  %v9871_v37 = vmul.f32 %v2355_v36, %v2353_v20  ;;  %v9875_v23 = vmul.f32 %v12292_v47, %v9838_v2  ;;  %v2609_v33 = vsub.f32 1.0, %v12292_v47  ;;  %v12294_v24 = vld [vmem:[#allocation85_spill] sm:$0xff] }
 0x288   : > { %12287 = vst [vmem:[#allocation58_spill] sm:$0xff] %v9860_v42  ;;  %12288 = vst [vmem:[#allocation66_spill] sm:$0xff] %v9864_v14  ;;  %v6566_v11 = vpop.f32.mrb[93].mxu0  ;;  %v1972_v51 = vadd.f32 %v9864_v14, %v1467_v35  ;;  %v2446_v1 = vadd.f32 %v9838_v2, %v1941_v6  ;;  %v2608_v30 = vsub.f32 1.0, %v9847_v5  ;;  %v2610_v42 = vsub.f32 1.0, %v12294_v24 }
 0x289   : > { %12290 = vst [vmem:[#allocation62_spill] sm:$0xff] %v9869_v63  ;;  %12291 = vst [vmem:[#allocation72_spill] sm:$0xff] %v9871_v37  ;;  %v4802_v61 = vpop.f32.mrb[94].mxu0  ;;  %v2444_v20 = vadd.f32 %v9875_v23, %v1939_v9  ;;  %v2732_v36 = vsub.f32 1.0, %v9858_v50  ;;  %v2734_v37 = vsub.f32 1.0, %v9275_v31  ;;  %v9888_v41 = vmul.f32 %v12279_v3, %v12295_v4  ;;  %v12300_v4 = vld [vmem:[#allocation107_spill] sm:$0xff] }
 0x28a   : > { %12293 = vst [vmem:[#allocation80_spill] sm:$0xff] %v9875_v23  ;;  %v4806_v11 = vpack.c.bf16 %v4802_v61, %v4799_v7  ;;  %v6567_v47 = vpop.f32.mrb[95].mxu0  ;;  %v9892_v6 = vmul.f32 %v12294_v24, %v9847_v5  ;;  %v2733_v35 = vsub.f32 1.0, %v9869_v63  ;;  %v2735_v2 = vsub.f32 1.0, %v9279_v52  ;;  %v4959_v24 = vld [vmem:[#allocation2 + $0xa0] sm:$0xff] }
 0x28b   : > { %12296 = vst [vmem:[#allocation101_spill] sm:$0xff] %v9888_v41  ;;  %v9896_v14 = vmul.f32 %v2609_v33, %v2607_v18  ;;  %v2447_v9 = vadd.f32 %v9847_v5, %v1942_v13  ;;  %v9901_v23 = vmul.f32 %v9275_v31, %v9858_v50  ;;  %v9905_v61 = vmul.f32 %v12283_v32, %v12300_v4  ;;  %v12308_v4 = vld [vmem:[#allocation106_spill] sm:$0xff] }
 0x28c   : > { %12297 = vst [vmem:[#allocation81_spill] sm:$0xff] %v9892_v6  ;;  %6571 = vmatmul.mubr.msk.bf16.vlgmr.msra.gmra.mrb[92].mxu1 %vm225_vm0, %v4806_v11  ;;  %v2445_v3 = vadd.f32 %v9892_v6, %v1940_v16  ;;  %v9909_v7 = vmul.f32 %v2610_v42, %v2608_v30  ;;  %v9912_v47 = vadd.f32 %v9858_v50, %v1957_v29  ;;  %v2857_v32 = vsub.f32 1.0, %v9888_v41  ;;  %v12350_v5 = vld [vmem:[#allocation146_spill] sm:$0xff] }
 0x28d   : > { %12298 = vst [vmem:[#allocation103_spill] sm:$0xff] %v9896_v14  ;;  %12299 = vst [vmem:[#allocation84_spill] sm:$0xff] %v9901_v23  ;;  %v9916_v13 = vmul.f32 %v9279_v52, %v9869_v63  ;;  %v9919_v18 = vadd.f32 %v9901_v23, %v1955_v46  ;;  %v9921_v33 = vmul.f32 %v2734_v37, %v2732_v36  ;;  %v2859_v11 = vsub.f32 1.0, %v9315_v0 }
 0x28e   : > { %12301 = vst [vmem:[#allocation86_spill] sm:$0xff] %v9905_v61  ;;  %12302 = vst [vmem:[#allocation88_spill] sm:$0xff] %v9909_v7  ;;  %v9929_v30 = vadd.f32 %v9869_v63, %v1958_v22  ;;  %v9931_v29 = vmul.f32 %v2735_v2, %v2733_v35  ;;  %v9935_v42 = vmul.f32 %v9315_v0, %v9888_v41  ;;  %v2858_v37 = vsub.f32 1.0, %v9905_v61  ;;  %v4904_v22 = vld [vmem:[#allocation2 + $0x28] sm:$0xff]  ;;  %v4903_v63 = vld [vmem:[#allocation2 + $0x20] sm:$0xff] }
 0x28f   : > { %12303 = vst [vmem:[#allocation90_spill] sm:$0xff] %v9916_v13  ;;  %12304 = vst [vmem:[#allocation96_spill] sm:$0xff] %v9921_v33  ;;  %v9926_v16 = vadd.f32 %v9916_v13, %v1956_v43  ;;  %v9939_v46 = vmul.f32 %v9323_v21, %v9905_v61  ;;  %v2860_v36 = vsub.f32 1.0, %v9323_v21  ;;  %v12309_v43 = vld [vmem:[#allocation128_spill] sm:$0xff]  ;;  %v9951_v35 = vadd.f32 %v9888_v41, %v1973_v25 }
 0x290   : > { %12305 = vst [vmem:[#allocation116_spill] sm:$0xff] %v9931_v29  ;;  %12306 = vst [vmem:[#allocation98_spill] sm:$0xff] %v9935_v42  ;;  %v9945_v52 = vmul.f32 %v12309_v43, %v12308_v4  ;;  %v9948_v2 = vadd.f32 %v9935_v42, %v1971_v19  ;;  %v4906_v0 = vadd.f32 %v4904_v22, %v9666_v57  ;;  %v12312_v33 = vld [vmem:[#allocation20_spill] sm:$0xff]  ;;  %v5089_v19 = vld [vmem:[#allocation2 + $0x10] sm:$0xff] }
 0x291   : > { %12307 = vst [vmem:[#allocation126_spill] sm:$0xff] %v9939_v46  ;;  %v4905_v29 = vadd.f32 %v4903_v63, %v9638_v27  ;;  %v9955_v13 = vmul.f32 %v2859_v11, %v2857_v32  ;;  %v9958_v21 = vadd.f32 %v9939_v46, %v1972_v51  ;;  %v9961_v4 = vadd.f32 %v9905_v61, %v1974_v17  ;;  %v5087_v42 = vld [vmem:[#allocation2] sm:$0xff]  ;;  %v12314_v22 = vld [vmem:[#allocation113_spill] sm:$0xff]  ;;  %v12315_v27 = vld [vmem:[#allocation150_spill] sm:$0xff] }
 0x292   : > { %12310 = vst [vmem:[#allocation97_spill] sm:$0xff] %v9945_v52  ;;  %v9965_v31 = vmul.f32 %v12312_v33, %v9945_v52  ;;  %v3112_v25 = vsub.f32 1.0, %v9945_v52  ;;  %v3114_v57 = vsub.f32 1.0, %v12312_v33  ;;  %v9971_v63 = vmul.f32 %v12315_v27, %v12314_v22  ;;  %4908 = vst.msk [vmem:[#allocation2 + $0x28] sm:$0xff] %vm225_vm0, %v4906_v0  ;;  %v4911_v61 = vld [vmem:[#allocation2 + $0x38] sm:$0xff]  ;;  %v4910_v22 = vld [vmem:[#allocation2 + $0x30] sm:$0xff] }
 0x293   : > { %12311 = vst [vmem:[#allocation14_spill] sm:$0xff] %v9955_v13  ;;  %v5149_v51 = vsel %vm225_vm0, %v5089_v19, 0.0  ;;  %4907 = vst.msk [vmem:[#allocation2 + $0x20] sm:$0xff] %vm225_vm0, %v4905_v29  ;;  %v9976_v17 = vmul.f32 %v2860_v36, %v2858_v37  ;;  %v9982_v11 = vadd.f32 %v9945_v52, %v2446_v1  ;;  %v5143_v33 = vsel %vm225_vm0, %v5087_v42, 0.0  ;;  %v12319_v19 = vld [vmem:[#allocation21_spill] sm:$0xff]  ;;  %v12321_v1 = vld [vmem:[#allocation122_spill] sm:$0xff] }
 0x294   : > { %12313 = vst [vmem:[#allocation15_spill] sm:$0xff] %v9965_v31  ;;  %12316 = vst [vmem:[#allocation107_spill] sm:$0xff] %v9971_v63  ;;  %v9979_v32 = vadd.f32 %v9965_v31, %v2444_v20  ;;  %5150 = vadd.xlane.f32.xlu1 %v5149_v51  ;;  %v9985_v46 = vmul.f32 %v3114_v57, %v3112_v25  ;;  %v9989_v0 = vmul.f32 %v12319_v19, %v9971_v63  ;;  %v12322_v36 = vld [vmem:[#allocation77_spill] sm:$0xff]  ;;  %v5090_v42 = vld [vmem:[#allocation2 + $0x18] sm:$0xff] }
 0x295   : > { %12317 = vst [vmem:[#allocation106_spill] sm:$0xff] %v9976_v17  ;;  %v2952_v29 = vadd.f32 %v9971_v63, %v2447_v9  ;;  %v3113_v37 = vsub.f32 1.0, %v9971_v63  ;;  %5144 = vadd.xlane.f32.xlu0 %v5143_v33  ;;  %v3115_v20 = vsub.f32 1.0, %v12319_v19  ;;  %v9996_v51 = vmul.f32 %v12322_v36, %v12321_v1  ;;  %v5088_v31 = vld [vmem:[#allocation2 + $0x8] sm:$0xff]  ;;  %v12324_v9 = vld [vmem:[#allocation142_spill] sm:$0xff]  ;;  %v12327_v33 = vld [vmem:[#allocation108_spill] sm:$0xff] }
 0x296   : > { %12318 = vst [vmem:[#allocation128_spill] sm:$0xff] %v9985_v46  ;;  %12320 = vst [vmem:[#allocation113_spill] sm:$0xff] %v9989_v0  ;;  %v4913_v25 = vadd.f32 %v4911_v61, %v9717_v10  ;;  %v4912_v57 = vadd.f32 %v4910_v22, %v9707_v44  ;;  %v1059_v46 = vpop.f32.mrb[0].mxu1  ;;  %v10001_v52 = vadd.f32 %v9989_v0, %v2445_v3  ;;  %v12325_v17 = vld [vmem:[#allocation158_spill] sm:$0xff]  ;;  %v5152_v1 = vsel %vm225_vm0, %v5090_v42, 0.0  ;;  %v12330_v22 = vld [vmem:[#allocation63_spill] sm:$0xff] }
 0x297   : > { %12323 = vst [vmem:[#allocation150_spill] sm:$0xff] %v9996_v51  ;;  %v10005_v63 = vmul.f32 %v12325_v17, %v12324_v9  ;;  %v10009_v19 = vmul.f32 %v12309_v43, %v12327_v33  ;;  %vm1066_vm1 = vcmp.gt.f32.partialorder %v1059_v46, 0.5  ;;  %v6296_v13 = vpop.f32.mrb[1].mxu1  ;;  %v10012_v41 = vmul.f32 %v3115_v20, %v3113_v37  ;;  %v12331_v9 = vld [vmem:[#allocation161_spill] sm:$0xff]  ;;  %v12333_v46 = vld [vmem:[#allocation123_spill] sm:$0xff] }
 0x298   : > { %v3457_v10 = vadd.f32 %v9996_v51, %v2952_v29  ;;  %5153 = vadd.xlane.f32.xlu1 %v5152_v1  ;;  %v5146_v44 = vsel %vm225_vm0, %v5088_v31, 0.0  ;;  %4915 = vst.msk [vmem:[#allocation2 + $0x38] sm:$0xff] %vm225_vm0, %v4913_v25  ;;  %4914 = vst.msk [vmem:[#allocation2 + $0x30] sm:$0xff] %vm225_vm0, %v4912_v57  ;;  %v5972_v61 = vsel %vm1066_vm1, 1.0, %v11912_v60  ;;  %v1062_v3 = vpop.f32.mrb[2].mxu1  ;;  %v10021_v33 = vmul.f32 %v12331_v9, %v12330_v22  ;;  %v12334_v37 = vld [vmem:[#allocation153_spill] sm:$0xff] }
 0x299   : > { %12326 = vst [vmem:[#allocation122_spill] sm:$0xff] %v10005_v63  ;;  %12328 = vst [vmem:[#allocation77_spill] sm:$0xff] %v10009_v19  ;;  %v2967_v13 = vadd.f32 %v10009_v19, %v9912_v47  ;;  %v10027_v29 = vmul.f32 %v12334_v37, %v12333_v46  ;;  %5147 = vadd.xlane.f32.xlu0 %v5146_v44  ;;  %v1072_v31 = vmul.f32 0.22119921, %v5972_v61  ;;  %v1076_v20 = vmul.f32 0.39346933, %v5972_v61 }
 0x29a   : > { %12329 = vst [vmem:[#allocation142_spill] sm:$0xff] %v10012_v41  ;;  %12332 = vst [vmem:[#allocation158_spill] sm:$0xff] %v10021_v33  ;;  %vm1067_vm10 = vcmp.gt.f32.partialorder %v1062_v3, 0.5  ;;  %v6297_v42 = vpop.f32.mrb[3].mxu1  ;;  %v3962_v25 = vadd.f32 %v10005_v63, %v3457_v10  ;;  %v4953_v1 = vld [vmem:[#allocation2 + $0x98] sm:$0xff]  ;;  %v10033_v22 = vmul.f32 %v9339_v53, %v10009_v19  ;;  %v3237_v47 = vsub.f32 1.0, %v10009_v19 }
 0x29b   : > { %12335 = vst [vmem:[#allocation108_spill] sm:$0xff] %v10027_v29  ;;  %v5973_v57 = vsel %vm1067_vm10, 1.0, %v11912_v60  ;;  %v3239_v41 = vsub.f32 1.0, %v9339_v53  ;;  %v10037_v46 = vsub.f32 1.0, %v1072_v31  ;;  %v1078_v44 = vsub.f32 1.0, %v1076_v20  ;;  %v12342_v53 = vld [vmem:[#allocation160_spill] sm:$0xff] }
 0x29c   : > { %12336 = vst [vmem:[#allocation63_spill] sm:$0xff] %v10033_v22  ;;  %v1073_v0 = vmul.f32 0.22119921, %v5973_v57  ;;  %v1077_v61 = vmul.f32 0.39346933, %v5973_v57  ;;  %v4467_v3 = vadd.f32 %v10021_v33, %v3962_v25  ;;  %v10042_v10 = vadd.f32 %v10033_v22, %v9919_v18 }
 0x29d   : > { %v10044_v42 = vmul.f32 %v3239_v41, %v3237_v47  ;;  %v3472_v50 = vadd.f32 %v10027_v29, %v2967_v13  ;;  %v10048_v23 = vmul.f32 %v1078_v44, %v9578_v8  ;;  %v10052_v31 = vmul.f32 %v10037_v46, %v9545_v26  ;;  %v12338_v47 = vld [vmem:[#allocation145_spill] sm:$0xff]  ;;  %v12341_v8 = vld [vmem:[#allocation78_spill] sm:$0xff] }
 0x29e   : > { %v10056_v20 = vmul.f32 %v10037_v46, %v12203_v48  ;;  %v10059_v25 = vmul.f32 %v9586_v59, %v1078_v44  ;;  %v10061_v18 = vsub.f32 1.0, %v1073_v0  ;;  %v1079_v41 = vsub.f32 1.0, %v1077_v61  ;;  %v12339_v13 = vld [vmem:[#allocation157_spill] sm:$0xff]  ;;  %v12344_v26 = vld [vmem:[#allocation118_spill] sm:$0xff] }
 0x29f   : > { %12337 = vst [vmem:[#allocation161_spill] sm:$0xff] %v10044_v42  ;;  %v4955_v57 = vadd.f32 %v4953_v1, %v4467_v3  ;;  %v10065_v42 = vmul.f32 %v12339_v13, %v12338_v47  ;;  %v10069_v19 = vmul.f32 %v12342_v53, %v12341_v8  ;;  %v10073_v22 = vmul.f32 %v12315_v27, %v12344_v26  ;;  %v12346_v59 = vld [vmem:[#allocation129_spill] sm:$0xff]  ;;  %v5091_v1 = vld [vmem:[#allocation2 + $0x20] sm:$0xff]  ;;  %v5093_v14 = vld [vmem:[#allocation2 + $0x30] sm:$0xff] }
 0x2a0   : > { %v3240_v48 = vsub.f32 1.0, %v9357_v28  ;;  %v10078_v0 = vmul.f32 %v12322_v36, %v12346_v59  ;;  %v5092_v44 = vld [vmem:[#allocation2 + $0x28] sm:$0xff]  ;;  %v10081_v61 = vmul.f32 %v1079_v41, %v9590_v62  ;;  %v10085_v3 = vmul.f32 %v10061_v18, %v9553_v12  ;;  %v12348_v8 = vld [vmem:[#allocation100_spill] sm:$0xff] }
 0x2a1   : > { %12340 = vst [vmem:[#allocation123_spill] sm:$0xff] %v10065_v42  ;;  %12343 = vst [vmem:[#allocation153_spill] sm:$0xff] %v10069_v19  ;;  %v10089_v47 = vmul.f32 %v10061_v18, %v12207_v55  ;;  %v10092_v26 = vmul.f32 %v12348_v8, %v1079_v41  ;;  %v3977_v59 = vadd.f32 %v10065_v42, %v3472_v50  ;;  %v3238_v12 = vsub.f32 1.0, %v10073_v22  ;;  %v12352_v41 = vld [vmem:[#allocation154_spill] sm:$0xff] }
 0x2a2   : > { %12345 = vst [vmem:[#allocation145_spill] sm:$0xff] %v10073_v22  ;;  %12347 = vst [vmem:[#allocation157_spill] sm:$0xff] %v10078_v0  ;;  %v10098_v7 = vmul.f32 %v9357_v28, %v10073_v22  ;;  %v2968_v62 = vadd.f32 %v10073_v22, %v9929_v30  ;;  %v10105_v55 = vmul.f32 %v12325_v17, %v12350_v5  ;;  %v5158_v50 = vsel %vm225_vm0, %v5092_v44, 0.0  ;;  %v5094_v28 = vld [vmem:[#allocation2 + $0x38] sm:$0xff]  ;;  %v12357_v44 = vld [vmem:[#allocation53_spill] sm:$0xff] }
 0x2a3   : > { %4957 = vst.msk [vmem:[#allocation2 + $0x98] sm:$0xff] %vm225_vm0, %v4955_v57  ;;  %v10109_v8 = vmul.f32 %v12331_v9, %v12352_v41  ;;  %v5155_v57 = vsel %vm225_vm0, %v5091_v1, 0.0  ;;  %v4482_v6 = vadd.f32 %v10069_v19, %v3977_v59  ;;  %v10118_v22 = vmul.f32 %v3240_v48, %v3238_v12  ;;  %5159 = vadd.xlane.f32.xlu1 %v5158_v50  ;;  %v12355_v41 = vld [vmem:[#allocation112_spill] sm:$0xff]  ;;  %v12361_v12 = vld [vmem:[#allocation155_spill] sm:$0xff] }
 0x2a4   : > { %12349 = vst [vmem:[#allocation78_spill] sm:$0xff] %v10098_v7  ;;  %12351 = vst [vmem:[#allocation160_spill] sm:$0xff] %v10105_v55  ;;  %v10116_v30 = vadd.f32 %v10098_v7, %v9926_v16  ;;  %v3473_v5 = vadd.f32 %v10078_v0, %v2968_v62  ;;  %5156 = vadd.xlane.f32.xlu0 %v5155_v57  ;;  %v10123_v58 = vmul.f32 %v12309_v43, %v12355_v41  ;;  %v4960_v57 = vld [vmem:[#allocation2 + $0xa8] sm:$0xff] }
 0x2a5   : > { %12353 = vst [vmem:[#allocation118_spill] sm:$0xff] %v10109_v8  ;;  %12354 = vst [vmem:[#allocation129_spill] sm:$0xff] %v10118_v22  ;;  %v3364_v1 = vsub.f32 1.0, %v12357_v44  ;;  %v10128_v59 = vmul.f32 %v12334_v37, %v12358_v49  ;;  %v10132_v16 = vmul.f32 %v12339_v13, %v12359_v56  ;;  %v4961_v48 = vadd.f32 %v4959_v24, %v4482_v6 }
 0x2a6   : > { %12356 = vst [vmem:[#allocation100_spill] sm:$0xff] %v10123_v58  ;;  %v3978_v62 = vadd.f32 %v10105_v55, %v3473_v5  ;;  %v10137_v50 = vmul.f32 %v12342_v53, %v12361_v12  ;;  %v5164_v43 = vsel %vm225_vm0, %v5094_v28, 0.0  ;;  %v10142_v41 = vmul.f32 %v12357_v44, %v10123_v58  ;;  %v12364_v5 = vld [vmem:[#allocation120_spill] sm:$0xff]  ;;  %v12367_v44 = vld [vmem:[#allocation134_spill] sm:$0xff] }
 0x2a7   : > { %12360 = vst [vmem:[#allocation146_spill] sm:$0xff] %v10132_v16  ;;  %v2983_v49 = vadd.f32 %v10123_v58, %v9951_v35  ;;  %v3362_v56 = vsub.f32 1.0, %v10123_v58  ;;  %v5161_v24 = vsel %vm225_vm0, %v5093_v14, 0.0  ;;  %4963 = vst.msk [vmem:[#allocation2 + $0xa0] sm:$0xff] %vm225_vm0, %v4961_v48  ;;  %5165 = vadd.xlane.f32.xlu1 %v5164_v43  ;;  %v10152_v28 = vmul.f32 %v12315_v27, %v12364_v5  ;;  %v12366_v12 = vld [vmem:[#allocation68_spill] sm:$0xff]  ;;  %v5104_v35 = vld [vmem:[#allocation2 + $0x88] sm:$0xff] }
 0x2a8   : > { %12362 = vst [vmem:[#allocation154_spill] sm:$0xff] %v10137_v50  ;;  %12363 = vst [vmem:[#allocation112_spill] sm:$0xff] %v10142_v41  ;;  %v4483_v6 = vadd.f32 %v10109_v8, %v3978_v62  ;;  %v3365_v22 = vsub.f32 1.0, %v12366_v12  ;;  %v10157_v7 = vmul.f32 %v12322_v36, %v12367_v44  ;;  %v10161_v58 = vadd.f32 %v10142_v41, %v9948_v2  ;;  %v12369_v62 = vld [vmem:[#allocation148_spill] sm:$0xff] }
 0x2a9   : > { %12365 = vst [vmem:[#allocation133_spill] sm:$0xff] %v10152_v28  ;;  %v10163_v14 = vmul.f32 %v3364_v1, %v3362_v56  ;;  %v3488_v48 = vadd.f32 %v10128_v59, %v2983_v49  ;;  %5162 = vadd.xlane.f32.xlu0 %v5161_v24  ;;  %v10168_v27 = vmul.f32 %v12325_v17, %v12369_v62  ;;  %v1184_v43 = vpop.f32.mrb[4].mxu1  ;;  %v3363_v2 = vsub.f32 1.0, %v10152_v28  ;;  %v12372_v56 = vld [vmem:[#allocation156_spill] sm:$0xff] }
 0x2aa   : > { %v4962_v5 = vadd.f32 %v4960_v57, %v4483_v6  ;;  %v10172_v36 = vmul.f32 %v12366_v12, %v10152_v28  ;;  %v2984_v44 = vadd.f32 %v10152_v28, %v9961_v4  ;;  %vm1191_vm11 = vcmp.gt.f32.partialorder %v1184_v43, 0.5  ;;  %v6308_v1 = vpop.f32.mrb[5].mxu1  ;;  %v5103_v57 = vld [vmem:[#allocation2 + $0x80] sm:$0xff]  ;;  %v4966_v12 = vld [vmem:[#allocation2 + $0xb0] sm:$0xff] }
 0x2ab   : > { %12368 = vst [vmem:[#allocation147_spill] sm:$0xff] %v10163_v14  ;;  %12370 = vst [vmem:[#allocation155_spill] sm:$0xff] %v10168_v27  ;;  %v3993_v49 = vadd.f32 %v10132_v16, %v3488_v48  ;;  %v10180_v24 = vmul.f32 %v12331_v9, %v12372_v56  ;;  %v5194_v17 = vsel %vm225_vm0, %v5104_v35, 0.0  ;;  %v5978_v6 = vsel %vm1191_vm11, 1.0, %v11912_v60  ;;  %v1187_v62 = vpop.f32.mrb[6].mxu1  ;;  %v4967_v14 = vld [vmem:[#allocation2 + $0xb8] sm:$0xff] }
 0x2ac   : > { %12371 = vst [vmem:[#allocation120_spill] sm:$0xff] %v10172_v36  ;;  %4964 = vst.msk [vmem:[#allocation2 + $0xa8] sm:$0xff] %vm225_vm0, %v4962_v5  ;;  %v10187_v4 = vadd.f32 %v10172_v36, %v9958_v21  ;;  %v10189_v43 = vmul.f32 %v3365_v22, %v3363_v2  ;;  %v3489_v48 = vadd.f32 %v10157_v7, %v2984_v44  ;;  %5195 = vadd.xlane.f32.xlu1 %v5194_v17  ;;  %v6309_v35 = vpop.f32.mrb[7].mxu1  ;;  %v12376_v21 = vld [vmem:[#allocation119_spill] sm:$0xff]  ;;  %v12384_v36 = vld [vmem:[#allocation76_spill] sm:$0xff] }
 0x2ad   : > { %12373 = vst [vmem:[#allocation134_spill] sm:$0xff] %v10180_v24  ;;  %v1197_v9 = vmul.f32 0.22119921, %v5978_v6  ;;  %v1201_v1 = vmul.f32 0.39346933, %v5978_v6  ;;  %vm1192_vm7 = vcmp.gt.f32.partialorder %v1187_v62, 0.5  ;;  %v4498_v56 = vadd.f32 %v10137_v50, %v3993_v49 }
 0x2ae   : > { %12374 = vst [vmem:[#allocation148_spill] sm:$0xff] %v10187_v4  ;;  %12375 = vst [vmem:[#allocation156_spill] sm:$0xff] %v10189_v43  ;;  %v5979_v28 = vsel %vm1192_vm7, 1.0, %v11912_v60  ;;  %v3994_v5 = vadd.f32 %v10168_v27, %v3489_v48  ;;  %v5191_v41 = vsel %vm225_vm0, %v5103_v57, 0.0  ;;  %v10198_v22 = vmul.f32 %v12334_v37, %v12376_v21  ;;  %v12378_v35 = vld [vmem:[#allocation110_spill] sm:$0xff]  ;;  %v12382_v21 = vld [vmem:[#allocation140_spill] sm:$0xff] }
 0x2af   : > { %v10200_v2 = vsub.f32 1.0, %v1197_v9  ;;  %v1203_v44 = vsub.f32 1.0, %v1201_v1  ;;  %v1198_v17 = vmul.f32 0.22119921, %v5979_v28  ;;  %v1202_v6 = vmul.f32 0.39346933, %v5979_v28  ;;  %5192 = vadd.xlane.f32.xlu0 %v5191_v41 }
 0x2b0   : > { %12377 = vst [vmem:[#allocation119_spill] sm:$0xff] %v10198_v22  ;;  %v4968_v62 = vadd.f32 %v4966_v12, %v4498_v56  ;;  %v4499_v49 = vadd.f32 %v10180_v24, %v3994_v5  ;;  %v10205_v43 = vmul.f32 %v12378_v35, %v10198_v22  ;;  %v3456_v57 = vadd.f32 %v10198_v22, %v9982_v11  ;;  %v12380_v9 = vld [vmem:[#allocation93_spill] sm:$0xff]  ;;  %v12381_v28 = vld [vmem:[#allocation144_spill] sm:$0xff]  ;;  %v4924_v27 = vld [vmem:[#allocation2 + $0x50] sm:$0xff] }
 0x2b1   : > { %v10210_v48 = vmul.f32 %v1203_v44, %v9615_v39  ;;  %v10214_v37 = vmul.f32 %v10200_v2, %v9560_v38  ;;  %v10218_v41 = vmul.f32 %v10200_v2, %v12380_v9  ;;  %v10221_v12 = vmul.f32 %v12381_v28, %v1203_v44  ;;  %v12388_v28 = vld [vmem:[#allocation71_spill] sm:$0xff] }
 0x2b2   : > { %12379 = vst [vmem:[#allocation162_spill] sm:$0xff] %v10205_v43  ;;  %v10223_v1 = vsub.f32 1.0, %v1198_v17  ;;  %v1204_v56 = vsub.f32 1.0, %v1202_v6  ;;  %4970 = vst.msk [vmem:[#allocation2 + $0xb0] sm:$0xff] %vm225_vm0, %v4968_v62  ;;  %v4969_v11 = vadd.f32 %v4967_v14, %v4499_v49  ;;  %v3454_v39 = vadd.f32 %v10205_v43, %v9979_v32  ;;  %v5106_v17 = vld [vmem:[#allocation2 + $0x98] sm:$0xff]  ;;  %v12386_v14 = vld [vmem:[#allocation124_spill] sm:$0xff] }
 0x2b3   : > { %v3617_v5 = vsub.f32 1.0, %v10198_v22  ;;  %v3619_v38 = vsub.f32 1.0, %v12378_v35  ;;  %v10232_v9 = vmul.f32 %v12339_v13, %v12382_v21  ;;  %v10236_v44 = vmul.f32 %v12342_v53, %v12384_v36  ;;  %v12387_v32 = vld [vmem:[#allocation87_spill] sm:$0xff]  ;;  %v12390_v53 = vld [vmem:[#allocation121_spill] sm:$0xff]  ;;  %v4952_v43 = vld [vmem:[#allocation2 + $0x90] sm:$0xff] }
 0x2b4   : > { %v10239_v6 = vmul.f32 %v1204_v56, %v9621_v15  ;;  %v10243_v62 = vmul.f32 %v10223_v1, %v12386_v14  ;;  %v10247_v49 = vmul.f32 %v10223_v1, %v12387_v32  ;;  %v10250_v35 = vmul.f32 %v12388_v28, %v1204_v56  ;;  %4971 = vst.msk [vmem:[#allocation2 + $0xb8] sm:$0xff] %vm225_vm0, %v4969_v11  ;;  %v12392_v21 = vld [vmem:[#allocation137_spill] sm:$0xff]  ;;  %v5107_v32 = vld [vmem:[#allocation2 + $0xa0] sm:$0xff]  ;;  %v12394_v28 = vld [vmem:[#allocation111_spill] sm:$0xff] }
 0x2b5   : > { %12383 = vst [vmem:[#allocation93_spill] sm:$0xff] %v10232_v9  ;;  %12385 = vst [vmem:[#allocation144_spill] sm:$0xff] %v10236_v44  ;;  %v10253_v13 = vmul.f32 %v3619_v38, %v3617_v5  ;;  %v10257_v36 = vmul.f32 %v12390_v53, %v10232_v9  ;;  %v3961_v15 = vadd.f32 %v10232_v9, %v3456_v57  ;;  %v5108_v22 = vld [vmem:[#allocation2 + $0xa8] sm:$0xff]  ;;  %v5200_v56 = vsel %vm225_vm0, %v5106_v17, 0.0  ;;  %v12398_v9 = vld [vmem:[#allocation143_spill] sm:$0xff] }
 0x2b6   : > { %v10262_v14 = vmul.f32 %v12392_v21, %v10236_v44  ;;  %v10267_v11 = vmul.f32 %v12394_v28, %v9996_v51  ;;  %v3618_v5 = vsub.f32 1.0, %v9996_v51  ;;  %v3620_v38 = vsub.f32 1.0, %v12394_v28  ;;  %5201 = vadd.xlane.f32.xlu1 %v5200_v56  ;;  %v12396_v21 = vld [vmem:[#allocation125_spill] sm:$0xff] }
 0x2b7   : > { %12389 = vst [vmem:[#allocation140_spill] sm:$0xff] %v10253_v13  ;;  %12391 = vst [vmem:[#allocation76_spill] sm:$0xff] %v10257_v36  ;;  %v3959_v13 = vadd.f32 %v10257_v36, %v3454_v39  ;;  %v4466_v57 = vadd.f32 %v10236_v44, %v3961_v15  ;;  %v10275_v53 = vmul.f32 %v12396_v21, %v10005_v63  ;;  %v1309_v24 = vpop.f32.mrb[8].mxu1  ;;  %v5206_v39 = vsel %vm225_vm0, %v5108_v22, 0.0 }
 0x2b8   : > { %12393 = vst [vmem:[#allocation124_spill] sm:$0xff] %v10262_v14  ;;  %12395 = vst [vmem:[#allocation87_spill] sm:$0xff] %v10267_v11  ;;  %v10279_v17 = vmul.f32 %v12398_v9, %v10021_v33  ;;  %v3455_v51 = vadd.f32 %v10267_v11, %v10001_v52  ;;  %v10283_v40 = vmul.f32 %v3620_v38, %v3618_v5  ;;  %v10287_v15 = vsel %vm225_vm0, %v5107_v32, 0.0  ;;  %v6320_v56 = vpop.f32.mrb[9].mxu1  ;;  %v12401_v9 = vld [vmem:[#allocation70_spill] sm:$0xff]  ;;  %v4925_v5 = vld [vmem:[#allocation2 + $0x58] sm:$0xff] }
 0x2b9   : > { %12397 = vst [vmem:[#allocation71_spill] sm:$0xff] %v10275_v53  ;;  %vm1316_vm8 = vcmp.gt.f32.partialorder %v1309_v24, 0.5  ;;  %v4464_v44 = vadd.f32 %v10262_v14, %v3959_v13  ;;  %v4954_v36 = vadd.f32 %v4952_v43, %v4466_v57  ;;  %v10292_v33 = vmul.f32 %v12401_v9, %v10027_v29  ;;  %v1312_v21 = vpop.f32.mrb[10].mxu1 }
 0x2ba   : > { %12399 = vst [vmem:[#allocation163_spill] sm:$0xff] %v10279_v17  ;;  %12400 = vst [vmem:[#allocation164_spill] sm:$0xff] %v10283_v40  ;;  %v5984_v28 = vsel %vm1316_vm8, 1.0, %v11912_v60  ;;  %v3960_v52 = vadd.f32 %v10275_v53, %v3455_v51  ;;  %v3742_v22 = vsub.f32 1.0, %v10027_v29  ;;  %v3744_v32 = vsub.f32 1.0, %v12401_v9  ;;  %v6321_v56 = vpop.f32.mrb[11].mxu1  ;;  %5207 = vadd.xlane.f32.xlu1 %v5206_v39 }
 0x2bb   : > { %12402 = vst [vmem:[#allocation165_spill] sm:$0xff] %v10292_v33  ;;  %v1322_v38 = vmul.f32 0.22119921, %v5984_v28  ;;  %v1326_v24 = vmul.f32 0.39346933, %v5984_v28  ;;  %vm1317_vm9 = vcmp.gt.f32.partialorder %v1312_v21, 0.5  ;;  %v4926_v13 = vadd.f32 %v4924_v27, %v4464_v44 }
 0x2bc   : > { %4956 = vst.msk [vmem:[#allocation2 + $0x90] sm:$0xff] %vm225_vm0, %v4954_v36  ;;  %v5985_v43 = vsel %vm1317_vm9, 1.0, %v11912_v60  ;;  %v4465_v57 = vadd.f32 %v10279_v17, %v3960_v52  ;;  %v3470_v51 = vadd.f32 %v10292_v33, %v10042_v10  ;;  %v10303_v14 = vmul.f32 %v3744_v32, %v3742_v22  ;;  %v5110_v53 = vld [vmem:[#allocation2 + $0xb8] sm:$0xff]  ;;  %v5109_v29 = vld [vmem:[#allocation2 + $0xb0] sm:$0xff]  ;;  %v12408_v22 = vld [vmem:[#allocation73_spill] sm:$0xff] }
 0x2bd   : > { %v10305_v9 = vsub.f32 1.0, %v1322_v38  ;;  %v1328_v28 = vsub.f32 1.0, %v1326_v24  ;;  %v1323_v21 = vmul.f32 0.22119921, %v5985_v43  ;;  %v1327_v56 = vmul.f32 0.39346933, %v5985_v43 }
 0x2be   : > { %12403 = vst [vmem:[#allocation166_spill] sm:$0xff] %v10303_v14  ;;  %4928 = vst.msk [vmem:[#allocation2 + $0x50] sm:$0xff] %vm225_vm0, %v4926_v13  ;;  %v4927_v27 = vadd.f32 %v4925_v5, %v4465_v57  ;;  %v12404_v44 = vld [vmem:[#allocation94_spill] sm:$0xff]  ;;  %v12406_v39 = vld [vmem:[#allocation35_spill] sm:$0xff]  ;;  %v5212_v10 = vsel %vm225_vm0, %v5110_v53, 0.0 }
 0x2bf   : > { %v10310_v36 = vmul.f32 %v12404_v44, %v10065_v42  ;;  %v10314_v52 = vmul.f32 %v12406_v39, %v10069_v19  ;;  %v10318_v32 = vmul.f32 %v1328_v28, %v12408_v22  ;;  %v12409_v38 = vld [vmem:[#allocation26_spill] sm:$0xff]  ;;  %v12410_v43 = vld [vmem:[#allocation105_spill] sm:$0xff]  ;;  %v12411_v13 = vld [vmem:[#allocation16_spill] sm:$0xff]  ;;  %5213 = vadd.xlane.f32.xlu1 %v5212_v10  ;;  %v10331_v17 = vsub.f32 1.0, %v1323_v21  ;;  %v1564_v19 = vpop.f32.mrb[12].mxu1 }
 0x2c0   : > { %v10322_v24 = vmul.f32 %v10305_v9, %v12409_v38  ;;  %v10326_v5 = vmul.f32 %v10305_v9, %v12410_v43  ;;  %v10329_v57 = vmul.f32 %v12411_v13, %v1328_v28  ;;  %v1329_v39 = vsub.f32 1.0, %v1327_v56  ;;  %4929 = vst.msk [vmem:[#allocation2 + $0x58] sm:$0xff] %vm225_vm0, %v4927_v27  ;;  %v6332_v38 = vpop.f32.mrb[13].mxu1  ;;  %v12412_v14 = vld [vmem:[#allocation32_spill] sm:$0xff] }
 0x2c1   : > { %12405 = vst [vmem:[#allocation167_spill] sm:$0xff] %v10310_v36  ;;  %12407 = vst [vmem:[#allocation168_spill] sm:$0xff] %v10314_v52  ;;  %v3975_v53 = vadd.f32 %v10310_v36, %v3470_v51  ;;  %v5209_v22 = vsel %vm225_vm0, %v5109_v29, 0.0  ;;  %vm1571_vm12 = vcmp.gt.f32.partialorder %v1564_v19, 0.5  ;;  %v10338_v43 = vmul.f32 %v12412_v14, %v10078_v0  ;;  %v12414_v51 = vld [vmem:[#allocation141_spill] sm:$0xff]  ;;  %v12415_v19 = vld [vmem:[#allocation22_spill] sm:$0xff] }
 0x2c2   : > { %v3743_v28 = vsub.f32 1.0, %v10078_v0  ;;  %v3745_v10 = vsub.f32 1.0, %v12412_v14  ;;  %v10343_v21 = vmul.f32 %v1329_v39, %v9657_v34  ;;  %v10347_v56 = vmul.f32 %v10331_v17, %v9599_v45  ;;  %v1567_v13 = vpop.f32.mrb[14].mxu1  ;;  %v4931_v36 = vld [vmem:[#allocation2 + $0x60] sm:$0xff]  ;;  %v5096_v45 = vld [vmem:[#allocation2 + $0x48] sm:$0xff] }
 0x2c3   : > { %12413 = vst [vmem:[#allocation73_spill] sm:$0xff] %v10338_v43  ;;  %v10351_v29 = vmul.f32 %v10331_v17, %v12414_v51  ;;  %v10354_v27 = vmul.f32 %v12415_v19, %v1329_v39  ;;  %v5105_v38 = vld [vmem:[#allocation2 + $0x90] sm:$0xff]  ;;  %v6000_v0 = vsel %vm1571_vm12, 1.0, %v11912_v60  ;;  %vm1572_vm13 = vcmp.gt.f32.partialorder %v1567_v13, 0.5  ;;  %v6333_v14 = vpop.f32.mrb[15].mxu1  ;;  %v5095_v19 = vld [vmem:[#allocation2 + $0x40] sm:$0xff] }
 0x2c4   : > { %v5197_v34 = vsel %vm225_vm0, %v5105_v38, 0.0  ;;  %v4480_v33 = vadd.f32 %v10314_v52, %v3975_v53  ;;  %v1577_v44 = vmul.f32 0.22119921, %v6000_v0  ;;  %v1581_v42 = vmul.f32 0.39346933, %v6000_v0  ;;  %v12417_v38 = vld [vmem:[#allocation56_spill] sm:$0xff] }
 0x2c5   : > { %v6001_v51 = vsel %vm1572_vm13, 1.0, %v11912_v60  ;;  %5198 = vadd.xlane.f32.xlu0 %v5197_v34  ;;  %v3471_v39 = vadd.f32 %v10338_v43, %v10116_v30  ;;  %v10362_v54 = vmul.f32 %v3745_v10, %v3743_v28  ;;  %v10366_v53 = vmul.f32 %v12417_v38, %v10105_v55  ;;  %v12419_v0 = vld [vmem:[#allocation37_spill] sm:$0xff]  ;;  %v12423_v10 = vld [vmem:[#allocation43_spill] sm:$0xff] }
 0x2c6   : > { %v1578_v40 = vmul.f32 0.22119921, %v6001_v51  ;;  %v1582_v11 = vmul.f32 0.39346933, %v6001_v51  ;;  %v4933_v63 = vadd.f32 %v4931_v36, %v4480_v33  ;;  %v1579_v14 = vsub.f32 1.0, %v1577_v44  ;;  %v12421_v36 = vld [vmem:[#allocation31_spill] sm:$0xff] }
 0x2c7   : > { %12416 = vst [vmem:[#allocation26_spill] sm:$0xff] %v10362_v54  ;;  %v1583_v13 = vsub.f32 1.0, %v1581_v42  ;;  %12418 = vst [vmem:[#allocation105_spill] sm:$0xff] %v10366_v53  ;;  %v10370_v52 = vmul.f32 %v12419_v0, %v10109_v8  ;;  %v5170_v30 = vsel %vm225_vm0, %v5096_v45, 0.0  ;;  %v5167_v33 = vsel %vm225_vm0, %v5095_v19, 0.0  ;;  %v12422_v44 = vld [vmem:[#allocation55_spill] sm:$0xff] }
 0x2c8   : > { %v1580_v34 = vsub.f32 1.0, %v1578_v40  ;;  %v1584_v4 = vsub.f32 1.0, %v1582_v11  ;;  %4935 = vst.msk [vmem:[#allocation2 + $0x60] sm:$0xff] %vm225_vm0, %v4933_v63  ;;  %v1589_v42 = vmul.f32 %v1579_v14, %v12422_v44  ;;  %v1593_v51 = vmul.f32 %v1579_v14, %v12423_v10  ;;  %v12424_v38 = vld [vmem:[#allocation127_spill] sm:$0xff]  ;;  %v1689_v54 = vpop.f32.mrb[16].mxu1  ;;  %v12425_v11 = vld [vmem:[#allocation57_spill] sm:$0xff]  ;;  %5171 = vadd.xlane.f32.xlu1 %v5170_v30 }
 0x2c9   : > { %12420 = vst [vmem:[#allocation16_spill] sm:$0xff] %v10370_v52  ;;  %v1585_v28 = vmul.f32 %v1583_v13, %v12421_v36  ;;  %v1603_v55 = vmul.f32 %v12424_v38, %v1583_v13  ;;  %5204 = vadd.xlane.f32.xlu0 %v10287_v15  ;;  %v10381_v40 = vadd.f32 %v1579_v14, %v10037_v46  ;;  %v12426_v0 = vld [vmem:[#allocation59_spill] sm:$0xff]  ;;  %v12427_v8 = vld [vmem:[#allocation44_spill] sm:$0xff]  ;;  %v6344_v43 = vpop.f32.mrb[17].mxu1  ;;  %vm1696_vm14 = vcmp.gt.f32.partialorder %v1689_v54, 0.5 }
 0x2ca   : > { %v1586_v63 = vmul.f32 %v1584_v4, %v12425_v11  ;;  %v1590_v45 = vmul.f32 %v1580_v34, %v12426_v0  ;;  %v1594_v19 = vmul.f32 %v1580_v34, %v12427_v8  ;;  %v10390_v44 = vadd.f32 %v1589_v42, %v10052_v31  ;;  %v1692_v15 = vpop.f32.mrb[18].mxu1 }
 0x2cb   : > { %v10387_v36 = vadd.f32 %v1585_v28, %v10048_v23  ;;  %v10393_v13 = vadd.f32 %v1593_v51, %v10056_v20  ;;  %v10396_v46 = vadd.f32 %v1603_v55, %v10059_v25  ;;  %v12428_v23 = vld [vmem:[#allocation27_spill] sm:$0xff]  ;;  %v6345_v31 = vpop.f32.mrb[19].mxu1  ;;  %v10409_v0 = vadd.f32 %v1580_v34, %v10061_v18  ;;  %v12429_v55 = vld [vmem:[#allocation18_spill] sm:$0xff] }
 0x2cc   : > { %v10399_v14 = vadd.f32 %v1586_v63, %v10081_v61  ;;  %v10402_v8 = vadd.f32 %v1590_v45, %v10085_v3  ;;  %v10405_v43 = vadd.f32 %v1594_v19, %v10089_v47  ;;  %v1604_v38 = vmul.f32 %v12428_v23, %v1584_v4  ;;  %v4932_v47 = vld [vmem:[#allocation2 + $0x68] sm:$0xff] }
 0x2cd   : > { %vm1697_vm15 = vcmp.gt.f32.partialorder %v1692_v15, 0.5  ;;  %5210 = vadd.xlane.f32.xlu0 %v5209_v22  ;;  %v3976_v20 = vadd.f32 %v10366_v53, %v3471_v39  ;;  %v6006_v61 = vsel %vm1696_vm14, 1.0, %v11912_v60  ;;  %v10419_v4 = vmul.f32 %v12429_v55, %v10128_v59  ;;  %v12430_v23 = vld [vmem:[#allocation89_spill] sm:$0xff] }
 0x2ce   : > { %v10413_v25 = vadd.f32 %v1604_v38, %v10092_v26  ;;  %v6007_v3 = vsel %vm1697_vm15, 1.0, %v11912_v60  ;;  %v1702_v30 = vmul.f32 0.22119921, %v6006_v61  ;;  %v1706_v18 = vmul.f32 0.39346933, %v6006_v61 }
 0x2cf   : > { %v1703_v34 = vmul.f32 0.22119921, %v6007_v3  ;;  %v4481_v54 = vadd.f32 %v10370_v52, %v3976_v20  ;;  %v1707_v22 = vmul.f32 0.39346933, %v6007_v3  ;;  %v3486_v39 = vadd.f32 %v10419_v4, %v10161_v58  ;;  %v1814_v11 = vpop.f32.mrb[20].mxu1  ;;  %v12432_v58 = vld [vmem:[#allocation102_spill] sm:$0xff] }
 0x2d0   : > { %v3867_v26 = vsub.f32 1.0, %v10128_v59  ;;  %v3869_v28 = vsub.f32 1.0, %v12429_v55  ;;  %v1704_v42 = vsub.f32 1.0, %v1702_v30  ;;  %v1708_v10 = vsub.f32 1.0, %v1706_v18  ;;  %v6356_v19 = vpop.f32.mrb[21].mxu1  ;;  %v12433_v20 = vld [vmem:[#allocation152_spill] sm:$0xff] }
 0x2d1   : > { %v1705_v51 = vsub.f32 1.0, %v1703_v34  ;;  %v4934_v63 = vadd.f32 %v4932_v47, %v4481_v54  ;;  %5168 = vadd.xlane.f32.xlu0 %v5167_v33  ;;  %v1709_v45 = vsub.f32 1.0, %v1707_v22  ;;  %vm1821_vm2 = vcmp.gt.f32.partialorder %v1814_v11, 0.5  ;;  %v12434_v3 = vld [vmem:[#allocation131_spill] sm:$0xff]  ;;  %v12435_v18 = vld [vmem:[#allocation30_spill] sm:$0xff]  ;;  %v1817_v52 = vpop.f32.mrb[22].mxu1 }
 0x2d2   : > { %v10426_v15 = vmul.f32 %v3869_v28, %v3867_v26  ;;  %v10430_v38 = vmul.f32 %v12430_v23, %v10132_v16  ;;  %v1710_v31 = vmul.f32 %v1708_v10, %v12432_v58  ;;  %v1714_v61 = vmul.f32 %v1704_v42, %v12433_v20  ;;  %v12436_v47 = vld [vmem:[#allocation28_spill] sm:$0xff]  ;;  %v12437_v22 = vld [vmem:[#allocation91_spill] sm:$0xff]  ;;  %v6357_v23 = vpop.f32.mrb[23].mxu1 }
 0x2d3   : > { %v1718_v30 = vmul.f32 %v1704_v42, %v12434_v3  ;;  %v1728_v34 = vmul.f32 %v12435_v18, %v1708_v10  ;;  %4936 = vst.msk [vmem:[#allocation2 + $0x68] sm:$0xff] %vm225_vm0, %v4934_v63  ;;  %v10438_v33 = vadd.f32 %v1704_v42, %v10200_v2  ;;  %v1711_v54 = vmul.f32 %v1709_v45, %v12436_v47  ;;  %v12438_v28 = vld [vmem:[#allocation47_spill] sm:$0xff] }
 0x2d4   : > { %12431 = vst [vmem:[#allocation141_spill] sm:$0xff] %v10430_v38  ;;  %v1715_v26 = vmul.f32 %v1705_v51, %v12437_v22  ;;  %v1719_v19 = vmul.f32 %v1705_v51, %v12438_v28  ;;  %v10444_v58 = vadd.f32 %v1710_v31, %v10210_v48  ;;  %v10447_v20 = vadd.f32 %v1714_v61, %v10214_v37  ;;  %v12439_v48 = vld [vmem:[#allocation34_spill] sm:$0xff]  ;;  %v5098_v3 = vld [vmem:[#allocation2 + $0x58] sm:$0xff] }
 0x2d5   : > { %v10450_v10 = vadd.f32 %v1718_v30, %v10218_v41  ;;  %v10453_v63 = vadd.f32 %v1728_v34, %v10221_v12  ;;  %v10456_v2 = vadd.f32 %v1711_v54, %v10239_v6  ;;  %v1729_v31 = vmul.f32 %v12439_v48, %v1709_v45  ;;  %v5097_v6 = vld [vmem:[#allocation2 + $0x50] sm:$0xff]  ;;  %v12442_v48 = vld [vmem:[#allocation75_spill] sm:$0xff] }
 0x2d6   : > { %v10459_v42 = vadd.f32 %v1715_v26, %v10243_v62  ;;  %v10462_v23 = vadd.f32 %v1719_v19, %v10247_v49  ;;  %v10466_v37 = vadd.f32 %v1705_v51, %v10223_v1  ;;  %v6012_v41 = vsel %vm1821_vm2, 1.0, %v11912_v60  ;;  %v12440_v1 = vld [vmem:[#allocation38_spill] sm:$0xff] }
 0x2d7   : > { %vm1822_vm3 = vcmp.gt.f32.partialorder %v1817_v52, 0.5  ;;  %v3991_v12 = vadd.f32 %v10430_v38, %v3486_v39  ;;  %v10472_v61 = vadd.f32 %v1729_v31, %v10250_v35  ;;  %v1827_v62 = vmul.f32 0.22119921, %v6012_v41  ;;  %v2069_v34 = vpop.f32.mrb[24].mxu1 }
 0x2d8   : > { %v1831_v30 = vmul.f32 0.39346933, %v6012_v41  ;;  %v6013_v49 = vsel %vm1822_vm3, 1.0, %v11912_v60  ;;  %v10477_v51 = vmul.f32 %v12440_v1, %v10137_v50  ;;  %v5176_v11 = vsel %vm225_vm0, %v5098_v3, 0.0  ;;  %v6368_v39 = vpop.f32.mrb[25].mxu1  ;;  %v12443_v41 = vld [vmem:[#allocation159_spill] sm:$0xff] }
 0x2d9   : > { %v1828_v18 = vmul.f32 0.22119921, %v6013_v49  ;;  %v1832_v45 = vmul.f32 0.39346933, %v6013_v49  ;;  %v1829_v52 = vsub.f32 1.0, %v1827_v62  ;;  %vm2076_vm4 = vcmp.gt.f32.partialorder %v2069_v34, 0.5  ;;  %5177 = vadd.xlane.f32.xlu1 %v5176_v11 }
 0x2da   : > { %12441 = vst [vmem:[#allocation22_spill] sm:$0xff] %v10477_v51  ;;  %v1833_v47 = vsub.f32 1.0, %v1831_v30  ;;  %v5173_v35 = vsel %vm225_vm0, %v5097_v6, 0.0  ;;  %v6028_v26 = vsel %vm2076_vm4, 1.0, %v11912_v60  ;;  %v2072_v28 = vpop.f32.mrb[26].mxu1  ;;  %v4496_v19 = vadd.f32 %v10477_v51, %v3991_v12  ;;  %v12444_v3 = vld [vmem:[#allocation19_spill] sm:$0xff] }
 0x2db   : > { %v1830_v54 = vsub.f32 1.0, %v1828_v18  ;;  %v1834_v22 = vsub.f32 1.0, %v1832_v45  ;;  %5174 = vadd.xlane.f32.xlu0 %v5173_v35  ;;  %v1839_v49 = vmul.f32 %v1829_v52, %v12443_v41  ;;  %v1843_v62 = vmul.f32 %v1829_v52, %v12444_v3  ;;  %v12445_v30 = vld [vmem:[#allocation95_spill] sm:$0xff]  ;;  %v6369_v39 = vpop.f32.mrb[27].mxu1  ;;  %v12446_v6 = vld [vmem:[#allocation130_spill] sm:$0xff]  ;;  %v12447_v45 = vld [vmem:[#allocation29_spill] sm:$0xff] }
 0x2dc   : > { %v1835_v31 = vmul.f32 %v1833_v47, %v12442_v48  ;;  %v1853_v34 = vmul.f32 %v12445_v30, %v1833_v47  ;;  %v10488_v11 = vadd.f32 %v1829_v52, %v10305_v9  ;;  %v12448_v50 = vld [vmem:[#allocation138_spill] sm:$0xff]  ;;  %vm2077_vm5 = vcmp.gt.f32.partialorder %v2072_v28, 0.5  ;;  %v12453_v39 = vld [vmem:[#allocation115_spill] sm:$0xff] }
 0x2dd   : > { %v1836_v18 = vmul.f32 %v1834_v22, %v12446_v6  ;;  %v1840_v1 = vmul.f32 %v1830_v54, %v12447_v45  ;;  %v1844_v38 = vmul.f32 %v1830_v54, %v12448_v50  ;;  %v10497_v35 = vadd.f32 %v1839_v49, %v10322_v24  ;;  %v4938_v9 = vld [vmem:[#allocation2 + $0x70] sm:$0xff] }
 0x2de   : > { %v10494_v12 = vadd.f32 %v1835_v31, %v10318_v32  ;;  %v10500_v48 = vadd.f32 %v1843_v62, %v10326_v5  ;;  %v10503_v47 = vadd.f32 %v1853_v34, %v10329_v57  ;;  %v12449_v32 = vld [vmem:[#allocation36_spill] sm:$0xff]  ;;  %v10516_v24 = vadd.f32 %v1830_v54, %v10331_v17 }
 0x2df   : > { %v10506_v52 = vadd.f32 %v1836_v18, %v10343_v21  ;;  %v10509_v41 = vadd.f32 %v1840_v1, %v10347_v56  ;;  %v10512_v50 = vadd.f32 %v1844_v38, %v10351_v29  ;;  %v1854_v31 = vmul.f32 %v12449_v32, %v1834_v22  ;;  %v2194_v3 = vpop.f32.mrb[28].mxu1  ;;  %v12450_v56 = vld [vmem:[#allocation33_spill] sm:$0xff]  ;;  %v12451_v54 = vld [vmem:[#allocation148_spill] sm:$0xff] }
 0x2e0   : > { %v2082_v5 = vmul.f32 0.22119921, %v6028_v26  ;;  %v2086_v49 = vmul.f32 0.39346933, %v6028_v26  ;;  %v6029_v21 = vsel %vm2077_vm5, 1.0, %v11912_v60  ;;  %v4940_v62 = vadd.f32 %v4938_v9, %v4496_v19  ;;  %v6380_v17 = vpop.f32.mrb[29].mxu1 }
 0x2e1   : > { %v10519_v57 = vadd.f32 %v1854_v31, %v10354_v27  ;;  %v10524_v1 = vmul.f32 %v12450_v56, %v10157_v7  ;;  %v2083_v22 = vmul.f32 0.22119921, %v6029_v21  ;;  %v2087_v30 = vmul.f32 0.39346933, %v6029_v21  ;;  %v12452_v19 = vld [vmem:[#allocation104_spill] sm:$0xff]  ;;  %v12454_v18 = vld [vmem:[#allocation65_spill] sm:$0xff] }
 0x2e2   : > { %v2084_v29 = vsub.f32 1.0, %v2082_v5  ;;  %v2088_v38 = vsub.f32 1.0, %v2086_v49  ;;  %vm2201_vm6 = vcmp.gt.f32.partialorder %v2194_v3, 0.5  ;;  %4942 = vst.msk [vmem:[#allocation2 + $0x70] sm:$0xff] %vm225_vm0, %v4940_v62  ;;  %v3868_v26 = vsub.f32 1.0, %v10157_v7  ;;  %v12455_v9 = vld [vmem:[#allocation39_spill] sm:$0xff] }
 0x2e3   : > { %v10529_v27 = vadd.f32 %v10524_v1, %v12451_v54  ;;  %v3870_v28 = vsub.f32 1.0, %v12450_v56  ;;  %v2197_v31 = vpop.f32.mrb[30].mxu1  ;;  %v2085_v49 = vsub.f32 1.0, %v2083_v22  ;;  %v2089_v21 = vsub.f32 1.0, %v2087_v30  ;;  %v12458_v30 = vld [vmem:[#allocation67_spill] sm:$0xff] }
 0x2e4   : > { %v2090_v34 = vmul.f32 %v2088_v38, %v12452_v19  ;;  %v2094_v6 = vmul.f32 %v2084_v29, %v12453_v39  ;;  %v2098_v45 = vmul.f32 %v2084_v29, %v12454_v18  ;;  %v2108_v32 = vmul.f32 %v12455_v9, %v2088_v38  ;;  %v6381_v62 = vpop.f32.mrb[31].mxu1  ;;  %v12456_v39 = vld [vmem:[#allocation74_spill] sm:$0xff]  ;;  %v12459_v9 = vld [vmem:[#allocation45_spill] sm:$0xff] }
 0x2e5   : > { %v10538_v5 = vadd.f32 %v2084_v29, %v10381_v40  ;;  %v6034_v3 = vsel %vm2201_vm6, 1.0, %v11912_v60  ;;  %v2091_v40 = vmul.f32 %v2089_v21, %v12456_v39  ;;  %v12457_v29 = vld [vmem:[#allocation114_spill] sm:$0xff]  ;;  %v2099_v18 = vmul.f32 %v2085_v49, %v12458_v30 }
 0x2e6   : > { %v10542_v17 = vadd.f32 %v2090_v34, %v10387_v36  ;;  %v10545_v54 = vadd.f32 %v2094_v6, %v10390_v44  ;;  %v10548_v19 = vadd.f32 %v2098_v45, %v10393_v13  ;;  %v10551_v38 = vadd.f32 %v2108_v32, %v10396_v46 }
 0x2e7   : > { %v2095_v22 = vmul.f32 %v2085_v49, %v12457_v29  ;;  %v2109_v62 = vmul.f32 %v12459_v9, %v2089_v21  ;;  %v10558_v36 = vadd.f32 %v2085_v49, %v10409_v0  ;;  %v2207_v34 = vmul.f32 0.22119921, %v6034_v3  ;;  %v2319_v32 = vpop.f32.mrb[32].mxu1  ;;  %v12461_v29 = vld [vmem:[#allocation24_spill] sm:$0xff]  ;;  %v12464_v9 = vld [vmem:[#allocation25_spill] sm:$0xff] }
 0x2e8   : > { %v2211_v44 = vmul.f32 0.39346933, %v6034_v3  ;;  %vm2202_vm1 = vcmp.gt.f32.partialorder %v2197_v31, 0.5  ;;  %v10561_v13 = vadd.f32 %v2091_v40, %v10399_v14  ;;  %v10567_v6 = vadd.f32 %v2099_v18, %v10405_v43  ;;  %v6392_v49 = vpop.f32.mrb[33].mxu1 }
 0x2e9   : > { %v10564_v46 = vadd.f32 %v2095_v22, %v10402_v8  ;;  %v10570_v45 = vadd.f32 %v2109_v62, %v10413_v25  ;;  %v2209_v21 = vsub.f32 1.0, %v2207_v34  ;;  %v6035_v0 = vsel %vm2202_vm1, 1.0, %v11912_v60  ;;  %v2322_v40 = vpop.f32.mrb[34].mxu1  ;;  %v12462_v22 = vld [vmem:[#allocation23_spill] sm:$0xff]  ;;  %v12463_v25 = vld [vmem:[#allocation48_spill] sm:$0xff] }
 0x2ea   : > { %v2213_v39 = vsub.f32 1.0, %v2211_v44  ;;  %vm2326_vm10 = vcmp.gt.f32.partialorder %v2319_v32, 0.5  ;;  %v2208_v31 = vmul.f32 0.22119921, %v6035_v0  ;;  %v2212_v3 = vmul.f32 0.39346933, %v6035_v0 }
 0x2eb   : > { %v6040_v14 = vsel %vm2326_vm10, 1.0, %v11912_v60  ;;  %v10574_v8 = vmul.f32 %v3870_v28, %v3868_v26  ;;  %v2219_v30 = vmul.f32 %v2209_v21, %v12462_v22  ;;  %v2223_v18 = vmul.f32 %v2209_v21, %v12463_v25  ;;  %v6393_v34 = vpop.f32.mrb[35].mxu1  ;;  %v12466_v25 = vld [vmem:[#allocation117_spill] sm:$0xff] }
 0x2ec   : > { %v2215_v43 = vmul.f32 %v2213_v39, %v12461_v29  ;;  %v2233_v62 = vmul.f32 %v12464_v9, %v2213_v39  ;;  %v10581_v44 = vadd.f32 %v2209_v21, %v10438_v33  ;;  %v2210_v32 = vsub.f32 1.0, %v2208_v31  ;;  %v12465_v39 = vld [vmem:[#allocation46_spill] sm:$0xff]  ;;  %v12467_v21 = vld [vmem:[#allocation51_spill] sm:$0xff] }
 0x2ed   : > { %12460 = vst [vmem:[#allocation31_spill] sm:$0xff] %v10574_v8  ;;  %v2214_v49 = vsub.f32 1.0, %v2212_v3  ;;  %v2332_v0 = vmul.f32 0.22119921, %v6040_v14  ;;  %v10587_v26 = vadd.f32 %v2219_v30, %v10447_v20  ;;  %v10590_v28 = vadd.f32 %v2223_v18, %v10450_v10  ;;  %v12468_v3 = vld [vmem:[#allocation83_spill] sm:$0xff]  ;;  %v12484_v8 = vld [vmem:[#allocation54_spill] sm:$0xff] }
 0x2ee   : > { %v10584_v51 = vadd.f32 %v2215_v43, %v10444_v58  ;;  %v10593_v29 = vadd.f32 %v2233_v62, %v10453_v63  ;;  %v2220_v33 = vmul.f32 %v2210_v32, %v12466_v25  ;;  %v2224_v31 = vmul.f32 %v2210_v32, %v12467_v21  ;;  %v12475_v25 = vld [vmem:[#allocation132_spill] sm:$0xff]  ;;  %v12477_v21 = vld [vmem:[#allocation49_spill] sm:$0xff] }
 0x2ef   : > { %v2216_v22 = vmul.f32 %v2214_v49, %v12465_v39  ;;  %v2234_v9 = vmul.f32 %v12468_v3, %v2214_v49  ;;  %v10600_v58 = vadd.f32 %v2210_v32, %v10466_v37  ;;  %v2334_v43 = vsub.f32 1.0, %v2332_v0  ;;  %v2574_v62 = vpop.f32.mrb[36].mxu1  ;;  %v12469_v49 = vld [vmem:[#allocation69_spill] sm:$0xff]  ;;  %v12470_v32 = vld [vmem:[#allocation139_spill] sm:$0xff] }
 0x2f0   : > { %v2336_v20 = vmul.f32 0.39346933, %v6040_v14  ;;  %vm2327_vm11 = vcmp.gt.f32.partialorder %v2322_v40, 0.5  ;;  %v10606_v63 = vadd.f32 %v2220_v33, %v10459_v42  ;;  %v10609_v30 = vadd.f32 %v2224_v31, %v10462_v23  ;;  %v12471_v39 = vld [vmem:[#allocation155_spill] sm:$0xff] }
 0x2f1   : > { %v10603_v10 = vadd.f32 %v2216_v22, %v10456_v2  ;;  %v10612_v18 = vadd.f32 %v2234_v9, %v10472_v61  ;;  %v2344_v37 = vmul.f32 %v2334_v43, %v12469_v49  ;;  %v2348_v0 = vmul.f32 %v2334_v43, %v12470_v32  ;;  %v6404_v2 = vpop.f32.mrb[37].mxu1  ;;  %v12472_v23 = vld [vmem:[#allocation151_spill] sm:$0xff]  ;;  %v12474_v61 = vld [vmem:[#allocation134_spill] sm:$0xff] }
 0x2f2   : > { %v2338_v34 = vsub.f32 1.0, %v2336_v20  ;;  %v10617_v14 = vadd.f32 %v2334_v43, %v10488_v11  ;;  %v6041_v40 = vsel %vm2327_vm11, 1.0, %v11912_v60  ;;  %vm2581_vm7 = vcmp.gt.f32.partialorder %v2574_v62, 0.5  ;;  %v2577_v42 = vpop.f32.mrb[38].mxu1  ;;  %v12478_v9 = vld [vmem:[#allocation58_spill] sm:$0xff] }
 0x2f3   : > { %v10622_v22 = vmul.f32 %v12472_v23, %v12471_v39  ;;  %v10626_v33 = vmul.f32 %v12475_v25, %v12474_v61  ;;  %v10630_v3 = vadd.f32 %v2344_v37, %v10497_v35  ;;  %v10633_v11 = vadd.f32 %v2348_v0, %v10500_v48  ;;  %v6405_v20 = vpop.f32.mrb[39].mxu1  ;;  %v12481_v39 = vld [vmem:[#allocation60_spill] sm:$0xff] }
 0x2f4   : > { %v2340_v31 = vmul.f32 %v2338_v34, %v12477_v21  ;;  %v2358_v43 = vmul.f32 %v12478_v9, %v2338_v34  ;;  %v2333_v62 = vmul.f32 0.22119921, %v6041_v40  ;;  %v2337_v49 = vmul.f32 0.39346933, %v6041_v40 }
 0x2f5   : > { %12473 = vst [vmem:[#allocation55_spill] sm:$0xff] %v10622_v22  ;;  %12476 = vst [vmem:[#allocation43_spill] sm:$0xff] %v10626_v33  ;;  %v6056_v32 = vsel %vm2581_vm7, 1.0, %v11912_v60  ;;  %vm2582_vm8 = vcmp.gt.f32.partialorder %v2577_v42, 0.5  ;;  %v3992_v34 = vadd.f32 %v10622_v22, %v10529_v27  ;;  %v12479_v42 = vld [vmem:[#allocation66_spill] sm:$0xff] }
 0x2f6   : > { %v10638_v2 = vadd.f32 %v2340_v31, %v10494_v12  ;;  %v10641_v25 = vadd.f32 %v2358_v43, %v10503_v47  ;;  %v2587_v21 = vmul.f32 0.22119921, %v6056_v32  ;;  %v2591_v35 = vmul.f32 0.39346933, %v6056_v32  ;;  %v12480_v12 = vld [vmem:[#allocation40_spill] sm:$0xff] }
 0x2f7   : > { %v2335_v37 = vsub.f32 1.0, %v2333_v62  ;;  %v2339_v61 = vsub.f32 1.0, %v2337_v49  ;;  %v6057_v48 = vsel %vm2582_vm8, 1.0, %v11912_v60  ;;  %v12482_v43 = vld [vmem:[#allocation72_spill] sm:$0xff]  ;;  %v2699_v32 = vpop.f32.mrb[40].mxu1 }
 0x2f8   : > { %v2589_v0 = vsub.f32 1.0, %v2587_v21  ;;  %v2593_v40 = vsub.f32 1.0, %v2591_v35  ;;  %v2588_v9 = vmul.f32 0.22119921, %v6057_v48  ;;  %v2592_v20 = vmul.f32 0.39346933, %v6057_v48 }
 0x2f9   : > { %v2341_v23 = vmul.f32 %v2339_v61, %v12479_v42  ;;  %v2345_v31 = vmul.f32 %v2335_v37, %v12480_v12  ;;  %v2349_v47 = vmul.f32 %v2335_v37, %v12481_v39  ;;  %v2359_v16 = vmul.f32 %v12482_v43, %v2339_v61  ;;  %v12483_v49 = vld [vmem:[#allocation80_spill] sm:$0xff]  ;;  %v12485_v21 = vld [vmem:[#allocation82_spill] sm:$0xff]  ;;  %v6416_v22 = vpop.f32.mrb[41].mxu1 }
 0x2fa   : > { %v10651_v62 = vadd.f32 %v2335_v37, %v10516_v24  ;;  %v2595_v53 = vmul.f32 %v2593_v40, %v12483_v49  ;;  %v2599_v27 = vmul.f32 %v2589_v0, %v12484_v8  ;;  %v2603_v35 = vmul.f32 %v2589_v0, %v12485_v21  ;;  %v2702_v24 = vpop.f32.mrb[42].mxu1  ;;  %v12490_v49 = vld [vmem:[#allocation88_spill] sm:$0xff]  ;;  %v5100_v21 = vld [vmem:[#allocation2 + $0x68] sm:$0xff] }
 0x2fb   : > { %v10657_v48 = vadd.f32 %v2341_v23, %v10506_v52  ;;  %v10660_v42 = vadd.f32 %v2345_v31, %v10509_v41  ;;  %v10663_v39 = vadd.f32 %v2349_v47, %v10512_v50  ;;  %v10666_v61 = vadd.f32 %v2359_v16, %v10519_v57  ;;  %v12486_v52 = vld [vmem:[#allocation103_spill] sm:$0xff]  ;;  %v6417_v41 = vpop.f32.mrb[43].mxu1 }
 0x2fc   : > { %v10669_v37 = vadd.f32 %v2595_v53, %v10542_v17  ;;  %v10672_v8 = vadd.f32 %v2599_v27, %v10545_v54  ;;  %v10675_v22 = vadd.f32 %v2603_v35, %v10548_v19  ;;  %v2613_v23 = vmul.f32 %v12486_v52, %v2593_v40  ;;  %v12487_v17 = vld [vmem:[#allocation81_spill] sm:$0xff] }
 0x2fd   : > { %v10679_v12 = vadd.f32 %v2589_v0, %v10538_v5  ;;  %v2590_v50 = vsub.f32 1.0, %v2588_v9  ;;  %v2594_v31 = vsub.f32 1.0, %v2592_v20  ;;  %vm2706_vm9 = vcmp.gt.f32.partialorder %v2699_v32, 0.5  ;;  %v12488_v19 = vld [vmem:[#allocation61_spill] sm:$0xff]  ;;  %v4939_v0 = vld [vmem:[#allocation2 + $0x78] sm:$0xff]  ;;  %v5099_v9 = vld [vmem:[#allocation2 + $0x60] sm:$0xff] }
 0x2fe   : > { %v10682_v16 = vadd.f32 %v2613_v23, %v10551_v38  ;;  %v6062_v53 = vsel %vm2706_vm9, 1.0, %v11912_v60  ;;  %vm2707_vm12 = vcmp.gt.f32.partialorder %v2702_v24, 0.5  ;;  %v4497_v57 = vadd.f32 %v10626_v33, %v3992_v34  ;;  %v12489_v40 = vld [vmem:[#allocation85_spill] sm:$0xff] }
 0x2ff   : > { %v2596_v54 = vmul.f32 %v2594_v31, %v12487_v17  ;;  %v2600_v47 = vmul.f32 %v2590_v50, %v12488_v19  ;;  %v2604_v43 = vmul.f32 %v2590_v50, %v12489_v40  ;;  %v2614_v5 = vmul.f32 %v12490_v49, %v2594_v31  ;;  %v2824_v23 = vpop.f32.mrb[44].mxu1  ;;  %v12493_v40 = vld [vmem:[#allocation17_spill] sm:$0xff] }
 0x300   : > { %v10691_v20 = vadd.f32 %v2590_v50, %v10558_v36  ;;  %v2712_v38 = vmul.f32 0.22119921, %v6062_v53  ;;  %v2716_v32 = vmul.f32 0.39346933, %v6062_v53  ;;  %v6063_v27 = vsel %vm2707_vm12, 1.0, %v11912_v60  ;;  %v6428_v53 = vpop.f32.mrb[45].mxu1 }
 0x301   : > { %v10695_v34 = vadd.f32 %v2596_v54, %v10561_v13  ;;  %v10698_v35 = vadd.f32 %v2600_v47, %v10564_v46  ;;  %v10701_v24 = vadd.f32 %v2604_v43, %v10567_v6  ;;  %v10704_v52 = vadd.f32 %v2614_v5, %v10570_v45  ;;  %v12491_v46 = vld [vmem:[#allocation84_spill] sm:$0xff]  ;;  %v2827_v5 = vpop.f32.mrb[46].mxu1 }
 0x302   : > { %v2714_v36 = vsub.f32 1.0, %v2712_v38  ;;  %v2718_v41 = vsub.f32 1.0, %v2716_v32  ;;  %v2713_v50 = vmul.f32 0.22119921, %v6063_v27  ;;  %v2717_v31 = vmul.f32 0.39346933, %v6063_v27 }
 0x303   : > { %vm2831_vm13 = vcmp.gt.f32.partialorder %v2824_v23, 0.5  ;;  %v4941_v17 = vadd.f32 %v4939_v0, %v4497_v57  ;;  %v5182_v13 = vsel %vm225_vm0, %v5100_v21, 0.0  ;;  %v5179_v54 = vsel %vm225_vm0, %v5099_v9, 0.0  ;;  %v12492_v47 = vld [vmem:[#allocation92_spill] sm:$0xff]  ;;  %v6429_v0 = vpop.f32.mrb[47].mxu1 }
 0x304   : > { %v2720_v19 = vmul.f32 %v2718_v41, %v12491_v46  ;;  %v2724_v6 = vmul.f32 %v2714_v36, %v12492_v47  ;;  %v2728_v43 = vmul.f32 %v2714_v36, %v12493_v40  ;;  %v12494_v45 = vld [vmem:[#allocation96_spill] sm:$0xff]  ;;  %5183 = vadd.xlane.f32.xlu1 %v5182_v13  ;;  %v10713_v38 = vadd.f32 %v2714_v36, %v10581_v44  ;;  %v12495_v36 = vld [vmem:[#allocation90_spill] sm:$0xff] }
 0x305   : > { %v2738_v49 = vmul.f32 %v12494_v45, %v2718_v41  ;;  %v2715_v32 = vsub.f32 1.0, %v2713_v50  ;;  %v2719_v27 = vsub.f32 1.0, %v2717_v31  ;;  %v6068_v57 = vsel %vm2831_vm13, 1.0, %v11912_v60  ;;  %4943 = vst.msk [vmem:[#allocation2 + $0x78] sm:$0xff] %vm225_vm0, %v4941_v17  ;;  %5180 = vadd.xlane.f32.xlu0 %v5179_v54  ;;  %v12496_v50 = vld [vmem:[#allocation62_spill] sm:$0xff]  ;;  %v12497_v53 = vld [vmem:[#allocation52_spill] sm:$0xff] }
 0x306   : > { %v10718_v9 = vadd.f32 %v2720_v19, %v10584_v51  ;;  %v10721_v21 = vadd.f32 %v2724_v6, %v10587_v26  ;;  %v10724_v23 = vadd.f32 %v2728_v43, %v10590_v28  ;;  %v12498_v17 = vld [vmem:[#allocation116_spill] sm:$0xff]  ;;  %v2837_v46 = vmul.f32 0.22119921, %v6068_v57 }
 0x307   : > { %v10727_v44 = vadd.f32 %v2738_v49, %v10593_v29  ;;  %v2721_v41 = vmul.f32 %v2719_v27, %v12495_v36  ;;  %v2725_v31 = vmul.f32 %v2715_v32, %v12496_v50  ;;  %v2729_v13 = vmul.f32 %v2715_v32, %v12497_v53  ;;  %v3079_v6 = vpop.f32.mrb[48].mxu1 }
 0x308   : > { %v2739_v54 = vmul.f32 %v12498_v17, %v2719_v27  ;;  %v10734_v51 = vadd.f32 %v2715_v32, %v10600_v58  ;;  %v2841_v26 = vmul.f32 0.39346933, %v6068_v57  ;;  %vm2832_vm14 = vcmp.gt.f32.partialorder %v2827_v5, 0.5  ;;  %v6440_v45 = vpop.f32.mrb[49].mxu1  ;;  %v12500_v27 = vld [vmem:[#allocation42_spill] sm:$0xff]  ;;  %v12501_v57 = vld [vmem:[#allocation136_spill] sm:$0xff] }
 0x309   : > { %v10737_v28 = vadd.f32 %v2721_v41, %v10603_v10  ;;  %v10740_v29 = vadd.f32 %v2725_v31, %v10606_v63  ;;  %v10743_v19 = vadd.f32 %v2729_v13, %v10609_v30  ;;  %v2839_v40 = vsub.f32 1.0, %v2837_v46  ;;  %v3082_v32 = vpop.f32.mrb[50].mxu1  ;;  %v12499_v63 = vld [vmem:[#allocation99_spill] sm:$0xff]  ;;  %v12504_v41 = vld [vmem:[#allocation101_spill] sm:$0xff]  ;;  %v12506_v13 = vld [vmem:[#allocation14_spill] sm:$0xff] }
 0x30a   : > { %v10746_v47 = vadd.f32 %v2739_v54, %v10612_v18  ;;  %v2843_v43 = vsub.f32 1.0, %v2841_v26  ;;  %v6069_v58 = vsel %vm2832_vm14, 1.0, %v11912_v60  ;;  %vm3086_vm15 = vcmp.gt.f32.partialorder %v3079_v6, 0.5  ;;  %v12503_v18 = vld [vmem:[#allocation98_spill] sm:$0xff]  ;;  %v12505_v31 = vld [vmem:[#allocation149_spill] sm:$0xff]  ;;  %v6441_v54 = vpop.f32.mrb[51].mxu1 }
 0x30b   : > { %v2838_v49 = vmul.f32 0.22119921, %v6069_v58  ;;  %v2842_v5 = vmul.f32 0.39346933, %v6069_v58  ;;  %v6084_v10 = vsel %vm3086_vm15, 1.0, %v11912_v60  ;;  %v12502_v30 = vsub.f32 %v12500_v27, %v12501_v57  ;;  %v12512_v54 = vld [vmem:[#allocation20_spill] sm:$0xff] }
 0x30c   : > { %v2845_v36 = vmul.f32 %v2843_v43, %v12503_v18  ;;  %v2849_v50 = vmul.f32 %v2839_v40, %v12504_v41  ;;  %v2853_v53 = vmul.f32 %v2839_v40, %v12505_v31  ;;  %v2863_v17 = vmul.f32 %v12506_v13, %v2843_v43  ;;  %v12507_v43 = vld [vmem:[#allocation126_spill] sm:$0xff] }
 0x30d   : > { %v10754_v0 = vadd.f32 %v12502_v30, %v12499_v63  ;;  %v10761_v46 = vadd.f32 %v2839_v40, %v10617_v14  ;;  %v2840_v26 = vsub.f32 1.0, %v2838_v49  ;;  %v2844_v6 = vsub.f32 1.0, %v2842_v5  ;;  %v12508_v18 = vld [vmem:[#allocation86_spill] sm:$0xff]  ;;  %v12509_v40 = vld [vmem:[#allocation64_spill] sm:$0xff] }
 0x30e   : > { %v3092_v58 = vmul.f32 0.22119921, %v6084_v10  ;;  %v10764_v45 = vadd.f32 %v2845_v36, %v10638_v2  ;;  %v10767_v63 = vadd.f32 %v2849_v50, %v10630_v3  ;;  %v10770_v27 = vadd.f32 %v2853_v53, %v10633_v11  ;;  %v12510_v5 = vld [vmem:[#allocation106_spill] sm:$0xff] }
 0x30f   : > { %v10773_v57 = vadd.f32 %v2863_v17, %v10641_v25  ;;  %v2846_v30 = vmul.f32 %v2844_v6, %v12507_v43  ;;  %v2850_v14 = vmul.f32 %v2840_v26, %v12508_v18  ;;  %v2854_v49 = vmul.f32 %v2840_v26, %v12509_v40  ;;  %v3204_v53 = vpop.f32.mrb[52].mxu1  ;;  %v12511_v17 = vld [vmem:[#allocation97_spill] sm:$0xff]  ;;  %v12516_v40 = vld [vmem:[#allocation128_spill] sm:$0xff] }
 0x310   : > { %v2864_v41 = vmul.f32 %v12510_v5, %v2844_v6  ;;  %v10780_v2 = vadd.f32 %v2840_v26, %v10651_v62  ;;  %v3094_v36 = vsub.f32 1.0, %v3092_v58  ;;  %v3096_v3 = vmul.f32 0.39346933, %v6084_v10  ;;  %v12513_v6 = vld [vmem:[#allocation93_spill] sm:$0xff] }
 0x311   : > { %vm3087_vm2 = vcmp.gt.f32.partialorder %v3082_v32, 0.5  ;;  %v10783_v11 = vadd.f32 %v2846_v30, %v10657_v48  ;;  %v10786_v25 = vadd.f32 %v2850_v14, %v10660_v42  ;;  %v10789_v50 = vadd.f32 %v2854_v49, %v10663_v39  ;;  %v6452_v48 = vpop.f32.mrb[53].mxu1  ;;  %v12514_v58 = vld [vmem:[#allocation121_spill] sm:$0xff] }
 0x312   : > { %v10792_v31 = vadd.f32 %v2864_v41, %v10666_v61  ;;  %v3098_v13 = vsub.f32 1.0, %v3096_v3  ;;  %v3104_v62 = vmul.f32 %v3094_v36, %v12511_v17  ;;  %v3108_v26 = vmul.f32 %v3094_v36, %v12512_v54  ;;  %v3207_v42 = vpop.f32.mrb[54].mxu1  ;;  %v12515_v61 = vld [vmem:[#allocation15_spill] sm:$0xff] }
 0x313   : > { %v10797_v10 = vadd.f32 %v3094_v36, %v10679_v12  ;;  %v6085_v32 = vsel %vm3087_vm2, 1.0, %v11912_v60  ;;  %vm3211_vm3 = vcmp.gt.f32.partialorder %v3204_v53, 0.5  ;;  %v4122_v39 = vsub.f32 1.0, %v12513_v6  ;;  %v6453_v49 = vpop.f32.mrb[55].mxu1 }
 0x314   : > { %v4124_v43 = vsub.f32 1.0, %v12514_v58  ;;  %v3100_v30 = vmul.f32 %v3098_v13, %v12515_v61  ;;  %v10804_v18 = vadd.f32 %v3104_v62, %v10672_v8  ;;  %v10807_v14 = vadd.f32 %v3108_v26, %v10675_v22  ;;  %v12519_v49 = vld [vmem:[#allocation107_spill] sm:$0xff] }
 0x315   : > { %v3118_v12 = vmul.f32 %v12516_v40, %v3098_v13  ;;  %v3093_v5 = vmul.f32 0.22119921, %v6085_v32  ;;  %v3097_v41 = vmul.f32 0.39346933, %v6085_v32  ;;  %v6090_v36 = vsel %vm3211_vm3, 1.0, %v11912_v60  ;;  %v12518_v40 = vld [vmem:[#allocation113_spill] sm:$0xff] }
 0x316   : > { %vm3212_vm4 = vcmp.gt.f32.partialorder %v3207_v42, 0.5  ;;  %v10812_v3 = vadd.f32 %v3100_v30, %v10669_v37  ;;  %v3217_v17 = vmul.f32 0.22119921, %v6090_v36  ;;  %v3221_v8 = vmul.f32 0.39346933, %v6090_v36  ;;  %v12520_v30 = vld [vmem:[#allocation21_spill] sm:$0xff] }
 0x317   : > { %v10815_v53 = vadd.f32 %v3118_v12, %v10682_v16  ;;  %v3095_v62 = vsub.f32 1.0, %v3093_v5  ;;  %v3099_v54 = vsub.f32 1.0, %v3097_v41  ;;  %v6091_v22 = vsel %vm3212_vm4, 1.0, %v11912_v60  ;;  %v12521_v16 = vld [vmem:[#allocation142_spill] sm:$0xff]  ;;  %v3329_v58 = vpop.f32.mrb[56].mxu1  ;;  %v12522_v41 = vld [vmem:[#allocation63_spill] sm:$0xff] }
 0x318   : > { %v10818_v26 = vmul.f32 %v4124_v43, %v4122_v39  ;;  %v3219_v13 = vsub.f32 1.0, %v3217_v17  ;;  %v3223_v48 = vsub.f32 1.0, %v3221_v8  ;;  %v3218_v32 = vmul.f32 0.22119921, %v6091_v22  ;;  %v12523_v39 = vld [vmem:[#allocation77_spill] sm:$0xff]  ;;  %v12524_v17 = vld [vmem:[#allocation79_spill] sm:$0xff] }
 0x319   : > { %v3222_v61 = vmul.f32 0.39346933, %v6091_v22  ;;  %v3101_v42 = vmul.f32 %v3099_v54, %v12518_v40  ;;  %v3105_v37 = vmul.f32 %v3095_v62, %v12519_v49  ;;  %v3109_v33 = vmul.f32 %v3095_v62, %v12520_v30 }
 0x31a   : > { %12517 = vst [vmem:[#allocation127_spill] sm:$0xff] %v10818_v26  ;;  %v3119_v12 = vmul.f32 %v12521_v16, %v3099_v54  ;;  %v10825_v5 = vadd.f32 %v3095_v62, %v10691_v20  ;;  %v3225_v36 = vmul.f32 %v3223_v48, %v12522_v41  ;;  %v3229_v43 = vmul.f32 %v3219_v13, %v12523_v39  ;;  %v6464_v26 = vpop.f32.mrb[57].mxu1  ;;  %v5102_v62 = vld [vmem:[#allocation2 + $0x78] sm:$0xff]  ;;  %v12527_v41 = vld [vmem:[#allocation145_spill] sm:$0xff] }
 0x31b   : > { %v3233_v8 = vmul.f32 %v3219_v13, %v12524_v17  ;;  %v10831_v22 = vadd.f32 %v3101_v42, %v10695_v34  ;;  %v10834_v40 = vadd.f32 %v3105_v37, %v10698_v35  ;;  %v10837_v49 = vadd.f32 %v3109_v33, %v10701_v24  ;;  %v3332_v20 = vpop.f32.mrb[58].mxu1  ;;  %v12525_v26 = vld [vmem:[#allocation161_spill] sm:$0xff] }
 0x31c   : > { %v10840_v54 = vadd.f32 %v3119_v12, %v10704_v52  ;;  %v10843_v30 = vadd.f32 %v3225_v36, %v10718_v9  ;;  %v10846_v16 = vadd.f32 %v3229_v43, %v10721_v21  ;;  %v3243_v35 = vmul.f32 %v12525_v26, %v3223_v48  ;;  %v6465_v42 = vpop.f32.mrb[59].mxu1  ;;  %v12526_v12 = vld [vmem:[#allocation78_spill] sm:$0xff]  ;;  %v12529_v43 = vld [vmem:[#allocation129_spill] sm:$0xff] }
 0x31d   : > { %v10849_v34 = vadd.f32 %v3233_v8, %v10724_v23  ;;  %v10853_v33 = vadd.f32 %v3219_v13, %v10713_v38  ;;  %v3220_v24 = vsub.f32 1.0, %v3218_v32  ;;  %v3224_v52 = vsub.f32 1.0, %v3222_v61  ;;  %v12528_v48 = vld [vmem:[#allocation50_spill] sm:$0xff] }
 0x31e   : > { %vm3336_vm5 = vcmp.gt.f32.partialorder %v3329_v58, 0.5  ;;  %v10856_v37 = vadd.f32 %v3243_v35, %v10727_v44  ;;  %vm3337_vm6 = vcmp.gt.f32.partialorder %v3332_v20, 0.5  ;;  %v5188_v21 = vsel %vm225_vm0, %v5102_v62, 0.0  ;;  %v5101_v61 = vld [vmem:[#allocation2 + $0x70] sm:$0xff] }
 0x31f   : > { %v6096_v9 = vsel %vm3336_vm5, 1.0, %v11912_v60  ;;  %v3226_v23 = vmul.f32 %v3224_v52, %v12526_v12  ;;  %v3230_v36 = vmul.f32 %v3220_v24, %v12527_v41  ;;  %v3234_v39 = vmul.f32 %v3220_v24, %v12528_v48  ;;  %5189 = vadd.xlane.f32.xlu1 %v5188_v21  ;;  %v3584_v26 = vpop.f32.mrb[60].mxu1  ;;  %v12531_v12 = vld [vmem:[#allocation125_spill] sm:$0xff] }
 0x320   : > { %v3244_v38 = vmul.f32 %v12529_v43, %v3224_v52  ;;  %v10865_v13 = vadd.f32 %v3220_v24, %v10734_v51  ;;  %v3342_v58 = vmul.f32 0.22119921, %v6096_v9  ;;  %v3346_v44 = vmul.f32 0.39346933, %v6096_v9  ;;  %v6476_v52 = vpop.f32.mrb[61].mxu1  ;;  %v12534_v48 = vld [vmem:[#allocation53_spill] sm:$0xff] }
 0x321   : > { %v6097_v32 = vsel %vm3337_vm6, 1.0, %v11912_v60  ;;  %v10869_v17 = vadd.f32 %v3226_v23, %v10737_v28  ;;  %v10872_v8 = vadd.f32 %v3230_v36, %v10740_v29  ;;  %v10875_v20 = vadd.f32 %v3234_v39, %v10743_v19  ;;  %v12530_v28 = vld [vmem:[#allocation122_spill] sm:$0xff]  ;;  %v12532_v23 = vld [vmem:[#allocation112_spill] sm:$0xff]  ;;  %v12535_v39 = vld [vmem:[#allocation147_spill] sm:$0xff] }
 0x322   : > { %v10878_v62 = vadd.f32 %v3244_v38, %v10746_v47  ;;  %v3344_v51 = vsub.f32 1.0, %v3342_v58  ;;  %v3348_v35 = vsub.f32 1.0, %v3346_v44  ;;  %v3343_v42 = vmul.f32 0.22119921, %v6097_v32  ;;  %v12533_v19 = vld [vmem:[#allocation100_spill] sm:$0xff]  ;;  %v3587_v38 = vpop.f32.mrb[62].mxu1 }
 0x323   : > { %v3347_v24 = vmul.f32 0.39346933, %v6097_v32  ;;  %vm3591_vm1 = vcmp.gt.f32.partialorder %v3584_v26, 0.5  ;;  %v5185_v9 = vsel %vm225_vm0, %v5101_v61, 0.0  ;;  %v4123_v21 = vsub.f32 1.0, %v12530_v28  ;;  %v6477_v26 = vpop.f32.mrb[63].mxu1 }
 0x324   : > { %v4125_v29 = vsub.f32 1.0, %v12531_v12  ;;  %v3350_v41 = vmul.f32 %v3348_v35, %v12532_v23  ;;  %v3354_v36 = vmul.f32 %v3344_v51, %v12533_v19  ;;  %v3358_v47 = vmul.f32 %v3344_v51, %v12534_v48  ;;  %5186 = vadd.xlane.f32.xlu0 %v5185_v9  ;;  %v12536_v9 = vld [vmem:[#allocation120_spill] sm:$0xff] }
 0x325   : > { %v3368_v43 = vmul.f32 %v12535_v39, %v3348_v35  ;;  %v10888_v58 = vadd.f32 %v3344_v51, %v10761_v46  ;;  %v3345_v44 = vsub.f32 1.0, %v3343_v42  ;;  %v3349_v32 = vsub.f32 1.0, %v3347_v24  ;;  %v12537_v51 = vld [vmem:[#allocation133_spill] sm:$0xff]  ;;  %v12538_v24 = vld [vmem:[#allocation68_spill] sm:$0xff] }
 0x326   : > { %v6112_v61 = vsel %vm3591_vm1, 1.0, %v11912_v60  ;;  %v10892_v52 = vadd.f32 %v3350_v41, %v10764_v45  ;;  %v10895_v23 = vadd.f32 %v3354_v36, %v10767_v63  ;;  %v10898_v19 = vadd.f32 %v3358_v47, %v10770_v27  ;;  %v12539_v39 = vld [vmem:[#allocation156_spill] sm:$0xff] }
 0x327   : > { %v10901_v35 = vadd.f32 %v3368_v43, %v10773_v57  ;;  %v3351_v46 = vmul.f32 %v3349_v32, %v12536_v9  ;;  %v3355_v42 = vmul.f32 %v3345_v44, %v12537_v51  ;;  %v3359_v48 = vmul.f32 %v3345_v44, %v12538_v24  ;;  %v3709_v43 = vpop.f32.mrb[64].mxu1  ;;  %v12540_v51 = vld [vmem:[#allocation162_spill] sm:$0xff] }
 0x328   : > { %v3369_v26 = vmul.f32 %v12539_v39, %v3349_v32  ;;  %v10908_v45 = vadd.f32 %v3345_v44, %v10780_v2  ;;  %v3597_v41 = vmul.f32 0.22119921, %v6112_v61  ;;  %v3601_v63 = vmul.f32 0.39346933, %v6112_v61  ;;  %v6488_v44 = vpop.f32.mrb[65].mxu1  ;;  %v12543_v39 = vld [vmem:[#allocation140_spill] sm:$0xff] }
 0x329   : > { %vm3592_vm10 = vcmp.gt.f32.partialorder %v3587_v38, 0.5  ;;  %v10911_v27 = vadd.f32 %v3351_v46, %v10783_v11  ;;  %v10914_v57 = vadd.f32 %v3355_v42, %v10786_v25  ;;  %v10917_v36 = vadd.f32 %v3359_v48, %v10789_v50  ;;  %v3712_v46 = vpop.f32.mrb[66].mxu1  ;;  %v12541_v42 = vld [vmem:[#allocation119_spill] sm:$0xff] }
 0x32a   : > { %v10920_v47 = vadd.f32 %v3369_v26, %v10792_v31  ;;  %v3599_v32 = vsub.f32 1.0, %v3597_v41  ;;  %v3603_v9 = vsub.f32 1.0, %v3601_v63  ;;  %v6113_v2 = vsel %vm3592_vm10, 1.0, %v11912_v60  ;;  %v12542_v31 = vld [vmem:[#allocation110_spill] sm:$0xff]  ;;  %v6489_v41 = vpop.f32.mrb[67].mxu1 }
 0x32b   : > { %vm3716_vm11 = vcmp.gt.f32.partialorder %v3709_v43, 0.5  ;;  %v3598_v38 = vmul.f32 0.22119921, %v6113_v2  ;;  %v3602_v61 = vmul.f32 0.39346933, %v6113_v2  ;;  %v10924_v25 = vmul.f32 %v4125_v29, %v4123_v21 }
 0x32c   : > { %v6118_v11 = vsel %vm3716_vm11, 1.0, %v11912_v60  ;;  %v3605_v50 = vmul.f32 %v3603_v9, %v12540_v51  ;;  %v3609_v24 = vmul.f32 %v3599_v32, %v12541_v42  ;;  %v3613_v48 = vmul.f32 %v3599_v32, %v12542_v31  ;;  %v12545_v31 = vld [vmem:[#allocation150_spill] sm:$0xff] }
 0x32d   : > { %v3623_v26 = vmul.f32 %v12543_v39, %v3603_v9  ;;  %v10931_v63 = vadd.f32 %v3599_v32, %v10797_v10  ;;  %v3600_v43 = vsub.f32 1.0, %v3598_v38  ;;  %v3604_v44 = vsub.f32 1.0, %v3602_v61  ;;  %v12544_v9 = vld [vmem:[#allocation87_spill] sm:$0xff]  ;;  %v12547_v61 = vld [vmem:[#allocation164_spill] sm:$0xff] }
 0x32e   : > { %v3722_v2 = vmul.f32 0.22119921, %v6118_v11  ;;  %v10934_v12 = vadd.f32 %v3605_v50, %v10812_v3  ;;  %v10937_v21 = vadd.f32 %v3609_v24, %v10804_v18  ;;  %v10940_v29 = vadd.f32 %v3613_v48, %v10807_v14  ;;  %v12546_v32 = vld [vmem:[#allocation111_spill] sm:$0xff] }
 0x32f   : > { %v10943_v51 = vadd.f32 %v3623_v26, %v10815_v53  ;;  %v3606_v42 = vmul.f32 %v3604_v44, %v12544_v9  ;;  %v3610_v10 = vmul.f32 %v3600_v43, %v12545_v31  ;;  %v3614_v38 = vmul.f32 %v3600_v43, %v12546_v32  ;;  %v3834_v26 = vpop.f32.mrb[68].mxu1  ;;  %v12550_v9 = vld [vmem:[#allocation123_spill] sm:$0xff] }
 0x330   : > { %v3624_v39 = vmul.f32 %v12547_v61, %v3604_v44  ;;  %v10950_v3 = vadd.f32 %v3600_v43, %v10825_v5  ;;  %v3724_v50 = vsub.f32 1.0, %v3722_v2  ;;  %v3726_v18 = vmul.f32 0.39346933, %v6118_v11  ;;  %v12548_v44 = vld [vmem:[#allocation108_spill] sm:$0xff]  ;;  %v12549_v43 = vld [vmem:[#allocation70_spill] sm:$0xff] }
 0x331   : > { %vm3717_vm7 = vcmp.gt.f32.partialorder %v3712_v46, 0.5  ;;  %v10953_v14 = vadd.f32 %v3606_v42, %v10831_v22  ;;  %v10956_v53 = vadd.f32 %v3610_v10, %v10834_v40  ;;  %v10959_v24 = vadd.f32 %v3614_v38, %v10837_v49  ;;  %v6500_v22 = vpop.f32.mrb[69].mxu1  ;;  %v12551_v42 = vld [vmem:[#allocation94_spill] sm:$0xff] }
 0x332   : > { %v10962_v48 = vadd.f32 %v3624_v39, %v10840_v54  ;;  %v3728_v41 = vsub.f32 1.0, %v3726_v18  ;;  %v3734_v5 = vmul.f32 %v3724_v50, %v12548_v44  ;;  %v3738_v2 = vmul.f32 %v3724_v50, %v12549_v43  ;;  %v3837_v40 = vpop.f32.mrb[70].mxu1  ;;  %v12552_v54 = vld [vmem:[#allocation165_spill] sm:$0xff]  ;;  %v12555_v61 = vld [vmem:[#allocation166_spill] sm:$0xff] }
 0x333   : > { %v10967_v11 = vadd.f32 %v3724_v50, %v10853_v33  ;;  %v6119_v46 = vsel %vm3717_vm7, 1.0, %v11912_v60  ;;  %vm3841_vm8 = vcmp.gt.f32.partialorder %v3834_v26, 0.5  ;;  %v4247_v49 = vsub.f32 1.0, %v12550_v9  ;;  %v6501_v39 = vpop.f32.mrb[71].mxu1 }
 0x334   : > { %v4249_v31 = vsub.f32 1.0, %v12551_v42  ;;  %v3730_v10 = vmul.f32 %v3728_v41, %v12552_v54  ;;  %v10974_v32 = vadd.f32 %v3734_v5, %v10846_v16  ;;  %v10977_v38 = vadd.f32 %v3738_v2, %v10849_v34 }
 0x335   : > { %v3748_v33 = vmul.f32 %v12555_v61, %v3728_v41  ;;  %v3723_v50 = vmul.f32 0.22119921, %v6119_v46  ;;  %v3727_v18 = vmul.f32 0.39346933, %v6119_v46  ;;  %v6124_v26 = vsel %vm3841_vm8, 1.0, %v11912_v60 }
 0x336   : > { %12553 = vst [vmem:[#allocation57_spill] sm:$0xff] %v10974_v32  ;;  %12554 = vst [vmem:[#allocation59_spill] sm:$0xff] %v10977_v38  ;;  %vm3842_vm9 = vcmp.gt.f32.partialorder %v3837_v40, 0.5  ;;  %v10982_v44 = vadd.f32 %v3730_v10, %v10843_v30  ;;  %v3847_v22 = vmul.f32 0.22119921, %v6124_v26  ;;  %v10988_v2 = vmul.f32 %v4249_v31, %v4247_v49  ;;  %v12558_v38 = vld [vmem:[#allocation73_spill] sm:$0xff] }
 0x337   : > { %v10985_v43 = vadd.f32 %v3748_v33, %v10856_v37  ;;  %v3851_v16 = vmul.f32 0.39346933, %v6124_v26  ;;  %v3725_v5 = vsub.f32 1.0, %v3723_v50  ;;  %v3729_v54 = vsub.f32 1.0, %v3727_v18  ;;  %v12559_v32 = vld [vmem:[#allocation157_spill] sm:$0xff]  ;;  %v12560_v10 = vld [vmem:[#allocation32_spill] sm:$0xff] }
 0x338   : > { %12556 = vst [vmem:[#allocation44_spill] sm:$0xff] %v10982_v44  ;;  %v6125_v34 = vsel %vm3842_vm9, 1.0, %v11912_v60  ;;  %v3849_v41 = vsub.f32 1.0, %v3847_v22  ;;  %v12561_v37 = vld [vmem:[#allocation26_spill] sm:$0xff]  ;;  %vm5376_vm7 = vcmask 130112   ;;  %vm5621_vm8 = vcmask 1041409  }
 0x339   : > { %12557 = vst [vmem:[#allocation27_spill] sm:$0xff] %v10985_v43  ;;  %v3853_v61 = vsub.f32 1.0, %v3851_v16  ;;  %v3848_v46 = vmul.f32 0.22119921, %v6125_v34  ;;  %v3852_v39 = vmul.f32 0.39346933, %v6125_v34  ;;  %v3731_v40 = vmul.f32 %v3729_v54, %v12558_v38 }
 0x33a   : > { %v3735_v30 = vmul.f32 %v3725_v5, %v12559_v32  ;;  %v3739_v44 = vmul.f32 %v3725_v5, %v12560_v10  ;;  %v3749_v33 = vmul.f32 %v12561_v37, %v3729_v54  ;;  %v4089_v43 = vpop.f32.mrb[72].mxu1  ;;  %v10995_v50 = vadd.f32 %v3725_v5, %v10865_v13 }
 0x33b   : > { %v3855_v18 = vmul.f32 %v3853_v61, %v10419_v4  ;;  %v3859_v49 = vmul.f32 %v3849_v41, %v10128_v59  ;;  %v3863_v31 = vmul.f32 %v3849_v41, %v12429_v55  ;;  %v6512_v26 = vpop.f32.mrb[73].mxu1  ;;  %v11001_v22 = vadd.f32 %v3731_v40, %v10869_v17 }
 0x33c   : > { %v11004_v32 = vadd.f32 %v3735_v30, %v10872_v8  ;;  %v11007_v38 = vadd.f32 %v3739_v44, %v10875_v20  ;;  %v11010_v16 = vadd.f32 %v3749_v33, %v10878_v62  ;;  %v4092_v13 = vpop.f32.mrb[74].mxu1  ;;  %v3873_v17 = vmul.f32 %v10426_v15, %v3853_v61  ;;  %v12563_v61 = vld [vmem:[#allocation31_spill] sm:$0xff]  ;;  %v12565_v26 = vld [vmem:[#allocation109_spill] sm:$0xff] }
 0x33d   : > { %v11013_v4 = vadd.f32 %v3855_v18, %v10892_v52  ;;  %v11016_v59 = vadd.f32 %v3859_v49, %v10895_v23  ;;  %v11019_v55 = vadd.f32 %v3863_v31, %v10898_v19  ;;  %v6513_v8 = vpop.f32.mrb[75].mxu1  ;;  %v11023_v5 = vadd.f32 %v3849_v41, %v10888_v58  ;;  %v12562_v23 = vld [vmem:[#allocation160_spill] sm:$0xff] }
 0x33e   : > { %v3850_v20 = vsub.f32 1.0, %v3848_v46  ;;  %v3854_v44 = vsub.f32 1.0, %v3852_v39  ;;  %vm4096_vm12 = vcmp.gt.f32.partialorder %v4089_v43, 0.5  ;;  %v11026_v62 = vadd.f32 %v3873_v17, %v10901_v35  ;;  %v4974_v39 = vld [vmem:[#allocation2 + $0xc8] sm:$0xff]  ;;  %v12564_v49 = vld [vmem:[#allocation56_spill] sm:$0xff] }
 0x33f   : > { %v6140_v52 = vsel %vm4096_vm12, 1.0, %v11912_v60  ;;  %vm4097_vm13 = vcmp.gt.f32.partialorder %v4092_v13, 0.5  ;;  %v4248_v54 = vsub.f32 1.0, %v12562_v23  ;;  %v4250_v31 = vsub.f32 1.0, %v12564_v49  ;;  %v12567_v13 = vld [vmem:[#allocation135_spill] sm:$0xff]  ;;  %v12569_v8 = vld [vmem:[#allocation76_spill] sm:$0xff] }
 0x340   : > { %v3856_v19 = vmul.f32 %v3854_v44, %v10524_v1  ;;  %v3860_v34 = vmul.f32 %v3850_v20, %v10157_v7  ;;  %v3864_v15 = vmul.f32 %v3850_v20, %v12450_v56  ;;  %v3874_v58 = vmul.f32 %v12563_v61, %v3854_v44  ;;  %v4214_v1 = vpop.f32.mrb[76].mxu1  ;;  %v12570_v44 = vld [vmem:[#allocation121_spill] sm:$0xff] }
 0x341   : > { %v11035_v41 = vadd.f32 %v3850_v20, %v10908_v45  ;;  %v4102_v43 = vmul.f32 0.22119921, %v6140_v52  ;;  %v4106_v46 = vmul.f32 0.39346933, %v6140_v52  ;;  %v6141_v35 = vsel %vm4097_vm13, 1.0, %v11912_v60  ;;  %v6524_v18 = vpop.f32.mrb[77].mxu1 }
 0x342   : > { %v11039_v40 = vadd.f32 %v3856_v19, %v10911_v27  ;;  %v11042_v30 = vadd.f32 %v3860_v34, %v10914_v57  ;;  %v11045_v7 = vadd.f32 %v3864_v15, %v10917_v36  ;;  %v11048_v56 = vadd.f32 %v3874_v58, %v10920_v47  ;;  %v12566_v57 = vld [vmem:[#allocation41_spill] sm:$0xff]  ;;  %v12571_v19 = vld [vmem:[#allocation127_spill] sm:$0xff]  ;;  %v4217_v15 = vpop.f32.mrb[78].mxu1 }
 0x343   : > { %v4104_v45 = vsub.f32 1.0, %v4102_v43  ;;  %v4108_v10 = vsub.f32 1.0, %v4106_v46  ;;  %v4103_v37 = vmul.f32 0.22119921, %v6141_v35  ;;  %v4107_v33 = vmul.f32 0.39346933, %v6141_v35 }
 0x344   : > { %vm4221_vm14 = vcmp.gt.f32.partialorder %v4214_v1, 0.5  ;;  %v4976_v27 = vadd.f32 %v4974_v39, %v10754_v0  ;;  %v12568_v17 = vsub.f32 %v12566_v57, %v12567_v13  ;;  %v6525_v46 = vpop.f32.mrb[79].mxu1  ;;  %vm4222_vm15 = vcmp.gt.f32.partialorder %v4217_v15, 0.5 }
 0x345   : > { %v4110_v20 = vmul.f32 %v4108_v10, %v12569_v8  ;;  %v4114_v47 = vmul.f32 %v4104_v45, %v12513_v6  ;;  %v4118_v52 = vmul.f32 %v4104_v45, %v12570_v44  ;;  %v4128_v34 = vmul.f32 %v12571_v19, %v4108_v10 }
 0x346   : > { %v4512_v36 = vadd.f32 %v12568_v17, %v12565_v26  ;;  %v11061_v61 = vadd.f32 %v4104_v45, %v10931_v63  ;;  %v4105_v58 = vsub.f32 1.0, %v4103_v37  ;;  %v4109_v43 = vsub.f32 1.0, %v4107_v33  ;;  %4978 = vst.msk [vmem:[#allocation2 + $0xc8] sm:$0xff] %vm225_vm0, %v4976_v27  ;;  %v12572_v63 = vld [vmem:[#allocation71_spill] sm:$0xff]  ;;  %v12573_v37 = vld [vmem:[#allocation125_spill] sm:$0xff]  ;;  %v4973_v26 = vld [vmem:[#allocation2 + $0xc0] sm:$0xff] }
 0x347   : > { %v6146_v0 = vsel %vm4221_vm14, 1.0, %v11912_v60  ;;  %v11066_v35 = vadd.f32 %v4110_v20, %v10934_v12  ;;  %v11069_v6 = vadd.f32 %v4114_v47, %v10937_v21  ;;  %v11072_v39 = vadd.f32 %v4118_v52, %v10940_v29 }
 0x348   : > { %v11075_v1 = vadd.f32 %v4128_v34, %v10943_v51  ;;  %v4111_v45 = vmul.f32 %v4109_v43, %v12572_v63  ;;  %v4115_v10 = vmul.f32 %v4105_v58, %v12530_v28  ;;  %v4119_v33 = vmul.f32 %v4105_v58, %v12573_v37  ;;  %v12576_v63 = vld [vmem:[#allocation57_spill] sm:$0xff] }
 0x349   : > { %v4129_v18 = vmul.f32 %v10924_v25, %v4109_v43  ;;  %v11082_v12 = vadd.f32 %v4105_v58, %v10950_v3  ;;  %v4227_v27 = vmul.f32 0.22119921, %v6146_v0  ;;  %v4231_v21 = vmul.f32 0.39346933, %v6146_v0  ;;  %v4339_v25 = vpop.f32.mrb[80].mxu1 }
 0x34a   : > { %v11085_v29 = vadd.f32 %v4111_v45, %v10953_v14  ;;  %v11088_v51 = vadd.f32 %v4115_v10, %v10956_v53  ;;  %v11091_v57 = vadd.f32 %v4119_v33, %v10959_v24  ;;  %v6147_v17 = vsel %vm4222_vm15, 1.0, %v11912_v60  ;;  %v6536_v20 = vpop.f32.mrb[81].mxu1  ;;  %v12574_v53 = vld [vmem:[#allocation167_spill] sm:$0xff] }
 0x34b   : > { %v11094_v28 = vadd.f32 %v4129_v18, %v10962_v48  ;;  %v4229_v13 = vsub.f32 1.0, %v4227_v27  ;;  %v4233_v3 = vsub.f32 1.0, %v4231_v21  ;;  %v4252_v8 = vmul.f32 %v4250_v31, %v4248_v54  ;;  %v4342_v52 = vpop.f32.mrb[82].mxu1 }
 0x34c   : > { %v4228_v47 = vmul.f32 0.22119921, %v6147_v17  ;;  %v4232_v44 = vmul.f32 0.39346933, %v6147_v17  ;;  %v4975_v14 = vadd.f32 %v4973_v26, %v4512_v36  ;;  %vm4346_vm2 = vcmp.gt.f32.partialorder %v4339_v25, 0.5  ;;  %v6537_v58 = vpop.f32.mrb[83].mxu1 }
 0x34d   : > { %v4235_v19 = vmul.f32 %v4233_v3, %v12574_v53  ;;  %v4239_v24 = vmul.f32 %v4229_v13, %v12550_v9  ;;  %v4243_v34 = vmul.f32 %v4229_v13, %v12551_v42  ;;  %v4253_v48 = vmul.f32 %v10988_v2, %v4233_v3  ;;  %v5112_v15 = vld [vmem:[#allocation2 + $0xc8] sm:$0xff]  ;;  %v12575_v36 = vld [vmem:[#allocation44_spill] sm:$0xff]  ;;  %v12577_v42 = vld [vmem:[#allocation59_spill] sm:$0xff] }
 0x34e   : > { %v11102_v43 = vadd.f32 %v4229_v13, %v10967_v11  ;;  %v4230_v54 = vsub.f32 1.0, %v4228_v47  ;;  %v4234_v31 = vsub.f32 1.0, %v4232_v44  ;;  %v5218_v0 = vsel %vm225_vm0, %v5112_v15, 0.0  ;;  %4977 = vst.msk [vmem:[#allocation2 + $0xc0] sm:$0xff] %vm225_vm0, %v4975_v14  ;;  %v12578_v2 = vld [vmem:[#allocation27_spill] sm:$0xff]  ;;  %v12579_v11 = vld [vmem:[#allocation105_spill] sm:$0xff] }
 0x34f   : > { %v11107_v46 = vadd.f32 %v4235_v19, %v12575_v36  ;;  %v11110_v9 = vadd.f32 %v4239_v24, %v12576_v63  ;;  %v11113_v45 = vadd.f32 %v4243_v34, %v12577_v42  ;;  %v11116_v10 = vadd.f32 %v4253_v48, %v12578_v2  ;;  %5219 = vadd.xlane.f32.xlu1 %v5218_v0  ;;  %v12580_v13 = vld [vmem:[#allocation146_spill] sm:$0xff]  ;;  %v12581_v17 = vld [vmem:[#allocation89_spill] sm:$0xff]  ;;  %v12582_v24 = vld [vmem:[#allocation155_spill] sm:$0xff] }
 0x350   : > { %v4236_v37 = vmul.f32 %v4234_v31, %v12579_v11  ;;  %v4240_v33 = vmul.f32 %v4230_v54, %v12562_v23  ;;  %v4244_v18 = vmul.f32 %v4230_v54, %v12564_v49  ;;  %v4254_v27 = vmul.f32 %v4252_v8, %v4234_v31  ;;  %v12583_v34 = vld [vmem:[#allocation151_spill] sm:$0xff]  ;;  %v12584_v42 = vld [vmem:[#allocation141_spill] sm:$0xff] }
 0x351   : > { %v11122_v21 = vadd.f32 %v4230_v54, %v10995_v50  ;;  %v6152_v26 = vsel %vm4346_vm2, 1.0, %v11912_v60  ;;  %v4372_v3 = vsub.f32 1.0, %v12580_v13  ;;  %v4374_v20 = vsub.f32 1.0, %v12581_v17  ;;  %v4594_v50 = vpop.f32.mrb[84].mxu1 }
 0x352   : > { %v11129_v47 = vadd.f32 %v4236_v37, %v11001_v22  ;;  %v11132_v44 = vadd.f32 %v4240_v33, %v11004_v32  ;;  %v11135_v23 = vadd.f32 %v4244_v18, %v11007_v38  ;;  %v11138_v49 = vadd.f32 %v4254_v27, %v11010_v16  ;;  %v6548_v53 = vpop.f32.mrb[85].mxu1 }
 0x353   : > { %v4352_v8 = vmul.f32 0.22119921, %v6152_v26  ;;  %v4356_v25 = vmul.f32 0.39346933, %v6152_v26  ;;  %v4376_v14 = vmul.f32 %v4374_v20, %v4372_v3  ;;  %vm4347_vm3 = vcmp.gt.f32.partialorder %v4342_v52, 0.5  ;;  %v4597_v32 = vpop.f32.mrb[86].mxu1 }
 0x354   : > { %v6153_v19 = vsel %vm4347_vm3, 1.0, %v11912_v60  ;;  %v4373_v22 = vsub.f32 1.0, %v12582_v24  ;;  %v4375_v48 = vsub.f32 1.0, %v12583_v34  ;;  %vm4601_vm4 = vcmp.gt.f32.partialorder %v4594_v50, 0.5  ;;  %v6549_v63 = vpop.f32.mrb[87].mxu1 }
 0x355   : > { %v5111_v15 = vld [vmem:[#allocation2 + $0xc0] sm:$0xff]  ;;  %v4354_v38 = vsub.f32 1.0, %v4352_v8  ;;  %v4358_v58 = vsub.f32 1.0, %v4356_v25  ;;  %v4353_v54 = vmul.f32 0.22119921, %v6153_v19  ;;  %v6168_v16 = vsel %vm4601_vm4, 1.0, %v11912_v60 }
 0x356   : > { %v5215_v31 = vsel %vm225_vm0, %v5111_v15, 0.0  ;;  %v4357_v0 = vmul.f32 0.39346933, %v6153_v19  ;;  %v4377_v36 = vmul.f32 %v4375_v48, %v4373_v22  ;;  %v4607_v52 = vmul.f32 0.22119921, %v6168_v16  ;;  %v12587_v15 = vld [vmem:[#allocation137_spill] sm:$0xff] }
 0x357   : > { %5216 = vadd.xlane.f32.xlu0 %v5215_v31  ;;  %v4360_v2 = vmul.f32 %v4358_v58, %v12584_v42  ;;  %v4364_v11 = vmul.f32 %v4354_v38, %v12580_v13  ;;  %v4368_v37 = vmul.f32 %v4354_v38, %v12581_v17  ;;  %v4378_v33 = vmul.f32 %v4376_v14, %v4358_v58  ;;  %v12585_v17 = vld [vmem:[#allocation55_spill] sm:$0xff]  ;;  %v4719_v19 = vpop.f32.mrb[88].mxu1 }
 0x358   : > { %v11149_v18 = vadd.f32 %v4354_v38, %v11023_v5  ;;  %v4355_v27 = vsub.f32 1.0, %v4353_v54  ;;  %v4359_v26 = vsub.f32 1.0, %v4357_v0  ;;  %v4609_v3 = vsub.f32 1.0, %v4607_v52  ;;  %v6560_v38 = vpop.f32.mrb[89].mxu1  ;;  %v4994_v54 = vld [vmem:[#allocation2 + $0xf0] sm:$0xff] }
 0x359   : > { %v11152_v20 = vadd.f32 %v4360_v2, %v11013_v4  ;;  %v11155_v50 = vadd.f32 %v4364_v11, %v11016_v59  ;;  %v11158_v8 = vadd.f32 %v4368_v37, %v11019_v55  ;;  %v11161_v13 = vadd.f32 %v4378_v33, %v11026_v62  ;;  %v12586_v59 = vld [vmem:[#allocation144_spill] sm:$0xff]  ;;  %v5008_v52 = vld [vmem:[#allocation2 + $0x110] sm:$0xff] }
 0x35a   : > { %v4361_v25 = vmul.f32 %v4359_v26, %v12585_v17  ;;  %v4365_v5 = vmul.f32 %v4355_v27, %v12582_v24  ;;  %v4369_v14 = vmul.f32 %v4355_v27, %v12583_v34  ;;  %v4379_v53 = vmul.f32 %v4377_v36, %v4359_v26  ;;  %v12589_v2 = vld [vmem:[#allocation124_spill] sm:$0xff]  ;;  %v4980_v26 = vld [vmem:[#allocation2 + $0xd0] sm:$0xff] }
 0x35b   : > { %v11167_v4 = vadd.f32 %v4355_v27, %v11035_v41  ;;  %v4611_v22 = vmul.f32 0.39346933, %v6168_v16  ;;  %v4619_v48 = vmul.f32 %v4609_v3, %v12586_v59  ;;  %v4623_v55 = vmul.f32 %v4609_v3, %v12587_v15  ;;  %v4987_v41 = vld [vmem:[#allocation2 + $0xe0] sm:$0xff]  ;;  %v11183_v16 = vpop.f32.mrb[90].mxu1 }
 0x35c   : > { %v11172_v62 = vadd.f32 %v4361_v25, %v11039_v40  ;;  %v11175_v58 = vadd.f32 %v4365_v5, %v11042_v30  ;;  %v11178_v24 = vadd.f32 %v4369_v14, %v11045_v7  ;;  %v11181_v34 = vadd.f32 %v4379_v53, %v11048_v56  ;;  %v6561_v30 = vpop.f32.mrb[91].mxu1  ;;  %v12588_v56 = vld [vmem:[#allocation158_spill] sm:$0xff]  ;;  %v11198_v53 = vpop.xlane.xlu1 %5150 }
 0x35d   : > { %v4613_v31 = vsub.f32 1.0, %v4611_v22  ;;  %v4621_v0 = vadd.f32 %v4619_v48, %v11069_v6  ;;  %v4625_v36 = vadd.f32 %v4623_v55, %v11072_v39  ;;  %v4627_v40 = vsub.f32 1.0, %v12586_v59  ;;  %v11200_v22 = vpop.xlane.xlu0 %5144 }
 0x35e   : > { %v4629_v63 = vsub.f32 1.0, %v12587_v15  ;;  %v4637_v7 = vadd.f32 %v4609_v3, %v11061_v61  ;;  %vm4602_vm5 = vcmp.gt.f32.partialorder %v4597_v32, 0.5  ;;  %v4628_v42 = vsub.f32 1.0, %v12588_v56  ;;  %v12590_v61 = vld [vmem:[#allocation143_spill] sm:$0xff]  ;;  %v12591_v3 = vld [vmem:[#allocation153_spill] sm:$0xff] }
 0x35f   : > { %v4615_v11 = vmul.f32 %v4613_v31, %v12589_v2  ;;  %v4989_v37 = vadd.f32 %v4987_v41, %v4621_v0  ;;  %v4996_v33 = vadd.f32 %v4994_v54, %v4625_v36  ;;  %v6169_v27 = vsel %vm4602_vm5, 1.0, %v11912_v60  ;;  %v11204_v55 = vpop.f32.mrb[92].mxu1  ;;  %v5001_v41 = vld [vmem:[#allocation2 + $0x100] sm:$0xff] }
 0x360   : > { %v4631_v6 = vmul.f32 %v4629_v63, %v4627_v40  ;;  %v5010_v39 = vadd.f32 %v5008_v52, %v4637_v7  ;;  %v4608_v17 = vmul.f32 0.22119921, %v6169_v27  ;;  %v4612_v25 = vmul.f32 0.39346933, %v6169_v27  ;;  %v6572_v36 = vpop.f32.mrb[93].mxu1  ;;  %v12592_v52 = vld [vmem:[#allocation163_spill] sm:$0xff] }
 0x361   : > { %v4617_v5 = vadd.f32 %v4615_v11, %v11066_v35  ;;  %4991 = vst.msk [vmem:[#allocation2 + $0xe0] sm:$0xff] %vm225_vm0, %v4989_v37  ;;  %4998 = vst.msk [vmem:[#allocation2 + $0xf0] sm:$0xff] %vm225_vm0, %v4996_v33  ;;  %v4630_v32 = vsub.f32 1.0, %v12590_v61  ;;  %vm4726_vm6 = vcmp.gt.f32.partialorder %v4719_v19, 0.5  ;;  %v4752_v14 = vsub.f32 1.0, %v12591_v3  ;;  %v5009_v7 = vld [vmem:[#allocation2 + $0x118] sm:$0xff] }
 0x362   : > { %v4633_v59 = vmul.f32 %v4631_v6, %v4613_v31  ;;  %5012 = vst.msk [vmem:[#allocation2 + $0x110] sm:$0xff] %vm225_vm0, %v5010_v39  ;;  %v4610_v48 = vsub.f32 1.0, %v4608_v17  ;;  %v4614_v15 = vsub.f32 1.0, %v4612_v25  ;;  %v6174_v35 = vsel %vm4726_vm6, 1.0, %v11912_v60  ;;  %v11210_v2 = vpop.f32.mrb[94].mxu1  ;;  %v4988_v33 = vld [vmem:[#allocation2 + $0xe8] sm:$0xff] }
 0x363   : > { %v4982_v38 = vadd.f32 %v4980_v26, %v4617_v5  ;;  %v4632_v54 = vmul.f32 %v4630_v32, %v4628_v42  ;;  %v4732_v0 = vmul.f32 0.22119921, %v6174_v35  ;;  %v4736_v19 = vmul.f32 0.39346933, %v6174_v35  ;;  %v4981_v42 = vld [vmem:[#allocation2 + $0xd8] sm:$0xff]  ;;  %v5002_v5 = vld [vmem:[#allocation2 + $0x108] sm:$0xff]  ;;  %v11222_v35 = vpop.xlane.xlu0 %5147 }
 0x364   : > { %v4635_v40 = vadd.f32 %v4633_v59, %v11075_v1  ;;  %v4616_v30 = vmul.f32 %v4614_v15, %v12592_v52  ;;  %v4620_v31 = vmul.f32 %v4610_v48, %v12588_v56  ;;  %v4624_v63 = vmul.f32 %v4610_v48, %v12590_v61  ;;  %v4995_v27 = vld [vmem:[#allocation2 + $0xf8] sm:$0xff]  ;;  %v6573_v1 = vpop.f32.mrb[95].mxu1  ;;  %v12593_v59 = vld [vmem:[#allocation168_spill] sm:$0xff] }
 0x365   : > { %4984 = vst.msk [vmem:[#allocation2 + $0xd0] sm:$0xff] %vm225_vm0, %v4982_v38  ;;  %v4634_v11 = vmul.f32 %v4632_v54, %v4614_v15  ;;  %v4638_v37 = vadd.f32 %v4610_v48, %v11082_v12  ;;  %v4734_v6 = vsub.f32 1.0, %v4732_v0  ;;  %v4738_v26 = vsub.f32 1.0, %v4736_v19  ;;  %v11220_v48 = vpop.xlane.xlu1 %5153  ;;  %v5022_v0 = vld [vmem:[#allocation2 + $0x130] sm:$0xff]  ;;  %v5029_v52 = vld [vmem:[#allocation2 + $0x140] sm:$0xff] }
 0x366   : > { %v5003_v39 = vadd.f32 %v5001_v41, %v4635_v40  ;;  %v4618_v17 = vadd.f32 %v4616_v30, %v11085_v29  ;;  %v4622_v56 = vadd.f32 %v4620_v31, %v11088_v51  ;;  %v4626_v25 = vadd.f32 %v4624_v63, %v11091_v57  ;;  %v12594_v51 = vld [vmem:[#allocation35_spill] sm:$0xff]  ;;  %v5015_v57 = vld [vmem:[#allocation2 + $0x120] sm:$0xff] }
 0x367   : > { %v4636_v61 = vadd.f32 %v4634_v11, %v11094_v28  ;;  %v5011_v32 = vadd.f32 %v5009_v7, %v4638_v37  ;;  %v4740_v15 = vmul.f32 %v4738_v26, %v12593_v59  ;;  %v4744_v12 = vmul.f32 %v4734_v6, %v12591_v3  ;;  %v5043_v30 = vld [vmem:[#allocation2 + $0x160] sm:$0xff]  ;;  %v12595_v7 = vld [vmem:[#allocation118_spill] sm:$0xff] }
 0x368   : > { %5005 = vst.msk [vmem:[#allocation2 + $0x100] sm:$0xff] %vm225_vm0, %v5003_v39  ;;  %v4983_v38 = vadd.f32 %v4981_v42, %v4618_v17  ;;  %v4990_v29 = vadd.f32 %v4988_v33, %v4622_v56  ;;  %v4997_v41 = vadd.f32 %v4995_v27, %v4626_v25  ;;  %v4748_v54 = vmul.f32 %v4734_v6, %v12594_v51  ;;  %v11248_v17 = vpop.xlane.xlu0 %5156  ;;  %v5036_v56 = vld [vmem:[#allocation2 + $0x150] sm:$0xff] }
 0x369   : > { %v5004_v19 = vadd.f32 %v5002_v5, %v4636_v61  ;;  %5013 = vst.msk [vmem:[#allocation2 + $0x118] sm:$0xff] %vm225_vm0, %v5011_v32  ;;  %v4742_v28 = vadd.f32 %v4740_v15, %v11107_v46  ;;  %v4746_v36 = vadd.f32 %v4744_v12, %v11110_v9  ;;  %v4754_v40 = vsub.f32 1.0, %v12594_v51  ;;  %v12598_v61 = vld [vmem:[#allocation38_spill] sm:$0xff]  ;;  %v5044_v15 = vld [vmem:[#allocation2 + $0x168] sm:$0xff] }
 0x36a   : > { %4985 = vst.msk [vmem:[#allocation2 + $0xd8] sm:$0xff] %vm225_vm0, %v4983_v38  ;;  %4992 = vst.msk [vmem:[#allocation2 + $0xe8] sm:$0xff] %vm225_vm0, %v4990_v29  ;;  %v4750_v31 = vadd.f32 %v4748_v54, %v11113_v45  ;;  %v4762_v63 = vadd.f32 %v4734_v6, %v11102_v43  ;;  %vm4727_vm1 = vcmp.gt.f32.partialorder %v11183_v16, 0.5  ;;  %v4753_v46 = vsub.f32 1.0, %v12595_v7  ;;  %v12596_v43 = vld [vmem:[#allocation37_spill] sm:$0xff]  ;;  %v12597_v6 = vld [vmem:[#allocation154_spill] sm:$0xff] }
 0x36b   : > { %4999 = vst.msk [vmem:[#allocation2 + $0xf8] sm:$0xff] %vm225_vm0, %v4997_v41  ;;  %5006 = vst.msk [vmem:[#allocation2 + $0x108] sm:$0xff] %vm225_vm0, %v5004_v19  ;;  %v4756_v9 = vmul.f32 %v4754_v40, %v4752_v14  ;;  %v5017_v11 = vadd.f32 %v5015_v57, %v4742_v28  ;;  %v5024_v37 = vadd.f32 %v5022_v0, %v4746_v36  ;;  %v6175_v42 = vsel %vm4727_vm1, 1.0, %v11912_v60  ;;  %v11246_v14 = vpop.xlane.xlu1 %5159  ;;  %v12599_v29 = vld [vmem:[#allocation16_spill] sm:$0xff]  ;;  %v5016_v28 = vld [vmem:[#allocation2 + $0x128] sm:$0xff] }
 0x36c   : > { %v5031_v33 = vadd.f32 %v5029_v52, %v4750_v31  ;;  %v5045_v27 = vadd.f32 %v5043_v30, %v4762_v63  ;;  %v4733_v1 = vmul.f32 0.22119921, %v6175_v42  ;;  %v4737_v39 = vmul.f32 0.39346933, %v6175_v42  ;;  %v5023_v36 = vld [vmem:[#allocation2 + $0x138] sm:$0xff]  ;;  %v5030_v40 = vld [vmem:[#allocation2 + $0x148] sm:$0xff] }
 0x36d   : > { %v4758_v45 = vmul.f32 %v4756_v9, %v4738_v26  ;;  %5019 = vst.msk [vmem:[#allocation2 + $0x120] sm:$0xff] %vm225_vm0, %v5017_v11  ;;  %5026 = vst.msk [vmem:[#allocation2 + $0x130] sm:$0xff] %vm225_vm0, %v5024_v37  ;;  %v4755_v16 = vsub.f32 1.0, %v12596_v43  ;;  %vm4851_vm10 = vcmp.gt.f32.partialorder %v11204_v55, 0.5  ;;  %v4877_v3 = vsub.f32 1.0, %v12597_v6 }
 0x36e   : > { %5033 = vst.msk [vmem:[#allocation2 + $0x140] sm:$0xff] %vm225_vm0, %v5031_v33  ;;  %5047 = vst.msk [vmem:[#allocation2 + $0x160] sm:$0xff] %vm225_vm0, %v5045_v27  ;;  %v4735_v26 = vsub.f32 1.0, %v4733_v1  ;;  %v4739_v25 = vsub.f32 1.0, %v4737_v39  ;;  %v6180_v5 = vsel %vm4851_vm10, 1.0, %v11912_v60  ;;  %v4879_v32 = vsub.f32 1.0, %v12598_v61  ;;  %v11269_v27 = vpop.xlane.xlu0 %5162 }
 0x36f   : > { %v4760_v59 = vadd.f32 %v4758_v45, %v11116_v10  ;;  %v4757_v55 = vmul.f32 %v4755_v16, %v4753_v46  ;;  %v4857_v12 = vmul.f32 0.22119921, %v6180_v5  ;;  %v4861_v38 = vmul.f32 0.39346933, %v6180_v5  ;;  %v5037_v46 = vld [vmem:[#allocation2 + $0x158] sm:$0xff]  ;;  %v11267_v33 = vpop.xlane.xlu1 %5165  ;;  %v5050_v39 = vld [vmem:[#allocation2 + $0x170] sm:$0xff] }
 0x370   : > { %v4741_v41 = vmul.f32 %v4739_v25, %v12599_v29  ;;  %v4745_v51 = vmul.f32 %v4735_v26, %v12595_v7  ;;  %v4749_v54 = vmul.f32 %v4735_v26, %v12596_v43  ;;  %v4763_v57 = vadd.f32 %v4735_v26, %v11122_v21  ;;  %v12600_v21 = vld [vmem:[#allocation22_spill] sm:$0xff]  ;;  %v5057_v45 = vld [vmem:[#allocation2 + $0x180] sm:$0xff] }
 0x371   : > { %v5038_v0 = vadd.f32 %v5036_v56, %v4760_v59  ;;  %v4759_v19 = vmul.f32 %v4757_v55, %v4739_v25  ;;  %v4859_v52 = vsub.f32 1.0, %v4857_v12  ;;  %v4863_v30 = vsub.f32 1.0, %v4861_v38  ;;  %v5064_v43 = vld [vmem:[#allocation2 + $0x190] sm:$0xff]  ;;  %v5071_v55 = vld [vmem:[#allocation2 + $0x1a0] sm:$0xff] }
 0x372   : > { %v4743_v10 = vadd.f32 %v4741_v41, %v11129_v47  ;;  %v4747_v31 = vadd.f32 %v4745_v51, %v11132_v44  ;;  %v4751_v63 = vadd.f32 %v4749_v54, %v11135_v23  ;;  %v5046_v9 = vadd.f32 %v5044_v15, %v4763_v57  ;;  %v5078_v26 = vld [vmem:[#allocation2 + $0x1b0] sm:$0xff] }
 0x373   : > { %5040 = vst.msk [vmem:[#allocation2 + $0x150] sm:$0xff] %vm225_vm0, %v5038_v0  ;;  %v4761_v7 = vadd.f32 %v4759_v19, %v11138_v49  ;;  %v4865_v11 = vmul.f32 %v4863_v30, %v12600_v21  ;;  %v4869_v37 = vmul.f32 %v4859_v52, %v12597_v6  ;;  %v4873_v42 = vmul.f32 %v4859_v52, %v12598_v61  ;;  %v12601_v5 = vld [vmem:[#allocation134_spill] sm:$0xff]  ;;  %v11290_v57 = vpop.xlane.xlu1 %5195  ;;  %v5058_v21 = vld [vmem:[#allocation2 + $0x188] sm:$0xff] }
 0x374   : > { %v5018_v47 = vadd.f32 %v5016_v28, %v4743_v10  ;;  %v5025_v44 = vadd.f32 %v5023_v36, %v4747_v31  ;;  %v5032_v1 = vadd.f32 %v5030_v40, %v4751_v63  ;;  %5048 = vst.msk [vmem:[#allocation2 + $0x168] sm:$0xff] %vm225_vm0, %v5046_v9  ;;  %v4881_v23 = vmul.f32 %v4879_v32, %v4877_v3  ;;  %v5121_v32 = vld [vmem:[#allocation2 + $0x110] sm:$0xff]  ;;  %v5119_v28 = vld [vmem:[#allocation2 + $0x100] sm:$0xff]  ;;  %v5120_v36 = vld [vmem:[#allocation2 + $0x108] sm:$0xff] }
 0x375   : > { %v5039_v49 = vadd.f32 %v5037_v46, %v4761_v7  ;;  %v4867_v16 = vadd.f32 %v4865_v11, %v11152_v20  ;;  %v4871_v6 = vadd.f32 %v4869_v37, %v11155_v50  ;;  %v4875_v56 = vadd.f32 %v4873_v42, %v11158_v8  ;;  %v5122_v20 = vld [vmem:[#allocation2 + $0x118] sm:$0xff] }
 0x376   : > { %5020 = vst.msk [vmem:[#allocation2 + $0x128] sm:$0xff] %vm225_vm0, %v5018_v47  ;;  %5027 = vst.msk [vmem:[#allocation2 + $0x138] sm:$0xff] %vm225_vm0, %v5025_v44  ;;  %v4883_v25 = vmul.f32 %v4881_v23, %v4863_v30  ;;  %v4887_v3 = vadd.f32 %v4859_v52, %v11149_v18  ;;  %vm4852_vm11 = vcmp.gt.f32.partialorder %v11210_v2, 0.5  ;;  %v4878_v61 = vsub.f32 1.0, %v12601_v5  ;;  %v12602_v18 = vld [vmem:[#allocation132_spill] sm:$0xff]  ;;  %v5079_v52 = vld [vmem:[#allocation2 + $0x1b8] sm:$0xff] }
 0x377   : > { %5034 = vst.msk [vmem:[#allocation2 + $0x148] sm:$0xff] %vm225_vm0, %v5032_v1  ;;  %5041 = vst.msk [vmem:[#allocation2 + $0x158] sm:$0xff] %vm225_vm0, %v5039_v49  ;;  %v5052_v50 = vadd.f32 %v5050_v39, %v4867_v16  ;;  %v5059_v8 = vadd.f32 %v5057_v45, %v4871_v6  ;;  %v5066_v59 = vadd.f32 %v5064_v43, %v4875_v56  ;;  %v6181_v15 = vsel %vm4852_vm11, 1.0, %v11912_v60  ;;  %v11292_v60 = vpop.xlane.xlu0 %5192  ;;  %v12603_v30 = vld [vmem:[#allocation43_spill] sm:$0xff]  ;;  %v5072_v23 = vld [vmem:[#allocation2 + $0x1a8] sm:$0xff]  ;;  %v5202_v49 = vpop.xlane.xlu1 %5201 }
 0x378   : > { %v4885_v12 = vadd.f32 %v4883_v25, %v11161_v13  ;;  %v5080_v38 = vadd.f32 %v5078_v26, %v4887_v3  ;;  %v4858_v29 = vmul.f32 0.22119921, %v6181_v15  ;;  %v4862_v41 = vmul.f32 0.39346933, %v6181_v15  ;;  %v5051_v7 = vld [vmem:[#allocation2 + $0x178] sm:$0xff]  ;;  %v5113_v45 = vld [vmem:[#allocation2 + $0xd0] sm:$0xff] }
 0x379   : > { %5054 = vst.msk [vmem:[#allocation2 + $0x170] sm:$0xff] %vm225_vm0, %v5052_v50  ;;  %5061 = vst.msk [vmem:[#allocation2 + $0x180] sm:$0xff] %vm225_vm0, %v5059_v8  ;;  %v4880_v2 = vsub.f32 1.0, %v12602_v18  ;;  %v5245_v51 = vsel %vm225_vm0, %v5121_v32, 0.0  ;;  %v5248_v54 = vsel %vm225_vm0, %v5122_v20, 0.0  ;;  %v5065_v11 = vld [vmem:[#allocation2 + $0x198] sm:$0xff] }
 0x37a   : > { %5068 = vst.msk [vmem:[#allocation2 + $0x190] sm:$0xff] %vm225_vm0, %v5066_v59  ;;  %v5073_v13 = vadd.f32 %v5071_v55, %v4885_v12  ;;  %5082 = vst.msk [vmem:[#allocation2 + $0x1b0] sm:$0xff] %vm225_vm0, %v5080_v38  ;;  %v4860_v0 = vsub.f32 1.0, %v4858_v29  ;;  %v4864_v19 = vsub.f32 1.0, %v4862_v41  ;;  %5246 = vadd.xlane.f32.xlu0 %v5245_v51  ;;  %5249 = vadd.xlane.f32.xlu1 %v5248_v54  ;;  %v5239_v37 = vsel %vm225_vm0, %v5119_v28, 0.0  ;;  %v5114_v43 = vld [vmem:[#allocation2 + $0xd8] sm:$0xff] }
 0x37b   : > { %v4882_v40 = vmul.f32 %v4880_v2, %v4878_v61  ;;  %v5242_v42 = vsel %vm225_vm0, %v5120_v36, 0.0  ;;  %v5199_v16 = vpop.xlane.xlu0 %5198  ;;  %v5115_v3 = vld [vmem:[#allocation2 + $0xe0] sm:$0xff]  ;;  %v12605_v61 = vld [vmem:[#allocation13_spill] sm:$0xff]  ;;  %v5208_v8 = vpop.xlane.xlu1 %5207  ;;  %v5117_v15 = vld [vmem:[#allocation2 + $0xf0] sm:$0xff]  ;;  %vm5623_vm9 = vcmask 1042434   ;;  %vm5625_vm12 = vcmask 1043459  }
 0x37c   : > { %5075 = vst.msk [vmem:[#allocation2 + $0x1a0] sm:$0xff] %vm225_vm0, %v5073_v13  ;;  %v4866_v10 = vmul.f32 %v4864_v19, %v12603_v30  ;;  %v4870_v31 = vmul.f32 %v4860_v0, %v12601_v5  ;;  %v4874_v63 = vmul.f32 %v4860_v0, %v12602_v18  ;;  %v4888_v46 = vadd.f32 %v4860_v0, %v11167_v4  ;;  %v5116_v5 = vld [vmem:[#allocation2 + $0xe8] sm:$0xff]  ;;  %v5118_v12 = vld [vmem:[#allocation2 + $0xf8] sm:$0xff]  ;;  %v5131_v13 = vld [vmem:[#allocation2 + $0x160] sm:$0xff] }
 0x37d   : > { %v4884_v9 = vmul.f32 %v4882_v40, %v4864_v19  ;;  %v5227_v50 = vsel %vm225_vm0, %v5115_v3, 0.0  ;;  %v5230_v55 = vsel %vm225_vm0, %v5116_v5, 0.0  ;;  %v5233_v18 = vsel %vm225_vm0, %v5117_v15, 0.0  ;;  %v5132_v0 = vld [vmem:[#allocation2 + $0x168] sm:$0xff] }
 0x37e   : > { %v4868_v47 = vadd.f32 %v4866_v10, %v11172_v62  ;;  %v4872_v44 = vadd.f32 %v4870_v31, %v11175_v58  ;;  %v4876_v1 = vadd.f32 %v4874_v63, %v11178_v24  ;;  %v5081_v39 = vadd.f32 %v5079_v52, %v4888_v46  ;;  %5240 = vadd.xlane.f32.xlu0 %v5239_v37  ;;  %v12604_v62 = vld [vmem:[#allocation12_spill] sm:$0xff] }
 0x37f   : > { %v4886_v4 = vadd.f32 %v4884_v9, %v11181_v34  ;;  %5243 = vadd.xlane.f32.xlu1 %v5242_v42  ;;  %v5371_v25 = vadd.s32 4294967288, %v12604_v62  ;;  %v5221_v24 = vsel %vm225_vm0, %v5113_v45, 0.0  ;;  %v5224_v34 = vsel %vm225_vm0, %v5114_v43, 0.0  ;;  %v5205_v59 = vpop.xlane.xlu0 %5204  ;;  %v5214_v28 = vpop.xlane.xlu1 %5213  ;;  %v5123_v46 = vld [vmem:[#allocation2 + $0x120] sm:$0xff]  ;;  %v5128_v45 = vld [vmem:[#allocation2 + $0x148] sm:$0xff]  ;;  %v5129_v43 = vld [vmem:[#allocation2 + $0x150] sm:$0xff] }
 0x380   : > { %v5053_v6 = vadd.f32 %v5051_v7, %v4868_v47  ;;  %v5060_v56 = vadd.f32 %v5058_v21, %v4872_v44  ;;  %v5067_v26 = vadd.f32 %v5065_v11, %v4876_v1  ;;  %5083 = vst.msk [vmem:[#allocation2 + $0x1b8] sm:$0xff] %vm225_vm0, %v5081_v39  ;;  %v11316_v32 = vsub.s32 %v12604_v62, %v12605_v61  ;;  %v5124_v21 = vld [vmem:[#allocation2 + $0x128] sm:$0xff]  ;;  %v5125_v47 = vld [vmem:[#allocation2 + $0x130] sm:$0xff]  ;;  %v5126_v44 = vld [vmem:[#allocation2 + $0x138] sm:$0xff] }
 0x381   : > { %v5074_v58 = vadd.f32 %v5072_v23, %v4886_v4  ;;  %v11319_v20 = vsub.s32 %v5371_v25, %v12605_v61  ;;  %v5236_v54 = vsel %vm225_vm0, %v5118_v12, 0.0  ;;  %v5275_v10 = vsel %vm225_vm0, %v5131_v13, 0.0  ;;  %v5127_v39 = vld [vmem:[#allocation2 + $0x140] sm:$0xff] }
 0x382   : > { %5055 = vst.msk [vmem:[#allocation2 + $0x178] sm:$0xff] %vm225_vm0, %v5053_v6  ;;  %5062 = vst.msk [vmem:[#allocation2 + $0x188] sm:$0xff] %vm225_vm0, %v5060_v56  ;;  %5222 = vadd.xlane.f32.xlu0 %v5221_v24  ;;  %v5444_v29 = vrot.slane %v11292_v60, %v11316_v32  ;;  %v5453_v51 = vrot.slane %v5199_v16, %v11316_v32  ;;  %v5462_v19 = vrot.slane %v5205_v59, %v11316_v32  ;;  %v5130_v16 = vld [vmem:[#allocation2 + $0x158] sm:$0xff]  ;;  %vm5627_vm13 = vcmask 1044484  }
 0x383   : > { %5069 = vst.msk [vmem:[#allocation2 + $0x198] sm:$0xff] %vm225_vm0, %v5067_v26  ;;  %5076 = vst.msk [vmem:[#allocation2 + $0x1a8] sm:$0xff] %vm225_vm0, %v5074_v58  ;;  %5225 = vadd.xlane.f32.xlu1 %v5224_v34  ;;  %v5448_v38 = vrot.slane %v11290_v57, %v11319_v20  ;;  %v5457_v41 = vrot.slane %v5202_v49, %v11319_v20  ;;  %v5466_v60 = vrot.slane %v5208_v8, %v11319_v20  ;;  %v5211_v36 = vpop.xlane.xlu0 %5210  ;;  %v5172_v56 = vpop.xlane.xlu1 %5171  ;;  %v5135_v34 = vld [vmem:[#allocation2 + $0x180] sm:$0xff]  ;;  %v5137_v8 = vld [vmem:[#allocation2 + $0x190] sm:$0xff]  ;;  %vm5629_vm14 = vcmask 1045509  }
 0x384   : > { %v5475_v52 = vrot.slane %v5214_v28, %v11319_v20  ;;  %v5471_v30 = vrot.slane %v5211_v36, %v11316_v32  ;;  %v5278_v63 = vsel %vm225_vm0, %v5132_v0, 0.0  ;;  %v5251_v37 = vsel %vm225_vm0, %v5123_v46, 0.0  ;;  %v5133_v28 = vld [vmem:[#allocation2 + $0x170] sm:$0xff] }
 0x385   : > { %v5449_v2 = vsel %vm5376_vm7, %v5448_v38, %v5444_v29  ;;  %v5458_v57 = vsel %vm5376_vm7, %v5457_v41, %v5453_v51  ;;  %v5467_v31 = vsel %vm5376_vm7, %v5466_v60, %v5462_v19  ;;  %v5254_v42 = vsel %vm225_vm0, %v5124_v21, 0.0  ;;  %v5141_v21 = vld [vmem:[#allocation2 + $0x1b0] sm:$0xff] }
 0x386   : > { %5228 = vadd.xlane.f32.xlu0 %v5227_v50  ;;  %v5635_v40 = vsel %vm5621_vm8, %v5458_v57, %v5449_v2  ;;  %v5476_v7 = vsel %vm5376_vm7, %v5475_v52, %v5471_v30  ;;  %v5257_v1 = vsel %vm225_vm0, %v5125_v47, 0.0  ;;  %v5260_v23 = vsel %vm225_vm0, %v5126_v44, 0.0 }
 0x387   : > { %5231 = vadd.xlane.f32.xlu1 %v5230_v55  ;;  %v5636_v9 = vsel %vm5623_vm9, %v5467_v31, %v5635_v40  ;;  %v5263_v4 = vsel %vm225_vm0, %v5127_v39, 0.0  ;;  %v5266_v49 = vsel %vm225_vm0, %v5128_v45, 0.0  ;;  %v5269_v6 = vsel %vm225_vm0, %v5129_v43, 0.0  ;;  %v5169_v5 = vpop.xlane.xlu0 %5168  ;;  %v5178_v59 = vpop.xlane.xlu1 %5177 }
 0x388   : > { %v11344_v11 = vsel %vm5625_vm12, %v5476_v7, %v5636_v9  ;;  %v5381_v26 = vrot.slane %v11198_v53, %v11316_v32  ;;  %v5370_v62 = vrot.slane %v11200_v22, %v11316_v32  ;;  %v5385_v25 = vrot.slane %v11220_v48, %v11319_v20 }
 0x389   : > { %v5375_v58 = vrot.slane %v11222_v35, %v11319_v20  ;;  %v5272_v24 = vsel %vm225_vm0, %v5130_v16, 0.0  ;;  %v5136_v3 = vld [vmem:[#allocation2 + $0x188] sm:$0xff]  ;;  %v5394_v61 = vrot.slane %v11246_v14, %v11319_v20  ;;  %v5390_v53 = vrot.slane %v11248_v17, %v11316_v32  ;;  %v5134_v52 = vld [vmem:[#allocation2 + $0x178] sm:$0xff] }
 0x38a   : > { %5234 = vadd.xlane.f32.xlu0 %v5233_v18  ;;  %v5287_v22 = vsel %vm225_vm0, %v5135_v34, 0.0  ;;  %v5386_v48 = vsel %vm5376_vm7, %v5385_v25, %v5381_v26  ;;  %v5290_v35 = vsel %vm225_vm0, %v5136_v3, 0.0  ;;  %v5138_v55 = vld [vmem:[#allocation2 + $0x198] sm:$0xff]  ;;  %v5403_v15 = vrot.slane %v11267_v33, %v11319_v20  ;;  %v5139_v18 = vld [vmem:[#allocation2 + $0x1a0] sm:$0xff]  ;;  %v5140_v33 = vld [vmem:[#allocation2 + $0x1a8] sm:$0xff] }
 0x38b   : > { %5237 = vadd.xlane.f32.xlu1 %v5236_v54  ;;  %v5377_v50 = vsel %vm5376_vm7, %v5375_v58, %v5370_v62  ;;  %v5399_v14 = vrot.slane %v11269_v27, %v11316_v32  ;;  %v5395_v12 = vsel %vm5376_vm7, %v5394_v61, %v5390_v53  ;;  %v5293_v38 = vsel %vm225_vm0, %v5137_v8, 0.0  ;;  %v5175_v29 = vpop.xlane.xlu0 %5174 }
 0x38c   : > { %v5622_v17 = vsel %vm5621_vm8, %v5386_v48, %v5377_v50  ;;  %v5296_v41 = vsel %vm225_vm0, %v5138_v55, 0.0  ;;  %v5412_v2 = vrot.slane %v5172_v56, %v11319_v20  ;;  %v5408_v51 = vrot.slane %v5169_v5, %v11316_v32 }
 0x38d   : > { %v5624_v54 = vsel %vm5623_vm9, %v5395_v12, %v5622_v17  ;;  %v5404_v27 = vsel %vm5376_vm7, %v5403_v15, %v5399_v14  ;;  %v5299_v0 = vsel %vm225_vm0, %v5139_v18, 0.0  ;;  %v5421_v57 = vrot.slane %v5178_v59, %v11319_v20 }
 0x38e   : > { %5276 = vadd.xlane.f32.xlu0 %v5275_v10  ;;  %v5417_v60 = vrot.slane %v5175_v29, %v11316_v32  ;;  %v5302_v19 = vsel %vm225_vm0, %v5140_v33, 0.0  ;;  %v5626_v36 = vsel %vm5625_vm12, %v5404_v27, %v5624_v54  ;;  %v5413_v40 = vsel %vm5376_vm7, %v5412_v2, %v5408_v51 }
 0x38f   : > { %5279 = vadd.xlane.f32.xlu1 %v5278_v63  ;;  %v5281_v63 = vsel %vm225_vm0, %v5133_v28, 0.0  ;;  %v5628_v46 = vsel %vm5627_vm13, %v5413_v40, %v5626_v36  ;;  %v5284_v7 = vsel %vm225_vm0, %v5134_v52, 0.0  ;;  %vm5631_vm15 = vcmask 1046534  }
 0x390   : > { %v5422_v9 = vsel %vm5376_vm7, %v5421_v57, %v5417_v60  ;;  %vm5633_vm2 = vcmask 1047559   ;;  %vm5665_vm3 = vcmask 125952   ;;  %vm5669_vm4 = vcmask 7168  }
 0x391   : > { %v5184_v13 = vpop.xlane.xlu1 %5183  ;;  %v5630_v44 = vsel %vm5629_vm14, %v5422_v9, %v5628_v46 }
 0x392   : > { %5252 = vadd.xlane.f32.xlu0 %v5251_v37  ;;  %v5181_v30 = vpop.xlane.xlu0 %5180  ;;  %v5430_v10 = vrot.slane %v5184_v13, %v11319_v20 }
 0x393   : > { %5255 = vadd.xlane.f32.xlu1 %v5254_v42  ;;  %v5426_v31 = vrot.slane %v5181_v30, %v11316_v32  ;;  %v5142_v42 = vld [vmem:[#allocation2 + $0x1b8] sm:$0xff] }
 0x394   : > { %v5308_v39 = vsel %vm225_vm0, %v5142_v42, 0.0 }
 0x395   : > { %v5431_v47 = vsel %vm5376_vm7, %v5430_v10, %v5426_v31 }
 0x396   : > { %5258 = vadd.xlane.f32.xlu0 %v5257_v1  ;;  %v5305_v1 = vsel %vm225_vm0, %v5141_v21, 0.0  ;;  %v5632_v43 = vsel %vm5631_vm15, %v5431_v47, %v5630_v44 }
 0x397   : > { %5261 = vadd.xlane.f32.xlu1 %v5260_v23 }
 0x39a   : > { %5264 = vadd.xlane.f32.xlu0 %v5263_v4 }
 0x39b   : > { %5267 = vadd.xlane.f32.xlu1 %v5266_v49 }
 0x39e   : > { %5270 = vadd.xlane.f32.xlu0 %v5269_v6 }
 0x39f   : > { %5273 = vadd.xlane.f32.xlu1 %v5272_v24 }
 0x3a2   : > { %5288 = vadd.xlane.f32.xlu0 %v5287_v22 }
 0x3a3   : > { %5291 = vadd.xlane.f32.xlu1 %v5290_v35 }
 0x3a6   : > { %5294 = vadd.xlane.f32.xlu0 %v5293_v38 }
 0x3a7   : > { %5297 = vadd.xlane.f32.xlu1 %v5296_v41 }
 0x3aa   : > { %5300 = vadd.xlane.f32.xlu0 %v5299_v0 }
 0x3ab   : > { %5303 = vadd.xlane.f32.xlu1 %v5302_v19 }
 0x3ac   : > { %v5190_v37 = vpop.xlane.xlu1 %5189 }
 0x3ad   : > { %v5439_v23 = vrot.slane %v5190_v37, %v11319_v20 }
 0x3ae   : > { %5282 = vadd.xlane.f32.xlu0 %v5281_v63 }
 0x3af   : > { %5285 = vadd.xlane.f32.xlu1 %v5284_v7 }
 0x3b1   : > { %v5187_v45 = vpop.xlane.xlu0 %5186 }
 0x3b2   : > { %5306 = vadd.xlane.f32.xlu0 %v5305_v1  ;;  %v5435_v4 = vrot.slane %v5187_v45, %v11316_v32 }
 0x3b3   : > { %5309 = vadd.xlane.f32.xlu1 %v5308_v39 }
 0x3b4   : > { %v5440_v49 = vsel %vm5376_vm7, %v5439_v23, %v5435_v4 }
 0x3b5   : > { %v5634_v16 = vsel %vm5633_vm2, %v5440_v49, %v5632_v43 }
 0x3b6   : > { %v5656_v6 = vsel %vm225_vm0, %v5634_v16, 0.0 }
 0x3b7   : > { %5657 = vadd.xlane.f32.xlu0 %v5656_v6 }
 0x3dc   : > { %v5220_v56 = vpop.xlane.xlu1 %5219 }
 0x3dd   : > { %v5484_v5 = vrot.slane %v5220_v56, %v11319_v20 }
 0x3e4   : > { %v5217_v26 = vpop.xlane.xlu0 %5216 }
 0x3e5   : > { %v5480_v61 = vrot.slane %v5217_v26, %v11316_v32 }
 0x3e7   : > { %v5485_v8 = vsel %vm5376_vm7, %v5484_v5, %v5480_v61 }
 0x3e8   : > { %v5638_v12 = vsel %vm5627_vm13, %v5485_v8, %v11344_v11 }
 0x407   : > { %v5247_v62 = vpop.xlane.xlu0 %5246  ;;  %v5250_v25 = vpop.xlane.xlu1 %5249 }
 0x408   : > { %v5529_v31 = vrot.slane %v5250_v25, %v11319_v20  ;;  %v5525_v42 = vrot.slane %v5247_v62, %v11316_v32 }
 0x40a   : > { %v5530_v45 = vsel %vm5376_vm7, %v5529_v31, %v5525_v42 }
 0x40b   : > { %v5241_v58 = vpop.xlane.xlu0 %5240 }
 0x40c   : > { %v5244_v24 = vpop.xlane.xlu1 %5243  ;;  %v5516_v63 = vrot.slane %v5241_v58, %v11316_v32 }
 0x40d   : > { %v5520_v30 = vrot.slane %v5244_v24, %v11319_v20 }
 0x40f   : > { %v5223_v34 = vpop.xlane.xlu0 %5222  ;;  %v5521_v47 = vsel %vm5376_vm7, %v5520_v30, %v5516_v63 }
 0x410   : > { %v5226_v3 = vpop.xlane.xlu1 %5225  ;;  %v5489_v50 = vrot.slane %v5223_v34, %v11316_v32  ;;  %v5642_v16 = vsel %vm5621_vm8, %v5530_v45, %v5521_v47 }
 0x411   : > { %v5493_v53 = vrot.slane %v5226_v3, %v11319_v20 }
 0x413   : > { %v5229_v22 = vpop.xlane.xlu0 %5228  ;;  %v5494_v55 = vsel %vm5376_vm7, %v5493_v53, %v5489_v50 }
 0x414   : > { %v5232_v48 = vpop.xlane.xlu1 %5231  ;;  %v5498_v59 = vrot.slane %v5229_v22, %v11316_v32  ;;  %v5639_v41 = vsel %vm5629_vm14, %v5494_v55, %v5638_v12 }
 0x415   : > { %v5502_v35 = vrot.slane %v5232_v48, %v11319_v20 }
 0x417   : > { %v5235_v15 = vpop.xlane.xlu0 %5234  ;;  %v5503_v14 = vsel %vm5376_vm7, %v5502_v35, %v5498_v59 }
 0x418   : > { %v5238_v17 = vpop.xlane.xlu1 %5237  ;;  %v5507_v38 = vrot.slane %v5235_v15, %v11316_v32  ;;  %v5640_v51 = vsel %vm5631_vm15, %v5503_v14, %v5639_v41 }
 0x419   : > { %v5511_v29 = vrot.slane %v5238_v17, %v11319_v20 }
 0x41b   : > { %v5277_v18 = vpop.xlane.xlu0 %5276  ;;  %v5512_v2 = vsel %vm5376_vm7, %v5511_v29, %v5507_v38 }
 0x41c   : > { %v5280_v33 = vpop.xlane.xlu1 %5279  ;;  %v5641_v54 = vsel %vm5633_vm2, %v5512_v2, %v5640_v51  ;;  %v5570_v5 = vrot.slane %v5277_v18, %v11316_v32 }
 0x41d   : > { %v5659_v27 = vsel %vm225_vm0, %v5641_v54, 0.0  ;;  %v5574_v25 = vrot.slane %v5280_v33, %v11319_v20 }
 0x41e   : > { %5660 = vadd.xlane.f32.xlu1 %v5659_v27 }
 0x41f   : > { %v5253_v13 = vpop.xlane.xlu0 %5252  ;;  %v5575_v59 = vsel %vm5376_vm7, %v5574_v25, %v5570_v5 }
 0x420   : > { %v5256_v0 = vpop.xlane.xlu1 %5255  ;;  %v5534_v7 = vrot.slane %v5253_v13, %v11316_v32 }
 0x421   : > { %v5538_v10 = vrot.slane %v5256_v0, %v11319_v20 }
 0x423   : > { %v5259_v11 = vpop.xlane.xlu0 %5258  ;;  %v5539_v23 = vsel %vm5376_vm7, %v5538_v10, %v5534_v7 }
 0x424   : > { %v5262_v57 = vpop.xlane.xlu1 %5261  ;;  %v5543_v44 = vrot.slane %v5259_v11, %v11316_v32  ;;  %v5643_v26 = vsel %vm5623_vm9, %v5539_v23, %v5642_v16 }
 0x425   : > { %v5547_v46 = vrot.slane %v5262_v57, %v11319_v20 }
 0x427   : > { %v5265_v60 = vpop.xlane.xlu0 %5264  ;;  %v5548_v4 = vsel %vm5376_vm7, %v5547_v46, %v5543_v44 }
 0x428   : > { %v5268_v19 = vpop.xlane.xlu1 %5267  ;;  %v5552_v39 = vrot.slane %v5265_v60, %v11316_v32  ;;  %v5644_v58 = vsel %vm5625_vm12, %v5548_v4, %v5643_v26 }
 0x429   : > { %v5556_v21 = vrot.slane %v5268_v19, %v11319_v20 }
 0x42b   : > { %v5271_v28 = vpop.xlane.xlu0 %5270  ;;  %v5557_v6 = vsel %vm5376_vm7, %v5556_v21, %v5552_v39 }
 0x42c   : > { %v5274_v36 = vpop.xlane.xlu1 %5273  ;;  %v5561_v43 = vrot.slane %v5271_v28, %v11316_v32  ;;  %v5645_v24 = vsel %vm5627_vm13, %v5557_v6, %v5644_v58 }
 0x42d   : > { %v5565_v1 = vrot.slane %v5274_v36, %v11319_v20 }
 0x42f   : > { %v5289_v40 = vpop.xlane.xlu0 %5288  ;;  %v5566_v62 = vsel %vm5376_vm7, %v5565_v1, %v5561_v43 }
 0x430   : > { %v5292_v52 = vpop.xlane.xlu1 %5291  ;;  %v5646_v22 = vsel %vm5629_vm14, %v5566_v62, %v5645_v24  ;;  %v5588_v15 = vrot.slane %v5289_v40, %v11316_v32 }
 0x431   : > { %v5592_v48 = vrot.slane %v5292_v52, %v11319_v20  ;;  %v5647_v38 = vsel %vm5631_vm15, %v5575_v59, %v5646_v22 }
 0x433   : > { %v5295_v9 = vpop.xlane.xlu0 %5294  ;;  %v5593_v2 = vsel %vm5376_vm7, %v5592_v48, %v5588_v15 }
 0x434   : > { %v5298_v37 = vpop.xlane.xlu1 %5297  ;;  %v5597_v50 = vrot.slane %v5295_v9, %v11316_v32 }
 0x435   : > { %v5601_v34 = vrot.slane %v5298_v37, %v11319_v20 }
 0x437   : > { %v5301_v49 = vpop.xlane.xlu0 %5300  ;;  %v5602_v14 = vsel %vm5376_vm7, %v5601_v34, %v5597_v50 }
 0x438   : > { %v5304_v56 = vpop.xlane.xlu1 %5303  ;;  %v5606_v55 = vrot.slane %v5301_v49, %v11316_v32  ;;  %v5649_v27 = vsel %vm5621_vm8, %v5602_v14, %v5593_v2 }
 0x439   : > { %v5610_v61 = vrot.slane %v5304_v56, %v11319_v20 }
 0x43b   : > { %v5283_v3 = vpop.xlane.xlu0 %5282  ;;  %v5611_v29 = vsel %vm5376_vm7, %v5610_v61, %v5606_v55 }
 0x43c   : > { %v5286_v53 = vpop.xlane.xlu1 %5285  ;;  %v5579_v35 = vrot.slane %v5283_v3, %v11316_v32  ;;  %v5650_v0 = vsel %vm5623_vm9, %v5611_v29, %v5649_v27 }
 0x43d   : > { %v5583_v8 = vrot.slane %v5286_v53, %v11319_v20 }
 0x43f   : > { %v5307_v17 = vpop.xlane.xlu0 %5306  ;;  %v5584_v12 = vsel %vm5376_vm7, %v5583_v8, %v5579_v35 }
 0x440   : > { %v5310_v41 = vpop.xlane.xlu1 %5309  ;;  %v5648_v18 = vsel %vm5633_vm2, %v5584_v12, %v5647_v38  ;;  %v5615_v51 = vrot.slane %v5307_v17, %v11316_v32 }
 0x441   : > { %v5619_v33 = vrot.slane %v5310_v41, %v11319_v20  ;;  %v5662_v54 = vsel %vm225_vm0, %v5648_v18, 0.0  ;;  %vm5673_vm0 = vcmask 3072  }
 0x442   : > { %5663 = vadd.xlane.f32.xlu0 %v5662_v54 }
 0x443   : > { %v5620_v13 = vsel %vm5376_vm7, %v5619_v33, %v5615_v51 }
 0x444   : > { %v5651_v11 = vsel %vm5625_vm12, %v5620_v13, %v5650_v0  ;;  %v5658_v60 = vpop.xlane.xlu0 %5657 }
 0x445   : > { %v5666_v57 = vsel %vm5665_vm3, %v5651_v11, 0.0  ;;  %5670 = vst.msk [vmem:[%s218_s15] sm:$0xff] %vm5669_vm4, %v5658_v60 }
 0x446   : > { %5667 = vadd.xlane.f32.xlu1 %v5666_v57 }
 0x4ab   : > { %v5661_v32 = vpop.xlane.xlu1 %5660 }
 0x4ac   : > { %5671 = vst.msk [vmem:[%s218_s15 + $0x8] sm:$0xff] %vm5669_vm4, %v5661_v32 }
 0x4cf   : > { %v5664_v20 = vpop.xlane.xlu0 %5663 }
 0x4d0   : > { %5672 = vst.msk [vmem:[%s218_s15 + $0x10] sm:$0xff] %vm5669_vm4, %v5664_v20 }
 0x4d3   : > { %v5668_v19 = vpop.xlane.xlu1 %5667 }
 0x4d4   : > { %5674 = vst.msk [vmem:[%s218_s15 + $0x18] sm:$0xf] %vm5673_vm0, %v5668_v19 }
 0x4d5   : > { %6957 = shalt.err (!%p6954_p11)
}
 0x4d6   : > { %s6958_s27 = scalar_lea.hbm %s11476_s16, 512  ;;  %s6962_s25 = scalar_lea.hbm %s11527_s2, 1024 }
 0x4d7   : > { %p6959_p1 = scmp.ne.s32.totalorder %s11476_s16, %s6958_s27  ;;  %p6963_p5 = scmp.lt.u32.totalorder %s11476_s16, %s11527_s2 }
 0x4d8   : > { %p6964_p4 = scmp.lt.u32.totalorder %s6962_s25, %s6958_s27  ;;  %p6966_p0 = scmp.lt.u32.totalorder %s6958_s27, %s11476_s16 }
 0x4d9   : > { %p6960_p6 = pnand %p6959_p1, %p12606_p3 }
 0x4da   : > { %p6965_p8 = por %p6964_p4, %p6963_p5 }
 0x4db   : > { %p6961_p2 = pneg %p6960_p6 }
 0x4dc   : > { %p6967_p12 = por %p6966_p0, %p6965_p8 }
 0x4de   : > { %p6968_p13 = pnand %p6967_p12, %p6961_p2 }
 0x4e0   : > { %6971 = shalt.err (!%p6968_p13)
}
 0x4e1   : > { %s7040_s21 = smov 128   ;;  %s7041_s15 = smov 8  }
 0x4e2   : > { %6578 = dma.vmem_to_hbm [thread:$0]  (%p12606_p3), %s11471_s19, 512, %s11476_s16, %s5676_s7, %s7040_s21, %s7040_s21, %s7041_s15  }
 0x4e3 PF: > { %s5704_s26 = sand.u32 1, %s7010_s9   ;;  %p12607_p7 = scmp.ne.s32.totalorder %s11887_s24, 0 }
 0x4e4   : > { %p12608_p10 = scmp.ge.s32.totalorder %s7030_s14, 2  ;;  %s5705_s30 = scalar_lea.sflag [#allocation5], %s5704_s26 }
 0x4e6   : > { %p6588_p9 = pnand %p12608_p10, %p12607_p7 }
 0x4e8   : > { %7005 = dma.done.wait (!%p6588_p9), %s5705_s30, 512  }
 0x4e9   : > { %7007 = vsyncadd (!%p6588_p9), %s5705_s30, 4294966784  ;;  %s21_s14 = sadd.s32 1, %s7030_s14   ;;  %s12609_s9 = smov %s7014_s10 }
 0x4ea   : > { %p18_p11 = scmp.ge.s32.totalorder %s21_s14, 4   ;;  %s12610_s10 = smov %s7018_s11 }
 0x4eb   : > { %s12611_s11 = smov %s7113_s23  ;;  %s12612_s12 = smov %s7026_s13 }
 0x4ec   : > { %s12613_s13 = smov %s12615_s17  ;;  %20 = sbr.rel (!%p18_p11) target bundleno = 8 (0x8), region = 166 }
 0x4f3   :  { %5710 = vsyncpa [#allocation4], 1 }
 0x4f4   :  { %5712 = vsyncpa [#allocation4 + $0x1], 1 }
 0x4f5   :  { %5713 = vsyncpa [#allocation7], 1 }
 0x4f6   :  { %5715 = vsyncpa [#allocation7 + $0x1], 1 }
 0x4f7   :  { %5716 = vsyncpa [#allocation5], 1 }
 0x4f8   :  { %5718 = vsyncpa [#allocation5 + $0x1], 1 }

</bundles_post_ra>
